<compile_context>
chip_gen: v7x
topology: tpu7x:2x2x1
jax: 0.10.0
libtpu: 0.0.40
codegen_flags: <defaults>
</compile_context>

<pallas_src>
import jax
import jax.numpy as jnp
from jax.experimental import pallas as pl
from jax.experimental.pallas import tpu as pltpu


# ----------------------------------------------------------------------------
# Wrapper-side helpers (cheap XLA ops)
# ----------------------------------------------------------------------------
def bilinear_up2(x):
    """2x bilinear upsample (NHWC), exactly matching
    F.interpolate(scale_factor=2, mode='bilinear', align_corners=False)."""
    def up_axis(a, axis):
        n = a.shape[axis]
        idx = jnp.arange(n)
        prev = jnp.take(a, jnp.maximum(idx - 1, 0), axis=axis)
        nxt = jnp.take(a, jnp.minimum(idx + 1, n - 1), axis=axis)
        even = 0.25 * prev + 0.75 * a          # out[2i]
        odd = 0.75 * a + 0.25 * nxt            # out[2i+1]
        out = jnp.stack([even, odd], axis=axis + 1)
        new_shape = list(a.shape)
        new_shape[axis] = 2 * n
        return out.reshape(new_shape)

    return up_axis(up_axis(x, 1), 2)           # H then W (NHWC)


# ----------------------------------------------------------------------------
# The fused ETA Pallas kernel
# ----------------------------------------------------------------------------
def eta_pallas(x_up, edge_up, tex_up, params):
    """x_up: (B,H2,W2,C) f32; edge_up/tex_up: (B,H2,W2,1) f32 (already sigmoided
    and upsampled).  Returns (B, Cout, H2*W2) f32 (lane-dense, NCHW after reshape)."""
    B, H2, W2, C = x_up.shape
    Cr = params["ca1_e"].shape[0]
    Cout = params["w_cat"].shape[2]
    HW = H2 * W2
    C2 = 2 * C

    def channel_mlp(v, w1, w2):
        # v: (1, C).  w1 = fc1.weight (Cr, C);  w2 = fc2.weight^T (Cr, C).
        h = jnp.maximum(jnp.sum(w1 * v, axis=1, keepdims=True), 0.0)    # (Cr, 1)
        return jnp.sum(w2 * h, axis=0, keepdims=True)                   # (1, C)

    def kernel(x_ref, e_ref, t_ref,
               ca1e_ref, ca2e_ref, sae_ref,
               ca1t_ref, ca2t_ref, sat_ref,
               w_ref, bns_ref, bnb_ref,
               o_ref,
               xpad, sa_a, sa_b):

        # Zero the padded scratch slabs.  Interiors are fully rewritten below, so
        # only the halos matter — but this must run EVERY grid step because the
        # batch axis is "parallel" (each TensorCore owns its own scratch on v7x).
        xpad[...] = jnp.zeros_like(xpad)
        sa_a[...] = jnp.zeros_like(sa_a)
        sa_b[...] = jnp.zeros_like(sa_b)

        def cbam(x3, ca_w1, ca_w2, sa_w):
            # ---------------- channel attention ----------------
            xf = x3.reshape(HW, C)
            avg = jnp.mean(xf, axis=0, keepdims=True)                   # (1, C)
            mx = jnp.max(xf, axis=0, keepdims=True)                     # (1, C)
            ca = jax.nn.sigmoid(channel_mlp(avg, ca_w1, ca_w2)
                                + channel_mlp(mx, ca_w1, ca_w2))        # (1, C)
            x3 = x3 * ca.reshape(1, 1, C)
            # ------- spatial attention: 7x7 conv, pad 3, lane-major planes -------
            sa_a[3:3 + H2, 3:3 + W2] = jnp.mean(x3, axis=2)             # avg plane
            sa_b[3:3 + H2, 3:3 + W2] = jnp.max(x3, axis=2)              # max plane
            s = jnp.zeros((H2, W2), jnp.float32)
            for i in range(7):
                for j in range(7):
                    tap = i * 7 + j
                    s = (s
                         + sa_w[tap] * sa_a[i:i + H2, j:j + W2]
                         + sa_w[49 + tap] * sa_b[i:i + H2, j:j + W2])
            return x3 * jax.nn.sigmoid(s)[:, :, None]

        x = x_ref[0]                                   # (H2, W2, C)
        e = e_ref[0]                                   # (H2, W2, 1)
        tx = t_ref[0]                                  # (H2, W2, 1)

        x_edge = cbam(x * e + x, ca1e_ref[...], ca2e_ref[...], sae_ref)
        x_tex = cbam(x * tx + x, ca1t_ref[...], ca2t_ref[...], sat_ref)

        # implicit torch.cat((x_texture, x_edge), dim=1) into the zero-padded slab
        xpad[1:1 + H2, 1:1 + W2, 0:C] = x_tex
        xpad[1:1 + H2, 1:1 + W2, C:C2] = x_edge

        # 3x3 conv as 9 accumulating MXU matmuls (no im2col patch materialized)
        acc = jnp.zeros((HW, Cout), jnp.float32)
        for i in range(3):
            for j in range(3):
                tap = i * 3 + j
                lhs = xpad[i:i + H2, j:j + W2, :].reshape(HW, C2)
                acc = acc + jnp.dot(lhs.astype(jnp.bfloat16), w_ref[tap],
                                    preferred_element_type=jnp.float32)

        # folded BN + ReLU epilogue in f32, lane-dense (Cout, HW) output store
        acc_t = acc.T                                                   # (Cout, HW)
        o_ref[0] = jnp.maximum(acc_t * bns_ref[...] + bnb_ref[...], 0.0)

    full2 = lambda b: (0, 0)
    return pl.pallas_call(
        kernel,
        out_shape=jax.ShapeDtypeStruct((B, Cout, HW), jnp.float32),
        grid=(B,),
        in_specs=[
            pl.BlockSpec((1, H2, W2, C), lambda b: (b, 0, 0, 0)),
            pl.BlockSpec((1, H2, W2, 1), lambda b: (b, 0, 0, 0)),
            pl.BlockSpec((1, H2, W2, 1), lambda b: (b, 0, 0, 0)),
            pl.BlockSpec((Cr, C), full2),                               # CA fc1 (edge)
            pl.BlockSpec((Cr, C), full2),                               # CA fc2^T (edge)
            pl.BlockSpec(memory_space=pltpu.MemorySpace.SMEM),          # SA 7x7 w (edge)
            pl.BlockSpec((Cr, C), full2),                               # CA fc1 (texture)
            pl.BlockSpec((Cr, C), full2),                               # CA fc2^T (texture)
            pl.BlockSpec(memory_space=pltpu.MemorySpace.SMEM),          # SA 7x7 w (texture)
            pl.BlockSpec((9, C2, Cout), lambda b: (0, 0, 0)),           # conv w per tap (bf16)
            pl.BlockSpec((Cout, 1), full2),                             # folded BN scale
            pl.BlockSpec((Cout, 1), full2),                             # folded BN shift
        ],
        out_specs=pl.BlockSpec((1, Cout, HW), lambda b: (b, 0, 0)),
        scratch_shapes=[
            pltpu.VMEM((H2 + 2, W2 + 2, C2), jnp.float32),   # concat + 3x3 pad slab
            pltpu.VMEM((H2 + 6, W2 + 6), jnp.float32),       # SA avg plane (pad 3)
            pltpu.VMEM((H2 + 6, W2 + 6), jnp.float32),       # SA max plane (pad 3)
        ],
        compiler_params=pltpu.CompilerParams(
            dimension_semantics=("parallel",),
            vmem_limit_bytes=48 * 1024 * 1024),
    )(x_up, edge_up, tex_up,
      params["ca1_e"], params["ca2_e"], params["sa_e"],
      params["ca1_t"], params["ca2_t"], params["sa_t"],
      params["w_cat"], params["bn_scale"], params["bn_shift"])


# ----------------------------------------------------------------------------
# Parameter construction (inference-mode, BatchNorm folded)
# ----------------------------------------------------------------------------
def init_eta_params(key, in_ch, out_ch, ratio=16):
    C = in_ch
    Cr = max(in_ch // ratio, 1)
    ks = jax.random.split(key, 11)

    def cbam_params(k1, k2, k3):
        ca_w1 = 0.3 * jax.random.normal(k1, (Cr, C), jnp.float32)   # fc1.weight
        ca_w2 = 0.3 * jax.random.normal(k2, (Cr, C), jnp.float32)   # fc2.weight^T
        # SA conv weight (1,2,7,7) flattened as [avg taps(49), max taps(49)]
        sa_w = 0.3 * jax.random.normal(k3, (98,), jnp.float32)
        return ca_w1, ca_w2, sa_w

    ca1e, ca2e, sawe = cbam_params(ks[0], ks[1], ks[2])
    ca1t, ca2t, sawt = cbam_params(ks[3], ks[4], ks[5])

    # cat = ConvBNR(2*C -> out_ch, 3x3, pad 1, no bias) + BN(inference) + ReLU
    # NOTE: real PyTorch weights are OIHW -> permute to HWIO before this reshape so
    # the tap-major / channel-minor layout matches the in-kernel tap accumulation.
    w_hwio = 0.1 * jax.random.normal(ks[6], (3, 3, 2 * C, out_ch), jnp.float32)
    gamma = 1.0 + 0.1 * jax.random.normal(ks[7], (out_ch,), jnp.float32)
    beta = 0.1 * jax.random.normal(ks[8], (out_ch,), jnp.float32)
    running_mean = 0.1 * jax.random.normal(ks[9], (out_ch,), jnp.float32)
    running_var = 0.5 + jax.random.uniform(ks[10], (out_ch,), jnp.float32)
    eps = 1e-5
    scale = gamma / jnp.sqrt(running_var + eps)
    shift = beta - running_mean * scale

    return {
        "ca1_e": ca1e, "ca2_e": ca2e, "sa_e": sawe,
        "ca1_t": ca1t, "ca2_t": ca2t, "sa_t": sawt,
        # input-channel order of the concat conv is [texture(0..C-1), edge(C..2C-1)]
        "w_cat": w_hwio.reshape(9, 2 * C, out_ch).astype(jnp.bfloat16),
        "bn_scale": scale.reshape(out_ch, 1),
        "bn_shift": shift.reshape(out_ch, 1),
    }


# ----------------------------------------------------------------------------
# ETA.forward (PyTorch-style NCHW in / NCHW out)
# ----------------------------------------------------------------------------
def eta_forward(x_nchw, edge_nchw, tex_nchw, params):
    x = jnp.transpose(x_nchw, (0, 2, 3, 1)).astype(jnp.float32)      # NCHW -> NHWC
    e = jnp.transpose(edge_nchw, (0, 2, 3, 1)).astype(jnp.float32)
    t = jnp.transpose(tex_nchw, (0, 2, 3, 1)).astype(jnp.float32)

    # torch: sigmoid(edge/texture) first, then 2x bilinear upsample of x/edge/texture
    e = bilinear_up2(jax.nn.sigmoid(e))
    t = bilinear_up2(jax.nn.sigmoid(t))
    x = bilinear_up2(x)

    B, H2, W2, _ = x.shape
    Cout = params["w_cat"].shape[2]
    out = eta_pallas(x, e, t, params)                                 # (B, Cout, H2*W2)
    return out.reshape(B, Cout, H2, W2)                               # NCHW (free reshape)


if __name__ == "__main__":
    B, C_in, C_out, H, W = 2, 32, 16, 8, 8
    key = jax.random.PRNGKey(0)
    kx, ke, kt, kp = jax.random.split(key, 4)

    x = jax.random.normal(kx, (B, C_in, H, W), jnp.float32)           # NCHW like PyTorch
    edge = jax.random.normal(ke, (B, 1, H, W), jnp.float32)
    texture = jax.random.normal(kt, (B, 1, H, W), jnp.float32)
    params = init_eta_params(kp, C_in, C_out)

    out = jax.jit(eta_forward)(x, edge, texture, params)
    out = jax.block_until_ready(out)
    assert out.shape == (B, C_out, 2 * H, 2 * W), out.shape
    print("KERNEL_OK")
</pallas_src>

<mosaic_0001>
module attributes {stable_mosaic.version = 11 : i64} {
  func.func @kernel(%arg0: i32, %arg1: memref<1x16x16x32xf32, #tpu.memory_space<vmem>>, %arg2: memref<1x16x16x1xf32, #tpu.memory_space<vmem>>, %arg3: memref<1x16x16x1xf32, #tpu.memory_space<vmem>>, %arg4: memref<2x32xf32, #tpu.memory_space<vmem>>, %arg5: memref<2x32xf32, #tpu.memory_space<vmem>>, %arg6: memref<98xf32, #tpu.memory_space<smem>>, %arg7: memref<2x32xf32, #tpu.memory_space<vmem>>, %arg8: memref<2x32xf32, #tpu.memory_space<vmem>>, %arg9: memref<98xf32, #tpu.memory_space<smem>>, %arg10: memref<9x64x16xbf16, #tpu.memory_space<vmem>>, %arg11: memref<16x1xf32, #tpu.memory_space<vmem>>, %arg12: memref<16x1xf32, #tpu.memory_space<vmem>>, %arg13: memref<1x16x256xf32, #tpu.memory_space<vmem>>, %arg14: memref<18x18x64xf32, #tpu.memory_space<vmem>>, %arg15: memref<22x22xf32, #tpu.memory_space<vmem>>, %arg16: memref<22x22xf32, #tpu.memory_space<vmem>>) attributes {dimension_semantics = [#tpu.dimension_semantics<parallel>], iteration_bounds = array<i64: 2>, scalar_prefetch = 0 : i64, scratch_operands = 3 : i64, tpu.core_type = #tpu.core_type<tc>, window_params = [{transform_indices = @transform_0, window_bounds = array<i64: 1, 16, 16, 32>}, {transform_indices = @transform_1, window_bounds = array<i64: 1, 16, 16, 1>}, {transform_indices = @transform_2, window_bounds = array<i64: 1, 16, 16, 1>}, {pipeline_mode = #tpu.pipeline_mode<synchronous>, transform_indices = @transform_3, window_bounds = array<i64: 2, 32>}, {pipeline_mode = #tpu.pipeline_mode<synchronous>, transform_indices = @transform_4, window_bounds = array<i64: 2, 32>}, {transform_indices = @transform_5, window_bounds = array<i64: 98>}, {pipeline_mode = #tpu.pipeline_mode<synchronous>, transform_indices = @transform_6, window_bounds = array<i64: 2, 32>}, {pipeline_mode = #tpu.pipeline_mode<synchronous>, transform_indices = @transform_7, window_bounds = array<i64: 2, 32>}, {transform_indices = @transform_8, window_bounds = array<i64: 98>}, {pipeline_mode = #tpu.pipeline_mode<synchronous>, transform_indices = @transform_9, window_bounds = array<i64: 9, 64, 16>}, {pipeline_mode = #tpu.pipeline_mode<synchronous>, transform_indices = @transform_10, window_bounds = array<i64: 16, 1>}, {pipeline_mode = #tpu.pipeline_mode<synchronous>, transform_indices = @transform_11, window_bounds = array<i64: 16, 1>}, {transform_indices = @transform_12, window_bounds = array<i64: 1, 16, 256>}]} {
    %cst = arith.constant 0.000000e+00 : f32
    %0 = vector.broadcast %cst : f32 to vector<18x18x64xf32>
    %c0 = arith.constant 0 : index
    %c0_0 = arith.constant 0 : index
    %c0_1 = arith.constant 0 : index
    %1 = vector.load %arg14[%c0, %c0_0, %c0_1] : memref<18x18x64xf32, #tpu.memory_space<vmem>>, vector<18x18x64xf32>
    tpu.vector_store %arg14[%c0, %c0_0, %c0_1], %0 {strides = array<i32>} : memref<18x18x64xf32, #tpu.memory_space<vmem>>, vector<18x18x64xf32>,
    %cst_2 = arith.constant 0.000000e+00 : f32
    %2 = vector.broadcast %cst_2 : f32 to vector<22x22xf32>
    %c0_3 = arith.constant 0 : index
    %c0_4 = arith.constant 0 : index
    %3 = vector.load %arg15[%c0_3, %c0_4] : memref<22x22xf32, #tpu.memory_space<vmem>>, vector<22x22xf32>
    tpu.vector_store %arg15[%c0_3, %c0_4], %2 {strides = array<i32>} : memref<22x22xf32, #tpu.memory_space<vmem>>, vector<22x22xf32>,
    %cst_5 = arith.constant 0.000000e+00 : f32
    %4 = vector.broadcast %cst_5 : f32 to vector<22x22xf32>
    %c0_6 = arith.constant 0 : index
    %c0_7 = arith.constant 0 : index
    %5 = vector.load %arg16[%c0_6, %c0_7] : memref<22x22xf32, #tpu.memory_space<vmem>>, vector<22x22xf32>
    tpu.vector_store %arg16[%c0_6, %c0_7], %4 {strides = array<i32>} : memref<22x22xf32, #tpu.memory_space<vmem>>, vector<22x22xf32>,
    %c0_8 = arith.constant 0 : index
    %c0_9 = arith.constant 0 : index
    %c0_10 = arith.constant 0 : index
    %c0_11 = arith.constant 0 : index
    %6 = vector.load %arg1[%c0_8, %c0_9, %c0_10, %c0_11] : memref<1x16x16x32xf32, #tpu.memory_space<vmem>>, vector<1x16x16x32xf32>
    %7 = vector.shape_cast %6 : vector<1x16x16x32xf32> to vector<16x16x32xf32>
    %c0_12 = arith.constant 0 : index
    %c0_13 = arith.constant 0 : index
    %c0_14 = arith.constant 0 : index
    %c0_15 = arith.constant 0 : index
    %8 = vector.load %arg2[%c0_12, %c0_13, %c0_14, %c0_15] : memref<1x16x16x1xf32, #tpu.memory_space<vmem>>, vector<1x16x16x1xf32>
    %9 = vector.shape_cast %8 : vector<1x16x16x1xf32> to vector<16x16x1xf32>
    %c0_16 = arith.constant 0 : index
    %c0_17 = arith.constant 0 : index
    %c0_18 = arith.constant 0 : index
    %c0_19 = arith.constant 0 : index
    %10 = vector.load %arg3[%c0_16, %c0_17, %c0_18, %c0_19] : memref<1x16x16x1xf32, #tpu.memory_space<vmem>>, vector<1x16x16x1xf32>
    %11 = vector.shape_cast %10 : vector<1x16x16x1xf32> to vector<16x16x1xf32>
    %12 = vector.broadcast %9 : vector<16x16x1xf32> to vector<16x16x32xf32>
    %13 = arith.mulf %7, %12 : vector<16x16x32xf32>
    %14 = arith.addf %13, %7 : vector<16x16x32xf32>
    %c0_20 = arith.constant 0 : index
    %c0_21 = arith.constant 0 : index
    %15 = vector.load %arg4[%c0_20, %c0_21] : memref<2x32xf32, #tpu.memory_space<vmem>>, vector<2x32xf32>
    %c0_22 = arith.constant 0 : index
    %c0_23 = arith.constant 0 : index
    %16 = vector.load %arg5[%c0_22, %c0_23] : memref<2x32xf32, #tpu.memory_space<vmem>>, vector<2x32xf32>
    %17 = vector.shape_cast %14 : vector<16x16x32xf32> to vector<256x32xf32>
    %cst_24 = arith.constant dense<0.000000e+00> : vector<32xf32>
    %18 = vector.multi_reduction <add>, %17, %cst_24 [0] : vector<256x32xf32> to vector<32xf32>
    %19 = vector.shape_cast %18 : vector<32xf32> to vector<1x32xf32>
    %cst_25 = arith.constant 2.560000e+02 : f32
    %20 = vector.broadcast %cst_25 : f32 to vector<1x32xf32>
    %21 = arith.divf %19, %20 : vector<1x32xf32>
    %cst_26 = arith.constant dense<0xFF800000> : vector<32xf32>
    %22 = vector.multi_reduction <maximumf>, %17, %cst_26 [0] : vector<256x32xf32> to vector<32xf32>
    %23 = vector.shape_cast %22 : vector<32xf32> to vector<1x32xf32>
    %24 = vector.broadcast %21 : vector<1x32xf32> to vector<2x32xf32>
    %25 = arith.mulf %15, %24 : vector<2x32xf32>
    %cst_27 = arith.constant dense<0.000000e+00> : vector<2xf32>
    %26 = vector.multi_reduction <add>, %25, %cst_27 [1] : vector<2x32xf32> to vector<2xf32>
    %27 = vector.shape_cast %26 : vector<2xf32> to vector<2x1xf32>
    %cst_28 = arith.constant 0.000000e+00 : f32
    %28 = vector.broadcast %cst_28 : f32 to vector<2x1xf32>
    %29 = arith.maximumf %27, %28 : vector<2x1xf32>
    %30 = vector.broadcast %29 : vector<2x1xf32> to vector<2x32xf32>
    %31 = arith.mulf %16, %30 : vector<2x32xf32>
    %cst_29 = arith.constant dense<0.000000e+00> : vector<32xf32>
    %32 = vector.multi_reduction <add>, %31, %cst_29 [0] : vector<2x32xf32> to vector<32xf32>
    %33 = vector.shape_cast %32 : vector<32xf32> to vector<1x32xf32>
    %34 = vector.broadcast %23 : vector<1x32xf32> to vector<2x32xf32>
    %35 = arith.mulf %15, %34 : vector<2x32xf32>
    %cst_30 = arith.constant dense<0.000000e+00> : vector<2xf32>
    %36 = vector.multi_reduction <add>, %35, %cst_30 [1] : vector<2x32xf32> to vector<2xf32>
    %37 = vector.shape_cast %36 : vector<2xf32> to vector<2x1xf32>
    %cst_31 = arith.constant 0.000000e+00 : f32
    %38 = vector.broadcast %cst_31 : f32 to vector<2x1xf32>
    %39 = arith.maximumf %37, %38 : vector<2x1xf32>
    %40 = vector.broadcast %39 : vector<2x1xf32> to vector<2x32xf32>
    %41 = arith.mulf %16, %40 : vector<2x32xf32>
    %cst_32 = arith.constant dense<0.000000e+00> : vector<32xf32>
    %42 = vector.multi_reduction <add>, %41, %cst_32 [0] : vector<2x32xf32> to vector<32xf32>
    %43 = vector.shape_cast %42 : vector<32xf32> to vector<1x32xf32>
    %44 = arith.addf %33, %43 : vector<1x32xf32>
    %45 = arith.negf %44 : vector<1x32xf32>
    %46 = math.exp %45 : vector<1x32xf32>
    %cst_33 = arith.constant 1.000000e+00 : f32
    %47 = vector.broadcast %cst_33 : f32 to vector<1x32xf32>
    %48 = arith.addf %47, %46 : vector<1x32xf32>
    %49 = arith.divf %47, %48 : vector<1x32xf32>
    %50 = vector.shape_cast %49 : vector<1x32xf32> to vector<1x1x32xf32>
    %51 = vector.broadcast %50 : vector<1x1x32xf32> to vector<16x16x32xf32>
    %52 = arith.mulf %14, %51 : vector<16x16x32xf32>
    %cst_34 = arith.constant dense<0.000000e+00> : vector<16x16xf32>
    %53 = vector.multi_reduction <add>, %52, %cst_34 [2] : vector<16x16x32xf32> to vector<16x16xf32>
    %cst_35 = arith.constant 3.200000e+01 : f32
    %54 = vector.broadcast %cst_35 : f32 to vector<16x16xf32>
    %55 = arith.divf %53, %54 : vector<16x16xf32>
    %c3 = arith.constant 3 : index
    %c3_36 = arith.constant 3 : index
    %56 = vector.load %arg15[%c3, %c3_36] : memref<22x22xf32, #tpu.memory_space<vmem>>, vector<16x16xf32>
    tpu.vector_store %arg15[%c3, %c3_36], %55 {strides = array<i32>} : memref<22x22xf32, #tpu.memory_space<vmem>>, vector<16x16xf32>,
    %cst_37 = arith.constant dense<0xFF800000> : vector<16x16xf32>
    %57 = vector.multi_reduction <maximumf>, %52, %cst_37 [2] : vector<16x16x32xf32> to vector<16x16xf32>
    %c3_38 = arith.constant 3 : index
    %c3_39 = arith.constant 3 : index
    %58 = vector.load %arg16[%c3_38, %c3_39] : memref<22x22xf32, #tpu.memory_space<vmem>>, vector<16x16xf32>
    tpu.vector_store %arg16[%c3_38, %c3_39], %57 {strides = array<i32>} : memref<22x22xf32, #tpu.memory_space<vmem>>, vector<16x16xf32>,
    %cst_40 = arith.constant 0.000000e+00 : f32
    %59 = vector.broadcast %cst_40 : f32 to vector<16x16xf32>
    %c0_41 = arith.constant 0 : index
    %60 = memref.load %arg6[%c0_41] : memref<98xf32, #tpu.memory_space<smem>>
    %c0_42 = arith.constant 0 : index
    %c0_43 = arith.constant 0 : index
    %61 = vector.load %arg15[%c0_42, %c0_43] : memref<22x22xf32, #tpu.memory_space<vmem>>, vector<16x16xf32>
    %62 = vector.broadcast %60 : f32 to vector<16x16xf32>
    %63 = arith.mulf %62, %61 : vector<16x16xf32>
    %64 = arith.addf %59, %63 : vector<16x16xf32>
    %c49 = arith.constant 49 : index
    %65 = memref.load %arg6[%c49] : memref<98xf32, #tpu.memory_space<smem>>
    %c0_44 = arith.constant 0 : index
    %c0_45 = arith.constant 0 : index
    %66 = vector.load %arg16[%c0_44, %c0_45] : memref<22x22xf32, #tpu.memory_space<vmem>>, vector<16x16xf32>
    %67 = vector.broadcast %65 : f32 to vector<16x16xf32>
    %68 = arith.mulf %67, %66 : vector<16x16xf32>
    %69 = arith.addf %64, %68 : vector<16x16xf32>
    %c1 = arith.constant 1 : index
    %70 = memref.load %arg6[%c1] : memref<98xf32, #tpu.memory_space<smem>>
    %c0_46 = arith.constant 0 : index
    %c1_47 = arith.constant 1 : index
    %71 = vector.load %arg15[%c0_46, %c1_47] : memref<22x22xf32, #tpu.memory_space<vmem>>, vector<16x16xf32>
    %72 = vector.broadcast %70 : f32 to vector<16x16xf32>
    %73 = arith.mulf %72, %71 : vector<16x16xf32>
    %74 = arith.addf %69, %73 : vector<16x16xf32>
    %c50 = arith.constant 50 : index
    %75 = memref.load %arg6[%c50] : memref<98xf32, #tpu.memory_space<smem>>
    %c0_48 = arith.constant 0 : index
    %c1_49 = arith.constant 1 : index
    %76 = vector.load %arg16[%c0_48, %c1_49] : memref<22x22xf32, #tpu.memory_space<vmem>>, vector<16x16xf32>
    %77 = vector.broadcast %75 : f32 to vector<16x16xf32>
    %78 = arith.mulf %77, %76 : vector<16x16xf32>
    %79 = arith.addf %74, %78 : vector<16x16xf32>
    %c2 = arith.constant 2 : index
    %80 = memref.load %arg6[%c2] : memref<98xf32, #tpu.memory_space<smem>>
    %c0_50 = arith.constant 0 : index
    %c2_51 = arith.constant 2 : index
    %81 = vector.load %arg15[%c0_50, %c2_51] : memref<22x22xf32, #tpu.memory_space<vmem>>, vector<16x16xf32>
    %82 = vector.broadcast %80 : f32 to vector<16x16xf32>
    %83 = arith.mulf %82, %81 : vector<16x16xf32>
    %84 = arith.addf %79, %83 : vector<16x16xf32>
    %c51 = arith.constant 51 : index
    %85 = memref.load %arg6[%c51] : memref<98xf32, #tpu.memory_space<smem>>
    %c0_52 = arith.constant 0 : index
    %c2_53 = arith.constant 2 : index
    %86 = vector.load %arg16[%c0_52, %c2_53] : memref<22x22xf32, #tpu.memory_space<vmem>>, vector<16x16xf32>
    %87 = vector.broadcast %85 : f32 to vector<16x16xf32>
    %88 = arith.mulf %87, %86 : vector<16x16xf32>
    %89 = arith.addf %84, %88 : vector<16x16xf32>
    %c3_54 = arith.constant 3 : index
    %90 = memref.load %arg6[%c3_54] : memref<98xf32, #tpu.memory_space<smem>>
    %c0_55 = arith.constant 0 : index
    %c3_56 = arith.constant 3 : index
    %91 = vector.load %arg15[%c0_55, %c3_56] : memref<22x22xf32, #tpu.memory_space<vmem>>, vector<16x16xf32>
    %92 = vector.broadcast %90 : f32 to vector<16x16xf32>
    %93 = arith.mulf %92, %91 : vector<16x16xf32>
    %94 = arith.addf %89, %93 : vector<16x16xf32>
    %c52 = arith.constant 52 : index
    %95 = memref.load %arg6[%c52] : memref<98xf32, #tpu.memory_space<smem>>
    %c0_57 = arith.constant 0 : index
    %c3_58 = arith.constant 3 : index
    %96 = vector.load %arg16[%c0_57, %c3_58] : memref<22x22xf32, #tpu.memory_space<vmem>>, vector<16x16xf32>
    %97 = vector.broadcast %95 : f32 to vector<16x16xf32>
    %98 = arith.mulf %97, %96 : vector<16x16xf32>
    %99 = arith.addf %94, %98 : vector<16x16xf32>
    %c4 = arith.constant 4 : index
    %100 = memref.load %arg6[%c4] : memref<98xf32, #tpu.memory_space<smem>>
    %c0_59 = arith.constant 0 : index
    %c4_60 = arith.constant 4 : index
    %101 = vector.load %arg15[%c0_59, %c4_60] : memref<22x22xf32, #tpu.memory_space<vmem>>, vector<16x16xf32>
    %102 = vector.broadcast %100 : f32 to vector<16x16xf32>
    %103 = arith.mulf %102, %101 : vector<16x16xf32>
    %104 = arith.addf %99, %103 : vector<16x16xf32>
    %c53 = arith.constant 53 : index
    %105 = memref.load %arg6[%c53] : memref<98xf32, #tpu.memory_space<smem>>
    %c0_61 = arith.constant 0 : index
    %c4_62 = arith.constant 4 : index
    %106 = vector.load %arg16[%c0_61, %c4_62] : memref<22x22xf32, #tpu.memory_space<vmem>>, vector<16x16xf32>
    %107 = vector.broadcast %105 : f32 to vector<16x16xf32>
    %108 = arith.mulf %107, %106 : vector<16x16xf32>
    %109 = arith.addf %104, %108 : vector<16x16xf32>
    %c5 = arith.constant 5 : index
    %110 = memref.load %arg6[%c5] : memref<98xf32, #tpu.memory_space<smem>>
    %c0_63 = arith.constant 0 : index
    %c5_64 = arith.constant 5 : index
    %111 = vector.load %arg15[%c0_63, %c5_64] : memref<22x22xf32, #tpu.memory_space<vmem>>, vector<16x16xf32>
    %112 = vector.broadcast %110 : f32 to vector<16x16xf32>
    %113 = arith.mulf %112, %111 : vector<16x16xf32>
    %114 = arith.addf %109, %113 : vector<16x16xf32>
    %c54 = arith.constant 54 : index
    %115 = memref.load %arg6[%c54] : memref<98xf32, #tpu.memory_space<smem>>
    %c0_65 = arith.constant 0 : index
    %c5_66 = arith.constant 5 : index
    %116 = vector.load %arg16[%c0_65, %c5_66] : memref<22x22xf32, #tpu.memory_space<vmem>>, vector<16x16xf32>
    %117 = vector.broadcast %115 : f32 to vector<16x16xf32>
    %118 = arith.mulf %117, %116 : vector<16x16xf32>
    %119 = arith.addf %114, %118 : vector<16x16xf32>
    %c6 = arith.constant 6 : index
    %120 = memref.load %arg6[%c6] : memref<98xf32, #tpu.memory_space<smem>>
    %c0_67 = arith.constant 0 : index
    %c6_68 = arith.constant 6 : index
    %121 = vector.load %arg15[%c0_67, %c6_68] : memref<22x22xf32, #tpu.memory_space<vmem>>, vector<16x16xf32>
    %122 = vector.broadcast %120 : f32 to vector<16x16xf32>
    %123 = arith.mulf %122, %121 : vector<16x16xf32>
    %124 = arith.addf %119, %123 : vector<16x16xf32>
    %c55 = arith.constant 55 : index
    %125 = memref.load %arg6[%c55] : memref<98xf32, #tpu.memory_space<smem>>
    %c0_69 = arith.constant 0 : index
    %c6_70 = arith.constant 6 : index
    %126 = vector.load %arg16[%c0_69, %c6_70] : memref<22x22xf32, #tpu.memory_space<vmem>>, vector<16x16xf32>
    %127 = vector.broadcast %125 : f32 to vector<16x16xf32>
    %128 = arith.mulf %127, %126 : vector<16x16xf32>
    %129 = arith.addf %124, %128 : vector<16x16xf32>
    %c7 = arith.constant 7 : index
    %130 = memref.load %arg6[%c7] : memref<98xf32, #tpu.memory_space<smem>>
    %c1_71 = arith.constant 1 : index
    %c0_72 = arith.constant 0 : index
    %131 = vector.load %arg15[%c1_71, %c0_72] : memref<22x22xf32, #tpu.memory_space<vmem>>, vector<16x16xf32>
    %132 = vector.broadcast %130 : f32 to vector<16x16xf32>
    %133 = arith.mulf %132, %131 : vector<16x16xf32>
    %134 = arith.addf %129, %133 : vector<16x16xf32>
    %c56 = arith.constant 56 : index
    %135 = memref.load %arg6[%c56] : memref<98xf32, #tpu.memory_space<smem>>
    %c1_73 = arith.constant 1 : index
    %c0_74 = arith.constant 0 : index
    %136 = vector.load %arg16[%c1_73, %c0_74] : memref<22x22xf32, #tpu.memory_space<vmem>>, vector<16x16xf32>
    %137 = vector.broadcast %135 : f32 to vector<16x16xf32>
    %138 = arith.mulf %137, %136 : vector<16x16xf32>
    %139 = arith.addf %134, %138 : vector<16x16xf32>
    %c8 = arith.constant 8 : index
    %140 = memref.load %arg6[%c8] : memref<98xf32, #tpu.memory_space<smem>>
    %c1_75 = arith.constant 1 : index
    %c1_76 = arith.constant 1 : index
    %141 = vector.load %arg15[%c1_75, %c1_76] : memref<22x22xf32, #tpu.memory_space<vmem>>, vector<16x16xf32>
    %142 = vector.broadcast %140 : f32 to vector<16x16xf32>
    %143 = arith.mulf %142, %141 : vector<16x16xf32>
    %144 = arith.addf %139, %143 : vector<16x16xf32>
    %c57 = arith.constant 57 : index
    %145 = memref.load %arg6[%c57] : memref<98xf32, #tpu.memory_space<smem>>
    %c1_77 = arith.constant 1 : index
    %c1_78 = arith.constant 1 : index
    %146 = vector.load %arg16[%c1_77, %c1_78] : memref<22x22xf32, #tpu.memory_space<vmem>>, vector<16x16xf32>
    %147 = vector.broadcast %145 : f32 to vector<16x16xf32>
    %148 = arith.mulf %147, %146 : vector<16x16xf32>
    %149 = arith.addf %144, %148 : vector<16x16xf32>
    %c9 = arith.constant 9 : index
    %150 = memref.load %arg6[%c9] : memref<98xf32, #tpu.memory_space<smem>>
    %c1_79 = arith.constant 1 : index
    %c2_80 = arith.constant 2 : index
    %151 = vector.load %arg15[%c1_79, %c2_80] : memref<22x22xf32, #tpu.memory_space<vmem>>, vector<16x16xf32>
    %152 = vector.broadcast %150 : f32 to vector<16x16xf32>
    %153 = arith.mulf %152, %151 : vector<16x16xf32>
    %154 = arith.addf %149, %153 : vector<16x16xf32>
    %c58 = arith.constant 58 : index
    %155 = memref.load %arg6[%c58] : memref<98xf32, #tpu.memory_space<smem>>
    %c1_81 = arith.constant 1 : index
    %c2_82 = arith.constant 2 : index
    %156 = vector.load %arg16[%c1_81, %c2_82] : memref<22x22xf32, #tpu.memory_space<vmem>>, vector<16x16xf32>
    %157 = vector.broadcast %155 : f32 to vector<16x16xf32>
    %158 = arith.mulf %157, %156 : vector<16x16xf32>
    %159 = arith.addf %154, %158 : vector<16x16xf32>
    %c10 = arith.constant 10 : index
    %160 = memref.load %arg6[%c10] : memref<98xf32, #tpu.memory_space<smem>>
    %c1_83 = arith.constant 1 : index
    %c3_84 = arith.constant 3 : index
    %161 = vector.load %arg15[%c1_83, %c3_84] : memref<22x22xf32, #tpu.memory_space<vmem>>, vector<16x16xf32>
    %162 = vector.broadcast %160 : f32 to vector<16x16xf32>
    %163 = arith.mulf %162, %161 : vector<16x16xf32>
    %164 = arith.addf %159, %163 : vector<16x16xf32>
    %c59 = arith.constant 59 : index
    %165 = memref.load %arg6[%c59] : memref<98xf32, #tpu.memory_space<smem>>
    %c1_85 = arith.constant 1 : index
    %c3_86 = arith.constant 3 : index
    %166 = vector.load %arg16[%c1_85, %c3_86] : memref<22x22xf32, #tpu.memory_space<vmem>>, vector<16x16xf32>
    %167 = vector.broadcast %165 : f32 to vector<16x16xf32>
    %168 = arith.mulf %167, %166 : vector<16x16xf32>
    %169 = arith.addf %164, %168 : vector<16x16xf32>
    %c11 = arith.constant 11 : index
    %170 = memref.load %arg6[%c11] : memref<98xf32, #tpu.memory_space<smem>>
    %c1_87 = arith.constant 1 : index
    %c4_88 = arith.constant 4 : index
    %171 = vector.load %arg15[%c1_87, %c4_88] : memref<22x22xf32, #tpu.memory_space<vmem>>, vector<16x16xf32>
    %172 = vector.broadcast %170 : f32 to vector<16x16xf32>
    %173 = arith.mulf %172, %171 : vector<16x16xf32>
    %174 = arith.addf %169, %173 : vector<16x16xf32>
    %c60 = arith.constant 60 : index
    %175 = memref.load %arg6[%c60] : memref<98xf32, #tpu.memory_space<smem>>
    %c1_89 = arith.constant 1 : index
    %c4_90 = arith.constant 4 : index
    %176 = vector.load %arg16[%c1_89, %c4_90] : memref<22x22xf32, #tpu.memory_space<vmem>>, vector<16x16xf32>
    %177 = vector.broadcast %175 : f32 to vector<16x16xf32>
    %178 = arith.mulf %177, %176 : vector<16x16xf32>
    %179 = arith.addf %174, %178 : vector<16x16xf32>
    %c12 = arith.constant 12 : index
    %180 = memref.load %arg6[%c12] : memref<98xf32, #tpu.memory_space<smem>>
    %c1_91 = arith.constant 1 : index
    %c5_92 = arith.constant 5 : index
    %181 = vector.load %arg15[%c1_91, %c5_92] : memref<22x22xf32, #tpu.memory_space<vmem>>, vector<16x16xf32>
    %182 = vector.broadcast %180 : f32 to vector<16x16xf32>
    %183 = arith.mulf %182, %181 : vector<16x16xf32>
    %184 = arith.addf %179, %183 : vector<16x16xf32>
    %c61 = arith.constant 61 : index
    %185 = memref.load %arg6[%c61] : memref<98xf32, #tpu.memory_space<smem>>
    %c1_93 = arith.constant 1 : index
    %c5_94 = arith.constant 5 : index
    %186 = vector.load %arg16[%c1_93, %c5_94] : memref<22x22xf32, #tpu.memory_space<vmem>>, vector<16x16xf32>
    %187 = vector.broadcast %185 : f32 to vector<16x16xf32>
    %188 = arith.mulf %187, %186 : vector<16x16xf32>
    %189 = arith.addf %184, %188 : vector<16x16xf32>
    %c13 = arith.constant 13 : index
    %190 = memref.load %arg6[%c13] : memref<98xf32, #tpu.memory_space<smem>>
    %c1_95 = arith.constant 1 : index
    %c6_96 = arith.constant 6 : index
    %191 = vector.load %arg15[%c1_95, %c6_96] : memref<22x22xf32, #tpu.memory_space<vmem>>, vector<16x16xf32>
    %192 = vector.broadcast %190 : f32 to vector<16x16xf32>
    %193 = arith.mulf %192, %191 : vector<16x16xf32>
    %194 = arith.addf %189, %193 : vector<16x16xf32>
    %c62 = arith.constant 62 : index
    %195 = memref.load %arg6[%c62] : memref<98xf32, #tpu.memory_space<smem>>
    %c1_97 = arith.constant 1 : index
    %c6_98 = arith.constant 6 : index
    %196 = vector.load %arg16[%c1_97, %c6_98] : memref<22x22xf32, #tpu.memory_space<vmem>>, vector<16x16xf32>
    %197 = vector.broadcast %195 : f32 to vector<16x16xf32>
    %198 = arith.mulf %197, %196 : vector<16x16xf32>
    %199 = arith.addf %194, %198 : vector<16x16xf32>
    %c14 = arith.constant 14 : index
    %200 = memref.load %arg6[%c14] : memref<98xf32, #tpu.memory_space<smem>>
    %c2_99 = arith.constant 2 : index
    %c0_100 = arith.constant 0 : index
    %201 = vector.load %arg15[%c2_99, %c0_100] : memref<22x22xf32, #tpu.memory_space<vmem>>, vector<16x16xf32>
    %202 = vector.broadcast %200 : f32 to vector<16x16xf32>
    %203 = arith.mulf %202, %201 : vector<16x16xf32>
    %204 = arith.addf %199, %203 : vector<16x16xf32>
    %c63 = arith.constant 63 : index
    %205 = memref.load %arg6[%c63] : memref<98xf32, #tpu.memory_space<smem>>
    %c2_101 = arith.constant 2 : index
    %c0_102 = arith.constant 0 : index
    %206 = vector.load %arg16[%c2_101, %c0_102] : memref<22x22xf32, #tpu.memory_space<vmem>>, vector<16x16xf32>
    %207 = vector.broadcast %205 : f32 to vector<16x16xf32>
    %208 = arith.mulf %207, %206 : vector<16x16xf32>
    %209 = arith.addf %204, %208 : vector<16x16xf32>
    %c15 = arith.constant 15 : index
    %210 = memref.load %arg6[%c15] : memref<98xf32, #tpu.memory_space<smem>>
    %c2_103 = arith.constant 2 : index
    %c1_104 = arith.constant 1 : index
    %211 = vector.load %arg15[%c2_103, %c1_104] : memref<22x22xf32, #tpu.memory_space<vmem>>, vector<16x16xf32>
    %212 = vector.broadcast %210 : f32 to vector<16x16xf32>
    %213 = arith.mulf %212, %211 : vector<16x16xf32>
    %214 = arith.addf %209, %213 : vector<16x16xf32>
    %c64 = arith.constant 64 : index
    %215 = memref.load %arg6[%c64] : memref<98xf32, #tpu.memory_space<smem>>
    %c2_105 = arith.constant 2 : index
    %c1_106 = arith.constant 1 : index
    %216 = vector.load %arg16[%c2_105, %c1_106] : memref<22x22xf32, #tpu.memory_space<vmem>>, vector<16x16xf32>
    %217 = vector.broadcast %215 : f32 to vector<16x16xf32>
    %218 = arith.mulf %217, %216 : vector<16x16xf32>
    %219 = arith.addf %214, %218 : vector<16x16xf32>
    %c16 = arith.constant 16 : index
    %220 = memref.load %arg6[%c16] : memref<98xf32, #tpu.memory_space<smem>>
    %c2_107 = arith.constant 2 : index
    %c2_108 = arith.constant 2 : index
    %221 = vector.load %arg15[%c2_107, %c2_108] : memref<22x22xf32, #tpu.memory_space<vmem>>, vector<16x16xf32>
    %222 = vector.broadcast %220 : f32 to vector<16x16xf32>
    %223 = arith.mulf %222, %221 : vector<16x16xf32>
    %224 = arith.addf %219, %223 : vector<16x16xf32>
    %c65 = arith.constant 65 : index
    %225 = memref.load %arg6[%c65] : memref<98xf32, #tpu.memory_space<smem>>
    %c2_109 = arith.constant 2 : index
    %c2_110 = arith.constant 2 : index
    %226 = vector.load %arg16[%c2_109, %c2_110] : memref<22x22xf32, #tpu.memory_space<vmem>>, vector<16x16xf32>
    %227 = vector.broadcast %225 : f32 to vector<16x16xf32>
    %228 = arith.mulf %227, %226 : vector<16x16xf32>
    %229 = arith.addf %224, %228 : vector<16x16xf32>
    %c17 = arith.constant 17 : index
    %230 = memref.load %arg6[%c17] : memref<98xf32, #tpu.memory_space<smem>>
    %c2_111 = arith.constant 2 : index
    %c3_112 = arith.constant 3 : index
    %231 = vector.load %arg15[%c2_111, %c3_112] : memref<22x22xf32, #tpu.memory_space<vmem>>, vector<16x16xf32>
    %232 = vector.broadcast %230 : f32 to vector<16x16xf32>
    %233 = arith.mulf %232, %231 : vector<16x16xf32>
    %234 = arith.addf %229, %233 : vector<16x16xf32>
    %c66 = arith.constant 66 : index
    %235 = memref.load %arg6[%c66] : memref<98xf32, #tpu.memory_space<smem>>
    %c2_113 = arith.constant 2 : index
    %c3_114 = arith.constant 3 : index
    %236 = vector.load %arg16[%c2_113, %c3_114] : memref<22x22xf32, #tpu.memory_space<vmem>>, vector<16x16xf32>
    %237 = vector.broadcast %235 : f32 to vector<16x16xf32>
    %238 = arith.mulf %237, %236 : vector<16x16xf32>
    %239 = arith.addf %234, %238 : vector<16x16xf32>
    %c18 = arith.constant 18 : index
    %240 = memref.load %arg6[%c18] : memref<98xf32, #tpu.memory_space<smem>>
    %c2_115 = arith.constant 2 : index
    %c4_116 = arith.constant 4 : index
    %241 = vector.load %arg15[%c2_115, %c4_116] : memref<22x22xf32, #tpu.memory_space<vmem>>, vector<16x16xf32>
    %242 = vector.broadcast %240 : f32 to vector<16x16xf32>
    %243 = arith.mulf %242, %241 : vector<16x16xf32>
    %244 = arith.addf %239, %243 : vector<16x16xf32>
    %c67 = arith.constant 67 : index
    %245 = memref.load %arg6[%c67] : memref<98xf32, #tpu.memory_space<smem>>
    %c2_117 = arith.constant 2 : index
    %c4_118 = arith.constant 4 : index
    %246 = vector.load %arg16[%c2_117, %c4_118] : memref<22x22xf32, #tpu.memory_space<vmem>>, vector<16x16xf32>
    %247 = vector.broadcast %245 : f32 to vector<16x16xf32>
    %248 = arith.mulf %247, %246 : vector<16x16xf32>
    %249 = arith.addf %244, %248 : vector<16x16xf32>
    %c19 = arith.constant 19 : index
    %250 = memref.load %arg6[%c19] : memref<98xf32, #tpu.memory_space<smem>>
    %c2_119 = arith.constant 2 : index
    %c5_120 = arith.constant 5 : index
    %251 = vector.load %arg15[%c2_119, %c5_120] : memref<22x22xf32, #tpu.memory_space<vmem>>, vector<16x16xf32>
    %252 = vector.broadcast %250 : f32 to vector<16x16xf32>
    %253 = arith.mulf %252, %251 : vector<16x16xf32>
    %254 = arith.addf %249, %253 : vector<16x16xf32>
    %c68 = arith.constant 68 : index
    %255 = memref.load %arg6[%c68] : memref<98xf32, #tpu.memory_space<smem>>
    %c2_121 = arith.constant 2 : index
    %c5_122 = arith.constant 5 : index
    %256 = vector.load %arg16[%c2_121, %c5_122] : memref<22x22xf32, #tpu.memory_space<vmem>>, vector<16x16xf32>
    %257 = vector.broadcast %255 : f32 to vector<16x16xf32>
    %258 = arith.mulf %257, %256 : vector<16x16xf32>
    %259 = arith.addf %254, %258 : vector<16x16xf32>
    %c20 = arith.constant 20 : index
    %260 = memref.load %arg6[%c20] : memref<98xf32, #tpu.memory_space<smem>>
    %c2_123 = arith.constant 2 : index
    %c6_124 = arith.constant 6 : index
    %261 = vector.load %arg15[%c2_123, %c6_124] : memref<22x22xf32, #tpu.memory_space<vmem>>, vector<16x16xf32>
    %262 = vector.broadcast %260 : f32 to vector<16x16xf32>
    %263 = arith.mulf %262, %261 : vector<16x16xf32>
    %264 = arith.addf %259, %263 : vector<16x16xf32>
    %c69 = arith.constant 69 : index
    %265 = memref.load %arg6[%c69] : memref<98xf32, #tpu.memory_space<smem>>
    %c2_125 = arith.constant 2 : index
    %c6_126 = arith.constant 6 : index
    %266 = vector.load %arg16[%c2_125, %c6_126] : memref<22x22xf32, #tpu.memory_space<vmem>>, vector<16x16xf32>
    %267 = vector.broadcast %265 : f32 to vector<16x16xf32>
    %268 = arith.mulf %267, %266 : vector<16x16xf32>
    %269 = arith.addf %264, %268 : vector<16x16xf32>
    %c21 = arith.constant 21 : index
    %270 = memref.load %arg6[%c21] : memref<98xf32, #tpu.memory_space<smem>>
    %c3_127 = arith.constant 3 : index
    %c0_128 = arith.constant 0 : index
    %271 = vector.load %arg15[%c3_127, %c0_128] : memref<22x22xf32, #tpu.memory_space<vmem>>, vector<16x16xf32>
    %272 = vector.broadcast %270 : f32 to vector<16x16xf32>
    %273 = arith.mulf %272, %271 : vector<16x16xf32>
    %274 = arith.addf %269, %273 : vector<16x16xf32>
    %c70 = arith.constant 70 : index
    %275 = memref.load %arg6[%c70] : memref<98xf32, #tpu.memory_space<smem>>
    %c3_129 = arith.constant 3 : index
    %c0_130 = arith.constant 0 : index
    %276 = vector.load %arg16[%c3_129, %c0_130] : memref<22x22xf32, #tpu.memory_space<vmem>>, vector<16x16xf32>
    %277 = vector.broadcast %275 : f32 to vector<16x16xf32>
    %278 = arith.mulf %277, %276 : vector<16x16xf32>
    %279 = arith.addf %274, %278 : vector<16x16xf32>
    %c22 = arith.constant 22 : index
    %280 = memref.load %arg6[%c22] : memref<98xf32, #tpu.memory_space<smem>>
    %c3_131 = arith.constant 3 : index
    %c1_132 = arith.constant 1 : index
    %281 = vector.load %arg15[%c3_131, %c1_132] : memref<22x22xf32, #tpu.memory_space<vmem>>, vector<16x16xf32>
    %282 = vector.broadcast %280 : f32 to vector<16x16xf32>
    %283 = arith.mulf %282, %281 : vector<16x16xf32>
    %284 = arith.addf %279, %283 : vector<16x16xf32>
    %c71 = arith.constant 71 : index
    %285 = memref.load %arg6[%c71] : memref<98xf32, #tpu.memory_space<smem>>
    %c3_133 = arith.constant 3 : index
    %c1_134 = arith.constant 1 : index
    %286 = vector.load %arg16[%c3_133, %c1_134] : memref<22x22xf32, #tpu.memory_space<vmem>>, vector<16x16xf32>
    %287 = vector.broadcast %285 : f32 to vector<16x16xf32>
    %288 = arith.mulf %287, %286 : vector<16x16xf32>
    %289 = arith.addf %284, %288 : vector<16x16xf32>
    %c23 = arith.constant 23 : index
    %290 = memref.load %arg6[%c23] : memref<98xf32, #tpu.memory_space<smem>>
    %c3_135 = arith.constant 3 : index
    %c2_136 = arith.constant 2 : index
    %291 = vector.load %arg15[%c3_135, %c2_136] : memref<22x22xf32, #tpu.memory_space<vmem>>, vector<16x16xf32>
    %292 = vector.broadcast %290 : f32 to vector<16x16xf32>
    %293 = arith.mulf %292, %291 : vector<16x16xf32>
    %294 = arith.addf %289, %293 : vector<16x16xf32>
    %c72 = arith.constant 72 : index
    %295 = memref.load %arg6[%c72] : memref<98xf32, #tpu.memory_space<smem>>
    %c3_137 = arith.constant 3 : index
    %c2_138 = arith.constant 2 : index
    %296 = vector.load %arg16[%c3_137, %c2_138] : memref<22x22xf32, #tpu.memory_space<vmem>>, vector<16x16xf32>
    %297 = vector.broadcast %295 : f32 to vector<16x16xf32>
    %298 = arith.mulf %297, %296 : vector<16x16xf32>
    %299 = arith.addf %294, %298 : vector<16x16xf32>
    %c24 = arith.constant 24 : index
    %300 = memref.load %arg6[%c24] : memref<98xf32, #tpu.memory_space<smem>>
    %c3_139 = arith.constant 3 : index
    %c3_140 = arith.constant 3 : index
    %301 = vector.load %arg15[%c3_139, %c3_140] : memref<22x22xf32, #tpu.memory_space<vmem>>, vector<16x16xf32>
    %302 = vector.broadcast %300 : f32 to vector<16x16xf32>
    %303 = arith.mulf %302, %301 : vector<16x16xf32>
    %304 = arith.addf %299, %303 : vector<16x16xf32>
    %c73 = arith.constant 73 : index
    %305 = memref.load %arg6[%c73] : memref<98xf32, #tpu.memory_space<smem>>
    %c3_141 = arith.constant 3 : index
    %c3_142 = arith.constant 3 : index
    %306 = vector.load %arg16[%c3_141, %c3_142] : memref<22x22xf32, #tpu.memory_space<vmem>>, vector<16x16xf32>
    %307 = vector.broadcast %305 : f32 to vector<16x16xf32>
    %308 = arith.mulf %307, %306 : vector<16x16xf32>
    %309 = arith.addf %304, %308 : vector<16x16xf32>
    %c25 = arith.constant 25 : index
    %310 = memref.load %arg6[%c25] : memref<98xf32, #tpu.memory_space<smem>>
    %c3_143 = arith.constant 3 : index
    %c4_144 = arith.constant 4 : index
    %311 = vector.load %arg15[%c3_143, %c4_144] : memref<22x22xf32, #tpu.memory_space<vmem>>, vector<16x16xf32>
    %312 = vector.broadcast %310 : f32 to vector<16x16xf32>
    %313 = arith.mulf %312, %311 : vector<16x16xf32>
    %314 = arith.addf %309, %313 : vector<16x16xf32>
    %c74 = arith.constant 74 : index
    %315 = memref.load %arg6[%c74] : memref<98xf32, #tpu.memory_space<smem>>
    %c3_145 = arith.constant 3 : index
    %c4_146 = arith.constant 4 : index
    %316 = vector.load %arg16[%c3_145, %c4_146] : memref<22x22xf32, #tpu.memory_space<vmem>>, vector<16x16xf32>
    %317 = vector.broadcast %315 : f32 to vector<16x16xf32>
    %318 = arith.mulf %317, %316 : vector<16x16xf32>
    %319 = arith.addf %314, %318 : vector<16x16xf32>
    %c26 = arith.constant 26 : index
    %320 = memref.load %arg6[%c26] : memref<98xf32, #tpu.memory_space<smem>>
    %c3_147 = arith.constant 3 : index
    %c5_148 = arith.constant 5 : index
    %321 = vector.load %arg15[%c3_147, %c5_148] : memref<22x22xf32, #tpu.memory_space<vmem>>, vector<16x16xf32>
    %322 = vector.broadcast %320 : f32 to vector<16x16xf32>
    %323 = arith.mulf %322, %321 : vector<16x16xf32>
    %324 = arith.addf %319, %323 : vector<16x16xf32>
    %c75 = arith.constant 75 : index
    %325 = memref.load %arg6[%c75] : memref<98xf32, #tpu.memory_space<smem>>
    %c3_149 = arith.constant 3 : index
    %c5_150 = arith.constant 5 : index
    %326 = vector.load %arg16[%c3_149, %c5_150] : memref<22x22xf32, #tpu.memory_space<vmem>>, vector<16x16xf32>
    %327 = vector.broadcast %325 : f32 to vector<16x16xf32>
    %328 = arith.mulf %327, %326 : vector<16x16xf32>
    %329 = arith.addf %324, %328 : vector<16x16xf32>
    %c27 = arith.constant 27 : index
    %330 = memref.load %arg6[%c27] : memref<98xf32, #tpu.memory_space<smem>>
    %c3_151 = arith.constant 3 : index
    %c6_152 = arith.constant 6 : index
    %331 = vector.load %arg15[%c3_151, %c6_152] : memref<22x22xf32, #tpu.memory_space<vmem>>, vector<16x16xf32>
    %332 = vector.broadcast %330 : f32 to vector<16x16xf32>
    %333 = arith.mulf %332, %331 : vector<16x16xf32>
    %334 = arith.addf %329, %333 : vector<16x16xf32>
    %c76 = arith.constant 76 : index
    %335 = memref.load %arg6[%c76] : memref<98xf32, #tpu.memory_space<smem>>
    %c3_153 = arith.constant 3 : index
    %c6_154 = arith.constant 6 : index
    %336 = vector.load %arg16[%c3_153, %c6_154] : memref<22x22xf32, #tpu.memory_space<vmem>>, vector<16x16xf32>
    %337 = vector.broadcast %335 : f32 to vector<16x16xf32>
    %338 = arith.mulf %337, %336 : vector<16x16xf32>
    %339 = arith.addf %334, %338 : vector<16x16xf32>
    %c28 = arith.constant 28 : index
    %340 = memref.load %arg6[%c28] : memref<98xf32, #tpu.memory_space<smem>>
    %c4_155 = arith.constant 4 : index
    %c0_156 = arith.constant 0 : index
    %341 = vector.load %arg15[%c4_155, %c0_156] : memref<22x22xf32, #tpu.memory_space<vmem>>, vector<16x16xf32>
    %342 = vector.broadcast %340 : f32 to vector<16x16xf32>
    %343 = arith.mulf %342, %341 : vector<16x16xf32>
    %344 = arith.addf %339, %343 : vector<16x16xf32>
    %c77 = arith.constant 77 : index
    %345 = memref.load %arg6[%c77] : memref<98xf32, #tpu.memory_space<smem>>
    %c4_157 = arith.constant 4 : index
    %c0_158 = arith.constant 0 : index
    %346 = vector.load %arg16[%c4_157, %c0_158] : memref<22x22xf32, #tpu.memory_space<vmem>>, vector<16x16xf32>
    %347 = vector.broadcast %345 : f32 to vector<16x16xf32>
    %348 = arith.mulf %347, %346 : vector<16x16xf32>
    %349 = arith.addf %344, %348 : vector<16x16xf32>
    %c29 = arith.constant 29 : index
    %350 = memref.load %arg6[%c29] : memref<98xf32, #tpu.memory_space<smem>>
    %c4_159 = arith.constant 4 : index
    %c1_160 = arith.constant 1 : index
    %351 = vector.load %arg15[%c4_159, %c1_160] : memref<22x22xf32, #tpu.memory_space<vmem>>, vector<16x16xf32>
    %352 = vector.broadcast %350 : f32 to vector<16x16xf32>
    %353 = arith.mulf %352, %351 : vector<16x16xf32>
    %354 = arith.addf %349, %353 : vector<16x16xf32>
    %c78 = arith.constant 78 : index
    %355 = memref.load %arg6[%c78] : memref<98xf32, #tpu.memory_space<smem>>
    %c4_161 = arith.constant 4 : index
    %c1_162 = arith.constant 1 : index
    %356 = vector.load %arg16[%c4_161, %c1_162] : memref<22x22xf32, #tpu.memory_space<vmem>>, vector<16x16xf32>
    %357 = vector.broadcast %355 : f32 to vector<16x16xf32>
    %358 = arith.mulf %357, %356 : vector<16x16xf32>
    %359 = arith.addf %354, %358 : vector<16x16xf32>
    %c30 = arith.constant 30 : index
    %360 = memref.load %arg6[%c30] : memref<98xf32, #tpu.memory_space<smem>>
    %c4_163 = arith.constant 4 : index
    %c2_164 = arith.constant 2 : index
    %361 = vector.load %arg15[%c4_163, %c2_164] : memref<22x22xf32, #tpu.memory_space<vmem>>, vector<16x16xf32>
    %362 = vector.broadcast %360 : f32 to vector<16x16xf32>
    %363 = arith.mulf %362, %361 : vector<16x16xf32>
    %364 = arith.addf %359, %363 : vector<16x16xf32>
    %c79 = arith.constant 79 : index
    %365 = memref.load %arg6[%c79] : memref<98xf32, #tpu.memory_space<smem>>
    %c4_165 = arith.constant 4 : index
    %c2_166 = arith.constant 2 : index
    %366 = vector.load %arg16[%c4_165, %c2_166] : memref<22x22xf32, #tpu.memory_space<vmem>>, vector<16x16xf32>
    %367 = vector.broadcast %365 : f32 to vector<16x16xf32>
    %368 = arith.mulf %367, %366 : vector<16x16xf32>
    %369 = arith.addf %364, %368 : vector<16x16xf32>
    %c31 = arith.constant 31 : index
    %370 = memref.load %arg6[%c31] : memref<98xf32, #tpu.memory_space<smem>>
    %c4_167 = arith.constant 4 : index
    %c3_168 = arith.constant 3 : index
    %371 = vector.load %arg15[%c4_167, %c3_168] : memref<22x22xf32, #tpu.memory_space<vmem>>, vector<16x16xf32>
    %372 = vector.broadcast %370 : f32 to vector<16x16xf32>
    %373 = arith.mulf %372, %371 : vector<16x16xf32>
    %374 = arith.addf %369, %373 : vector<16x16xf32>
    %c80 = arith.constant 80 : index
    %375 = memref.load %arg6[%c80] : memref<98xf32, #tpu.memory_space<smem>>
    %c4_169 = arith.constant 4 : index
    %c3_170 = arith.constant 3 : index
    %376 = vector.load %arg16[%c4_169, %c3_170] : memref<22x22xf32, #tpu.memory_space<vmem>>, vector<16x16xf32>
    %377 = vector.broadcast %375 : f32 to vector<16x16xf32>
    %378 = arith.mulf %377, %376 : vector<16x16xf32>
    %379 = arith.addf %374, %378 : vector<16x16xf32>
    %c32 = arith.constant 32 : index
    %380 = memref.load %arg6[%c32] : memref<98xf32, #tpu.memory_space<smem>>
    %c4_171 = arith.constant 4 : index
    %c4_172 = arith.constant 4 : index
    %381 = vector.load %arg15[%c4_171, %c4_172] : memref<22x22xf32, #tpu.memory_space<vmem>>, vector<16x16xf32>
    %382 = vector.broadcast %380 : f32 to vector<16x16xf32>
    %383 = arith.mulf %382, %381 : vector<16x16xf32>
    %384 = arith.addf %379, %383 : vector<16x16xf32>
    %c81 = arith.constant 81 : index
    %385 = memref.load %arg6[%c81] : memref<98xf32, #tpu.memory_space<smem>>
    %c4_173 = arith.constant 4 : index
    %c4_174 = arith.constant 4 : index
    %386 = vector.load %arg16[%c4_173, %c4_174] : memref<22x22xf32, #tpu.memory_space<vmem>>, vector<16x16xf32>
    %387 = vector.broadcast %385 : f32 to vector<16x16xf32>
    %388 = arith.mulf %387, %386 : vector<16x16xf32>
    %389 = arith.addf %384, %388 : vector<16x16xf32>
    %c33 = arith.constant 33 : index
    %390 = memref.load %arg6[%c33] : memref<98xf32, #tpu.memory_space<smem>>
    %c4_175 = arith.constant 4 : index
    %c5_176 = arith.constant 5 : index
    %391 = vector.load %arg15[%c4_175, %c5_176] : memref<22x22xf32, #tpu.memory_space<vmem>>, vector<16x16xf32>
    %392 = vector.broadcast %390 : f32 to vector<16x16xf32>
    %393 = arith.mulf %392, %391 : vector<16x16xf32>
    %394 = arith.addf %389, %393 : vector<16x16xf32>
    %c82 = arith.constant 82 : index
    %395 = memref.load %arg6[%c82] : memref<98xf32, #tpu.memory_space<smem>>
    %c4_177 = arith.constant 4 : index
    %c5_178 = arith.constant 5 : index
    %396 = vector.load %arg16[%c4_177, %c5_178] : memref<22x22xf32, #tpu.memory_space<vmem>>, vector<16x16xf32>
    %397 = vector.broadcast %395 : f32 to vector<16x16xf32>
    %398 = arith.mulf %397, %396 : vector<16x16xf32>
    %399 = arith.addf %394, %398 : vector<16x16xf32>
    %c34 = arith.constant 34 : index
    %400 = memref.load %arg6[%c34] : memref<98xf32, #tpu.memory_space<smem>>
    %c4_179 = arith.constant 4 : index
    %c6_180 = arith.constant 6 : index
    %401 = vector.load %arg15[%c4_179, %c6_180] : memref<22x22xf32, #tpu.memory_space<vmem>>, vector<16x16xf32>
    %402 = vector.broadcast %400 : f32 to vector<16x16xf32>
    %403 = arith.mulf %402, %401 : vector<16x16xf32>
    %404 = arith.addf %399, %403 : vector<16x16xf32>
    %c83 = arith.constant 83 : index
    %405 = memref.load %arg6[%c83] : memref<98xf32, #tpu.memory_space<smem>>
    %c4_181 = arith.constant 4 : index
    %c6_182 = arith.constant 6 : index
    %406 = vector.load %arg16[%c4_181, %c6_182] : memref<22x22xf32, #tpu.memory_space<vmem>>, vector<16x16xf32>
    %407 = vector.broadcast %405 : f32 to vector<16x16xf32>
    %408 = arith.mulf %407, %406 : vector<16x16xf32>
    %409 = arith.addf %404, %408 : vector<16x16xf32>
    %c35 = arith.constant 35 : index
    %410 = memref.load %arg6[%c35] : memref<98xf32, #tpu.memory_space<smem>>
    %c5_183 = arith.constant 5 : index
    %c0_184 = arith.constant 0 : index
    %411 = vector.load %arg15[%c5_183, %c0_184] : memref<22x22xf32, #tpu.memory_space<vmem>>, vector<16x16xf32>
    %412 = vector.broadcast %410 : f32 to vector<16x16xf32>
    %413 = arith.mulf %412, %411 : vector<16x16xf32>
    %414 = arith.addf %409, %413 : vector<16x16xf32>
    %c84 = arith.constant 84 : index
    %415 = memref.load %arg6[%c84] : memref<98xf32, #tpu.memory_space<smem>>
    %c5_185 = arith.constant 5 : index
    %c0_186 = arith.constant 0 : index
    %416 = vector.load %arg16[%c5_185, %c0_186] : memref<22x22xf32, #tpu.memory_space<vmem>>, vector<16x16xf32>
    %417 = vector.broadcast %415 : f32 to vector<16x16xf32>
    %418 = arith.mulf %417, %416 : vector<16x16xf32>
    %419 = arith.addf %414, %418 : vector<16x16xf32>
    %c36 = arith.constant 36 : index
    %420 = memref.load %arg6[%c36] : memref<98xf32, #tpu.memory_space<smem>>
    %c5_187 = arith.constant 5 : index
    %c1_188 = arith.constant 1 : index
    %421 = vector.load %arg15[%c5_187, %c1_188] : memref<22x22xf32, #tpu.memory_space<vmem>>, vector<16x16xf32>
    %422 = vector.broadcast %420 : f32 to vector<16x16xf32>
    %423 = arith.mulf %422, %421 : vector<16x16xf32>
    %424 = arith.addf %419, %423 : vector<16x16xf32>
    %c85 = arith.constant 85 : index
    %425 = memref.load %arg6[%c85] : memref<98xf32, #tpu.memory_space<smem>>
    %c5_189 = arith.constant 5 : index
    %c1_190 = arith.constant 1 : index
    %426 = vector.load %arg16[%c5_189, %c1_190] : memref<22x22xf32, #tpu.memory_space<vmem>>, vector<16x16xf32>
    %427 = vector.broadcast %425 : f32 to vector<16x16xf32>
    %428 = arith.mulf %427, %426 : vector<16x16xf32>
    %429 = arith.addf %424, %428 : vector<16x16xf32>
    %c37 = arith.constant 37 : index
    %430 = memref.load %arg6[%c37] : memref<98xf32, #tpu.memory_space<smem>>
    %c5_191 = arith.constant 5 : index
    %c2_192 = arith.constant 2 : index
    %431 = vector.load %arg15[%c5_191, %c2_192] : memref<22x22xf32, #tpu.memory_space<vmem>>, vector<16x16xf32>
    %432 = vector.broadcast %430 : f32 to vector<16x16xf32>
    %433 = arith.mulf %432, %431 : vector<16x16xf32>
    %434 = arith.addf %429, %433 : vector<16x16xf32>
    %c86 = arith.constant 86 : index
    %435 = memref.load %arg6[%c86] : memref<98xf32, #tpu.memory_space<smem>>
    %c5_193 = arith.constant 5 : index
    %c2_194 = arith.constant 2 : index
    %436 = vector.load %arg16[%c5_193, %c2_194] : memref<22x22xf32, #tpu.memory_space<vmem>>, vector<16x16xf32>
    %437 = vector.broadcast %435 : f32 to vector<16x16xf32>
    %438 = arith.mulf %437, %436 : vector<16x16xf32>
    %439 = arith.addf %434, %438 : vector<16x16xf32>
    %c38 = arith.constant 38 : index
    %440 = memref.load %arg6[%c38] : memref<98xf32, #tpu.memory_space<smem>>
    %c5_195 = arith.constant 5 : index
    %c3_196 = arith.constant 3 : index
    %441 = vector.load %arg15[%c5_195, %c3_196] : memref<22x22xf32, #tpu.memory_space<vmem>>, vector<16x16xf32>
    %442 = vector.broadcast %440 : f32 to vector<16x16xf32>
    %443 = arith.mulf %442, %441 : vector<16x16xf32>
    %444 = arith.addf %439, %443 : vector<16x16xf32>
    %c87 = arith.constant 87 : index
    %445 = memref.load %arg6[%c87] : memref<98xf32, #tpu.memory_space<smem>>
    %c5_197 = arith.constant 5 : index
    %c3_198 = arith.constant 3 : index
    %446 = vector.load %arg16[%c5_197, %c3_198] : memref<22x22xf32, #tpu.memory_space<vmem>>, vector<16x16xf32>
    %447 = vector.broadcast %445 : f32 to vector<16x16xf32>
    %448 = arith.mulf %447, %446 : vector<16x16xf32>
    %449 = arith.addf %444, %448 : vector<16x16xf32>
    %c39 = arith.constant 39 : index
    %450 = memref.load %arg6[%c39] : memref<98xf32, #tpu.memory_space<smem>>
    %c5_199 = arith.constant 5 : index
    %c4_200 = arith.constant 4 : index
    %451 = vector.load %arg15[%c5_199, %c4_200] : memref<22x22xf32, #tpu.memory_space<vmem>>, vector<16x16xf32>
    %452 = vector.broadcast %450 : f32 to vector<16x16xf32>
    %453 = arith.mulf %452, %451 : vector<16x16xf32>
    %454 = arith.addf %449, %453 : vector<16x16xf32>
    %c88 = arith.constant 88 : index
    %455 = memref.load %arg6[%c88] : memref<98xf32, #tpu.memory_space<smem>>
    %c5_201 = arith.constant 5 : index
    %c4_202 = arith.constant 4 : index
    %456 = vector.load %arg16[%c5_201, %c4_202] : memref<22x22xf32, #tpu.memory_space<vmem>>, vector<16x16xf32>
    %457 = vector.broadcast %455 : f32 to vector<16x16xf32>
    %458 = arith.mulf %457, %456 : vector<16x16xf32>
    %459 = arith.addf %454, %458 : vector<16x16xf32>
    %c40 = arith.constant 40 : index
    %460 = memref.load %arg6[%c40] : memref<98xf32, #tpu.memory_space<smem>>
    %c5_203 = arith.constant 5 : index
    %c5_204 = arith.constant 5 : index
    %461 = vector.load %arg15[%c5_203, %c5_204] : memref<22x22xf32, #tpu.memory_space<vmem>>, vector<16x16xf32>
    %462 = vector.broadcast %460 : f32 to vector<16x16xf32>
    %463 = arith.mulf %462, %461 : vector<16x16xf32>
    %464 = arith.addf %459, %463 : vector<16x16xf32>
    %c89 = arith.constant 89 : index
    %465 = memref.load %arg6[%c89] : memref<98xf32, #tpu.memory_space<smem>>
    %c5_205 = arith.constant 5 : index
    %c5_206 = arith.constant 5 : index
    %466 = vector.load %arg16[%c5_205, %c5_206] : memref<22x22xf32, #tpu.memory_space<vmem>>, vector<16x16xf32>
    %467 = vector.broadcast %465 : f32 to vector<16x16xf32>
    %468 = arith.mulf %467, %466 : vector<16x16xf32>
    %469 = arith.addf %464, %468 : vector<16x16xf32>
    %c41 = arith.constant 41 : index
    %470 = memref.load %arg6[%c41] : memref<98xf32, #tpu.memory_space<smem>>
    %c5_207 = arith.constant 5 : index
    %c6_208 = arith.constant 6 : index
    %471 = vector.load %arg15[%c5_207, %c6_208] : memref<22x22xf32, #tpu.memory_space<vmem>>, vector<16x16xf32>
    %472 = vector.broadcast %470 : f32 to vector<16x16xf32>
    %473 = arith.mulf %472, %471 : vector<16x16xf32>
    %474 = arith.addf %469, %473 : vector<16x16xf32>
    %c90 = arith.constant 90 : index
    %475 = memref.load %arg6[%c90] : memref<98xf32, #tpu.memory_space<smem>>
    %c5_209 = arith.constant 5 : index
    %c6_210 = arith.constant 6 : index
    %476 = vector.load %arg16[%c5_209, %c6_210] : memref<22x22xf32, #tpu.memory_space<vmem>>, vector<16x16xf32>
    %477 = vector.broadcast %475 : f32 to vector<16x16xf32>
    %478 = arith.mulf %477, %476 : vector<16x16xf32>
    %479 = arith.addf %474, %478 : vector<16x16xf32>
    %c42 = arith.constant 42 : index
    %480 = memref.load %arg6[%c42] : memref<98xf32, #tpu.memory_space<smem>>
    %c6_211 = arith.constant 6 : index
    %c0_212 = arith.constant 0 : index
    %481 = vector.load %arg15[%c6_211, %c0_212] : memref<22x22xf32, #tpu.memory_space<vmem>>, vector<16x16xf32>
    %482 = vector.broadcast %480 : f32 to vector<16x16xf32>
    %483 = arith.mulf %482, %481 : vector<16x16xf32>
    %484 = arith.addf %479, %483 : vector<16x16xf32>
    %c91 = arith.constant 91 : index
    %485 = memref.load %arg6[%c91] : memref<98xf32, #tpu.memory_space<smem>>
    %c6_213 = arith.constant 6 : index
    %c0_214 = arith.constant 0 : index
    %486 = vector.load %arg16[%c6_213, %c0_214] : memref<22x22xf32, #tpu.memory_space<vmem>>, vector<16x16xf32>
    %487 = vector.broadcast %485 : f32 to vector<16x16xf32>
    %488 = arith.mulf %487, %486 : vector<16x16xf32>
    %489 = arith.addf %484, %488 : vector<16x16xf32>
    %c43 = arith.constant 43 : index
    %490 = memref.load %arg6[%c43] : memref<98xf32, #tpu.memory_space<smem>>
    %c6_215 = arith.constant 6 : index
    %c1_216 = arith.constant 1 : index
    %491 = vector.load %arg15[%c6_215, %c1_216] : memref<22x22xf32, #tpu.memory_space<vmem>>, vector<16x16xf32>
    %492 = vector.broadcast %490 : f32 to vector<16x16xf32>
    %493 = arith.mulf %492, %491 : vector<16x16xf32>
    %494 = arith.addf %489, %493 : vector<16x16xf32>
    %c92 = arith.constant 92 : index
    %495 = memref.load %arg6[%c92] : memref<98xf32, #tpu.memory_space<smem>>
    %c6_217 = arith.constant 6 : index
    %c1_218 = arith.constant 1 : index
    %496 = vector.load %arg16[%c6_217, %c1_218] : memref<22x22xf32, #tpu.memory_space<vmem>>, vector<16x16xf32>
    %497 = vector.broadcast %495 : f32 to vector<16x16xf32>
    %498 = arith.mulf %497, %496 : vector<16x16xf32>
    %499 = arith.addf %494, %498 : vector<16x16xf32>
    %c44 = arith.constant 44 : index
    %500 = memref.load %arg6[%c44] : memref<98xf32, #tpu.memory_space<smem>>
    %c6_219 = arith.constant 6 : index
    %c2_220 = arith.constant 2 : index
    %501 = vector.load %arg15[%c6_219, %c2_220] : memref<22x22xf32, #tpu.memory_space<vmem>>, vector<16x16xf32>
    %502 = vector.broadcast %500 : f32 to vector<16x16xf32>
    %503 = arith.mulf %502, %501 : vector<16x16xf32>
    %504 = arith.addf %499, %503 : vector<16x16xf32>
    %c93 = arith.constant 93 : index
    %505 = memref.load %arg6[%c93] : memref<98xf32, #tpu.memory_space<smem>>
    %c6_221 = arith.constant 6 : index
    %c2_222 = arith.constant 2 : index
    %506 = vector.load %arg16[%c6_221, %c2_222] : memref<22x22xf32, #tpu.memory_space<vmem>>, vector<16x16xf32>
    %507 = vector.broadcast %505 : f32 to vector<16x16xf32>
    %508 = arith.mulf %507, %506 : vector<16x16xf32>
    %509 = arith.addf %504, %508 : vector<16x16xf32>
    %c45 = arith.constant 45 : index
    %510 = memref.load %arg6[%c45] : memref<98xf32, #tpu.memory_space<smem>>
    %c6_223 = arith.constant 6 : index
    %c3_224 = arith.constant 3 : index
    %511 = vector.load %arg15[%c6_223, %c3_224] : memref<22x22xf32, #tpu.memory_space<vmem>>, vector<16x16xf32>
    %512 = vector.broadcast %510 : f32 to vector<16x16xf32>
    %513 = arith.mulf %512, %511 : vector<16x16xf32>
    %514 = arith.addf %509, %513 : vector<16x16xf32>
    %c94 = arith.constant 94 : index
    %515 = memref.load %arg6[%c94] : memref<98xf32, #tpu.memory_space<smem>>
    %c6_225 = arith.constant 6 : index
    %c3_226 = arith.constant 3 : index
    %516 = vector.load %arg16[%c6_225, %c3_226] : memref<22x22xf32, #tpu.memory_space<vmem>>, vector<16x16xf32>
    %517 = vector.broadcast %515 : f32 to vector<16x16xf32>
    %518 = arith.mulf %517, %516 : vector<16x16xf32>
    %519 = arith.addf %514, %518 : vector<16x16xf32>
    %c46 = arith.constant 46 : index
    %520 = memref.load %arg6[%c46] : memref<98xf32, #tpu.memory_space<smem>>
    %c6_227 = arith.constant 6 : index
    %c4_228 = arith.constant 4 : index
    %521 = vector.load %arg15[%c6_227, %c4_228] : memref<22x22xf32, #tpu.memory_space<vmem>>, vector<16x16xf32>
    %522 = vector.broadcast %520 : f32 to vector<16x16xf32>
    %523 = arith.mulf %522, %521 : vector<16x16xf32>
    %524 = arith.addf %519, %523 : vector<16x16xf32>
    %c95 = arith.constant 95 : index
    %525 = memref.load %arg6[%c95] : memref<98xf32, #tpu.memory_space<smem>>
    %c6_229 = arith.constant 6 : index
    %c4_230 = arith.constant 4 : index
    %526 = vector.load %arg16[%c6_229, %c4_230] : memref<22x22xf32, #tpu.memory_space<vmem>>, vector<16x16xf32>
    %527 = vector.broadcast %525 : f32 to vector<16x16xf32>
    %528 = arith.mulf %527, %526 : vector<16x16xf32>
    %529 = arith.addf %524, %528 : vector<16x16xf32>
    %c47 = arith.constant 47 : index
    %530 = memref.load %arg6[%c47] : memref<98xf32, #tpu.memory_space<smem>>
    %c6_231 = arith.constant 6 : index
    %c5_232 = arith.constant 5 : index
    %531 = vector.load %arg15[%c6_231, %c5_232] : memref<22x22xf32, #tpu.memory_space<vmem>>, vector<16x16xf32>
    %532 = vector.broadcast %530 : f32 to vector<16x16xf32>
    %533 = arith.mulf %532, %531 : vector<16x16xf32>
    %534 = arith.addf %529, %533 : vector<16x16xf32>
    %c96 = arith.constant 96 : index
    %535 = memref.load %arg6[%c96] : memref<98xf32, #tpu.memory_space<smem>>
    %c6_233 = arith.constant 6 : index
    %c5_234 = arith.constant 5 : index
    %536 = vector.load %arg16[%c6_233, %c5_234] : memref<22x22xf32, #tpu.memory_space<vmem>>, vector<16x16xf32>
    %537 = vector.broadcast %535 : f32 to vector<16x16xf32>
    %538 = arith.mulf %537, %536 : vector<16x16xf32>
    %539 = arith.addf %534, %538 : vector<16x16xf32>
    %c48 = arith.constant 48 : index
    %540 = memref.load %arg6[%c48] : memref<98xf32, #tpu.memory_space<smem>>
    %c6_235 = arith.constant 6 : index
    %c6_236 = arith.constant 6 : index
    %541 = vector.load %arg15[%c6_235, %c6_236] : memref<22x22xf32, #tpu.memory_space<vmem>>, vector<16x16xf32>
    %542 = vector.broadcast %540 : f32 to vector<16x16xf32>
    %543 = arith.mulf %542, %541 : vector<16x16xf32>
    %544 = arith.addf %539, %543 : vector<16x16xf32>
    %c97 = arith.constant 97 : index
    %545 = memref.load %arg6[%c97] : memref<98xf32, #tpu.memory_space<smem>>
    %c6_237 = arith.constant 6 : index
    %c6_238 = arith.constant 6 : index
    %546 = vector.load %arg16[%c6_237, %c6_238] : memref<22x22xf32, #tpu.memory_space<vmem>>, vector<16x16xf32>
    %547 = vector.broadcast %545 : f32 to vector<16x16xf32>
    %548 = arith.mulf %547, %546 : vector<16x16xf32>
    %549 = arith.addf %544, %548 : vector<16x16xf32>
    %550 = arith.negf %549 : vector<16x16xf32>
    %551 = math.exp %550 : vector<16x16xf32>
    %cst_239 = arith.constant 1.000000e+00 : f32
    %552 = vector.broadcast %cst_239 : f32 to vector<16x16xf32>
    %553 = arith.addf %552, %551 : vector<16x16xf32>
    %554 = arith.divf %552, %553 : vector<16x16xf32>
    %555 = vector.shape_cast %554 : vector<16x16xf32> to vector<16x16x1xf32>
    %556 = vector.broadcast %555 : vector<16x16x1xf32> to vector<16x16x32xf32>
    %557 = arith.mulf %52, %556 : vector<16x16x32xf32>
    %558 = vector.broadcast %11 : vector<16x16x1xf32> to vector<16x16x32xf32>
    %559 = arith.mulf %7, %558 : vector<16x16x32xf32>
    %560 = arith.addf %559, %7 : vector<16x16x32xf32>
    %c0_240 = arith.constant 0 : index
    %c0_241 = arith.constant 0 : index
    %561 = vector.load %arg7[%c0_240, %c0_241] : memref<2x32xf32, #tpu.memory_space<vmem>>, vector<2x32xf32>
    %c0_242 = arith.constant 0 : index
    %c0_243 = arith.constant 0 : index
    %562 = vector.load %arg8[%c0_242, %c0_243] : memref<2x32xf32, #tpu.memory_space<vmem>>, vector<2x32xf32>
    %563 = vector.shape_cast %560 : vector<16x16x32xf32> to vector<256x32xf32>
    %cst_244 = arith.constant dense<0.000000e+00> : vector<32xf32>
    %564 = vector.multi_reduction <add>, %563, %cst_244 [0] : vector<256x32xf32> to vector<32xf32>
    %565 = vector.shape_cast %564 : vector<32xf32> to vector<1x32xf32>
    %cst_245 = arith.constant 2.560000e+02 : f32
    %566 = vector.broadcast %cst_245 : f32 to vector<1x32xf32>
    %567 = arith.divf %565, %566 : vector<1x32xf32>
    %cst_246 = arith.constant dense<0xFF800000> : vector<32xf32>
    %568 = vector.multi_reduction <maximumf>, %563, %cst_246 [0] : vector<256x32xf32> to vector<32xf32>
    %569 = vector.shape_cast %568 : vector<32xf32> to vector<1x32xf32>
    %570 = vector.broadcast %567 : vector<1x32xf32> to vector<2x32xf32>
    %571 = arith.mulf %561, %570 : vector<2x32xf32>
    %cst_247 = arith.constant dense<0.000000e+00> : vector<2xf32>
    %572 = vector.multi_reduction <add>, %571, %cst_247 [1] : vector<2x32xf32> to vector<2xf32>
    %573 = vector.shape_cast %572 : vector<2xf32> to vector<2x1xf32>
    %cst_248 = arith.constant 0.000000e+00 : f32
    %574 = vector.broadcast %cst_248 : f32 to vector<2x1xf32>
    %575 = arith.maximumf %573, %574 : vector<2x1xf32>
    %576 = vector.broadcast %575 : vector<2x1xf32> to vector<2x32xf32>
    %577 = arith.mulf %562, %576 : vector<2x32xf32>
    %cst_249 = arith.constant dense<0.000000e+00> : vector<32xf32>
    %578 = vector.multi_reduction <add>, %577, %cst_249 [0] : vector<2x32xf32> to vector<32xf32>
    %579 = vector.shape_cast %578 : vector<32xf32> to vector<1x32xf32>
    %580 = vector.broadcast %569 : vector<1x32xf32> to vector<2x32xf32>
    %581 = arith.mulf %561, %580 : vector<2x32xf32>
    %cst_250 = arith.constant dense<0.000000e+00> : vector<2xf32>
    %582 = vector.multi_reduction <add>, %581, %cst_250 [1] : vector<2x32xf32> to vector<2xf32>
    %583 = vector.shape_cast %582 : vector<2xf32> to vector<2x1xf32>
    %cst_251 = arith.constant 0.000000e+00 : f32
    %584 = vector.broadcast %cst_251 : f32 to vector<2x1xf32>
    %585 = arith.maximumf %583, %584 : vector<2x1xf32>
    %586 = vector.broadcast %585 : vector<2x1xf32> to vector<2x32xf32>
    %587 = arith.mulf %562, %586 : vector<2x32xf32>
    %cst_252 = arith.constant dense<0.000000e+00> : vector<32xf32>
    %588 = vector.multi_reduction <add>, %587, %cst_252 [0] : vector<2x32xf32> to vector<32xf32>
    %589 = vector.shape_cast %588 : vector<32xf32> to vector<1x32xf32>
    %590 = arith.addf %579, %589 : vector<1x32xf32>
    %591 = arith.negf %590 : vector<1x32xf32>
    %592 = math.exp %591 : vector<1x32xf32>
    %cst_253 = arith.constant 1.000000e+00 : f32
    %593 = vector.broadcast %cst_253 : f32 to vector<1x32xf32>
    %594 = arith.addf %593, %592 : vector<1x32xf32>
    %595 = arith.divf %593, %594 : vector<1x32xf32>
    %596 = vector.shape_cast %595 : vector<1x32xf32> to vector<1x1x32xf32>
    %597 = vector.broadcast %596 : vector<1x1x32xf32> to vector<16x16x32xf32>
    %598 = arith.mulf %560, %597 : vector<16x16x32xf32>
    %cst_254 = arith.constant dense<0.000000e+00> : vector<16x16xf32>
    %599 = vector.multi_reduction <add>, %598, %cst_254 [2] : vector<16x16x32xf32> to vector<16x16xf32>
    %cst_255 = arith.constant 3.200000e+01 : f32
    %600 = vector.broadcast %cst_255 : f32 to vector<16x16xf32>
    %601 = arith.divf %599, %600 : vector<16x16xf32>
    %c3_256 = arith.constant 3 : index
    %c3_257 = arith.constant 3 : index
    %602 = vector.load %arg15[%c3_256, %c3_257] : memref<22x22xf32, #tpu.memory_space<vmem>>, vector<16x16xf32>
    tpu.vector_store %arg15[%c3_256, %c3_257], %601 {strides = array<i32>} : memref<22x22xf32, #tpu.memory_space<vmem>>, vector<16x16xf32>,
    %cst_258 = arith.constant dense<0xFF800000> : vector<16x16xf32>
    %603 = vector.multi_reduction <maximumf>, %598, %cst_258 [2] : vector<16x16x32xf32> to vector<16x16xf32>
    %c3_259 = arith.constant 3 : index
    %c3_260 = arith.constant 3 : index
    %604 = vector.load %arg16[%c3_259, %c3_260] : memref<22x22xf32, #tpu.memory_space<vmem>>, vector<16x16xf32>
    tpu.vector_store %arg16[%c3_259, %c3_260], %603 {strides = array<i32>} : memref<22x22xf32, #tpu.memory_space<vmem>>, vector<16x16xf32>,
    %cst_261 = arith.constant 0.000000e+00 : f32
    %605 = vector.broadcast %cst_261 : f32 to vector<16x16xf32>
    %c0_262 = arith.constant 0 : index
    %606 = memref.load %arg9[%c0_262] : memref<98xf32, #tpu.memory_space<smem>>
    %c0_263 = arith.constant 0 : index
    %c0_264 = arith.constant 0 : index
    %607 = vector.load %arg15[%c0_263, %c0_264] : memref<22x22xf32, #tpu.memory_space<vmem>>, vector<16x16xf32>
    %608 = vector.broadcast %606 : f32 to vector<16x16xf32>
    %609 = arith.mulf %608, %607 : vector<16x16xf32>
    %610 = arith.addf %605, %609 : vector<16x16xf32>
    %c49_265 = arith.constant 49 : index
    %611 = memref.load %arg9[%c49_265] : memref<98xf32, #tpu.memory_space<smem>>
    %c0_266 = arith.constant 0 : index
    %c0_267 = arith.constant 0 : index
    %612 = vector.load %arg16[%c0_266, %c0_267] : memref<22x22xf32, #tpu.memory_space<vmem>>, vector<16x16xf32>
    %613 = vector.broadcast %611 : f32 to vector<16x16xf32>
    %614 = arith.mulf %613, %612 : vector<16x16xf32>
    %615 = arith.addf %610, %614 : vector<16x16xf32>
    %c1_268 = arith.constant 1 : index
    %616 = memref.load %arg9[%c1_268] : memref<98xf32, #tpu.memory_space<smem>>
    %c0_269 = arith.constant 0 : index
    %c1_270 = arith.constant 1 : index
    %617 = vector.load %arg15[%c0_269, %c1_270] : memref<22x22xf32, #tpu.memory_space<vmem>>, vector<16x16xf32>
    %618 = vector.broadcast %616 : f32 to vector<16x16xf32>
    %619 = arith.mulf %618, %617 : vector<16x16xf32>
    %620 = arith.addf %615, %619 : vector<16x16xf32>
    %c50_271 = arith.constant 50 : index
    %621 = memref.load %arg9[%c50_271] : memref<98xf32, #tpu.memory_space<smem>>
    %c0_272 = arith.constant 0 : index
    %c1_273 = arith.constant 1 : index
    %622 = vector.load %arg16[%c0_272, %c1_273] : memref<22x22xf32, #tpu.memory_space<vmem>>, vector<16x16xf32>
    %623 = vector.broadcast %621 : f32 to vector<16x16xf32>
    %624 = arith.mulf %623, %622 : vector<16x16xf32>
    %625 = arith.addf %620, %624 : vector<16x16xf32>
    %c2_274 = arith.constant 2 : index
    %626 = memref.load %arg9[%c2_274] : memref<98xf32, #tpu.memory_space<smem>>
    %c0_275 = arith.constant 0 : index
    %c2_276 = arith.constant 2 : index
    %627 = vector.load %arg15[%c0_275, %c2_276] : memref<22x22xf32, #tpu.memory_space<vmem>>, vector<16x16xf32>
    %628 = vector.broadcast %626 : f32 to vector<16x16xf32>
    %629 = arith.mulf %628, %627 : vector<16x16xf32>
    %630 = arith.addf %625, %629 : vector<16x16xf32>
    %c51_277 = arith.constant 51 : index
    %631 = memref.load %arg9[%c51_277] : memref<98xf32, #tpu.memory_space<smem>>
    %c0_278 = arith.constant 0 : index
    %c2_279 = arith.constant 2 : index
    %632 = vector.load %arg16[%c0_278, %c2_279] : memref<22x22xf32, #tpu.memory_space<vmem>>, vector<16x16xf32>
    %633 = vector.broadcast %631 : f32 to vector<16x16xf32>
    %634 = arith.mulf %633, %632 : vector<16x16xf32>
    %635 = arith.addf %630, %634 : vector<16x16xf32>
    %c3_280 = arith.constant 3 : index
    %636 = memref.load %arg9[%c3_280] : memref<98xf32, #tpu.memory_space<smem>>
    %c0_281 = arith.constant 0 : index
    %c3_282 = arith.constant 3 : index
    %637 = vector.load %arg15[%c0_281, %c3_282] : memref<22x22xf32, #tpu.memory_space<vmem>>, vector<16x16xf32>
    %638 = vector.broadcast %636 : f32 to vector<16x16xf32>
    %639 = arith.mulf %638, %637 : vector<16x16xf32>
    %640 = arith.addf %635, %639 : vector<16x16xf32>
    %c52_283 = arith.constant 52 : index
    %641 = memref.load %arg9[%c52_283] : memref<98xf32, #tpu.memory_space<smem>>
    %c0_284 = arith.constant 0 : index
    %c3_285 = arith.constant 3 : index
    %642 = vector.load %arg16[%c0_284, %c3_285] : memref<22x22xf32, #tpu.memory_space<vmem>>, vector<16x16xf32>
    %643 = vector.broadcast %641 : f32 to vector<16x16xf32>
    %644 = arith.mulf %643, %642 : vector<16x16xf32>
    %645 = arith.addf %640, %644 : vector<16x16xf32>
    %c4_286 = arith.constant 4 : index
    %646 = memref.load %arg9[%c4_286] : memref<98xf32, #tpu.memory_space<smem>>
    %c0_287 = arith.constant 0 : index
    %c4_288 = arith.constant 4 : index
    %647 = vector.load %arg15[%c0_287, %c4_288] : memref<22x22xf32, #tpu.memory_space<vmem>>, vector<16x16xf32>
    %648 = vector.broadcast %646 : f32 to vector<16x16xf32>
    %649 = arith.mulf %648, %647 : vector<16x16xf32>
    %650 = arith.addf %645, %649 : vector<16x16xf32>
    %c53_289 = arith.constant 53 : index
    %651 = memref.load %arg9[%c53_289] : memref<98xf32, #tpu.memory_space<smem>>
    %c0_290 = arith.constant 0 : index
    %c4_291 = arith.constant 4 : index
    %652 = vector.load %arg16[%c0_290, %c4_291] : memref<22x22xf32, #tpu.memory_space<vmem>>, vector<16x16xf32>
    %653 = vector.broadcast %651 : f32 to vector<16x16xf32>
    %654 = arith.mulf %653, %652 : vector<16x16xf32>
    %655 = arith.addf %650, %654 : vector<16x16xf32>
    %c5_292 = arith.constant 5 : index
    %656 = memref.load %arg9[%c5_292] : memref<98xf32, #tpu.memory_space<smem>>
    %c0_293 = arith.constant 0 : index
    %c5_294 = arith.constant 5 : index
    %657 = vector.load %arg15[%c0_293, %c5_294] : memref<22x22xf32, #tpu.memory_space<vmem>>, vector<16x16xf32>
    %658 = vector.broadcast %656 : f32 to vector<16x16xf32>
    %659 = arith.mulf %658, %657 : vector<16x16xf32>
    %660 = arith.addf %655, %659 : vector<16x16xf32>
    %c54_295 = arith.constant 54 : index
    %661 = memref.load %arg9[%c54_295] : memref<98xf32, #tpu.memory_space<smem>>
    %c0_296 = arith.constant 0 : index
    %c5_297 = arith.constant 5 : index
    %662 = vector.load %arg16[%c0_296, %c5_297] : memref<22x22xf32, #tpu.memory_space<vmem>>, vector<16x16xf32>
    %663 = vector.broadcast %661 : f32 to vector<16x16xf32>
    %664 = arith.mulf %663, %662 : vector<16x16xf32>
    %665 = arith.addf %660, %664 : vector<16x16xf32>
    %c6_298 = arith.constant 6 : index
    %666 = memref.load %arg9[%c6_298] : memref<98xf32, #tpu.memory_space<smem>>
    %c0_299 = arith.constant 0 : index
    %c6_300 = arith.constant 6 : index
    %667 = vector.load %arg15[%c0_299, %c6_300] : memref<22x22xf32, #tpu.memory_space<vmem>>, vector<16x16xf32>
    %668 = vector.broadcast %666 : f32 to vector<16x16xf32>
    %669 = arith.mulf %668, %667 : vector<16x16xf32>
    %670 = arith.addf %665, %669 : vector<16x16xf32>
    %c55_301 = arith.constant 55 : index
    %671 = memref.load %arg9[%c55_301] : memref<98xf32, #tpu.memory_space<smem>>
    %c0_302 = arith.constant 0 : index
    %c6_303 = arith.constant 6 : index
    %672 = vector.load %arg16[%c0_302, %c6_303] : memref<22x22xf32, #tpu.memory_space<vmem>>, vector<16x16xf32>
    %673 = vector.broadcast %671 : f32 to vector<16x16xf32>
    %674 = arith.mulf %673, %672 : vector<16x16xf32>
    %675 = arith.addf %670, %674 : vector<16x16xf32>
    %c7_304 = arith.constant 7 : index
    %676 = memref.load %arg9[%c7_304] : memref<98xf32, #tpu.memory_space<smem>>
    %c1_305 = arith.constant 1 : index
    %c0_306 = arith.constant 0 : index
    %677 = vector.load %arg15[%c1_305, %c0_306] : memref<22x22xf32, #tpu.memory_space<vmem>>, vector<16x16xf32>
    %678 = vector.broadcast %676 : f32 to vector<16x16xf32>
    %679 = arith.mulf %678, %677 : vector<16x16xf32>
    %680 = arith.addf %675, %679 : vector<16x16xf32>
    %c56_307 = arith.constant 56 : index
    %681 = memref.load %arg9[%c56_307] : memref<98xf32, #tpu.memory_space<smem>>
    %c1_308 = arith.constant 1 : index
    %c0_309 = arith.constant 0 : index
    %682 = vector.load %arg16[%c1_308, %c0_309] : memref<22x22xf32, #tpu.memory_space<vmem>>, vector<16x16xf32>
    %683 = vector.broadcast %681 : f32 to vector<16x16xf32>
    %684 = arith.mulf %683, %682 : vector<16x16xf32>
    %685 = arith.addf %680, %684 : vector<16x16xf32>
    %c8_310 = arith.constant 8 : index
    %686 = memref.load %arg9[%c8_310] : memref<98xf32, #tpu.memory_space<smem>>
    %c1_311 = arith.constant 1 : index
    %c1_312 = arith.constant 1 : index
    %687 = vector.load %arg15[%c1_311, %c1_312] : memref<22x22xf32, #tpu.memory_space<vmem>>, vector<16x16xf32>
    %688 = vector.broadcast %686 : f32 to vector<16x16xf32>
    %689 = arith.mulf %688, %687 : vector<16x16xf32>
    %690 = arith.addf %685, %689 : vector<16x16xf32>
    %c57_313 = arith.constant 57 : index
    %691 = memref.load %arg9[%c57_313] : memref<98xf32, #tpu.memory_space<smem>>
    %c1_314 = arith.constant 1 : index
    %c1_315 = arith.constant 1 : index
    %692 = vector.load %arg16[%c1_314, %c1_315] : memref<22x22xf32, #tpu.memory_space<vmem>>, vector<16x16xf32>
    %693 = vector.broadcast %691 : f32 to vector<16x16xf32>
    %694 = arith.mulf %693, %692 : vector<16x16xf32>
    %695 = arith.addf %690, %694 : vector<16x16xf32>
    %c9_316 = arith.constant 9 : index
    %696 = memref.load %arg9[%c9_316] : memref<98xf32, #tpu.memory_space<smem>>
    %c1_317 = arith.constant 1 : index
    %c2_318 = arith.constant 2 : index
    %697 = vector.load %arg15[%c1_317, %c2_318] : memref<22x22xf32, #tpu.memory_space<vmem>>, vector<16x16xf32>
    %698 = vector.broadcast %696 : f32 to vector<16x16xf32>
    %699 = arith.mulf %698, %697 : vector<16x16xf32>
    %700 = arith.addf %695, %699 : vector<16x16xf32>
    %c58_319 = arith.constant 58 : index
    %701 = memref.load %arg9[%c58_319] : memref<98xf32, #tpu.memory_space<smem>>
    %c1_320 = arith.constant 1 : index
    %c2_321 = arith.constant 2 : index
    %702 = vector.load %arg16[%c1_320, %c2_321] : memref<22x22xf32, #tpu.memory_space<vmem>>, vector<16x16xf32>
    %703 = vector.broadcast %701 : f32 to vector<16x16xf32>
    %704 = arith.mulf %703, %702 : vector<16x16xf32>
    %705 = arith.addf %700, %704 : vector<16x16xf32>
    %c10_322 = arith.constant 10 : index
    %706 = memref.load %arg9[%c10_322] : memref<98xf32, #tpu.memory_space<smem>>
    %c1_323 = arith.constant 1 : index
    %c3_324 = arith.constant 3 : index
    %707 = vector.load %arg15[%c1_323, %c3_324] : memref<22x22xf32, #tpu.memory_space<vmem>>, vector<16x16xf32>
    %708 = vector.broadcast %706 : f32 to vector<16x16xf32>
    %709 = arith.mulf %708, %707 : vector<16x16xf32>
    %710 = arith.addf %705, %709 : vector<16x16xf32>
    %c59_325 = arith.constant 59 : index
    %711 = memref.load %arg9[%c59_325] : memref<98xf32, #tpu.memory_space<smem>>
    %c1_326 = arith.constant 1 : index
    %c3_327 = arith.constant 3 : index
    %712 = vector.load %arg16[%c1_326, %c3_327] : memref<22x22xf32, #tpu.memory_space<vmem>>, vector<16x16xf32>
    %713 = vector.broadcast %711 : f32 to vector<16x16xf32>
    %714 = arith.mulf %713, %712 : vector<16x16xf32>
    %715 = arith.addf %710, %714 : vector<16x16xf32>
    %c11_328 = arith.constant 11 : index
    %716 = memref.load %arg9[%c11_328] : memref<98xf32, #tpu.memory_space<smem>>
    %c1_329 = arith.constant 1 : index
    %c4_330 = arith.constant 4 : index
    %717 = vector.load %arg15[%c1_329, %c4_330] : memref<22x22xf32, #tpu.memory_space<vmem>>, vector<16x16xf32>
    %718 = vector.broadcast %716 : f32 to vector<16x16xf32>
    %719 = arith.mulf %718, %717 : vector<16x16xf32>
    %720 = arith.addf %715, %719 : vector<16x16xf32>
    %c60_331 = arith.constant 60 : index
    %721 = memref.load %arg9[%c60_331] : memref<98xf32, #tpu.memory_space<smem>>
    %c1_332 = arith.constant 1 : index
    %c4_333 = arith.constant 4 : index
    %722 = vector.load %arg16[%c1_332, %c4_333] : memref<22x22xf32, #tpu.memory_space<vmem>>, vector<16x16xf32>
    %723 = vector.broadcast %721 : f32 to vector<16x16xf32>
    %724 = arith.mulf %723, %722 : vector<16x16xf32>
    %725 = arith.addf %720, %724 : vector<16x16xf32>
    %c12_334 = arith.constant 12 : index
    %726 = memref.load %arg9[%c12_334] : memref<98xf32, #tpu.memory_space<smem>>
    %c1_335 = arith.constant 1 : index
    %c5_336 = arith.constant 5 : index
    %727 = vector.load %arg15[%c1_335, %c5_336] : memref<22x22xf32, #tpu.memory_space<vmem>>, vector<16x16xf32>
    %728 = vector.broadcast %726 : f32 to vector<16x16xf32>
    %729 = arith.mulf %728, %727 : vector<16x16xf32>
    %730 = arith.addf %725, %729 : vector<16x16xf32>
    %c61_337 = arith.constant 61 : index
    %731 = memref.load %arg9[%c61_337] : memref<98xf32, #tpu.memory_space<smem>>
    %c1_338 = arith.constant 1 : index
    %c5_339 = arith.constant 5 : index
    %732 = vector.load %arg16[%c1_338, %c5_339] : memref<22x22xf32, #tpu.memory_space<vmem>>, vector<16x16xf32>
    %733 = vector.broadcast %731 : f32 to vector<16x16xf32>
    %734 = arith.mulf %733, %732 : vector<16x16xf32>
    %735 = arith.addf %730, %734 : vector<16x16xf32>
    %c13_340 = arith.constant 13 : index
    %736 = memref.load %arg9[%c13_340] : memref<98xf32, #tpu.memory_space<smem>>
    %c1_341 = arith.constant 1 : index
    %c6_342 = arith.constant 6 : index
    %737 = vector.load %arg15[%c1_341, %c6_342] : memref<22x22xf32, #tpu.memory_space<vmem>>, vector<16x16xf32>
    %738 = vector.broadcast %736 : f32 to vector<16x16xf32>
    %739 = arith.mulf %738, %737 : vector<16x16xf32>
    %740 = arith.addf %735, %739 : vector<16x16xf32>
    %c62_343 = arith.constant 62 : index
    %741 = memref.load %arg9[%c62_343] : memref<98xf32, #tpu.memory_space<smem>>
    %c1_344 = arith.constant 1 : index
    %c6_345 = arith.constant 6 : index
    %742 = vector.load %arg16[%c1_344, %c6_345] : memref<22x22xf32, #tpu.memory_space<vmem>>, vector<16x16xf32>
    %743 = vector.broadcast %741 : f32 to vector<16x16xf32>
    %744 = arith.mulf %743, %742 : vector<16x16xf32>
    %745 = arith.addf %740, %744 : vector<16x16xf32>
    %c14_346 = arith.constant 14 : index
    %746 = memref.load %arg9[%c14_346] : memref<98xf32, #tpu.memory_space<smem>>
    %c2_347 = arith.constant 2 : index
    %c0_348 = arith.constant 0 : index
    %747 = vector.load %arg15[%c2_347, %c0_348] : memref<22x22xf32, #tpu.memory_space<vmem>>, vector<16x16xf32>
    %748 = vector.broadcast %746 : f32 to vector<16x16xf32>
    %749 = arith.mulf %748, %747 : vector<16x16xf32>
    %750 = arith.addf %745, %749 : vector<16x16xf32>
    %c63_349 = arith.constant 63 : index
    %751 = memref.load %arg9[%c63_349] : memref<98xf32, #tpu.memory_space<smem>>
    %c2_350 = arith.constant 2 : index
    %c0_351 = arith.constant 0 : index
    %752 = vector.load %arg16[%c2_350, %c0_351] : memref<22x22xf32, #tpu.memory_space<vmem>>, vector<16x16xf32>
    %753 = vector.broadcast %751 : f32 to vector<16x16xf32>
    %754 = arith.mulf %753, %752 : vector<16x16xf32>
    %755 = arith.addf %750, %754 : vector<16x16xf32>
    %c15_352 = arith.constant 15 : index
    %756 = memref.load %arg9[%c15_352] : memref<98xf32, #tpu.memory_space<smem>>
    %c2_353 = arith.constant 2 : index
    %c1_354 = arith.constant 1 : index
    %757 = vector.load %arg15[%c2_353, %c1_354] : memref<22x22xf32, #tpu.memory_space<vmem>>, vector<16x16xf32>
    %758 = vector.broadcast %756 : f32 to vector<16x16xf32>
    %759 = arith.mulf %758, %757 : vector<16x16xf32>
    %760 = arith.addf %755, %759 : vector<16x16xf32>
    %c64_355 = arith.constant 64 : index
    %761 = memref.load %arg9[%c64_355] : memref<98xf32, #tpu.memory_space<smem>>
    %c2_356 = arith.constant 2 : index
    %c1_357 = arith.constant 1 : index
    %762 = vector.load %arg16[%c2_356, %c1_357] : memref<22x22xf32, #tpu.memory_space<vmem>>, vector<16x16xf32>
    %763 = vector.broadcast %761 : f32 to vector<16x16xf32>
    %764 = arith.mulf %763, %762 : vector<16x16xf32>
    %765 = arith.addf %760, %764 : vector<16x16xf32>
    %c16_358 = arith.constant 16 : index
    %766 = memref.load %arg9[%c16_358] : memref<98xf32, #tpu.memory_space<smem>>
    %c2_359 = arith.constant 2 : index
    %c2_360 = arith.constant 2 : index
    %767 = vector.load %arg15[%c2_359, %c2_360] : memref<22x22xf32, #tpu.memory_space<vmem>>, vector<16x16xf32>
    %768 = vector.broadcast %766 : f32 to vector<16x16xf32>
    %769 = arith.mulf %768, %767 : vector<16x16xf32>
    %770 = arith.addf %765, %769 : vector<16x16xf32>
    %c65_361 = arith.constant 65 : index
    %771 = memref.load %arg9[%c65_361] : memref<98xf32, #tpu.memory_space<smem>>
    %c2_362 = arith.constant 2 : index
    %c2_363 = arith.constant 2 : index
    %772 = vector.load %arg16[%c2_362, %c2_363] : memref<22x22xf32, #tpu.memory_space<vmem>>, vector<16x16xf32>
    %773 = vector.broadcast %771 : f32 to vector<16x16xf32>
    %774 = arith.mulf %773, %772 : vector<16x16xf32>
    %775 = arith.addf %770, %774 : vector<16x16xf32>
    %c17_364 = arith.constant 17 : index
    %776 = memref.load %arg9[%c17_364] : memref<98xf32, #tpu.memory_space<smem>>
    %c2_365 = arith.constant 2 : index
    %c3_366 = arith.constant 3 : index
    %777 = vector.load %arg15[%c2_365, %c3_366] : memref<22x22xf32, #tpu.memory_space<vmem>>, vector<16x16xf32>
    %778 = vector.broadcast %776 : f32 to vector<16x16xf32>
    %779 = arith.mulf %778, %777 : vector<16x16xf32>
    %780 = arith.addf %775, %779 : vector<16x16xf32>
    %c66_367 = arith.constant 66 : index
    %781 = memref.load %arg9[%c66_367] : memref<98xf32, #tpu.memory_space<smem>>
    %c2_368 = arith.constant 2 : index
    %c3_369 = arith.constant 3 : index
    %782 = vector.load %arg16[%c2_368, %c3_369] : memref<22x22xf32, #tpu.memory_space<vmem>>, vector<16x16xf32>
    %783 = vector.broadcast %781 : f32 to vector<16x16xf32>
    %784 = arith.mulf %783, %782 : vector<16x16xf32>
    %785 = arith.addf %780, %784 : vector<16x16xf32>
    %c18_370 = arith.constant 18 : index
    %786 = memref.load %arg9[%c18_370] : memref<98xf32, #tpu.memory_space<smem>>
    %c2_371 = arith.constant 2 : index
    %c4_372 = arith.constant 4 : index
    %787 = vector.load %arg15[%c2_371, %c4_372] : memref<22x22xf32, #tpu.memory_space<vmem>>, vector<16x16xf32>
    %788 = vector.broadcast %786 : f32 to vector<16x16xf32>
    %789 = arith.mulf %788, %787 : vector<16x16xf32>
    %790 = arith.addf %785, %789 : vector<16x16xf32>
    %c67_373 = arith.constant 67 : index
    %791 = memref.load %arg9[%c67_373] : memref<98xf32, #tpu.memory_space<smem>>
    %c2_374 = arith.constant 2 : index
    %c4_375 = arith.constant 4 : index
    %792 = vector.load %arg16[%c2_374, %c4_375] : memref<22x22xf32, #tpu.memory_space<vmem>>, vector<16x16xf32>
    %793 = vector.broadcast %791 : f32 to vector<16x16xf32>
    %794 = arith.mulf %793, %792 : vector<16x16xf32>
    %795 = arith.addf %790, %794 : vector<16x16xf32>
    %c19_376 = arith.constant 19 : index
    %796 = memref.load %arg9[%c19_376] : memref<98xf32, #tpu.memory_space<smem>>
    %c2_377 = arith.constant 2 : index
    %c5_378 = arith.constant 5 : index
    %797 = vector.load %arg15[%c2_377, %c5_378] : memref<22x22xf32, #tpu.memory_space<vmem>>, vector<16x16xf32>
    %798 = vector.broadcast %796 : f32 to vector<16x16xf32>
    %799 = arith.mulf %798, %797 : vector<16x16xf32>
    %800 = arith.addf %795, %799 : vector<16x16xf32>
    %c68_379 = arith.constant 68 : index
    %801 = memref.load %arg9[%c68_379] : memref<98xf32, #tpu.memory_space<smem>>
    %c2_380 = arith.constant 2 : index
    %c5_381 = arith.constant 5 : index
    %802 = vector.load %arg16[%c2_380, %c5_381] : memref<22x22xf32, #tpu.memory_space<vmem>>, vector<16x16xf32>
    %803 = vector.broadcast %801 : f32 to vector<16x16xf32>
    %804 = arith.mulf %803, %802 : vector<16x16xf32>
    %805 = arith.addf %800, %804 : vector<16x16xf32>
    %c20_382 = arith.constant 20 : index
    %806 = memref.load %arg9[%c20_382] : memref<98xf32, #tpu.memory_space<smem>>
    %c2_383 = arith.constant 2 : index
    %c6_384 = arith.constant 6 : index
    %807 = vector.load %arg15[%c2_383, %c6_384] : memref<22x22xf32, #tpu.memory_space<vmem>>, vector<16x16xf32>
    %808 = vector.broadcast %806 : f32 to vector<16x16xf32>
    %809 = arith.mulf %808, %807 : vector<16x16xf32>
    %810 = arith.addf %805, %809 : vector<16x16xf32>
    %c69_385 = arith.constant 69 : index
    %811 = memref.load %arg9[%c69_385] : memref<98xf32, #tpu.memory_space<smem>>
    %c2_386 = arith.constant 2 : index
    %c6_387 = arith.constant 6 : index
    %812 = vector.load %arg16[%c2_386, %c6_387] : memref<22x22xf32, #tpu.memory_space<vmem>>, vector<16x16xf32>
    %813 = vector.broadcast %811 : f32 to vector<16x16xf32>
    %814 = arith.mulf %813, %812 : vector<16x16xf32>
    %815 = arith.addf %810, %814 : vector<16x16xf32>
    %c21_388 = arith.constant 21 : index
    %816 = memref.load %arg9[%c21_388] : memref<98xf32, #tpu.memory_space<smem>>
    %c3_389 = arith.constant 3 : index
    %c0_390 = arith.constant 0 : index
    %817 = vector.load %arg15[%c3_389, %c0_390] : memref<22x22xf32, #tpu.memory_space<vmem>>, vector<16x16xf32>
    %818 = vector.broadcast %816 : f32 to vector<16x16xf32>
    %819 = arith.mulf %818, %817 : vector<16x16xf32>
    %820 = arith.addf %815, %819 : vector<16x16xf32>
    %c70_391 = arith.constant 70 : index
    %821 = memref.load %arg9[%c70_391] : memref<98xf32, #tpu.memory_space<smem>>
    %c3_392 = arith.constant 3 : index
    %c0_393 = arith.constant 0 : index
    %822 = vector.load %arg16[%c3_392, %c0_393] : memref<22x22xf32, #tpu.memory_space<vmem>>, vector<16x16xf32>
    %823 = vector.broadcast %821 : f32 to vector<16x16xf32>
    %824 = arith.mulf %823, %822 : vector<16x16xf32>
    %825 = arith.addf %820, %824 : vector<16x16xf32>
    %c22_394 = arith.constant 22 : index
    %826 = memref.load %arg9[%c22_394] : memref<98xf32, #tpu.memory_space<smem>>
    %c3_395 = arith.constant 3 : index
    %c1_396 = arith.constant 1 : index
    %827 = vector.load %arg15[%c3_395, %c1_396] : memref<22x22xf32, #tpu.memory_space<vmem>>, vector<16x16xf32>
    %828 = vector.broadcast %826 : f32 to vector<16x16xf32>
    %829 = arith.mulf %828, %827 : vector<16x16xf32>
    %830 = arith.addf %825, %829 : vector<16x16xf32>
    %c71_397 = arith.constant 71 : index
    %831 = memref.load %arg9[%c71_397] : memref<98xf32, #tpu.memory_space<smem>>
    %c3_398 = arith.constant 3 : index
    %c1_399 = arith.constant 1 : index
    %832 = vector.load %arg16[%c3_398, %c1_399] : memref<22x22xf32, #tpu.memory_space<vmem>>, vector<16x16xf32>
    %833 = vector.broadcast %831 : f32 to vector<16x16xf32>
    %834 = arith.mulf %833, %832 : vector<16x16xf32>
    %835 = arith.addf %830, %834 : vector<16x16xf32>
    %c23_400 = arith.constant 23 : index
    %836 = memref.load %arg9[%c23_400] : memref<98xf32, #tpu.memory_space<smem>>
    %c3_401 = arith.constant 3 : index
    %c2_402 = arith.constant 2 : index
    %837 = vector.load %arg15[%c3_401, %c2_402] : memref<22x22xf32, #tpu.memory_space<vmem>>, vector<16x16xf32>
    %838 = vector.broadcast %836 : f32 to vector<16x16xf32>
    %839 = arith.mulf %838, %837 : vector<16x16xf32>
    %840 = arith.addf %835, %839 : vector<16x16xf32>
    %c72_403 = arith.constant 72 : index
    %841 = memref.load %arg9[%c72_403] : memref<98xf32, #tpu.memory_space<smem>>
    %c3_404 = arith.constant 3 : index
    %c2_405 = arith.constant 2 : index
    %842 = vector.load %arg16[%c3_404, %c2_405] : memref<22x22xf32, #tpu.memory_space<vmem>>, vector<16x16xf32>
    %843 = vector.broadcast %841 : f32 to vector<16x16xf32>
    %844 = arith.mulf %843, %842 : vector<16x16xf32>
    %845 = arith.addf %840, %844 : vector<16x16xf32>
    %c24_406 = arith.constant 24 : index
    %846 = memref.load %arg9[%c24_406] : memref<98xf32, #tpu.memory_space<smem>>
    %c3_407 = arith.constant 3 : index
    %c3_408 = arith.constant 3 : index
    %847 = vector.load %arg15[%c3_407, %c3_408] : memref<22x22xf32, #tpu.memory_space<vmem>>, vector<16x16xf32>
    %848 = vector.broadcast %846 : f32 to vector<16x16xf32>
    %849 = arith.mulf %848, %847 : vector<16x16xf32>
    %850 = arith.addf %845, %849 : vector<16x16xf32>
    %c73_409 = arith.constant 73 : index
    %851 = memref.load %arg9[%c73_409] : memref<98xf32, #tpu.memory_space<smem>>
    %c3_410 = arith.constant 3 : index
    %c3_411 = arith.constant 3 : index
    %852 = vector.load %arg16[%c3_410, %c3_411] : memref<22x22xf32, #tpu.memory_space<vmem>>, vector<16x16xf32>
    %853 = vector.broadcast %851 : f32 to vector<16x16xf32>
    %854 = arith.mulf %853, %852 : vector<16x16xf32>
    %855 = arith.addf %850, %854 : vector<16x16xf32>
    %c25_412 = arith.constant 25 : index
    %856 = memref.load %arg9[%c25_412] : memref<98xf32, #tpu.memory_space<smem>>
    %c3_413 = arith.constant 3 : index
    %c4_414 = arith.constant 4 : index
    %857 = vector.load %arg15[%c3_413, %c4_414] : memref<22x22xf32, #tpu.memory_space<vmem>>, vector<16x16xf32>
    %858 = vector.broadcast %856 : f32 to vector<16x16xf32>
    %859 = arith.mulf %858, %857 : vector<16x16xf32>
    %860 = arith.addf %855, %859 : vector<16x16xf32>
    %c74_415 = arith.constant 74 : index
    %861 = memref.load %arg9[%c74_415] : memref<98xf32, #tpu.memory_space<smem>>
    %c3_416 = arith.constant 3 : index
    %c4_417 = arith.constant 4 : index
    %862 = vector.load %arg16[%c3_416, %c4_417] : memref<22x22xf32, #tpu.memory_space<vmem>>, vector<16x16xf32>
    %863 = vector.broadcast %861 : f32 to vector<16x16xf32>
    %864 = arith.mulf %863, %862 : vector<16x16xf32>
    %865 = arith.addf %860, %864 : vector<16x16xf32>
    %c26_418 = arith.constant 26 : index
    %866 = memref.load %arg9[%c26_418] : memref<98xf32, #tpu.memory_space<smem>>
    %c3_419 = arith.constant 3 : index
    %c5_420 = arith.constant 5 : index
    %867 = vector.load %arg15[%c3_419, %c5_420] : memref<22x22xf32, #tpu.memory_space<vmem>>, vector<16x16xf32>
    %868 = vector.broadcast %866 : f32 to vector<16x16xf32>
    %869 = arith.mulf %868, %867 : vector<16x16xf32>
    %870 = arith.addf %865, %869 : vector<16x16xf32>
    %c75_421 = arith.constant 75 : index
    %871 = memref.load %arg9[%c75_421] : memref<98xf32, #tpu.memory_space<smem>>
    %c3_422 = arith.constant 3 : index
    %c5_423 = arith.constant 5 : index
    %872 = vector.load %arg16[%c3_422, %c5_423] : memref<22x22xf32, #tpu.memory_space<vmem>>, vector<16x16xf32>
    %873 = vector.broadcast %871 : f32 to vector<16x16xf32>
    %874 = arith.mulf %873, %872 : vector<16x16xf32>
    %875 = arith.addf %870, %874 : vector<16x16xf32>
    %c27_424 = arith.constant 27 : index
    %876 = memref.load %arg9[%c27_424] : memref<98xf32, #tpu.memory_space<smem>>
    %c3_425 = arith.constant 3 : index
    %c6_426 = arith.constant 6 : index
    %877 = vector.load %arg15[%c3_425, %c6_426] : memref<22x22xf32, #tpu.memory_space<vmem>>, vector<16x16xf32>
    %878 = vector.broadcast %876 : f32 to vector<16x16xf32>
    %879 = arith.mulf %878, %877 : vector<16x16xf32>
    %880 = arith.addf %875, %879 : vector<16x16xf32>
    %c76_427 = arith.constant 76 : index
    %881 = memref.load %arg9[%c76_427] : memref<98xf32, #tpu.memory_space<smem>>
    %c3_428 = arith.constant 3 : index
    %c6_429 = arith.constant 6 : index
    %882 = vector.load %arg16[%c3_428, %c6_429] : memref<22x22xf32, #tpu.memory_space<vmem>>, vector<16x16xf32>
    %883 = vector.broadcast %881 : f32 to vector<16x16xf32>
    %884 = arith.mulf %883, %882 : vector<16x16xf32>
    %885 = arith.addf %880, %884 : vector<16x16xf32>
    %c28_430 = arith.constant 28 : index
    %886 = memref.load %arg9[%c28_430] : memref<98xf32, #tpu.memory_space<smem>>
    %c4_431 = arith.constant 4 : index
    %c0_432 = arith.constant 0 : index
    %887 = vector.load %arg15[%c4_431, %c0_432] : memref<22x22xf32, #tpu.memory_space<vmem>>, vector<16x16xf32>
    %888 = vector.broadcast %886 : f32 to vector<16x16xf32>
    %889 = arith.mulf %888, %887 : vector<16x16xf32>
    %890 = arith.addf %885, %889 : vector<16x16xf32>
    %c77_433 = arith.constant 77 : index
    %891 = memref.load %arg9[%c77_433] : memref<98xf32, #tpu.memory_space<smem>>
    %c4_434 = arith.constant 4 : index
    %c0_435 = arith.constant 0 : index
    %892 = vector.load %arg16[%c4_434, %c0_435] : memref<22x22xf32, #tpu.memory_space<vmem>>, vector<16x16xf32>
    %893 = vector.broadcast %891 : f32 to vector<16x16xf32>
    %894 = arith.mulf %893, %892 : vector<16x16xf32>
    %895 = arith.addf %890, %894 : vector<16x16xf32>
    %c29_436 = arith.constant 29 : index
    %896 = memref.load %arg9[%c29_436] : memref<98xf32, #tpu.memory_space<smem>>
    %c4_437 = arith.constant 4 : index
    %c1_438 = arith.constant 1 : index
    %897 = vector.load %arg15[%c4_437, %c1_438] : memref<22x22xf32, #tpu.memory_space<vmem>>, vector<16x16xf32>
    %898 = vector.broadcast %896 : f32 to vector<16x16xf32>
    %899 = arith.mulf %898, %897 : vector<16x16xf32>
    %900 = arith.addf %895, %899 : vector<16x16xf32>
    %c78_439 = arith.constant 78 : index
    %901 = memref.load %arg9[%c78_439] : memref<98xf32, #tpu.memory_space<smem>>
    %c4_440 = arith.constant 4 : index
    %c1_441 = arith.constant 1 : index
    %902 = vector.load %arg16[%c4_440, %c1_441] : memref<22x22xf32, #tpu.memory_space<vmem>>, vector<16x16xf32>
    %903 = vector.broadcast %901 : f32 to vector<16x16xf32>
    %904 = arith.mulf %903, %902 : vector<16x16xf32>
    %905 = arith.addf %900, %904 : vector<16x16xf32>
    %c30_442 = arith.constant 30 : index
    %906 = memref.load %arg9[%c30_442] : memref<98xf32, #tpu.memory_space<smem>>
    %c4_443 = arith.constant 4 : index
    %c2_444 = arith.constant 2 : index
    %907 = vector.load %arg15[%c4_443, %c2_444] : memref<22x22xf32, #tpu.memory_space<vmem>>, vector<16x16xf32>
    %908 = vector.broadcast %906 : f32 to vector<16x16xf32>
    %909 = arith.mulf %908, %907 : vector<16x16xf32>
    %910 = arith.addf %905, %909 : vector<16x16xf32>
    %c79_445 = arith.constant 79 : index
    %911 = memref.load %arg9[%c79_445] : memref<98xf32, #tpu.memory_space<smem>>
    %c4_446 = arith.constant 4 : index
    %c2_447 = arith.constant 2 : index
    %912 = vector.load %arg16[%c4_446, %c2_447] : memref<22x22xf32, #tpu.memory_space<vmem>>, vector<16x16xf32>
    %913 = vector.broadcast %911 : f32 to vector<16x16xf32>
    %914 = arith.mulf %913, %912 : vector<16x16xf32>
    %915 = arith.addf %910, %914 : vector<16x16xf32>
    %c31_448 = arith.constant 31 : index
    %916 = memref.load %arg9[%c31_448] : memref<98xf32, #tpu.memory_space<smem>>
    %c4_449 = arith.constant 4 : index
    %c3_450 = arith.constant 3 : index
    %917 = vector.load %arg15[%c4_449, %c3_450] : memref<22x22xf32, #tpu.memory_space<vmem>>, vector<16x16xf32>
    %918 = vector.broadcast %916 : f32 to vector<16x16xf32>
    %919 = arith.mulf %918, %917 : vector<16x16xf32>
    %920 = arith.addf %915, %919 : vector<16x16xf32>
    %c80_451 = arith.constant 80 : index
    %921 = memref.load %arg9[%c80_451] : memref<98xf32, #tpu.memory_space<smem>>
    %c4_452 = arith.constant 4 : index
    %c3_453 = arith.constant 3 : index
    %922 = vector.load %arg16[%c4_452, %c3_453] : memref<22x22xf32, #tpu.memory_space<vmem>>, vector<16x16xf32>
    %923 = vector.broadcast %921 : f32 to vector<16x16xf32>
    %924 = arith.mulf %923, %922 : vector<16x16xf32>
    %925 = arith.addf %920, %924 : vector<16x16xf32>
    %c32_454 = arith.constant 32 : index
    %926 = memref.load %arg9[%c32_454] : memref<98xf32, #tpu.memory_space<smem>>
    %c4_455 = arith.constant 4 : index
    %c4_456 = arith.constant 4 : index
    %927 = vector.load %arg15[%c4_455, %c4_456] : memref<22x22xf32, #tpu.memory_space<vmem>>, vector<16x16xf32>
    %928 = vector.broadcast %926 : f32 to vector<16x16xf32>
    %929 = arith.mulf %928, %927 : vector<16x16xf32>
    %930 = arith.addf %925, %929 : vector<16x16xf32>
    %c81_457 = arith.constant 81 : index
    %931 = memref.load %arg9[%c81_457] : memref<98xf32, #tpu.memory_space<smem>>
    %c4_458 = arith.constant 4 : index
    %c4_459 = arith.constant 4 : index
    %932 = vector.load %arg16[%c4_458, %c4_459] : memref<22x22xf32, #tpu.memory_space<vmem>>, vector<16x16xf32>
    %933 = vector.broadcast %931 : f32 to vector<16x16xf32>
    %934 = arith.mulf %933, %932 : vector<16x16xf32>
    %935 = arith.addf %930, %934 : vector<16x16xf32>
    %c33_460 = arith.constant 33 : index
    %936 = memref.load %arg9[%c33_460] : memref<98xf32, #tpu.memory_space<smem>>
    %c4_461 = arith.constant 4 : index
    %c5_462 = arith.constant 5 : index
    %937 = vector.load %arg15[%c4_461, %c5_462] : memref<22x22xf32, #tpu.memory_space<vmem>>, vector<16x16xf32>
    %938 = vector.broadcast %936 : f32 to vector<16x16xf32>
    %939 = arith.mulf %938, %937 : vector<16x16xf32>
    %940 = arith.addf %935, %939 : vector<16x16xf32>
    %c82_463 = arith.constant 82 : index
    %941 = memref.load %arg9[%c82_463] : memref<98xf32, #tpu.memory_space<smem>>
    %c4_464 = arith.constant 4 : index
    %c5_465 = arith.constant 5 : index
    %942 = vector.load %arg16[%c4_464, %c5_465] : memref<22x22xf32, #tpu.memory_space<vmem>>, vector<16x16xf32>
    %943 = vector.broadcast %941 : f32 to vector<16x16xf32>
    %944 = arith.mulf %943, %942 : vector<16x16xf32>
    %945 = arith.addf %940, %944 : vector<16x16xf32>
    %c34_466 = arith.constant 34 : index
    %946 = memref.load %arg9[%c34_466] : memref<98xf32, #tpu.memory_space<smem>>
    %c4_467 = arith.constant 4 : index
    %c6_468 = arith.constant 6 : index
    %947 = vector.load %arg15[%c4_467, %c6_468] : memref<22x22xf32, #tpu.memory_space<vmem>>, vector<16x16xf32>
    %948 = vector.broadcast %946 : f32 to vector<16x16xf32>
    %949 = arith.mulf %948, %947 : vector<16x16xf32>
    %950 = arith.addf %945, %949 : vector<16x16xf32>
    %c83_469 = arith.constant 83 : index
    %951 = memref.load %arg9[%c83_469] : memref<98xf32, #tpu.memory_space<smem>>
    %c4_470 = arith.constant 4 : index
    %c6_471 = arith.constant 6 : index
    %952 = vector.load %arg16[%c4_470, %c6_471] : memref<22x22xf32, #tpu.memory_space<vmem>>, vector<16x16xf32>
    %953 = vector.broadcast %951 : f32 to vector<16x16xf32>
    %954 = arith.mulf %953, %952 : vector<16x16xf32>
    %955 = arith.addf %950, %954 : vector<16x16xf32>
    %c35_472 = arith.constant 35 : index
    %956 = memref.load %arg9[%c35_472] : memref<98xf32, #tpu.memory_space<smem>>
    %c5_473 = arith.constant 5 : index
    %c0_474 = arith.constant 0 : index
    %957 = vector.load %arg15[%c5_473, %c0_474] : memref<22x22xf32, #tpu.memory_space<vmem>>, vector<16x16xf32>
    %958 = vector.broadcast %956 : f32 to vector<16x16xf32>
    %959 = arith.mulf %958, %957 : vector<16x16xf32>
    %960 = arith.addf %955, %959 : vector<16x16xf32>
    %c84_475 = arith.constant 84 : index
    %961 = memref.load %arg9[%c84_475] : memref<98xf32, #tpu.memory_space<smem>>
    %c5_476 = arith.constant 5 : index
    %c0_477 = arith.constant 0 : index
    %962 = vector.load %arg16[%c5_476, %c0_477] : memref<22x22xf32, #tpu.memory_space<vmem>>, vector<16x16xf32>
    %963 = vector.broadcast %961 : f32 to vector<16x16xf32>
    %964 = arith.mulf %963, %962 : vector<16x16xf32>
    %965 = arith.addf %960, %964 : vector<16x16xf32>
    %c36_478 = arith.constant 36 : index
    %966 = memref.load %arg9[%c36_478] : memref<98xf32, #tpu.memory_space<smem>>
    %c5_479 = arith.constant 5 : index
    %c1_480 = arith.constant 1 : index
    %967 = vector.load %arg15[%c5_479, %c1_480] : memref<22x22xf32, #tpu.memory_space<vmem>>, vector<16x16xf32>
    %968 = vector.broadcast %966 : f32 to vector<16x16xf32>
    %969 = arith.mulf %968, %967 : vector<16x16xf32>
    %970 = arith.addf %965, %969 : vector<16x16xf32>
    %c85_481 = arith.constant 85 : index
    %971 = memref.load %arg9[%c85_481] : memref<98xf32, #tpu.memory_space<smem>>
    %c5_482 = arith.constant 5 : index
    %c1_483 = arith.constant 1 : index
    %972 = vector.load %arg16[%c5_482, %c1_483] : memref<22x22xf32, #tpu.memory_space<vmem>>, vector<16x16xf32>
    %973 = vector.broadcast %971 : f32 to vector<16x16xf32>
    %974 = arith.mulf %973, %972 : vector<16x16xf32>
    %975 = arith.addf %970, %974 : vector<16x16xf32>
    %c37_484 = arith.constant 37 : index
    %976 = memref.load %arg9[%c37_484] : memref<98xf32, #tpu.memory_space<smem>>
    %c5_485 = arith.constant 5 : index
    %c2_486 = arith.constant 2 : index
    %977 = vector.load %arg15[%c5_485, %c2_486] : memref<22x22xf32, #tpu.memory_space<vmem>>, vector<16x16xf32>
    %978 = vector.broadcast %976 : f32 to vector<16x16xf32>
    %979 = arith.mulf %978, %977 : vector<16x16xf32>
    %980 = arith.addf %975, %979 : vector<16x16xf32>
    %c86_487 = arith.constant 86 : index
    %981 = memref.load %arg9[%c86_487] : memref<98xf32, #tpu.memory_space<smem>>
    %c5_488 = arith.constant 5 : index
    %c2_489 = arith.constant 2 : index
    %982 = vector.load %arg16[%c5_488, %c2_489] : memref<22x22xf32, #tpu.memory_space<vmem>>, vector<16x16xf32>
    %983 = vector.broadcast %981 : f32 to vector<16x16xf32>
    %984 = arith.mulf %983, %982 : vector<16x16xf32>
    %985 = arith.addf %980, %984 : vector<16x16xf32>
    %c38_490 = arith.constant 38 : index
    %986 = memref.load %arg9[%c38_490] : memref<98xf32, #tpu.memory_space<smem>>
    %c5_491 = arith.constant 5 : index
    %c3_492 = arith.constant 3 : index
    %987 = vector.load %arg15[%c5_491, %c3_492] : memref<22x22xf32, #tpu.memory_space<vmem>>, vector<16x16xf32>
    %988 = vector.broadcast %986 : f32 to vector<16x16xf32>
    %989 = arith.mulf %988, %987 : vector<16x16xf32>
    %990 = arith.addf %985, %989 : vector<16x16xf32>
    %c87_493 = arith.constant 87 : index
    %991 = memref.load %arg9[%c87_493] : memref<98xf32, #tpu.memory_space<smem>>
    %c5_494 = arith.constant 5 : index
    %c3_495 = arith.constant 3 : index
    %992 = vector.load %arg16[%c5_494, %c3_495] : memref<22x22xf32, #tpu.memory_space<vmem>>, vector<16x16xf32>
    %993 = vector.broadcast %991 : f32 to vector<16x16xf32>
    %994 = arith.mulf %993, %992 : vector<16x16xf32>
    %995 = arith.addf %990, %994 : vector<16x16xf32>
    %c39_496 = arith.constant 39 : index
    %996 = memref.load %arg9[%c39_496] : memref<98xf32, #tpu.memory_space<smem>>
    %c5_497 = arith.constant 5 : index
    %c4_498 = arith.constant 4 : index
    %997 = vector.load %arg15[%c5_497, %c4_498] : memref<22x22xf32, #tpu.memory_space<vmem>>, vector<16x16xf32>
    %998 = vector.broadcast %996 : f32 to vector<16x16xf32>
    %999 = arith.mulf %998, %997 : vector<16x16xf32>
    %1000 = arith.addf %995, %999 : vector<16x16xf32>
    %c88_499 = arith.constant 88 : index
    %1001 = memref.load %arg9[%c88_499] : memref<98xf32, #tpu.memory_space<smem>>
    %c5_500 = arith.constant 5 : index
    %c4_501 = arith.constant 4 : index
    %1002 = vector.load %arg16[%c5_500, %c4_501] : memref<22x22xf32, #tpu.memory_space<vmem>>, vector<16x16xf32>
    %1003 = vector.broadcast %1001 : f32 to vector<16x16xf32>
    %1004 = arith.mulf %1003, %1002 : vector<16x16xf32>
    %1005 = arith.addf %1000, %1004 : vector<16x16xf32>
    %c40_502 = arith.constant 40 : index
    %1006 = memref.load %arg9[%c40_502] : memref<98xf32, #tpu.memory_space<smem>>
    %c5_503 = arith.constant 5 : index
    %c5_504 = arith.constant 5 : index
    %1007 = vector.load %arg15[%c5_503, %c5_504] : memref<22x22xf32, #tpu.memory_space<vmem>>, vector<16x16xf32>
    %1008 = vector.broadcast %1006 : f32 to vector<16x16xf32>
    %1009 = arith.mulf %1008, %1007 : vector<16x16xf32>
    %1010 = arith.addf %1005, %1009 : vector<16x16xf32>
    %c89_505 = arith.constant 89 : index
    %1011 = memref.load %arg9[%c89_505] : memref<98xf32, #tpu.memory_space<smem>>
    %c5_506 = arith.constant 5 : index
    %c5_507 = arith.constant 5 : index
    %1012 = vector.load %arg16[%c5_506, %c5_507] : memref<22x22xf32, #tpu.memory_space<vmem>>, vector<16x16xf32>
    %1013 = vector.broadcast %1011 : f32 to vector<16x16xf32>
    %1014 = arith.mulf %1013, %1012 : vector<16x16xf32>
    %1015 = arith.addf %1010, %1014 : vector<16x16xf32>
    %c41_508 = arith.constant 41 : index
    %1016 = memref.load %arg9[%c41_508] : memref<98xf32, #tpu.memory_space<smem>>
    %c5_509 = arith.constant 5 : index
    %c6_510 = arith.constant 6 : index
    %1017 = vector.load %arg15[%c5_509, %c6_510] : memref<22x22xf32, #tpu.memory_space<vmem>>, vector<16x16xf32>
    %1018 = vector.broadcast %1016 : f32 to vector<16x16xf32>
    %1019 = arith.mulf %1018, %1017 : vector<16x16xf32>
    %1020 = arith.addf %1015, %1019 : vector<16x16xf32>
    %c90_511 = arith.constant 90 : index
    %1021 = memref.load %arg9[%c90_511] : memref<98xf32, #tpu.memory_space<smem>>
    %c5_512 = arith.constant 5 : index
    %c6_513 = arith.constant 6 : index
    %1022 = vector.load %arg16[%c5_512, %c6_513] : memref<22x22xf32, #tpu.memory_space<vmem>>, vector<16x16xf32>
    %1023 = vector.broadcast %1021 : f32 to vector<16x16xf32>
    %1024 = arith.mulf %1023, %1022 : vector<16x16xf32>
    %1025 = arith.addf %1020, %1024 : vector<16x16xf32>
    %c42_514 = arith.constant 42 : index
    %1026 = memref.load %arg9[%c42_514] : memref<98xf32, #tpu.memory_space<smem>>
    %c6_515 = arith.constant 6 : index
    %c0_516 = arith.constant 0 : index
    %1027 = vector.load %arg15[%c6_515, %c0_516] : memref<22x22xf32, #tpu.memory_space<vmem>>, vector<16x16xf32>
    %1028 = vector.broadcast %1026 : f32 to vector<16x16xf32>
    %1029 = arith.mulf %1028, %1027 : vector<16x16xf32>
    %1030 = arith.addf %1025, %1029 : vector<16x16xf32>
    %c91_517 = arith.constant 91 : index
    %1031 = memref.load %arg9[%c91_517] : memref<98xf32, #tpu.memory_space<smem>>
    %c6_518 = arith.constant 6 : index
    %c0_519 = arith.constant 0 : index
    %1032 = vector.load %arg16[%c6_518, %c0_519] : memref<22x22xf32, #tpu.memory_space<vmem>>, vector<16x16xf32>
    %1033 = vector.broadcast %1031 : f32 to vector<16x16xf32>
    %1034 = arith.mulf %1033, %1032 : vector<16x16xf32>
    %1035 = arith.addf %1030, %1034 : vector<16x16xf32>
    %c43_520 = arith.constant 43 : index
    %1036 = memref.load %arg9[%c43_520] : memref<98xf32, #tpu.memory_space<smem>>
    %c6_521 = arith.constant 6 : index
    %c1_522 = arith.constant 1 : index
    %1037 = vector.load %arg15[%c6_521, %c1_522] : memref<22x22xf32, #tpu.memory_space<vmem>>, vector<16x16xf32>
    %1038 = vector.broadcast %1036 : f32 to vector<16x16xf32>
    %1039 = arith.mulf %1038, %1037 : vector<16x16xf32>
    %1040 = arith.addf %1035, %1039 : vector<16x16xf32>
    %c92_523 = arith.constant 92 : index
    %1041 = memref.load %arg9[%c92_523] : memref<98xf32, #tpu.memory_space<smem>>
    %c6_524 = arith.constant 6 : index
    %c1_525 = arith.constant 1 : index
    %1042 = vector.load %arg16[%c6_524, %c1_525] : memref<22x22xf32, #tpu.memory_space<vmem>>, vector<16x16xf32>
    %1043 = vector.broadcast %1041 : f32 to vector<16x16xf32>
    %1044 = arith.mulf %1043, %1042 : vector<16x16xf32>
    %1045 = arith.addf %1040, %1044 : vector<16x16xf32>
    %c44_526 = arith.constant 44 : index
    %1046 = memref.load %arg9[%c44_526] : memref<98xf32, #tpu.memory_space<smem>>
    %c6_527 = arith.constant 6 : index
    %c2_528 = arith.constant 2 : index
    %1047 = vector.load %arg15[%c6_527, %c2_528] : memref<22x22xf32, #tpu.memory_space<vmem>>, vector<16x16xf32>
    %1048 = vector.broadcast %1046 : f32 to vector<16x16xf32>
    %1049 = arith.mulf %1048, %1047 : vector<16x16xf32>
    %1050 = arith.addf %1045, %1049 : vector<16x16xf32>
    %c93_529 = arith.constant 93 : index
    %1051 = memref.load %arg9[%c93_529] : memref<98xf32, #tpu.memory_space<smem>>
    %c6_530 = arith.constant 6 : index
    %c2_531 = arith.constant 2 : index
    %1052 = vector.load %arg16[%c6_530, %c2_531] : memref<22x22xf32, #tpu.memory_space<vmem>>, vector<16x16xf32>
    %1053 = vector.broadcast %1051 : f32 to vector<16x16xf32>
    %1054 = arith.mulf %1053, %1052 : vector<16x16xf32>
    %1055 = arith.addf %1050, %1054 : vector<16x16xf32>
    %c45_532 = arith.constant 45 : index
    %1056 = memref.load %arg9[%c45_532] : memref<98xf32, #tpu.memory_space<smem>>
    %c6_533 = arith.constant 6 : index
    %c3_534 = arith.constant 3 : index
    %1057 = vector.load %arg15[%c6_533, %c3_534] : memref<22x22xf32, #tpu.memory_space<vmem>>, vector<16x16xf32>
    %1058 = vector.broadcast %1056 : f32 to vector<16x16xf32>
    %1059 = arith.mulf %1058, %1057 : vector<16x16xf32>
    %1060 = arith.addf %1055, %1059 : vector<16x16xf32>
    %c94_535 = arith.constant 94 : index
    %1061 = memref.load %arg9[%c94_535] : memref<98xf32, #tpu.memory_space<smem>>
    %c6_536 = arith.constant 6 : index
    %c3_537 = arith.constant 3 : index
    %1062 = vector.load %arg16[%c6_536, %c3_537] : memref<22x22xf32, #tpu.memory_space<vmem>>, vector<16x16xf32>
    %1063 = vector.broadcast %1061 : f32 to vector<16x16xf32>
    %1064 = arith.mulf %1063, %1062 : vector<16x16xf32>
    %1065 = arith.addf %1060, %1064 : vector<16x16xf32>
    %c46_538 = arith.constant 46 : index
    %1066 = memref.load %arg9[%c46_538] : memref<98xf32, #tpu.memory_space<smem>>
    %c6_539 = arith.constant 6 : index
    %c4_540 = arith.constant 4 : index
    %1067 = vector.load %arg15[%c6_539, %c4_540] : memref<22x22xf32, #tpu.memory_space<vmem>>, vector<16x16xf32>
    %1068 = vector.broadcast %1066 : f32 to vector<16x16xf32>
    %1069 = arith.mulf %1068, %1067 : vector<16x16xf32>
    %1070 = arith.addf %1065, %1069 : vector<16x16xf32>
    %c95_541 = arith.constant 95 : index
    %1071 = memref.load %arg9[%c95_541] : memref<98xf32, #tpu.memory_space<smem>>
    %c6_542 = arith.constant 6 : index
    %c4_543 = arith.constant 4 : index
    %1072 = vector.load %arg16[%c6_542, %c4_543] : memref<22x22xf32, #tpu.memory_space<vmem>>, vector<16x16xf32>
    %1073 = vector.broadcast %1071 : f32 to vector<16x16xf32>
    %1074 = arith.mulf %1073, %1072 : vector<16x16xf32>
    %1075 = arith.addf %1070, %1074 : vector<16x16xf32>
    %c47_544 = arith.constant 47 : index
    %1076 = memref.load %arg9[%c47_544] : memref<98xf32, #tpu.memory_space<smem>>
    %c6_545 = arith.constant 6 : index
    %c5_546 = arith.constant 5 : index
    %1077 = vector.load %arg15[%c6_545, %c5_546] : memref<22x22xf32, #tpu.memory_space<vmem>>, vector<16x16xf32>
    %1078 = vector.broadcast %1076 : f32 to vector<16x16xf32>
    %1079 = arith.mulf %1078, %1077 : vector<16x16xf32>
    %1080 = arith.addf %1075, %1079 : vector<16x16xf32>
    %c96_547 = arith.constant 96 : index
    %1081 = memref.load %arg9[%c96_547] : memref<98xf32, #tpu.memory_space<smem>>
    %c6_548 = arith.constant 6 : index
    %c5_549 = arith.constant 5 : index
    %1082 = vector.load %arg16[%c6_548, %c5_549] : memref<22x22xf32, #tpu.memory_space<vmem>>, vector<16x16xf32>
    %1083 = vector.broadcast %1081 : f32 to vector<16x16xf32>
    %1084 = arith.mulf %1083, %1082 : vector<16x16xf32>
    %1085 = arith.addf %1080, %1084 : vector<16x16xf32>
    %c48_550 = arith.constant 48 : index
    %1086 = memref.load %arg9[%c48_550] : memref<98xf32, #tpu.memory_space<smem>>
    %c6_551 = arith.constant 6 : index
    %c6_552 = arith.constant 6 : index
    %1087 = vector.load %arg15[%c6_551, %c6_552] : memref<22x22xf32, #tpu.memory_space<vmem>>, vector<16x16xf32>
    %1088 = vector.broadcast %1086 : f32 to vector<16x16xf32>
    %1089 = arith.mulf %1088, %1087 : vector<16x16xf32>
    %1090 = arith.addf %1085, %1089 : vector<16x16xf32>
    %c97_553 = arith.constant 97 : index
    %1091 = memref.load %arg9[%c97_553] : memref<98xf32, #tpu.memory_space<smem>>
    %c6_554 = arith.constant 6 : index
    %c6_555 = arith.constant 6 : index
    %1092 = vector.load %arg16[%c6_554, %c6_555] : memref<22x22xf32, #tpu.memory_space<vmem>>, vector<16x16xf32>
    %1093 = vector.broadcast %1091 : f32 to vector<16x16xf32>
    %1094 = arith.mulf %1093, %1092 : vector<16x16xf32>
    %1095 = arith.addf %1090, %1094 : vector<16x16xf32>
    %1096 = arith.negf %1095 : vector<16x16xf32>
    %1097 = math.exp %1096 : vector<16x16xf32>
    %cst_556 = arith.constant 1.000000e+00 : f32
    %1098 = vector.broadcast %cst_556 : f32 to vector<16x16xf32>
    %1099 = arith.addf %1098, %1097 : vector<16x16xf32>
    %1100 = arith.divf %1098, %1099 : vector<16x16xf32>
    %1101 = vector.shape_cast %1100 : vector<16x16xf32> to vector<16x16x1xf32>
    %1102 = vector.broadcast %1101 : vector<16x16x1xf32> to vector<16x16x32xf32>
    %1103 = arith.mulf %598, %1102 : vector<16x16x32xf32>
    %c1_557 = arith.constant 1 : index
    %c1_558 = arith.constant 1 : index
    %c0_559 = arith.constant 0 : index
    %1104 = vector.load %arg14[%c1_557, %c1_558, %c0_559] : memref<18x18x64xf32, #tpu.memory_space<vmem>>, vector<16x16x32xf32>
    tpu.vector_store %arg14[%c1_557, %c1_558, %c0_559], %1103 {strides = array<i32>} : memref<18x18x64xf32, #tpu.memory_space<vmem>>, vector<16x16x32xf32>,
    %c1_560 = arith.constant 1 : index
    %c1_561 = arith.constant 1 : index
    %c32_562 = arith.constant 32 : index
    %1105 = vector.load %arg14[%c1_560, %c1_561, %c32_562] : memref<18x18x64xf32, #tpu.memory_space<vmem>>, vector<16x16x32xf32>
    tpu.vector_store %arg14[%c1_560, %c1_561, %c32_562], %557 {strides = array<i32>} : memref<18x18x64xf32, #tpu.memory_space<vmem>>, vector<16x16x32xf32>,
    %cst_563 = arith.constant 0.000000e+00 : f32
    %1106 = vector.broadcast %cst_563 : f32 to vector<256x16xf32>
    %c0_564 = arith.constant 0 : index
    %c0_565 = arith.constant 0 : index
    %c0_566 = arith.constant 0 : index
    %1107 = vector.load %arg14[%c0_564, %c0_565, %c0_566] : memref<18x18x64xf32, #tpu.memory_space<vmem>>, vector<16x16x64xf32>
    %1108 = vector.shape_cast %1107 : vector<16x16x64xf32> to vector<256x64xf32>
    %1109 = arith.truncf %1108 : vector<256x64xf32> to vector<256x64xbf16>
    %c0_567 = arith.constant 0 : index
    %c0_568 = arith.constant 0 : index
    %c0_569 = arith.constant 0 : index
    %1110 = vector.load %arg10[%c0_567, %c0_568, %c0_569] : memref<9x64x16xbf16, #tpu.memory_space<vmem>>, vector<1x64x16xbf16>
    %1111 = vector.shape_cast %1110 : vector<1x64x16xbf16> to vector<64x16xbf16>
    %cst_570 = arith.constant dense<0.000000e+00> : vector<256x16xf32>
    %1112 = tpu.matmul %1109, %1111, %cst_570 {dimension_numbers = #tpu.dot_dimension_numbers<[1], [0], [0], [1], [0, 0, 1, 1], [], []>} : vector<256x64xbf16>, vector<64x16xbf16>, vector<256x16xf32> -> vector<256x16xf32>
    %1113 = arith.addf %1106, %1112 : vector<256x16xf32>
    %c0_571 = arith.constant 0 : index
    %c1_572 = arith.constant 1 : index
    %c0_573 = arith.constant 0 : index
    %1114 = vector.load %arg14[%c0_571, %c1_572, %c0_573] : memref<18x18x64xf32, #tpu.memory_space<vmem>>, vector<16x16x64xf32>
    %1115 = vector.shape_cast %1114 : vector<16x16x64xf32> to vector<256x64xf32>
    %1116 = arith.truncf %1115 : vector<256x64xf32> to vector<256x64xbf16>
    %c1_574 = arith.constant 1 : index
    %c0_575 = arith.constant 0 : index
    %c0_576 = arith.constant 0 : index
    %1117 = vector.load %arg10[%c1_574, %c0_575, %c0_576] : memref<9x64x16xbf16, #tpu.memory_space<vmem>>, vector<1x64x16xbf16>
    %1118 = vector.shape_cast %1117 : vector<1x64x16xbf16> to vector<64x16xbf16>
    %cst_577 = arith.constant dense<0.000000e+00> : vector<256x16xf32>
    %1119 = tpu.matmul %1116, %1118, %cst_577 {dimension_numbers = #tpu.dot_dimension_numbers<[1], [0], [0], [1], [0, 0, 1, 1], [], []>} : vector<256x64xbf16>, vector<64x16xbf16>, vector<256x16xf32> -> vector<256x16xf32>
    %1120 = arith.addf %1113, %1119 : vector<256x16xf32>
    %c0_578 = arith.constant 0 : index
    %c2_579 = arith.constant 2 : index
    %c0_580 = arith.constant 0 : index
    %1121 = vector.load %arg14[%c0_578, %c2_579, %c0_580] : memref<18x18x64xf32, #tpu.memory_space<vmem>>, vector<16x16x64xf32>
    %1122 = vector.shape_cast %1121 : vector<16x16x64xf32> to vector<256x64xf32>
    %1123 = arith.truncf %1122 : vector<256x64xf32> to vector<256x64xbf16>
    %c2_581 = arith.constant 2 : index
    %c0_582 = arith.constant 0 : index
    %c0_583 = arith.constant 0 : index
    %1124 = vector.load %arg10[%c2_581, %c0_582, %c0_583] : memref<9x64x16xbf16, #tpu.memory_space<vmem>>, vector<1x64x16xbf16>
    %1125 = vector.shape_cast %1124 : vector<1x64x16xbf16> to vector<64x16xbf16>
    %cst_584 = arith.constant dense<0.000000e+00> : vector<256x16xf32>
    %1126 = tpu.matmul %1123, %1125, %cst_584 {dimension_numbers = #tpu.dot_dimension_numbers<[1], [0], [0], [1], [0, 0, 1, 1], [], []>} : vector<256x64xbf16>, vector<64x16xbf16>, vector<256x16xf32> -> vector<256x16xf32>
    %1127 = arith.addf %1120, %1126 : vector<256x16xf32>
    %c1_585 = arith.constant 1 : index
    %c0_586 = arith.constant 0 : index
    %c0_587 = arith.constant 0 : index
    %1128 = vector.load %arg14[%c1_585, %c0_586, %c0_587] : memref<18x18x64xf32, #tpu.memory_space<vmem>>, vector<16x16x64xf32>
    %1129 = vector.shape_cast %1128 : vector<16x16x64xf32> to vector<256x64xf32>
    %1130 = arith.truncf %1129 : vector<256x64xf32> to vector<256x64xbf16>
    %c3_588 = arith.constant 3 : index
    %c0_589 = arith.constant 0 : index
    %c0_590 = arith.constant 0 : index
    %1131 = vector.load %arg10[%c3_588, %c0_589, %c0_590] : memref<9x64x16xbf16, #tpu.memory_space<vmem>>, vector<1x64x16xbf16>
    %1132 = vector.shape_cast %1131 : vector<1x64x16xbf16> to vector<64x16xbf16>
    %cst_591 = arith.constant dense<0.000000e+00> : vector<256x16xf32>
    %1133 = tpu.matmul %1130, %1132, %cst_591 {dimension_numbers = #tpu.dot_dimension_numbers<[1], [0], [0], [1], [0, 0, 1, 1], [], []>} : vector<256x64xbf16>, vector<64x16xbf16>, vector<256x16xf32> -> vector<256x16xf32>
    %1134 = arith.addf %1127, %1133 : vector<256x16xf32>
    %c1_592 = arith.constant 1 : index
    %c1_593 = arith.constant 1 : index
    %c0_594 = arith.constant 0 : index
    %1135 = vector.load %arg14[%c1_592, %c1_593, %c0_594] : memref<18x18x64xf32, #tpu.memory_space<vmem>>, vector<16x16x64xf32>
    %1136 = vector.shape_cast %1135 : vector<16x16x64xf32> to vector<256x64xf32>
    %1137 = arith.truncf %1136 : vector<256x64xf32> to vector<256x64xbf16>
    %c4_595 = arith.constant 4 : index
    %c0_596 = arith.constant 0 : index
    %c0_597 = arith.constant 0 : index
    %1138 = vector.load %arg10[%c4_595, %c0_596, %c0_597] : memref<9x64x16xbf16, #tpu.memory_space<vmem>>, vector<1x64x16xbf16>
    %1139 = vector.shape_cast %1138 : vector<1x64x16xbf16> to vector<64x16xbf16>
    %cst_598 = arith.constant dense<0.000000e+00> : vector<256x16xf32>
    %1140 = tpu.matmul %1137, %1139, %cst_598 {dimension_numbers = #tpu.dot_dimension_numbers<[1], [0], [0], [1], [0, 0, 1, 1], [], []>} : vector<256x64xbf16>, vector<64x16xbf16>, vector<256x16xf32> -> vector<256x16xf32>
    %1141 = arith.addf %1134, %1140 : vector<256x16xf32>
    %c1_599 = arith.constant 1 : index
    %c2_600 = arith.constant 2 : index
    %c0_601 = arith.constant 0 : index
    %1142 = vector.load %arg14[%c1_599, %c2_600, %c0_601] : memref<18x18x64xf32, #tpu.memory_space<vmem>>, vector<16x16x64xf32>
    %1143 = vector.shape_cast %1142 : vector<16x16x64xf32> to vector<256x64xf32>
    %1144 = arith.truncf %1143 : vector<256x64xf32> to vector<256x64xbf16>
    %c5_602 = arith.constant 5 : index
    %c0_603 = arith.constant 0 : index
    %c0_604 = arith.constant 0 : index
    %1145 = vector.load %arg10[%c5_602, %c0_603, %c0_604] : memref<9x64x16xbf16, #tpu.memory_space<vmem>>, vector<1x64x16xbf16>
    %1146 = vector.shape_cast %1145 : vector<1x64x16xbf16> to vector<64x16xbf16>
    %cst_605 = arith.constant dense<0.000000e+00> : vector<256x16xf32>
    %1147 = tpu.matmul %1144, %1146, %cst_605 {dimension_numbers = #tpu.dot_dimension_numbers<[1], [0], [0], [1], [0, 0, 1, 1], [], []>} : vector<256x64xbf16>, vector<64x16xbf16>, vector<256x16xf32> -> vector<256x16xf32>
    %1148 = arith.addf %1141, %1147 : vector<256x16xf32>
    %c2_606 = arith.constant 2 : index
    %c0_607 = arith.constant 0 : index
    %c0_608 = arith.constant 0 : index
    %1149 = vector.load %arg14[%c2_606, %c0_607, %c0_608] : memref<18x18x64xf32, #tpu.memory_space<vmem>>, vector<16x16x64xf32>
    %1150 = vector.shape_cast %1149 : vector<16x16x64xf32> to vector<256x64xf32>
    %1151 = arith.truncf %1150 : vector<256x64xf32> to vector<256x64xbf16>
    %c6_609 = arith.constant 6 : index
    %c0_610 = arith.constant 0 : index
    %c0_611 = arith.constant 0 : index
    %1152 = vector.load %arg10[%c6_609, %c0_610, %c0_611] : memref<9x64x16xbf16, #tpu.memory_space<vmem>>, vector<1x64x16xbf16>
    %1153 = vector.shape_cast %1152 : vector<1x64x16xbf16> to vector<64x16xbf16>
    %cst_612 = arith.constant dense<0.000000e+00> : vector<256x16xf32>
    %1154 = tpu.matmul %1151, %1153, %cst_612 {dimension_numbers = #tpu.dot_dimension_numbers<[1], [0], [0], [1], [0, 0, 1, 1], [], []>} : vector<256x64xbf16>, vector<64x16xbf16>, vector<256x16xf32> -> vector<256x16xf32>
    %1155 = arith.addf %1148, %1154 : vector<256x16xf32>
    %c2_613 = arith.constant 2 : index
    %c1_614 = arith.constant 1 : index
    %c0_615 = arith.constant 0 : index
    %1156 = vector.load %arg14[%c2_613, %c1_614, %c0_615] : memref<18x18x64xf32, #tpu.memory_space<vmem>>, vector<16x16x64xf32>
    %1157 = vector.shape_cast %1156 : vector<16x16x64xf32> to vector<256x64xf32>
    %1158 = arith.truncf %1157 : vector<256x64xf32> to vector<256x64xbf16>
    %c7_616 = arith.constant 7 : index
    %c0_617 = arith.constant 0 : index
    %c0_618 = arith.constant 0 : index
    %1159 = vector.load %arg10[%c7_616, %c0_617, %c0_618] : memref<9x64x16xbf16, #tpu.memory_space<vmem>>, vector<1x64x16xbf16>
    %1160 = vector.shape_cast %1159 : vector<1x64x16xbf16> to vector<64x16xbf16>
    %cst_619 = arith.constant dense<0.000000e+00> : vector<256x16xf32>
    %1161 = tpu.matmul %1158, %1160, %cst_619 {dimension_numbers = #tpu.dot_dimension_numbers<[1], [0], [0], [1], [0, 0, 1, 1], [], []>} : vector<256x64xbf16>, vector<64x16xbf16>, vector<256x16xf32> -> vector<256x16xf32>
    %1162 = arith.addf %1155, %1161 : vector<256x16xf32>
    %c2_620 = arith.constant 2 : index
    %c2_621 = arith.constant 2 : index
    %c0_622 = arith.constant 0 : index
    %1163 = vector.load %arg14[%c2_620, %c2_621, %c0_622] : memref<18x18x64xf32, #tpu.memory_space<vmem>>, vector<16x16x64xf32>
    %1164 = vector.shape_cast %1163 : vector<16x16x64xf32> to vector<256x64xf32>
    %1165 = arith.truncf %1164 : vector<256x64xf32> to vector<256x64xbf16>
    %c8_623 = arith.constant 8 : index
    %c0_624 = arith.constant 0 : index
    %c0_625 = arith.constant 0 : index
    %1166 = vector.load %arg10[%c8_623, %c0_624, %c0_625] : memref<9x64x16xbf16, #tpu.memory_space<vmem>>, vector<1x64x16xbf16>
    %1167 = vector.shape_cast %1166 : vector<1x64x16xbf16> to vector<64x16xbf16>
    %cst_626 = arith.constant dense<0.000000e+00> : vector<256x16xf32>
    %1168 = tpu.matmul %1165, %1167, %cst_626 {dimension_numbers = #tpu.dot_dimension_numbers<[1], [0], [0], [1], [0, 0, 1, 1], [], []>} : vector<256x64xbf16>, vector<64x16xbf16>, vector<256x16xf32> -> vector<256x16xf32>
    %1169 = arith.addf %1162, %1168 : vector<256x16xf32>
    %1170 = tpu.transpose %1169, [1, 0] : vector<256x16xf32> -> vector<16x256xf32>
    %c0_627 = arith.constant 0 : index
    %c0_628 = arith.constant 0 : index
    %1171 = vector.load %arg11[%c0_627, %c0_628] : memref<16x1xf32, #tpu.memory_space<vmem>>, vector<16x1xf32>
    %1172 = vector.broadcast %1171 : vector<16x1xf32> to vector<16x256xf32>
    %1173 = arith.mulf %1170, %1172 : vector<16x256xf32>
    %c0_629 = arith.constant 0 : index
    %c0_630 = arith.constant 0 : index
    %1174 = vector.load %arg12[%c0_629, %c0_630] : memref<16x1xf32, #tpu.memory_space<vmem>>, vector<16x1xf32>
    %1175 = vector.broadcast %1174 : vector<16x1xf32> to vector<16x256xf32>
    %1176 = arith.addf %1173, %1175 : vector<16x256xf32>
    %cst_631 = arith.constant 0.000000e+00 : f32
    %1177 = vector.broadcast %cst_631 : f32 to vector<16x256xf32>
    %1178 = arith.maximumf %1176, %1177 : vector<16x256xf32>
    %c0_632 = arith.constant 0 : index
    %c0_633 = arith.constant 0 : index
    %c0_634 = arith.constant 0 : index
    %1179 = vector.load %arg13[%c0_632, %c0_633, %c0_634] : memref<1x16x256xf32, #tpu.memory_space<vmem>>, vector<1x16x256xf32>
    %1180 = vector.shape_cast %1179 : vector<1x16x256xf32> to vector<16x256xf32>
    %1181 = vector.shape_cast %1178 : vector<16x256xf32> to vector<1x16x256xf32>
    tpu.vector_store %arg13[%c0_632, %c0_633, %c0_634], %1181 {strides = array<i32>} : memref<1x16x256xf32, #tpu.memory_space<vmem>>, vector<1x16x256xf32>,
    return
  }
  func.func @transform_0(%arg0: i32) -> (i32, i32, i32, i32) {
    %c0_i32 = arith.constant 0 : i32
    %c0_i32_0 = arith.constant 0 : i32
    %c0_i32_1 = arith.constant 0 : i32
    %c0_i32_2 = arith.constant 0 : i32
    return %arg0, %c0_i32, %c0_i32_0, %c0_i32_1 : i32, i32, i32, i32
  }
  func.func @transform_1(%arg0: i32) -> (i32, i32, i32, i32) {
    %c0_i32 = arith.constant 0 : i32
    %c0_i32_0 = arith.constant 0 : i32
    %c0_i32_1 = arith.constant 0 : i32
    %c0_i32_2 = arith.constant 0 : i32
    return %arg0, %c0_i32, %c0_i32_0, %c0_i32_1 : i32, i32, i32, i32
  }
  func.func @transform_2(%arg0: i32) -> (i32, i32, i32, i32) {
    %c0_i32 = arith.constant 0 : i32
    %c0_i32_0 = arith.constant 0 : i32
    %c0_i32_1 = arith.constant 0 : i32
    %c0_i32_2 = arith.constant 0 : i32
    return %arg0, %c0_i32, %c0_i32_0, %c0_i32_1 : i32, i32, i32, i32
  }
  func.func @transform_3(%arg0: i32) -> (i32, i32) {
    %c0_i32 = arith.constant 0 : i32
    %c0_i32_0 = arith.constant 0 : i32
    %c0_i32_1 = arith.constant 0 : i32
    return %c0_i32, %c0_i32_0 : i32, i32
  }
  func.func @transform_4(%arg0: i32) -> (i32, i32) {
    %c0_i32 = arith.constant 0 : i32
    %c0_i32_0 = arith.constant 0 : i32
    %c0_i32_1 = arith.constant 0 : i32
    return %c0_i32, %c0_i32_0 : i32, i32
  }
  func.func @transform_5(%arg0: i32) -> i32 {
    %c0_i32 = arith.constant 0 : i32
    %c0_i32_0 = arith.constant 0 : i32
    return %c0_i32 : i32
  }
  func.func @transform_6(%arg0: i32) -> (i32, i32) {
    %c0_i32 = arith.constant 0 : i32
    %c0_i32_0 = arith.constant 0 : i32
    %c0_i32_1 = arith.constant 0 : i32
    return %c0_i32, %c0_i32_0 : i32, i32
  }
  func.func @transform_7(%arg0: i32) -> (i32, i32) {
    %c0_i32 = arith.constant 0 : i32
    %c0_i32_0 = arith.constant 0 : i32
    %c0_i32_1 = arith.constant 0 : i32
    return %c0_i32, %c0_i32_0 : i32, i32
  }
  func.func @transform_8(%arg0: i32) -> i32 {
    %c0_i32 = arith.constant 0 : i32
    %c0_i32_0 = arith.constant 0 : i32
    return %c0_i32 : i32
  }
  func.func @transform_9(%arg0: i32) -> (i32, i32, i32) {
    %c0_i32 = arith.constant 0 : i32
    %c0_i32_0 = arith.constant 0 : i32
    %c0_i32_1 = arith.constant 0 : i32
    %c0_i32_2 = arith.constant 0 : i32
    return %c0_i32, %c0_i32_0, %c0_i32_1 : i32, i32, i32
  }
  func.func @transform_10(%arg0: i32) -> (i32, i32) {
    %c0_i32 = arith.constant 0 : i32
    %c0_i32_0 = arith.constant 0 : i32
    %c0_i32_1 = arith.constant 0 : i32
    return %c0_i32, %c0_i32_0 : i32, i32
  }
  func.func @transform_11(%arg0: i32) -> (i32, i32) {
    %c0_i32 = arith.constant 0 : i32
    %c0_i32_0 = arith.constant 0 : i32
    %c0_i32_1 = arith.constant 0 : i32
    return %c0_i32, %c0_i32_0 : i32, i32
  }
  func.func @transform_12(%arg0: i32) -> (i32, i32, i32) {
    %c0_i32 = arith.constant 0 : i32
    %c0_i32_0 = arith.constant 0 : i32
    %c0_i32_1 = arith.constant 0 : i32
    return %arg0, %c0_i32, %c0_i32_0 : i32, i32, i32
  }
}

</mosaic_0001>

<bundles_post_ra>
// kernel: eta_forward.1
= control target key start
LH: loop header
LB: loop body
LE: loop exit
PB: predicated region body
PF: predicated region fallthrough
CT: control target
= control target key end

     0   :  { %s15759_s0 = inlined_call_operand.vmem [shape: f32[2,16,16,32], index: 0, kind: input, shape index: {}]   ;;  %s15760_s1 = inlined_call_operand.vmem [shape: f32[2,16,16,1], index: 1, kind: input, shape index: {}]   ;;  %s15761_s2 = inlined_call_operand.vmem [shape: f32[2,16,16,1], index: 2, kind: input, shape index: {}]   ;;  %s15762_s3 = inlined_call_operand.vmem [shape: f32[2,32], index: 3, kind: input, shape index: {}]   ;;  %s15763_s4 = inlined_call_operand.vmem [shape: f32[2,32], index: 4, kind: input, shape index: {}]   ;;  %s15764_s5 = inlined_call_operand.vmem [shape: f32[98], index: 5, kind: input, shape index: {}]   ;;  %s15765_s6 = inlined_call_operand.vmem [shape: f32[2,32], index: 6, kind: input, shape index: {}]   ;;  %s15766_s7 = inlined_call_operand.vmem [shape: f32[2,32], index: 7, kind: input, shape index: {}]   ;;  %s15767_s8 = inlined_call_operand.vmem [shape: f32[98], index: 8, kind: input, shape index: {}]   ;;  %s15768_s9 = inlined_call_operand.vmem [shape: bf16[9,64,16], index: 9, kind: input, shape index: {}]   ;;  %s15769_s10 = inlined_call_operand.vmem [shape: f32[16,1], index: 10, kind: input, shape index: {}]   ;;  %s15770_s11 = inlined_call_operand.vmem [shape: f32[16,1], index: 11, kind: input, shape index: {}]   ;;  %s15771_s12 = inlined_call_operand.vmem [shape: f32[2,16,256], index: 12, kind: output, shape index: {}]  }
   0x1   :  { %16118 = sst [smem:[#allocation160_spill]] %s15759_s0 }
   0x2   :  { %16119 = sst [smem:[#allocation161_spill]] %s15760_s1 }
   0x3   :  { %16120 = sst [smem:[#allocation162_spill]] %s15761_s2 }
   0x4   :  { %16121 = sst [smem:[#allocation163_spill]] %s15762_s3 }
   0x5   :  { %16122 = sst [smem:[#allocation164_spill]] %s15763_s4 }
   0x6   :  { %16123 = sst [smem:[#allocation165_spill]] %s15764_s5 }
   0x7   :  { %16124 = sst [smem:[#allocation166_spill]] %s15765_s6 }
   0x8   :  { %16125 = sst [smem:[#allocation167_spill]] %s15766_s7 }
   0x9   :  { %16126 = sst [smem:[#allocation168_spill]] %s15767_s8 }
   0xa   :  { %16127 = sst [smem:[#allocation169_spill]] %s15768_s9 }
   0xb   :  { %16128 = sst [smem:[#allocation170_spill]] %s15769_s10 }
   0xc   :  { %16129 = sst [smem:[#allocation171_spill]] %s15770_s11 }
   0xd   :  { %16130 = sst [smem:[#allocation172_spill]] %s15771_s12 }
   0xe   :  { %17 = vsyncpa [#allocation6], 0 }
   0xf   :  { %18 = vsyncpa [#allocation8], 0  ;;  %s10495_s21 = smov 0  }
  0x10 LB: > { %16131 = sst [smem:[#allocation11_spill]] %s10417_s21  ;;  %s10501_s22 = sadd.s32 4294967295, %s10417_s21   ;;  %s10417_s21 = sphi %s10495_s21, %s24_s21  }
  0x11   : > { %p8994_p0 = scmp.ge.s32.totalorder %s10417_s21, 1  ;;  %p322_p1 = scmp.lt.s32.totalorder %s10417_s21, 3 }
  0x12   : > { %s16132_s5 = sld [smem:[#allocation165_spill]]  ;;  %p15772_p3 = scmp.eq.s32.totalorder %s10501_s22, 0 }
  0x13   : > { %p10508_p2 = pnand %p8994_p0, %p322_p1  ;;  %s16134_s8 = sld [smem:[#allocation168_spill]] }
  0x15   : > { %s16133_s26 = scalar_select %p10508_p2, 1, 0 }
  0x16   : > { %p10271_p4 = pneg %p10508_p2 }
  0x18   : > { %s341_s25 = sshll.u32 %s16132_s5, 4  ;;  %p10520_p5 = pnand %p15772_p3, %p10271_p4  ;;  %s342_s25 = int_to_ptr.vmem [resolvable:$true] %s341_s25 }
  0x19   : > { %s358_s29 = sshll.u32 %s16134_s8, 4  ;;  %s10373_s13 = scalar_lea.vmem %s342_s25, 16  ;;  %s359_s29 = int_to_ptr.vmem [resolvable:$true] %s358_s29 }
  0x1a   : > { %p10374_p6 = scmp.ne.s32.totalorder %s342_s25, %s10373_s13  ;;  %p10375_p7 = pneg %p10520_p5 }
  0x1b   : > { %p10381_p10 = scmp.lt.s32.totalorder %s342_s25, %s342_s25  ;;  %p10382_p11 = scmp.lt.s32.totalorder %s10373_s13, %s10373_s13 }
  0x1c   : > { %p10376_p8 = pnand %p10375_p7, %p10374_p6 }
  0x1d   : > { %p10383_p12 = por %p10382_p11, %p10381_p10 }
  0x1e   : > { %p10377_p9 = pneg %p10376_p8 }
  0x20   : > { %p10384_p13 = pnand %p10383_p12, %p10377_p9 }
  0x22   : > { %10387 = shalt.err (!%p10384_p13)
}
  0x23   : > { %s10419_s14 = smov [#allocation5]   ;;  %s10388_s15 = scalar_lea.vmem %s359_s29, 16 }
  0x24   : > { %10274 = dma.vmem_to_smem (!%p10520_p5), %s342_s25, 16, %s10419_s14, [#allocation6]  }
  0x25   : > { %p10389_p0 = scmp.ne.s32.totalorder %s359_s29, %s10388_s15  ;;  %p10396_p3 = scmp.lt.s32.totalorder %s359_s29, %s359_s29 }
  0x26   : > { %p10397_p2 = scmp.lt.s32.totalorder %s10388_s15, %s10388_s15 }
  0x27   : > { %p10391_p1 = pnand %p10389_p0, %p10375_p7 }
  0x28   : > { %p10398_p6 = por %p10397_p2, %p10396_p3 }
  0x29   : > { %p10392_p4 = pneg %p10391_p1 }
  0x2b   : > { %p10399_p8 = pnand %p10398_p6, %p10392_p4 }
  0x2d   : > { %10402 = shalt.err (!%p10399_p8)
}
  0x2e   : > { %s10420_s16 = smov [#allocation7]   ;;  %p16136_p9 = scmp.ne.s32.totalorder %s16133_s26, 0 }
  0x2f   : > { %10277 = dma.vmem_to_smem (!%p10520_p5), %s359_s29, 16, %s10420_s16, [#allocation8]  }
  0x30   : > { %404 = sbr.rel (%p16136_p9) target bundleno = 2624 (0xa40), region = 68 }
  0x37   : > { %p16137_p10 = scmp.eq.s32.totalorder %s10501_s22, 0 }
  0x39   : > { %10408 = dma.done.wait (%p16137_p10), [#allocation6], 16   ;;  %p16138_p11 = pmov %p16137_p10 }
  0x3a   : > { %p16139_p7 = pmov %p16137_p10 }
  0x3b   : > { %10410 = vsyncadd (%p16138_p11), [#allocation6], 4294967280 }
  0x3c   : > { %10412 = dma.done.wait (%p16139_p7), [#allocation8], 16   ;;  %p16140_p2 = pmov %p16139_p7 }
  0x3e   : > { %10414 = vsyncadd (%p16140_p2), [#allocation8], 4294967280 }
  0x3f   : > { %414 = sfence }
  0x40   : > { %p461_p3 = scmp.lt.s32.totalorder %s10501_s22, 1  ;;  %v10421_v0 = vmov 0   ;;  %s16142_s1 = sld [smem:[#allocation161_spill]]  ;;  %vm868_vm0 = vcmask 261120   ;;  %vm1010_vm1 = vcmask 254976   ;;  %vm538_vm2 = vcmask 179200  }
  0x41   : > { %10302 = vset.pattern.permute.xlu1 %v10421_v0  ;;  %10301 = vset.pattern.permute.xlu0 %v10421_v0  ;;  %s16143_s2 = sld [smem:[#allocation162_spill]]  ;;  %s16144_s0 = sld [smem:[#allocation160_spill]]  ;;  %vm541_vm3 = vcmask 177152   ;;  %vm1248_vm4 = vcmask 154712   ;;  %vm1385_vm5 = vcmask 1041409   ;;  %vm1387_vm6 = vcmask 1042434  }
  0x42   : > { %s16766_s22 = smov (!%p461_p3, %s10501_s22), 1  ;;  %s16170_s3 = sld [smem:[#allocation163_spill]]  ;;  %vm1389_vm7 = vcmask 1043459   ;;  %vm1391_vm8 = vcmask 1044484   ;;  %vm1393_vm9 = vcmask 1045509   ;;  %vm1395_vm10 = vcmask 1046534  }
  0x43   : > { %16141 = sst [smem:[#allocation12_spill]] %s16766_s22  ;;  %s10545_s17 = sshll.u32 %s16766_s22, 8  ;;  %vm1397_vm11 = vcmask 1047559   ;;  %vm1408_vm12 = vcmask 154648   ;;  %vm482_vm13 = vcmask 523264   ;;  %vm485_vm14 = vcmask 517120  }
  0x44   : > { %s16187_s6 = sld [smem:[#allocation166_spill]]  ;;  %s16188_s4 = sld [smem:[#allocation164_spill]]  ;;  %vm5920_vm15 = vcmask 523520  }
  0x45   : > { %s16238_s7 = sld [smem:[#allocation167_spill]]  ;;  %s11821_s23 = sld [smem:[#allocation5 + $0x34]] }
  0x46   : > { %s10551_s20 = scalar_lea.vmem %s16142_s1, %s10545_s17  ;;  %s11814_s19 = sld [smem:[#allocation5 + $0x32]] }
  0x47   : > { %v580_v1 = vld [vmem:[%s10551_s20 + $0x10] sm:$0xff]  ;;  %v578_v2 = vld [vmem:[%s10551_s20] sm:$0xff]  ;;  %v581_v3 = vld [vmem:[%s10551_s20 + $0x18] sm:$0xff]  ;;  %s10589_s25 = scalar_lea.vmem %s16143_s2, %s10545_s17  ;;  %s10627_s28 = scalar_lea.vmem %s16144_s0, %s10545_s17 }
  0x48   : > { %654 = vperm.xlu1 %10302, %v580_v1   ;;  %644 = vperm.xlu0 %10301, %v578_v2   ;;  %v579_v4 = vld [vmem:[%s10551_s20 + $0x8] sm:$0xff]  ;;  %v582_v6 = vld [vmem:[%s10551_s20 + $0x20] sm:$0xff]  ;;  %v585_v7 = vld [vmem:[%s10551_s20 + $0x38] sm:$0xff]  ;;  %s15899_s24 = smov 127   ;;  %s15903_s26 = smov 125  }
  0x49   : > { %v583_v5 = vld [vmem:[%s10551_s20 + $0x28] sm:$0xff]  ;;  %v584_v8 = vld [vmem:[%s10551_s20 + $0x30] sm:$0xff]  ;;  %v586_v10 = vld [vmem:[%s10551_s20 + $0x40] sm:$0xff]  ;;  %s11872_s27 = sld [smem:[#allocation5]]  ;;  %s11880_s29 = sld [smem:[#allocation5 + $0x35]] }
  0x4a   : > { %v587_v9 = vld [vmem:[%s10551_s20 + $0x48] sm:$0xff]  ;;  %v589_v11 = vld [vmem:[%s10551_s20 + $0x58] sm:$0xff]  ;;  %v588_v12 = vld [vmem:[%s10551_s20 + $0x50] sm:$0xff]  ;;  %s11886_s30 = sld [smem:[#allocation5 + $0x36]]  ;;  %s11902_s13 = sld [smem:[#allocation5 + $0x37]] }
  0x4b   : > { %v591_v13 = vld [vmem:[%s10551_s20 + $0x68] sm:$0xff]  ;;  %v590_v14 = vld [vmem:[%s10551_s20 + $0x60] sm:$0xff]  ;;  %v593_v15 = vld [vmem:[%s10551_s20 + $0x78] sm:$0xff]  ;;  %s11912_s14 = sld [smem:[#allocation5 + $0x39]]  ;;  %s15901_s15 = smov 124  }
  0x4c   : > { %659 = vperm.xlu1 %10302, %v581_v3   ;;  %649 = vperm.xlu0 %10301, %v579_v4   ;;  %v592_v16 = vld [vmem:[%s10551_s20 + $0x70] sm:$0xff]  ;;  %v595_v17 = vld [vmem:[%s10551_s20 + $0x88] sm:$0xff]  ;;  %v594_v18 = vld [vmem:[%s10551_s20 + $0x80] sm:$0xff]  ;;  %s11920_s16 = sld [smem:[#allocation5 + $0x3a]]  ;;  %s15892_s17 = smov 123  }
  0x4d   : > { %v597_v19 = vld [vmem:[%s10551_s20 + $0x98] sm:$0xff]  ;;  %v596_v20 = vld [vmem:[%s10551_s20 + $0x90] sm:$0xff]  ;;  %v599_v21 = vld [vmem:[%s10551_s20 + $0xa8] sm:$0xff]  ;;  %s11927_s18 = sld [smem:[#allocation5 + $0x3b]]  ;;  %s16319_s0 = smov 124  }
  0x4e   : > { %v598_v22 = vld [vmem:[%s10551_s20 + $0xa0] sm:$0xff]  ;;  %v601_v23 = vld [vmem:[%s10551_s20 + $0xb8] sm:$0xff]  ;;  %v600_v24 = vld [vmem:[%s10551_s20 + $0xb0] sm:$0xff]  ;;  %s12454_s1 = sld [smem:[#allocation7 + $0x2]]  ;;  %s12467_s2 = sld [smem:[#allocation7 + $0x3]] }
  0x4f   : > { %v603_v25 = vld [vmem:[%s10551_s20 + $0xc8] sm:$0xff]  ;;  %v602_v26 = vld [vmem:[%s10551_s20 + $0xc0] sm:$0xff]  ;;  %v605_v27 = vld [vmem:[%s10551_s20 + $0xd8] sm:$0xff]  ;;  %16275 = sst [smem:[#allocation78_spill]] %s11872_s27  ;;  %s12483_s5 = sld [smem:[#allocation7 + $0x34]] }
  0x50   : > { %669 = vperm.xlu1 %10302, %v583_v5   ;;  %664 = vperm.xlu0 %10301, %v582_v6   ;;  %v604_v28 = vld [vmem:[%s10551_s20 + $0xd0] sm:$0xff]  ;;  %v607_v29 = vld [vmem:[%s10551_s20 + $0xe8] sm:$0xff]  ;;  %v606_v30 = vld [vmem:[%s10551_s20 + $0xe0] sm:$0xff]  ;;  %s12496_s8 = sld [smem:[#allocation5 + $0xe]]  ;;  %s12500_s21 = sld [smem:[#allocation7 + $0x4]] }
  0x51   : > { %v609_v31 = vld [vmem:[%s10551_s20 + $0xf8] sm:$0xff]  ;;  %v608_v32 = vld [vmem:[%s10551_s20 + $0xf0] sm:$0xff]  ;;  %v611_v33 = vld [vmem:[%s10589_s25 + $0x8] sm:$0xff]  ;;  %s11818_s20 = sld [smem:[#allocation5 + $0x33]]  ;;  %s16325_s12 = smov 126  }
  0x52   : > { %v610_v34 = vld [vmem:[%s10589_s25] sm:$0xff]  ;;  %v612_v35 = vld [vmem:[%s10589_s25 + $0x10] sm:$0xff]  ;;  %v613_v36 = vld [vmem:[%s10589_s25 + $0x18] sm:$0xff]  ;;  %s12506_s22 = sld [smem:[#allocation5 + $0x3f]]  ;;  %s16328_s10 = smov 122  }
  0x53   : > { %v614_v37 = vld [vmem:[%s10589_s25 + $0x20] sm:$0xff]  ;;  %v615_v38 = vld [vmem:[%s10589_s25 + $0x28] sm:$0xff]  ;;  %v616_v39 = vld [vmem:[%s10589_s25 + $0x30] sm:$0xff]  ;;  %s12515_s11 = sld [smem:[#allocation5 + $0x47]]  ;;  %s12519_s9 = sld [smem:[#allocation7 + $0x35]] }
  0x54   : > { %679 = vperm.xlu1 %10302, %v585_v7   ;;  %674 = vperm.xlu0 %10301, %v584_v8   ;;  %v617_v40 = vld [vmem:[%s10589_s25 + $0x38] sm:$0xff]  ;;  %v618_v41 = vld [vmem:[%s10589_s25 + $0x40] sm:$0xff]  ;;  %v619_v42 = vld [vmem:[%s10589_s25 + $0x48] sm:$0xff] }
  0x55   : > { %v620_v43 = vld [vmem:[%s10589_s25 + $0x50] sm:$0xff]  ;;  %v621_v44 = vld [vmem:[%s10589_s25 + $0x58] sm:$0xff]  ;;  %v622_v45 = vld [vmem:[%s10589_s25 + $0x60] sm:$0xff] }
  0x56   : > { %v623_v46 = vld [vmem:[%s10589_s25 + $0x68] sm:$0xff]  ;;  %v624_v47 = vld [vmem:[%s10589_s25 + $0x70] sm:$0xff]  ;;  %v625_v48 = vld [vmem:[%s10589_s25 + $0x78] sm:$0xff]  ;;  %16323 = sst [smem:[#allocation102_spill]] %s12496_s8 }
  0x57   : > { %v626_v49 = vld [vmem:[%s10589_s25 + $0x80] sm:$0xff]  ;;  %v627_v50 = vld [vmem:[%s10589_s25 + $0x88] sm:$0xff]  ;;  %v628_v51 = vld [vmem:[%s10589_s25 + $0x90] sm:$0xff] }
  0x58   : > { %689 = vperm.xlu1 %10302, %v587_v9   ;;  %684 = vperm.xlu0 %10301, %v586_v10   ;;  %v629_v52 = vld [vmem:[%s10589_s25 + $0x98] sm:$0xff]  ;;  %v630_v53 = vld [vmem:[%s10589_s25 + $0xa0] sm:$0xff]  ;;  %v631_v54 = vld [vmem:[%s10589_s25 + $0xa8] sm:$0xff]  ;;  %16326 = sst [smem:[#allocation104_spill]] %s12506_s22 }
  0x59   : > { %v632_v55 = vld [vmem:[%s10589_s25 + $0xb0] sm:$0xff]  ;;  %v633_v56 = vld [vmem:[%s10589_s25 + $0xb8] sm:$0xff]  ;;  %v634_v57 = vld [vmem:[%s10589_s25 + $0xc0] sm:$0xff]  ;;  %16327 = sst [smem:[#allocation105_spill]] %s12515_s11 }
  0x5a   : > { %v635_v58 = vld [vmem:[%s10589_s25 + $0xc8] sm:$0xff]  ;;  %v636_v59 = vld [vmem:[%s10589_s25 + $0xd0] sm:$0xff]  ;;  %v637_v60 = vld [vmem:[%s10589_s25 + $0xd8] sm:$0xff] }
  0x5b   : > { %v638_v61 = vld [vmem:[%s10589_s25 + $0xe0] sm:$0xff]  ;;  %v639_v62 = vld [vmem:[%s10589_s25 + $0xe8] sm:$0xff]  ;;  %v640_v63 = vld [vmem:[%s10589_s25 + $0xf0] sm:$0xff] }
  0x5c   : > { %699 = vperm.xlu1 %10302, %v589_v11   ;;  %694 = vperm.xlu0 %10301, %v588_v12   ;;  %v641_v0 = vld [vmem:[%s10589_s25 + $0xf8] sm:$0xff]  ;;  %v10630_v1 = vld [vmem:[%s10627_s28] sm:$0xff]  ;;  %v10633_v4 = vld [vmem:[%s10627_s28 + $0x10] sm:$0xff]  ;;  %s15897_s25 = smov 126  }
  0x5d   : > { %v10637_v6 = vld [vmem:[%s10627_s28 + $0x18] sm:$0xff]  ;;  %v10640_v7 = vld [vmem:[%s10627_s28 + $0x8] sm:$0xff] }
  0x60   : > { %709 = vperm.xlu1 %10302, %v591_v13   ;;  %704 = vperm.xlu0 %10301, %v590_v14   ;;  %v10649_v14 = vld [vmem:[%s10627_s28 + $0x20] sm:$0xff] }
  0x64   : > { %719 = vperm.xlu1 %10302, %v593_v15   ;;  %714 = vperm.xlu0 %10301, %v592_v16   ;;  %v10652_v15 = vld [vmem:[%s10627_s28 + $0x28] sm:$0xff] }
  0x68   : > { %729 = vperm.xlu1 %10302, %v595_v17   ;;  %724 = vperm.xlu0 %10301, %v594_v18  }
  0x6c   : > { %739 = vperm.xlu1 %10302, %v597_v19   ;;  %734 = vperm.xlu0 %10301, %v596_v20  }
  0x70   : > { %749 = vperm.xlu1 %10302, %v599_v21   ;;  %744 = vperm.xlu0 %10301, %v598_v22  }
  0x74   : > { %759 = vperm.xlu1 %10302, %v601_v23   ;;  %754 = vperm.xlu0 %10301, %v600_v24  }
  0x78   : > { %769 = vperm.xlu1 %10302, %v603_v25   ;;  %764 = vperm.xlu0 %10301, %v602_v26   ;;  %v10670_v26 = vld [vmem:[%s10627_s28 + $0x38] sm:$0xff] }
  0x7c   : > { %779 = vperm.xlu1 %10302, %v605_v27   ;;  %774 = vperm.xlu0 %10301, %v604_v28   ;;  %v10673_v27 = vld [vmem:[%s10627_s28 + $0x30] sm:$0xff] }
  0x80   : > { %789 = vperm.xlu1 %10302, %v607_v29   ;;  %784 = vperm.xlu0 %10301, %v606_v30  }
  0x84   : > { %799 = vperm.xlu1 %10302, %v609_v31   ;;  %794 = vperm.xlu0 %10301, %v608_v32  }
  0x88   : > { %3216 = vperm.xlu1 %10302, %v611_v33   ;;  %3211 = vperm.xlu0 %10301, %v610_v34  }
  0x8c   : > { %3221 = vperm.xlu1 %10302, %v612_v35   ;;  %3226 = vperm.xlu0 %10301, %v613_v36  }
  0x90   : > { %3231 = vperm.xlu1 %10302, %v614_v37   ;;  %3236 = vperm.xlu0 %10301, %v615_v38   ;;  %v10688_v37 = vld [vmem:[%s10627_s28 + $0x40] sm:$0xff] }
  0x94   : > { %3241 = vperm.xlu1 %10302, %v616_v39   ;;  %3246 = vperm.xlu0 %10301, %v617_v40   ;;  %v10691_v39 = vld [vmem:[%s10627_s28 + $0x48] sm:$0xff] }
  0x98   : > { %3251 = vperm.xlu1 %10302, %v618_v41   ;;  %3256 = vperm.xlu0 %10301, %v619_v42  }
  0x9c   : > { %3261 = vperm.xlu1 %10302, %v620_v43   ;;  %3266 = vperm.xlu0 %10301, %v621_v44  }
  0xa0   : > { %3271 = vperm.xlu1 %10302, %v622_v45   ;;  %3276 = vperm.xlu0 %10301, %v623_v46  }
  0xa4   : > { %3281 = vperm.xlu1 %10302, %v624_v47   ;;  %3286 = vperm.xlu0 %10301, %v625_v48  }
  0xa8   : > { %3291 = vperm.xlu1 %10302, %v626_v49   ;;  %3296 = vperm.xlu0 %10301, %v627_v50   ;;  %v10706_v50 = vld [vmem:[%s10627_s28 + $0x58] sm:$0xff] }
  0xac   : > { %3301 = vperm.xlu1 %10302, %v628_v51   ;;  %3306 = vperm.xlu0 %10301, %v629_v52   ;;  %v10709_v51 = vld [vmem:[%s10627_s28 + $0x50] sm:$0xff] }
  0xb0   : > { %3311 = vperm.xlu1 %10302, %v630_v53   ;;  %3316 = vperm.xlu0 %10301, %v631_v54  }
  0xb4   : > { %3321 = vperm.xlu1 %10302, %v632_v55   ;;  %3326 = vperm.xlu0 %10301, %v633_v56  }
  0xb8   : > { %3331 = vperm.xlu1 %10302, %v634_v57   ;;  %3336 = vperm.xlu0 %10301, %v635_v58  }
  0xbc   : > { %3341 = vperm.xlu1 %10302, %v636_v59   ;;  %3346 = vperm.xlu0 %10301, %v637_v60  }
  0xc0   : > { %3351 = vperm.xlu1 %10302, %v638_v61   ;;  %3356 = vperm.xlu0 %10301, %v639_v62   ;;  %v10724_v62 = vld [vmem:[%s10627_s28 + $0x68] sm:$0xff] }
  0xc4   : > { %3361 = vperm.xlu1 %10302, %v640_v63   ;;  %3366 = vperm.xlu0 %10301, %v641_v0   ;;  %v10727_v63 = vld [vmem:[%s10627_s28 + $0x60] sm:$0xff] }
  0xc7   : > { %v655_v2 = vpop.permute.xlu1 %654  ;;  %v645_v3 = vpop.permute.xlu0 %644 }
  0xc8   : > { %v802_v5 = vmul.f32 %v645_v3, %v10630_v1  ;;  %v804_v8 = vmul.f32 %v655_v2, %v10633_v4 }
  0xca   : > { %v10644_v11 = vadd.f32 %v802_v5, %v10630_v1  ;;  %v10655_v16 = vadd.f32 %v804_v8, %v10633_v4 }
  0xcb   : > { %v660_v9 = vpop.permute.xlu1 %659  ;;  %v650_v10 = vpop.permute.xlu0 %649 }
  0xcc   : > { %16145 = vst [vmem:[#allocation13_spill] sm:$0xff] %v10644_v11  ;;  %v805_v12 = vmul.f32 %v660_v9, %v10637_v6  ;;  %v803_v13 = vmul.f32 %v650_v10, %v10640_v7  ;;  %16146 = vst [vmem:[#allocation14_spill] sm:$0xff] %v10655_v16  ;;  %v869_v21 = vsel %vm868_vm0, %v10644_v11, 0.0  ;;  %v872_v28 = vsel %vm868_vm0, %v10655_v16, 0.0 }
  0xce   : > { %v10658_v17 = vadd.f32 %v803_v13, %v10640_v7  ;;  %v10664_v22 = vadd.f32 %v805_v12, %v10637_v6 }
  0xcf   : > { %v670_v18 = vpop.permute.xlu1 %669  ;;  %v665_v19 = vpop.permute.xlu0 %664 }
  0xd0   : > { %16147 = vst [vmem:[#allocation15_spill] sm:$0xff] %v10658_v17  ;;  %v806_v20 = vmul.f32 %v665_v19, %v10649_v14  ;;  %16148 = vst [vmem:[#allocation16_spill] sm:$0xff] %v10664_v22  ;;  %v870_v23 = vsel %vm868_vm0, %v10658_v17, 0.0  ;;  %v807_v24 = vmul.f32 %v670_v18, %v10652_v15  ;;  %v874_v33 = vsel %vm868_vm0, %v10664_v22, 0.0  ;;  %v10742_v19 = vld [vmem:[%s10627_s28 + $0x78] sm:$0xff] }
  0xd1   : > { %v871_v25 = vadd.f32 %v870_v23, %v869_v21 }
  0xd2   : > { %v10678_v29 = vadd.f32 %v806_v20, %v10649_v14  ;;  %v10683_v34 = vadd.f32 %v807_v24, %v10652_v15  ;;  %v10745_v20 = vld [vmem:[%s10627_s28 + $0x70] sm:$0xff] }
  0xd3   : > { %v680_v30 = vpop.permute.xlu1 %679  ;;  %v675_v31 = vpop.permute.xlu0 %674  ;;  %v873_v32 = vadd.f32 %v872_v28, %v871_v25 }
  0xd4   : > { %16149 = vst [vmem:[#allocation17_spill] sm:$0xff] %v10678_v29  ;;  %16150 = vst [vmem:[#allocation18_spill] sm:$0xff] %v10683_v34  ;;  %v809_v35 = vmul.f32 %v680_v30, %v10670_v26  ;;  %v808_v36 = vmul.f32 %v675_v31, %v10673_v27  ;;  %v876_v40 = vsel %vm868_vm0, %v10678_v29, 0.0  ;;  %v878_v46 = vsel %vm868_vm0, %v10683_v34, 0.0 }
  0xd5   : > { %v875_v38 = vadd.f32 %v874_v33, %v873_v32 }
  0xd6   : > { %v10696_v41 = vadd.f32 %v808_v36, %v10673_v27  ;;  %v10702_v47 = vadd.f32 %v809_v35, %v10670_v26  ;;  %v10760_v36 = vld [vmem:[%s10627_s28 + $0x88] sm:$0xff] }
  0xd7   : > { %v690_v42 = vpop.permute.xlu1 %689  ;;  %v685_v43 = vpop.permute.xlu0 %684  ;;  %v877_v44 = vadd.f32 %v876_v40, %v875_v38  ;;  %v10763_v38 = vld [vmem:[%s10627_s28 + $0x80] sm:$0xff] }
  0xd8   : > { %16151 = vst [vmem:[#allocation19_spill] sm:$0xff] %v10696_v41  ;;  %v810_v45 = vmul.f32 %v685_v43, %v10688_v37  ;;  %16152 = vst [vmem:[#allocation20_spill] sm:$0xff] %v10702_v47  ;;  %v811_v48 = vmul.f32 %v690_v42, %v10691_v39  ;;  %v880_v52 = vsel %vm868_vm0, %v10696_v41, 0.0  ;;  %v882_v57 = vsel %vm868_vm0, %v10702_v47, 0.0 }
  0xd9   : > { %v879_v49 = vadd.f32 %v878_v46, %v877_v44 }
  0xda   : > { %v10714_v53 = vadd.f32 %v810_v45, %v10688_v37  ;;  %v10719_v58 = vadd.f32 %v811_v48, %v10691_v39 }
  0xdb   : > { %v700_v54 = vpop.permute.xlu1 %699  ;;  %v695_v55 = vpop.permute.xlu0 %694  ;;  %v881_v56 = vadd.f32 %v880_v52, %v879_v49 }
  0xdc   : > { %16153 = vst [vmem:[#allocation21_spill] sm:$0xff] %v10714_v53  ;;  %16154 = vst [vmem:[#allocation22_spill] sm:$0xff] %v10719_v58  ;;  %v813_v59 = vmul.f32 %v700_v54, %v10706_v50  ;;  %v812_v60 = vmul.f32 %v695_v55, %v10709_v51  ;;  %v884_v0 = vsel %vm868_vm0, %v10714_v53, 0.0  ;;  %v886_v9 = vsel %vm868_vm0, %v10719_v58, 0.0  ;;  %v10778_v55 = vld [vmem:[%s10627_s28 + $0x90] sm:$0xff] }
  0xdd   : > { %v883_v61 = vadd.f32 %v882_v57, %v881_v56 }
  0xde   : > { %v10732_v2 = vadd.f32 %v812_v60, %v10709_v51  ;;  %v10737_v10 = vadd.f32 %v813_v59, %v10706_v50 }
  0xdf   : > { %v710_v3 = vpop.permute.xlu1 %709  ;;  %v705_v5 = vpop.permute.xlu0 %704  ;;  %v885_v8 = vadd.f32 %v884_v0, %v883_v61  ;;  %v10786_v0 = vld [vmem:[%s10627_s28 + $0x98] sm:$0xff] }
  0xe0   : > { %16155 = vst [vmem:[#allocation23_spill] sm:$0xff] %v10732_v2  ;;  %16156 = vst [vmem:[#allocation24_spill] sm:$0xff] %v10737_v10  ;;  %v815_v12 = vmul.f32 %v710_v3, %v10724_v62  ;;  %v814_v13 = vmul.f32 %v705_v5, %v10727_v63  ;;  %v888_v21 = vsel %vm868_vm0, %v10732_v2, 0.0  ;;  %v890_v30 = vsel %vm868_vm0, %v10737_v10, 0.0 }
  0xe1   : > { %v887_v18 = vadd.f32 %v886_v9, %v885_v8 }
  0xe2   : > { %v10750_v23 = vadd.f32 %v814_v13, %v10727_v63  ;;  %v10755_v31 = vadd.f32 %v815_v12, %v10724_v62 }
  0xe3   : > { %v720_v24 = vpop.permute.xlu1 %719  ;;  %v715_v25 = vpop.permute.xlu0 %714  ;;  %v889_v28 = vadd.f32 %v888_v21, %v887_v18 }
  0xe4   : > { %16157 = vst [vmem:[#allocation25_spill] sm:$0xff] %v10750_v23  ;;  %16158 = vst [vmem:[#allocation26_spill] sm:$0xff] %v10755_v31  ;;  %v817_v32 = vmul.f32 %v720_v24, %v10742_v19  ;;  %v816_v33 = vmul.f32 %v715_v25, %v10745_v20  ;;  %v892_v40 = vsel %vm868_vm0, %v10750_v23, 0.0  ;;  %v894_v46 = vsel %vm868_vm0, %v10755_v31, 0.0 }
  0xe5   : > { %v891_v35 = vadd.f32 %v890_v30, %v889_v28  ;;  %v10801_v28 = vld [vmem:[%s10627_s28 + $0xa0] sm:$0xff]  ;;  %v942_v30 = vsel %vm868_vm0, %v10655_v16, -inf }
  0xe6   : > { %v10768_v42 = vadd.f32 %v816_v33, %v10745_v20  ;;  %v10773_v48 = vadd.f32 %v817_v32, %v10742_v19  ;;  %v940_v32 = vsel %vm868_vm0, %v10644_v11, -inf  ;;  %v946_v33 = vsel %vm868_vm0, %v10683_v34, -inf }
  0xe7   : > { %v730_v43 = vpop.permute.xlu1 %729  ;;  %v725_v44 = vpop.permute.xlu0 %724  ;;  %v893_v45 = vadd.f32 %v892_v40, %v891_v35  ;;  %v941_v40 = vsel %vm868_vm0, %v10658_v17, -inf }
  0xe8   : > { %16159 = vst [vmem:[#allocation27_spill] sm:$0xff] %v10768_v42  ;;  %16160 = vst [vmem:[#allocation28_spill] sm:$0xff] %v10773_v48  ;;  %v819_v49 = vmul.f32 %v730_v43, %v10760_v36  ;;  %v818_v52 = vmul.f32 %v725_v44, %v10763_v38  ;;  %v896_v56 = vsel %vm868_vm0, %v10768_v42, 0.0  ;;  %v898_v3 = vsel %vm868_vm0, %v10773_v48, 0.0 }
  0xe9   : > { %v895_v54 = vadd.f32 %v894_v46, %v893_v45  ;;  %v944_v43 = vsel %vm868_vm0, %v10678_v29, -inf  ;;  %v950_v44 = vsel %vm868_vm0, %v10702_v47, -inf  ;;  %v948_v46 = vsel %vm868_vm0, %v10696_v41, -inf }
  0xea   : > { %v10783_v57 = vadd.f32 %v818_v52, %v10763_v38  ;;  %v10791_v5 = vadd.f32 %v819_v49, %v10760_v36  ;;  %v949_v47 = vmax.f32 %v942_v30, %v948_v46  ;;  %v10852_v30 = vld [vmem:[%s10627_s28 + $0xb0] sm:$0xff] }
  0xeb   : > { %v740_v59 = vpop.permute.xlu1 %739  ;;  %v735_v60 = vpop.permute.xlu0 %734  ;;  %v897_v61 = vadd.f32 %v896_v56, %v895_v54  ;;  %v10825_v54 = vld [vmem:[%s10627_s28 + $0xa8] sm:$0xff] }
  0xec   : > { %16161 = vst [vmem:[#allocation29_spill] sm:$0xff] %v10783_v57  ;;  %16162 = vst [vmem:[#allocation30_spill] sm:$0xff] %v10791_v5  ;;  %v820_v8 = vmul.f32 %v735_v60, %v10778_v55  ;;  %v900_v12 = vsel %vm868_vm0, %v10783_v57, 0.0  ;;  %v821_v13 = vmul.f32 %v740_v59, %v10786_v0  ;;  %v902_v35 = vsel %vm868_vm0, %v10791_v5, 0.0 }
  0xed   : > { %v899_v9 = vadd.f32 %v898_v3, %v897_v61  ;;  %v943_v61 = vsel %vm868_vm0, %v10664_v22, -inf  ;;  %v947_v3 = vmax.f32 %v941_v40, %v946_v33  ;;  %v962_v33 = vsel %vm868_vm0, %v10755_v31, -inf }
  0xee   : > { %v10798_v18 = vadd.f32 %v820_v8, %v10778_v55  ;;  %v10820_v49 = vadd.f32 %v821_v13, %v10786_v0  ;;  %v954_v8 = vsel %vm868_vm0, %v10719_v58, -inf  ;;  %v952_v13 = vsel %vm868_vm0, %v10714_v53, -inf  ;;  %v10866_v53 = vld [vmem:[%s10627_s28 + $0xd8] sm:$0xff] }
  0xef   : > { %v750_v21 = vpop.permute.xlu1 %749  ;;  %v745_v24 = vpop.permute.xlu0 %744  ;;  %v901_v25 = vadd.f32 %v900_v12, %v899_v9  ;;  %v945_v12 = vmax.f32 %v940_v32, %v944_v43  ;;  %v955_v32 = vmax.f32 %v947_v3, %v954_v8  ;;  %v960_v43 = vsel %vm868_vm0, %v10750_v23, -inf  ;;  %v10855_v3 = vld [vmem:[%s10627_s28 + $0xc8] sm:$0xff]  ;;  %v10858_v8 = vld [vmem:[%s10627_s28 + $0xc0] sm:$0xff] }
  0xf0   : > { %16163 = vst [vmem:[#allocation31_spill] sm:$0xff] %v10798_v18  ;;  %16164 = vst [vmem:[#allocation32_spill] sm:$0xff] %v10820_v49  ;;  %v904_v52 = vsel %vm868_vm0, %v10798_v18, 0.0  ;;  %v822_v56 = vmul.f32 %v745_v24, %v10801_v28  ;;  %v956_v24 = vsel %vm868_vm0, %v10732_v2, -inf  ;;  %v823_v40 = vmul.f32 %v750_v21, %v10825_v54 }
  0xf1   : > { %v903_v45 = vadd.f32 %v902_v35, %v901_v25  ;;  %v958_v25 = vsel %vm868_vm0, %v10737_v10, -inf  ;;  %v951_v35 = vmax.f32 %v943_v61, %v950_v44  ;;  %v953_v31 = vmax.f32 %v945_v12, %v952_v13  ;;  %v10875_v13 = vld [vmem:[%s10627_s28 + $0xd0] sm:$0xff] }
  0xf2   : > { %v10849_v44 = vadd.f32 %v822_v56, %v10801_v28  ;;  %v957_v10 = vmax.f32 %v949_v47, %v956_v24  ;;  %v963_v23 = vmax.f32 %v955_v32, %v962_v33  ;;  %v966_v2 = vsel %vm868_vm0, %v10773_v48, -inf }
  0xf3   : > { %v760_v59 = vpop.permute.xlu1 %759  ;;  %v755_v60 = vpop.permute.xlu0 %754  ;;  %v905_v9 = vadd.f32 %v904_v52, %v903_v45  ;;  %v10842_v45 = vld [vmem:[%s10627_s28 + $0xb8] sm:$0xff]  ;;  %v906_v52 = vsel %vm868_vm0, %v10820_v49, 0.0  ;;  %v959_v21 = vmax.f32 %v951_v35, %v958_v25  ;;  %v964_v56 = vsel %vm868_vm0, %v10768_v42, -inf }
  0xf4   : > { %16165 = vst [vmem:[#allocation33_spill] sm:$0xff] %v10849_v44  ;;  %v825_v34 = vmul.f32 %v760_v59, %v10842_v45  ;;  %v961_v22 = vmax.f32 %v953_v31, %v960_v43  ;;  %v970_v47 = vsel %vm868_vm0, %v10791_v5, -inf  ;;  %v824_v12 = vmul.f32 %v755_v60, %v10852_v30 }
  0xf5   : > { %v907_v58 = vadd.f32 %v906_v52, %v905_v9  ;;  %v10871_v9 = vadd.f32 %v823_v40, %v10825_v54  ;;  %v968_v25 = vsel %vm868_vm0, %v10783_v57, -inf  ;;  %v908_v59 = vsel %vm868_vm0, %v10849_v44, 0.0 }
  0xf6   : > { %v967_v40 = vmax.f32 %v959_v21, %v966_v2  ;;  %v965_v32 = vmax.f32 %v957_v10, %v964_v56  ;;  %v971_v52 = vmax.f32 %v963_v23, %v970_v47  ;;  %v974_v5 = vsel %vm868_vm0, %v10820_v49, -inf  ;;  %v10901_v10 = vld [vmem:[%s10627_s28 + $0xe0] sm:$0xff]  ;;  %v10924_v49 = vld [vmem:[%s10627_s28 + $0xf8] sm:$0xff] }
  0xf7   : > { %v770_v46 = vpop.permute.xlu1 %769  ;;  %v765_v61 = vpop.permute.xlu0 %764  ;;  %16166 = vst [vmem:[#allocation34_spill] sm:$0xff] %v10871_v9  ;;  %v909_v43 = vadd.f32 %v908_v59, %v907_v58  ;;  %v10887_v48 = vadd.f32 %v825_v34, %v10842_v45  ;;  %v972_v42 = vsel %vm868_vm0, %v10798_v18, -inf  ;;  %v910_v58 = vsel %vm868_vm0, %v10871_v9, 0.0  ;;  %16169 = vst [vmem:[#allocation37_spill] sm:$0xff] %v10901_v10 }
  0xf8   : > { %v827_v24 = vmul.f32 %v770_v46, %v10855_v3  ;;  %v826_v31 = vmul.f32 %v765_v61, %v10858_v8  ;;  %v10891_v46 = vld [vmem:[%s10627_s28 + $0xe8] sm:$0xff]  ;;  %v969_v61 = vmax.f32 %v961_v22, %v968_v25  ;;  %v10898_v2 = vadd.f32 %v824_v12, %v10852_v30 }
  0xf9   : > { %16167 = vst [vmem:[#allocation35_spill] sm:$0xff] %v10891_v46  ;;  %v978_v34 = vsel %vm868_vm0, %v10871_v9, -inf  ;;  %v976_v23 = vsel %vm868_vm0, %v10849_v44, -inf  ;;  %v975_v12 = vmax.f32 %v967_v40, %v974_v5  ;;  %v911_v25 = vadd.f32 %v910_v58, %v909_v43  ;;  %v10932_v43 = vld [vmem:[%s10627_s28 + $0xf0] sm:$0xff]  ;;  %s11874_s28 = sld [smem:[#allocation5 + $0x31]] }
  0xfa   : > { %16168 = vst [vmem:[#allocation36_spill] sm:$0xff] %v10898_v2  ;;  %v10908_v22 = vadd.f32 %v827_v24, %v10855_v3  ;;  %v10911_v21 = vadd.f32 %v826_v31, %v10858_v8  ;;  %v982_v9 = vsel %vm868_vm0, %v10887_v48, -inf  ;;  %v979_v44 = vmax.f32 %v971_v52, %v978_v34 }
  0xfb   : > { %v780_v35 = vpop.permute.xlu1 %779  ;;  %v775_v33 = vpop.permute.xlu0 %774  ;;  %v977_v18 = vmax.f32 %v969_v61, %v976_v23  ;;  %v912_v5 = vsel %vm868_vm0, %v10898_v2, 0.0  ;;  %v983_v58 = vmax.f32 %v975_v12, %v982_v9 }
  0xfc   : > { %v829_v60 = vmul.f32 %v780_v35, %v10866_v53  ;;  %v828_v57 = vmul.f32 %v775_v33, %v10875_v13  ;;  %v973_v33 = vmax.f32 %v965_v32, %v972_v42  ;;  %v980_v42 = vsel %vm868_vm0, %v10898_v2, -inf }
  0xfd   : > { %v984_v32 = vsel %vm868_vm0, %v10911_v21, -inf  ;;  %v913_v34 = vadd.f32 %v912_v5, %v911_v25  ;;  %v914_v25 = vsel %vm868_vm0, %v10887_v48, 0.0 }
  0xfe   : > { %v10914_v59 = vadd.f32 %v829_v60, %v10866_v53  ;;  %v10920_v24 = vadd.f32 %v828_v57, %v10875_v13  ;;  %v986_v57 = vsel %vm868_vm0, %v10908_v22, -inf  ;;  %v981_v41 = vmax.f32 %v973_v33, %v980_v42 }
  0xff   : > { %v790_v56 = vpop.permute.xlu1 %789  ;;  %v785_v47 = vpop.permute.xlu0 %784  ;;  %v987_v17 = vmax.f32 %v979_v44, %v986_v57  ;;  %v985_v9 = vmax.f32 %v977_v18, %v984_v32  ;;  %v915_v44 = vadd.f32 %v914_v25, %v913_v34  ;;  %v918_v25 = vsel %vm868_vm0, %v10908_v22, 0.0  ;;  %16276 = sst [smem:[#allocation79_spill]] %s11874_s28 }
 0x100   : > { %v831_v35 = vmul.f32 %v790_v56, %v10891_v46  ;;  %v830_v31 = vmul.f32 %v785_v47, %v10901_v10  ;;  %v990_v23 = vsel %vm868_vm0, %v10914_v59, -inf  ;;  %v988_v47 = vsel %vm868_vm0, %v10920_v24, -inf }
 0x101   : > { %v991_v5 = vmax.f32 %v983_v58, %v990_v23  ;;  %v989_v16 = vmax.f32 %v981_v41, %v988_v47  ;;  %v916_v58 = vsel %vm868_vm0, %v10911_v21, 0.0 }
 0x102   : > { %v10929_v40 = vadd.f32 %v831_v35, %v10891_v46  ;;  %v10941_v60 = vadd.f32 %v830_v31, %v10901_v10 }
 0x103   : > { %v800_v52 = vpop.permute.xlu1 %799  ;;  %v795_v61 = vpop.permute.xlu0 %794 }
 0x104   : > { %v833_v56 = vmul.f32 %v800_v52, %v10924_v49  ;;  %v994_v35 = vsel %vm868_vm0, %v10929_v40, -inf  ;;  %v992_v2 = vsel %vm868_vm0, %v10941_v60, -inf  ;;  %v832_v31 = vmul.f32 %v795_v61, %v10932_v43 }
 0x105   : > { %v995_v46 = vmax.f32 %v987_v17, %v994_v35  ;;  %v993_v10 = vmax.f32 %v985_v9, %v992_v2  ;;  %v917_v35 = vadd.f32 %v916_v58, %v915_v44 }
 0x106   : > { %v10954_v12 = vadd.f32 %v833_v56, %v10924_v49  ;;  %v10959_v52 = vadd.f32 %v832_v31, %v10932_v43 }
 0x107   : > { %v3217_v29 = vpop.permute.xlu1 %3216  ;;  %v3212_v11 = vpop.permute.xlu0 %3211  ;;  %v1000_v23 = vmax.f32 %v993_v10, %v995_v46 }
 0x108   : > { %v998_v33 = vsel %vm868_vm0, %v10954_v12, -inf  ;;  %v996_v42 = vsel %vm868_vm0, %v10959_v52, -inf  ;;  %v3370_v57 = vmul.f32 %v3217_v29, %v10640_v7  ;;  %v3369_v61 = vmul.f32 %v3212_v11, %v10630_v1 }
 0x109   : > { %v999_v18 = vmax.f32 %v991_v5, %v998_v33  ;;  %v997_v32 = vmax.f32 %v989_v16, %v996_v42 }
 0x10a   : > { %v10970_v41 = vadd.f32 %v3370_v57, %v10640_v7  ;;  %v10973_v34 = vadd.f32 %v3369_v61, %v10630_v1 }
 0x10b   : > { %v3222_v17 = vpop.permute.xlu1 %3221  ;;  %v3227_v2 = vpop.permute.xlu0 %3226  ;;  %v1001_v56 = vmax.f32 %v997_v32, %v999_v18  ;;  %v919_v18 = vadd.f32 %v918_v25, %v917_v35 }
 0x10c   : > { %v3371_v47 = vmul.f32 %v3222_v17, %v10633_v4  ;;  %v3436_v16 = vsel %vm868_vm0, %v10970_v41, 0.0  ;;  %v3372_v11 = vmul.f32 %v3227_v2, %v10637_v6  ;;  %v3435_v29 = vsel %vm868_vm0, %v10973_v34, 0.0 }
 0x10d   : > { %v1002_v31 = vmax.f32 %v1000_v23, %v1001_v56  ;;  %v3437_v46 = vadd.f32 %v3436_v16, %v3435_v29  ;;  %v920_v23 = vsel %vm868_vm0, %v10920_v24, 0.0  ;;  %v922_v29 = vsel %vm868_vm0, %v10914_v59, 0.0 }
 0x10e   : > { %v10982_v7 = vadd.f32 %v3371_v47, %v10633_v4  ;;  %v10985_v10 = vadd.f32 %v3372_v11, %v10637_v6  ;;  %v921_v47 = vadd.f32 %v920_v23, %v919_v18 }
 0x10f   : > { %v3232_v1 = vpop.permute.xlu1 %3231  ;;  %v3237_v9 = vpop.permute.xlu0 %3236  ;;  %v1003_v42 = vrot.slane %v1002_v31, 4 }
 0x110   : > { %v3438_v5 = vsel %vm868_vm0, %v10982_v7, 0.0  ;;  %v3373_v33 = vmul.f32 %v3232_v1, %v10649_v14  ;;  %v3374_v44 = vmul.f32 %v3237_v9, %v10652_v15  ;;  %v3440_v57 = vsel %vm868_vm0, %v10985_v10, 0.0 }
 0x111   : > { %v3439_v4 = vadd.f32 %v3438_v5, %v3437_v46  ;;  %v1004_v2 = vmax.f32 %v1002_v31, %v1003_v42  ;;  %v923_v18 = vadd.f32 %v922_v29, %v921_v47 }
 0x112   : > { %v10996_v6 = vadd.f32 %v3373_v33, %v10649_v14  ;;  %v10999_v32 = vadd.f32 %v3374_v44, %v10652_v15 }
 0x113   : > { %v3441_v61 = vadd.f32 %v3440_v57, %v3439_v4  ;;  %v3242_v58 = vpop.permute.xlu1 %3241  ;;  %v3247_v17 = vpop.permute.xlu0 %3246  ;;  %v1005_v11 = vrot.slane %v1004_v2, 2 }
 0x114   : > { %v3442_v56 = vsel %vm868_vm0, %v10996_v6, 0.0  ;;  %v3375_v16 = vmul.f32 %v3242_v58, %v10673_v27  ;;  %v3444_v14 = vsel %vm868_vm0, %v10999_v32, 0.0  ;;  %v3376_v15 = vmul.f32 %v3247_v17, %v10670_v26 }
 0x115   : > { %v3443_v35 = vadd.f32 %v3442_v56, %v3441_v61  ;;  %v1006_v44 = vmax.f32 %v1004_v2, %v1005_v11  ;;  %v924_v2 = vsel %vm868_vm0, %v10941_v60, 0.0 }
 0x116   : > { %v11012_v46 = vadd.f32 %v3375_v16, %v10673_v27  ;;  %v11015_v25 = vadd.f32 %v3376_v15, %v10670_v26 }
 0x117   : > { %v3445_v31 = vadd.f32 %v3444_v14, %v3443_v35  ;;  %v3252_v1 = vpop.permute.xlu1 %3251  ;;  %v3257_v9 = vpop.permute.xlu0 %3256  ;;  %v1007_v17 = vrot.slane %v1006_v44, 1  ;;  %v925_v35 = vadd.f32 %v924_v2, %v923_v18  ;;  %v928_v2 = vsel %vm868_vm0, %v10959_v52, 0.0 }
 0x118   : > { %v3377_v5 = vmul.f32 %v3252_v1, %v10688_v37  ;;  %v3378_v33 = vmul.f32 %v3257_v9, %v10691_v39  ;;  %v3446_v4 = vsel %vm868_vm0, %v11012_v46, 0.0  ;;  %v3448_v57 = vsel %vm868_vm0, %v11015_v25, 0.0 }
 0x119   : > { %v3447_v42 = vadd.f32 %v3446_v4, %v3445_v31  ;;  %v1008_v29 = vmax.f32 %v1006_v44, %v1007_v17  ;;  %v926_v9 = vsel %vm868_vm0, %v10929_v40, 0.0 }
 0x11a   : > { %v11024_v27 = vadd.f32 %v3377_v5, %v10688_v37  ;;  %v11027_v61 = vadd.f32 %v3378_v33, %v10691_v39  ;;  %v11041_v39 = vld [vmem:[%s16170_s3] sm:$0x3]  ;;  %v927_v18 = vadd.f32 %v926_v9, %v925_v35  ;;  %s12479_s3 = sld [smem:[#allocation5 + $0x45]] }
 0x11b   : > { %v3262_v26 = vpop.permute.xlu1 %3261  ;;  %v3267_v58 = vpop.permute.xlu0 %3266  ;;  %v3449_v23 = vadd.f32 %v3448_v57, %v3447_v42  ;;  %v1023_v4 = vmul.f32 %v1008_v29, %v11041_v39 }
 0x11c   : > { %v3379_v56 = vmul.f32 %v3262_v26, %v10709_v51  ;;  %v3380_v47 = vmul.f32 %v3267_v58, %v10706_v50  ;;  %v3450_v16 = vsel %vm868_vm0, %v11024_v27, 0.0  ;;  %v3452_v15 = vsel %vm868_vm0, %v11027_v61, 0.0 }
 0x11d   : > { %v3451_v37 = vadd.f32 %v3450_v16, %v3449_v23  ;;  %v1024_v26 = vsel %vm1010_vm1, %v1023_v4, 0.0 }
 0x11e   : > { %v11036_v14 = vadd.f32 %v3379_v56, %v10709_v51  ;;  %v11046_v11 = vadd.f32 %v3380_v47, %v10706_v50  ;;  %1025 = vadd.xlane.f32.xlu1 %v1024_v26  ;;  %v929_v47 = vadd.f32 %v928_v2, %v927_v18 }
 0x11f   : > { %v3272_v31 = vpop.permute.xlu1 %3271  ;;  %v3277_v1 = vpop.permute.xlu0 %3276  ;;  %v3453_v51 = vadd.f32 %v3452_v15, %v3451_v37 }
 0x120   : > { %v3454_v5 = vsel %vm868_vm0, %v11036_v14, 0.0  ;;  %v3381_v33 = vmul.f32 %v3272_v31, %v10727_v63  ;;  %v3382_v44 = vmul.f32 %v3277_v1, %v10724_v62  ;;  %v3456_v57 = vsel %vm868_vm0, %v11046_v11, 0.0 }
 0x121   : > { %v3455_v42 = vadd.f32 %v3454_v5, %v3453_v51 }
 0x122   : > { %v11055_v50 = vadd.f32 %v3381_v33, %v10727_v63  ;;  %v11066_v63 = vadd.f32 %v3382_v44, %v10724_v62  ;;  %v930_v62 = vsel %vm868_vm0, %v10954_v12, 0.0 }
 0x123   : > { %v3282_v58 = vpop.permute.xlu1 %3281  ;;  %v3287_v17 = vpop.permute.xlu0 %3286  ;;  %v3457_v23 = vadd.f32 %v3456_v57, %v3455_v42  ;;  %v931_v4 = vadd.f32 %v930_v62, %v929_v47  ;;  %v3507_v47 = vsel %vm868_vm0, %v10982_v7, -inf }
 0x124   : > { %v3458_v56 = vsel %vm868_vm0, %v11055_v50, 0.0  ;;  %v3383_v35 = vmul.f32 %v3282_v58, %v10745_v20  ;;  %v3384_v16 = vmul.f32 %v3287_v17, %v10742_v19  ;;  %v3460_v15 = vsel %vm868_vm0, %v11066_v63, 0.0 }
 0x125   : > { %v3459_v37 = vadd.f32 %v3458_v56, %v3457_v23  ;;  %v3509_v17 = vsel %vm868_vm0, %v10996_v6, -inf  ;;  %v3505_v56 = vsel %vm868_vm0, %v10973_v34, -inf }
 0x126   : > { %v11073_v29 = vadd.f32 %v3383_v35, %v10745_v20  ;;  %v11076_v31 = vadd.f32 %v3384_v16, %v10742_v19  ;;  %v3506_v19 = vsel %vm868_vm0, %v10970_v41, -inf  ;;  %v932_v35 = vrot.slane %v931_v4, 4 }
 0x127   : > { %v3292_v1 = vpop.permute.xlu1 %3291  ;;  %v3297_v9 = vpop.permute.xlu0 %3296  ;;  %v3461_v51 = vadd.f32 %v3460_v15, %v3459_v37  ;;  %v3511_v16 = vsel %vm868_vm0, %v10999_v32, -inf  ;;  %v3513_v37 = vsel %vm868_vm0, %v11012_v46, -inf  ;;  %v3510_v62 = vmax.f32 %v3505_v56, %v3509_v17 }
 0x128   : > { %v3385_v5 = vmul.f32 %v3292_v1, %v10763_v38  ;;  %v3386_v33 = vmul.f32 %v3297_v9, %v10760_v36  ;;  %v3462_v18 = vsel %vm868_vm0, %v11073_v29, 0.0  ;;  %v3464_v44 = vsel %vm868_vm0, %v11076_v31, 0.0 }
 0x129   : > { %v3463_v42 = vadd.f32 %v3462_v18, %v3461_v51  ;;  %v3508_v9 = vsel %vm868_vm0, %v10985_v10, -inf }
 0x12a   : > { %v11085_v20 = vadd.f32 %v3385_v5, %v10763_v38  ;;  %v11092_v57 = vadd.f32 %v3386_v33, %v10760_v36 }
 0x12b   : > { %v3302_v26 = vpop.permute.xlu1 %3301  ;;  %v3307_v58 = vpop.permute.xlu0 %3306  ;;  %v3465_v2 = vadd.f32 %v3464_v44, %v3463_v42  ;;  %v3515_v42 = vsel %vm868_vm0, %v11015_v25, -inf }
 0x12c   : > { %16171 = vst [vmem:[#allocation38_spill] sm:$0xff] %v11085_v20  ;;  %v3466_v23 = vsel %vm868_vm0, %v11085_v20, 0.0  ;;  %v3387_v38 = vmul.f32 %v3302_v26, %v10778_v55  ;;  %v3388_v36 = vmul.f32 %v3307_v58, %v10786_v0  ;;  %v3468_v51 = vsel %vm868_vm0, %v11092_v57, 0.0 }
 0x12d   : > { %v3467_v15 = vadd.f32 %v3466_v23, %v3465_v2  ;;  %v3512_v58 = vmax.f32 %v3506_v19, %v3511_v16  ;;  %v3514_v2 = vmax.f32 %v3507_v47, %v3513_v37  ;;  %v11124_v23 = vadd.f32 %v932_v35, %v931_v4 }
 0x12e   : > { %v11109_v1 = vadd.f32 %v3387_v38, %v10778_v55  ;;  %v11116_v5 = vadd.f32 %v3388_v36, %v10786_v0  ;;  %v3517_v0 = vsel %vm868_vm0, %v11024_v27, -inf  ;;  %v3519_v38 = vsel %vm868_vm0, %v11027_v61, -inf }
 0x12f   : > { %v3312_v33 = vpop.permute.xlu1 %3311  ;;  %v3317_v18 = vpop.permute.xlu0 %3316  ;;  %v3469_v44 = vadd.f32 %v3468_v51, %v3467_v15  ;;  %v3516_v15 = vmax.f32 %v3508_v9, %v3515_v42  ;;  %v3521_v51 = vsel %vm868_vm0, %v11036_v14, -inf  ;;  %v3523_v16 = vsel %vm868_vm0, %v11046_v11, -inf }
 0x130   : > { %16172 = vst [vmem:[#allocation39_spill] sm:$0xff] %v11109_v1  ;;  %v3470_v55 = vsel %vm868_vm0, %v11109_v1, 0.0  ;;  %v3389_v26 = vmul.f32 %v3312_v33, %v10801_v28  ;;  %v3390_v17 = vmul.f32 %v3317_v18, %v10825_v54  ;;  %v3472_v19 = vsel %vm868_vm0, %v11116_v5, 0.0 }
 0x131   : > { %v3471_v56 = vadd.f32 %v3470_v55, %v3469_v44  ;;  %v3518_v33 = vmax.f32 %v3510_v62, %v3517_v0  ;;  %v3520_v18 = vmax.f32 %v3512_v58, %v3519_v38  ;;  %v3525_v42 = vsel %vm868_vm0, %v11055_v50, -inf }
 0x132   : > { %v11131_v36 = vadd.f32 %v3389_v26, %v10801_v28  ;;  %v11138_v4 = vadd.f32 %v3390_v17, %v10825_v54  ;;  %v3527_v54 = vsel %vm868_vm0, %v11066_v63, -inf  ;;  %v3529_v55 = vsel %vm868_vm0, %v11073_v29, -inf }
 0x133   : > { %v3322_v47 = vpop.permute.xlu1 %3321  ;;  %v3327_v35 = vpop.permute.xlu0 %3326  ;;  %v3473_v37 = vadd.f32 %v3472_v19, %v3471_v56  ;;  %v3522_v56 = vmax.f32 %v3514_v2, %v3521_v51  ;;  %v3524_v19 = vmax.f32 %v3516_v15, %v3523_v16  ;;  %v3528_v2 = vmax.f32 %v3520_v18, %v3527_v54 }
 0x134   : > { %16173 = vst [vmem:[#allocation40_spill] sm:$0xff] %v11131_v36  ;;  %16174 = vst [vmem:[#allocation41_spill] sm:$0xff] %v11138_v4  ;;  %v3474_v28 = vsel %vm868_vm0, %v11131_v36, 0.0  ;;  %v3391_v9 = vmul.f32 %v3322_v47, %v10852_v30  ;;  %v3392_v44 = vmul.f32 %v3327_v35, %v10842_v45  ;;  %v3476_v62 = vsel %vm868_vm0, %v11138_v4, 0.0 }
 0x135   : > { %v3475_v26 = vadd.f32 %v3474_v28, %v3473_v37  ;;  %v3531_v47 = vsel %vm868_vm0, %v11076_v31, -inf  ;;  %v3526_v28 = vmax.f32 %v3518_v33, %v3525_v42  ;;  %v3530_v15 = vmax.f32 %v3522_v56, %v3529_v55 }
 0x136   : > { %v11153_v17 = vadd.f32 %v3391_v9, %v10852_v30  ;;  %v11158_v58 = vadd.f32 %v3392_v44, %v10842_v45  ;;  %v3533_v45 = vsel %vm868_vm0, %v11085_v20, -inf  ;;  %v3535_v16 = vsel %vm868_vm0, %v11092_v57, -inf }
 0x137   : > { %v3332_v0 = vpop.permute.xlu1 %3331  ;;  %v3337_v38 = vpop.permute.xlu0 %3336  ;;  %v3477_v35 = vadd.f32 %v3476_v62, %v3475_v26  ;;  %v3532_v26 = vmax.f32 %v3524_v19, %v3531_v47  ;;  %v3537_v62 = vsel %vm868_vm0, %v11109_v1, -inf  ;;  %v3539_v55 = vsel %vm868_vm0, %v11116_v5, -inf }
 0x138   : > { %16175 = vst [vmem:[#allocation42_spill] sm:$0xff] %v11153_v17  ;;  %16176 = vst [vmem:[#allocation43_spill] sm:$0xff] %v11158_v58  ;;  %v3478_v37 = vsel %vm868_vm0, %v11153_v17, 0.0  ;;  %v3393_v30 = vmul.f32 %v3332_v0, %v10858_v8  ;;  %v3394_v51 = vmul.f32 %v3337_v38, %v10855_v3  ;;  %v3480_v33 = vsel %vm868_vm0, %v11158_v58, 0.0 }
 0x139   : > { %v3479_v9 = vadd.f32 %v3478_v37, %v3477_v35  ;;  %v3534_v0 = vmax.f32 %v3526_v28, %v3533_v45  ;;  %v3536_v38 = vmax.f32 %v3528_v2, %v3535_v16  ;;  %v3541_v47 = vsel %vm868_vm0, %v11131_v36, -inf }
 0x13a   : > { %v11171_v44 = vadd.f32 %v3393_v30, %v10858_v8  ;;  %v11178_v18 = vadd.f32 %v3394_v51, %v10855_v3  ;;  %v3543_v3 = vsel %vm868_vm0, %v11138_v4, -inf  ;;  %v3545_v37 = vsel %vm868_vm0, %v11153_v17, -inf  ;;  %v16181_v17 = vld [vmem:[#allocation37_spill] sm:$0xff] }
 0x13b   : > { %v3342_v42 = vpop.permute.xlu1 %3341  ;;  %v3347_v54 = vpop.permute.xlu0 %3346  ;;  %v3481_v56 = vadd.f32 %v3480_v33, %v3479_v9  ;;  %v3538_v9 = vmax.f32 %v3530_v15, %v3537_v62  ;;  %v3540_v33 = vmax.f32 %v3532_v26, %v3539_v55  ;;  %v3547_v15 = vsel %vm868_vm0, %v11158_v58, -inf  ;;  %v16182_v26 = vld [vmem:[#allocation35_spill] sm:$0xff] }
 0x13c   : > { %16177 = vst [vmem:[#allocation44_spill] sm:$0xff] %v11171_v44  ;;  %16178 = vst [vmem:[#allocation45_spill] sm:$0xff] %v11178_v18  ;;  %v3482_v8 = vsel %vm868_vm0, %v11171_v44, 0.0  ;;  %v3395_v19 = vmul.f32 %v3342_v42, %v10875_v13  ;;  %v3396_v35 = vmul.f32 %v3347_v54, %v10866_v53  ;;  %v3484_v28 = vsel %vm868_vm0, %v11178_v18, 0.0 }
 0x13d   : > { %v3483_v30 = vadd.f32 %v3482_v8, %v3481_v56  ;;  %v3542_v42 = vmax.f32 %v3534_v0, %v3541_v47  ;;  %v3544_v8 = vmax.f32 %v3536_v38, %v3543_v3  ;;  %v3551_v55 = vsel %vm868_vm0, %v11178_v18, -inf }
 0x13e   : > { %v11193_v51 = vadd.f32 %v3395_v19, %v10875_v13  ;;  %v11198_v2 = vadd.f32 %v3396_v35, %v10866_v53  ;;  %v3546_v13 = vmax.f32 %v3538_v9, %v3545_v37  ;;  %v3549_v53 = vsel %vm868_vm0, %v11171_v44, -inf }
 0x13f   : > { %v3352_v45 = vpop.permute.xlu1 %3351  ;;  %v3357_v16 = vpop.permute.xlu0 %3356  ;;  %v3485_v54 = vadd.f32 %v3484_v28, %v3483_v30 }
 0x140   : > { %16179 = vst [vmem:[#allocation46_spill] sm:$0xff] %v11193_v51  ;;  %16180 = vst [vmem:[#allocation47_spill] sm:$0xff] %v11198_v2  ;;  %v3486_v36 = vsel %vm868_vm0, %v11193_v51, 0.0  ;;  %v3397_v56 = vmul.f32 %v3352_v45, %v16181_v17  ;;  %v3398_v62 = vmul.f32 %v3357_v16, %v16182_v26  ;;  %v3553_v47 = vsel %vm868_vm0, %v11193_v51, -inf }
 0x141   : > { %v3487_v19 = vadd.f32 %v3486_v36, %v3485_v54  ;;  %v3488_v38 = vsel %vm868_vm0, %v11198_v2, 0.0  ;;  %v3555_v35 = vsel %vm868_vm0, %v11198_v2, -inf  ;;  %v3548_v45 = vmax.f32 %v3540_v33, %v3547_v15 }
 0x142   : > { %v11211_v0 = vadd.f32 %v3397_v56, %v16181_v17  ;;  %v11220_v3 = vadd.f32 %v3398_v62, %v16182_v26  ;;  %v3550_v16 = vmax.f32 %v3542_v42, %v3549_v53  ;;  %v3552_v26 = vmax.f32 %v3544_v8, %v3551_v55 }
 0x143   : > { %v3362_v37 = vpop.permute.xlu1 %3361  ;;  %v3367_v30 = vpop.permute.xlu0 %3366  ;;  %v3489_v9 = vadd.f32 %v3488_v38, %v3487_v19  ;;  %v3554_v62 = vmax.f32 %v3546_v13, %v3553_v47  ;;  %v3556_v38 = vmax.f32 %v3548_v45, %v3555_v35  ;;  %v934_v47 = vrot.slane %v11124_v23, 2 }
 0x144   : > { %16183 = vst [vmem:[#allocation37_spill] sm:$0xff] %v11211_v0  ;;  %16184 = vst [vmem:[#allocation35_spill] sm:$0xff] %v11220_v3  ;;  %v3490_v36 = vsel %vm868_vm0, %v11211_v0, 0.0  ;;  %v3557_v17 = vsel %vm868_vm0, %v11211_v0, -inf  ;;  %v3399_v28 = vmul.f32 %v3362_v37, %v10932_v43  ;;  %v3559_v54 = vsel %vm868_vm0, %v11220_v3, -inf  ;;  %v16234_v0 = vld [vmem:[#allocation34_spill] sm:$0xff] }
 0x145   : > { %v3400_v56 = vmul.f32 %v3367_v30, %v10924_v49  ;;  %v3491_v2 = vadd.f32 %v3490_v36, %v3489_v9  ;;  %v3558_v18 = vmax.f32 %v3550_v16, %v3557_v17  ;;  %v3492_v58 = vsel %vm868_vm0, %v11220_v3, 0.0 }
 0x146   : > { %v11231_v19 = vadd.f32 %v3399_v28, %v10932_v43  ;;  %v3560_v42 = vmax.f32 %v3552_v26, %v3559_v54  ;;  %v935_v36 = vadd.f32 %v934_v47, %v11124_v23 }
 0x147   : > { %v11236_v37 = vadd.f32 %v3400_v56, %v10924_v49  ;;  %v3493_v33 = vadd.f32 %v3492_v58, %v3491_v2 }
 0x148   : > { %16185 = vst [vmem:[#allocation48_spill] sm:$0xff] %v11231_v19  ;;  %v3494_v15 = vsel %vm868_vm0, %v11231_v19, 0.0  ;;  %v3561_v8 = vsel %vm868_vm0, %v11231_v19, -inf  ;;  %v3565_v35 = vmax.f32 %v3558_v18, %v3560_v42  ;;  %v936_v54 = vrot.slane %v935_v36, 1  ;;  %v3433_v18 = vld [vmem:[%s16187_s6] sm:$0x3] }
 0x149   : > { %16186 = vst [vmem:[#allocation49_spill] sm:$0xff] %v11236_v37  ;;  %v3562_v13 = vmax.f32 %v3554_v62, %v3561_v8  ;;  %v3563_v43 = vsel %vm868_vm0, %v11236_v37, -inf  ;;  %v3495_v53 = vadd.f32 %v3494_v15, %v3493_v33  ;;  %v3496_v49 = vsel %vm868_vm0, %v11236_v37, 0.0  ;;  %v16227_v37 = vld [vmem:[#allocation30_spill] sm:$0xff]  ;;  %v16231_v19 = vld [vmem:[#allocation32_spill] sm:$0xff]  ;;  %s16321_s6 = smov 127  }
 0x14a   : > { %v3564_v55 = vmax.f32 %v3556_v38, %v3563_v43  ;;  %v937_v33 = vadd.f32 %v936_v54, %v935_v36 }
 0x14b   : > { %v3497_v58 = vadd.f32 %v3496_v49, %v3495_v53 }
 0x14c   : > { %v3566_v2 = vmax.f32 %v3562_v13, %v3564_v55  ;;  %v939_v43 = vmul.f32 0.00390625, %v937_v33 }
 0x14d   : > { %v3498_v9 = vrot.slane %v3497_v58, 4 }
 0x14e   : > { %v3567_v30 = vmax.f32 %v3565_v35, %v3566_v2  ;;  %v1009_v49 = vmul.f32 %v939_v43, %v11041_v39 }
 0x14f   : > { %v3499_v28 = vadd.f32 %v3498_v9, %v3497_v58 }
 0x150   : > { %v3568_v17 = vrot.slane %v3567_v30, 4  ;;  %v1011_v35 = vsel %vm1010_vm1, %v1009_v49, 0.0 }
 0x151   : > { %v3500_v16 = vrot.slane %v3499_v28, 2 }
 0x152   : > { %v3569_v45 = vmax.f32 %v3567_v30, %v3568_v17  ;;  %v867_v30 = vld [vmem:[%s16188_s4] sm:$0x3]  ;;  %s16320_s4 = smov 123  }
 0x153   : > { %v3501_v26 = vadd.f32 %v3500_v16, %v3499_v28 }
 0x154   : > { %v3570_v56 = vrot.slane %v3569_v45, 2 }
 0x155   : > { %v3502_v38 = vrot.slane %v3501_v26, 1 }
 0x156   : > { %v3571_v62 = vmax.f32 %v3569_v45, %v3570_v56 }
 0x157   : > { %v3503_v8 = vadd.f32 %v3502_v38, %v3501_v26 }
 0x158   : > { %v3572_v15 = vrot.slane %v3571_v62, 1 }
 0x159   : > { %v3504_v13 = vmul.f32 0.00390625, %v3503_v8 }
 0x15a   : > { %v3573_v42 = vmax.f32 %v3571_v62, %v3572_v15 }
 0x15b   : > { %v3574_v53 = vmul.f32 %v3504_v13, %v3433_v18 }
 0x15c   : > { %v3587_v23 = vmul.f32 %v3573_v42, %v3433_v18 }
 0x15d   : > { %v3575_v47 = vsel %vm1010_vm1, %v3574_v53, 0.0 }
 0x15e   : > { %v3588_v55 = vsel %vm1010_vm1, %v3587_v23, 0.0  ;;  %3576 = vadd.xlane.f32.xlu1 %v3575_v47 }
 0x15f   : > { %3589 = vadd.xlane.f32.xlu0 %v3588_v55 }
 0x163   : > { %1012 = vadd.xlane.f32.xlu0 %v1011_v35  ;;  %v16189_v35 = vld [vmem:[#allocation14_spill] sm:$0xff] }
 0x1ab   : > { %v1026_v58 = vpop.xlane.xlu1 %1025 }
 0x1ac   : > { %v1027_v2 = vmax.f32 %v1026_v58, 0.0 }
 0x1ae   : > { %v1028_v9 = vmul.f32 %v1027_v2, %v867_v30  ;;  %v16191_v2 = vld [vmem:[#allocation13_spill] sm:$0xff] }
 0x1b0   : > { %v1029_v36 = vsel %vm1010_vm1, %v1028_v9, 0.0 }
 0x1b1   : > { %v1030_v17 = vrot.slane %v1029_v36, 4 }
 0x1b3   : > { %v1031_v45 = vadd.f32 %v1030_v17, %v1029_v36  ;;  %v16193_v17 = vld [vmem:[#allocation17_spill] sm:$0xff] }
 0x1b5   : > { %v1032_v56 = vrot.slane %v1031_v45, 2 }
 0x1b7   : > { %v1033_v38 = vadd.f32 %v1032_v56, %v1031_v45 }
 0x1b9   : > { %v1034_v8 = vrot.slane %v1033_v38, 1 }
 0x1bb   : > { %v1035_v13 = vadd.f32 %v1034_v8, %v1033_v38  ;;  %v16199_v38 = vld [vmem:[#allocation16_spill] sm:$0xff] }
 0x1ec   : > { %v11259_v28 = vpop.xlane.xlu0 %3589 }
 0x1f0   : > { %v1013_v16 = vpop.xlane.xlu0 %1012 }
 0x1f1   : > { %v1014_v39 = vmax.f32 %v1013_v16, 0.0  ;;  %v16195_v16 = vld [vmem:[#allocation15_spill] sm:$0xff] }
 0x1f3   : > { %v1015_v54 = vmul.f32 %v1014_v39, %v867_v30 }
 0x1f5   : > { %v1016_v26 = vsel %vm1010_vm1, %v1015_v54, 0.0 }
 0x1f6   : > { %v1017_v62 = vrot.slane %v1016_v26, 4 }
 0x1f8   : > { %v1018_v33 = vadd.f32 %v1017_v62, %v1016_v26  ;;  %v16197_v26 = vld [vmem:[#allocation19_spill] sm:$0xff] }
 0x1fa   : > { %v1019_v15 = vrot.slane %v1018_v33, 2 }
 0x1fc   : > { %v1020_v18 = vadd.f32 %v1019_v15, %v1018_v33 }
 0x1fe   : > { %v1021_v42 = vrot.slane %v1020_v18, 1 }
 0x200   : > { %v1022_v43 = vadd.f32 %v1021_v42, %v1020_v18  ;;  %v16201_v18 = vld [vmem:[#allocation21_spill] sm:$0xff] }
 0x202   : > { %v1036_v23 = vadd.f32 %v1035_v13, %v1022_v43  ;;  %v16203_v13 = vld [vmem:[#allocation18_spill] sm:$0xff] }
 0x204   : > { %v9009_v53 = vmul.f32 -1.442695, %v1036_v23 }
 0x206   : > { %10339 = vpow2.f32 %v9009_v53 }
 0x210   : > { %v10340_v55 = vpop.eup %10339 }
 0x211   : > { %v1040_v47 = vadd.f32 1.0, %v10340_v55  ;;  %v16205_v55 = vld [vmem:[#allocation23_spill] sm:$0xff] }
 0x213   : > { %10341 = vrcp.f32 %v1040_v47 }
 0x21d   : > { %v11262_v49 = vpop.eup %10341 }
 0x21e   : > { %v11266_v58 = vmul.f32 %v11262_v49, %v16189_v35  ;;  %v11270_v30 = vmul.f32 %v11262_v49, %v16191_v2  ;;  %v11278_v45 = vmul.f32 %v11262_v49, %v16193_v17  ;;  %v11282_v39 = vmul.f32 %v11262_v49, %v16195_v16  ;;  %v16207_v35 = vld [vmem:[#allocation20_spill] sm:$0xff]  ;;  %v16209_v17 = vld [vmem:[#allocation25_spill] sm:$0xff] }
 0x21f   : > { %v11290_v62 = vmul.f32 %v11262_v49, %v16197_v26  ;;  %v11294_v33 = vmul.f32 %v11262_v49, %v16199_v38  ;;  %v11302_v42 = vmul.f32 %v11262_v49, %v16201_v18  ;;  %v11306_v43 = vmul.f32 %v11262_v49, %v16203_v13  ;;  %v16215_v18 = vld [vmem:[#allocation24_spill] sm:$0xff] }
 0x220   : > { %16190 = vst [vmem:[#allocation14_spill] sm:$0xff] %v11266_v58  ;;  %16192 = vst [vmem:[#allocation13_spill] sm:$0xff] %v11270_v30  ;;  %v1081_v9 = vsel %vm868_vm0, %v11266_v58, 0.0  ;;  %v1075_v36 = vsel %vm868_vm0, %v11270_v30, 0.0  ;;  %v1087_v54 = vsel %vm868_vm0, %v11278_v45, 0.0  ;;  %v1078_v56 = vsel %vm868_vm0, %v11282_v39, 0.0 }
 0x221   : > { %16194 = vst [vmem:[#allocation17_spill] sm:$0xff] %v11278_v45  ;;  %16196 = vst [vmem:[#allocation15_spill] sm:$0xff] %v11282_v39  ;;  %1082 = vadd.xlane.f32.xlu1 %v1081_v9  ;;  %1076 = vadd.xlane.f32.xlu0 %v1075_v36  ;;  %v1093_v15 = vsel %vm868_vm0, %v11290_v62, 0.0  ;;  %v1084_v8 = vsel %vm868_vm0, %v11294_v33, 0.0  ;;  %v1099_v23 = vsel %vm868_vm0, %v11302_v42, 0.0  ;;  %v1090_v53 = vsel %vm868_vm0, %v11306_v43, 0.0 }
 0x222   : > { %16198 = vst [vmem:[#allocation19_spill] sm:$0xff] %v11290_v62  ;;  %16200 = vst [vmem:[#allocation16_spill] sm:$0xff] %v11294_v33  ;;  %v11314_v47 = vmul.f32 %v11262_v49, %v16205_v55  ;;  %v11318_v2 = vmul.f32 %v11262_v49, %v16207_v35  ;;  %v11326_v16 = vmul.f32 %v11262_v49, %v16209_v17  ;;  %v16217_v55 = vld [vmem:[#allocation29_spill] sm:$0xff]  ;;  %v1423_v4 = vsel %vm868_vm0, %v11278_v45, -inf }
 0x223   : > { %16202 = vst [vmem:[#allocation21_spill] sm:$0xff] %v11302_v42  ;;  %16204 = vst [vmem:[#allocation18_spill] sm:$0xff] %v11306_v43  ;;  %v11342_v13 = vmul.f32 %v11262_v49, %v16215_v18  ;;  %v11350_v35 = vmul.f32 %v11262_v49, %v16217_v55  ;;  %v16225_v55 = vld [vmem:[#allocation33_spill] sm:$0xff]  ;;  %v11410_v51 = vmul.f32 %v11262_v49, %v10920_v24 }
 0x224   : > { %16206 = vst [vmem:[#allocation23_spill] sm:$0xff] %v11314_v47  ;;  %16208 = vst [vmem:[#allocation20_spill] sm:$0xff] %v11318_v2  ;;  %v1105_v9 = vsel %vm868_vm0, %v11314_v47, 0.0  ;;  %v1096_v36 = vsel %vm868_vm0, %v11318_v2, 0.0  ;;  %v1111_v26 = vsel %vm868_vm0, %v11326_v16, 0.0  ;;  %v11426_v1 = vmul.f32 %v11262_v49, %v10941_v60 }
 0x225   : > { %1088 = vadd.xlane.f32.xlu1 %v1087_v54  ;;  %1079 = vadd.xlane.f32.xlu0 %v1078_v56  ;;  %16210 = vst [vmem:[#allocation25_spill] sm:$0xff] %v11326_v16  ;;  %v16211_v54 = vld [vmem:[#allocation22_spill] sm:$0xff]  ;;  %16216 = vst [vmem:[#allocation24_spill] sm:$0xff] %v11342_v13  ;;  %v1123_v17 = vsel %vm868_vm0, %v11350_v35, 0.0  ;;  %v1153_v44 = vsel %vm868_vm0, %v11410_v51, 0.0 }
 0x226   : > { %v11330_v56 = vmul.f32 %v11262_v49, %v16211_v54  ;;  %16218 = vst [vmem:[#allocation29_spill] sm:$0xff] %v11350_v35  ;;  %16236 = vst [vmem:[#allocation51_spill] sm:$0xff] %v11410_v51  ;;  %v1159_v60 = vsel %vm868_vm0, %v11426_v1, 0.0 }
 0x227   : > { %16239 = vst [vmem:[#allocation53_spill] sm:$0xff] %v11426_v1 }
 0x228   : > { %16212 = vst [vmem:[#allocation22_spill] sm:$0xff] %v11330_v56  ;;  %v1102_v38 = vsel %vm868_vm0, %v11330_v56, 0.0 }
 0x229   : > { %1094 = vadd.xlane.f32.xlu1 %v1093_v15  ;;  %1085 = vadd.xlane.f32.xlu0 %v1084_v8  ;;  %v16213_v15 = vld [vmem:[#allocation27_spill] sm:$0xff] }
 0x22a   : > { %v11338_v8 = vmul.f32 %v11262_v49, %v16213_v15  ;;  %v16223_v15 = vld [vmem:[#allocation28_spill] sm:$0xff] }
 0x22b   : > { %v11366_v18 = vmul.f32 %v11262_v49, %v16223_v15  ;;  %v16229_v15 = vld [vmem:[#allocation36_spill] sm:$0xff] }
 0x22c   : > { %16214 = vst [vmem:[#allocation27_spill] sm:$0xff] %v11338_v8  ;;  %v11386_v3 = vmul.f32 %v11262_v49, %v16229_v15  ;;  %v11402_v15 = vmul.f32 %v11262_v49, %v16234_v0  ;;  %v3591_v0 = vmax.f32 %v11259_v28, 0.0  ;;  %v15813_v28 = vmov 0.0  }
 0x22d   : > { %1100 = vadd.xlane.f32.xlu1 %v1099_v23  ;;  %1091 = vadd.xlane.f32.xlu0 %v1090_v53  ;;  %v1117_v23 = vsel %vm868_vm0, %v11338_v8, 0.0  ;;  %v1108_v53 = vsel %vm868_vm0, %v11342_v13, 0.0  ;;  %16224 = vst [vmem:[#allocation28_spill] sm:$0xff] %v11366_v18  ;;  %539 = vst.msk [vmem:[#allocation3] sm:$0xff] %vm538_vm2, %v15813_v28 }
 0x22e   : > { %16230 = vst [vmem:[#allocation36_spill] sm:$0xff] %v11386_v3  ;;  %16235 = vst [vmem:[#allocation34_spill] sm:$0xff] %v11402_v15 }
 0x22f   : > { %540 = vst.msk [vmem:[#allocation3 + $0x8] sm:$0xff] %vm538_vm2, %v15813_v28  ;;  %543 = vst.msk [vmem:[#allocation4] sm:$0xff] %vm538_vm2, %v15813_v28 }
 0x230   : > { %544 = vst.msk [vmem:[#allocation4 + $0x8] sm:$0xff] %vm538_vm2, %v15813_v28 }
 0x231   : > { %1106 = vadd.xlane.f32.xlu1 %v1105_v9  ;;  %1097 = vadd.xlane.f32.xlu0 %v1096_v36  ;;  %v16219_v9 = vld [vmem:[#allocation26_spill] sm:$0xff] }
 0x232   : > { %v11354_v36 = vmul.f32 %v11262_v49, %v16219_v9  ;;  %v11374_v9 = vmul.f32 %v11262_v49, %v16225_v55  ;;  %v11390_v55 = vmul.f32 %v11262_v49, %v16231_v19  ;;  %v3577_v19 = vpop.xlane.xlu1 %3576 }
 0x234   : > { %16220 = vst [vmem:[#allocation26_spill] sm:$0xff] %v11354_v36  ;;  %v1114_v54 = vsel %vm868_vm0, %v11354_v36, 0.0  ;;  %16226 = vst [vmem:[#allocation33_spill] sm:$0xff] %v11374_v9 }
 0x235   : > { %1112 = vadd.xlane.f32.xlu1 %v1111_v26  ;;  %1103 = vadd.xlane.f32.xlu0 %v1102_v38  ;;  %v16221_v26 = vld [vmem:[#allocation31_spill] sm:$0xff]  ;;  %16232 = vst [vmem:[#allocation32_spill] sm:$0xff] %v11390_v55 }
 0x236   : > { %v11362_v38 = vmul.f32 %v11262_v49, %v16221_v26  ;;  %v11378_v26 = vmul.f32 %v11262_v49, %v16227_v37  ;;  %v1141_v37 = vsel %vm868_vm0, %v11386_v3, 0.0 }
 0x238   : > { %16222 = vst [vmem:[#allocation31_spill] sm:$0xff] %v11362_v38  ;;  %16228 = vst [vmem:[#allocation30_spill] sm:$0xff] %v11378_v26 }
 0x239   : > { %1118 = vadd.xlane.f32.xlu1 %v1117_v23  ;;  %1109 = vadd.xlane.f32.xlu0 %v1108_v53  ;;  %v1129_v23 = vsel %vm868_vm0, %v11362_v38, 0.0  ;;  %v1120_v53 = vsel %vm868_vm0, %v11366_v18, 0.0 }
 0x23d   : > { %1124 = vadd.xlane.f32.xlu1 %v1123_v17  ;;  %1115 = vadd.xlane.f32.xlu0 %v1114_v54  ;;  %v1135_v17 = vsel %vm868_vm0, %v11374_v9, 0.0  ;;  %v1126_v54 = vsel %vm868_vm0, %v11378_v26, 0.0 }
 0x241   : > { %1130 = vadd.xlane.f32.xlu1 %v1129_v23  ;;  %1121 = vadd.xlane.f32.xlu0 %v1120_v53  ;;  %v1132_v23 = vsel %vm868_vm0, %v11390_v55, 0.0  ;;  %v11398_v53 = vmul.f32 %v11262_v49, %v10911_v21  ;;  %v11414_v21 = vmul.f32 %v11262_v49, %v10887_v48  ;;  %v11430_v48 = vmul.f32 %v11262_v49, %v10908_v22 }
 0x243   : > { %16233 = vst [vmem:[#allocation50_spill] sm:$0xff] %v11398_v53  ;;  %16237 = vst [vmem:[#allocation52_spill] sm:$0xff] %v11414_v21  ;;  %v1144_v24 = vsel %vm868_vm0, %v11414_v21, 0.0  ;;  %v1150_v22 = vsel %vm868_vm0, %v11430_v48, 0.0 }
 0x244   : > { %16240 = vst [vmem:[#allocation54_spill] sm:$0xff] %v11430_v48 }
 0x245   : > { %1136 = vadd.xlane.f32.xlu1 %v1135_v17  ;;  %1127 = vadd.xlane.f32.xlu0 %v1126_v54  ;;  %v1147_v17 = vsel %vm868_vm0, %v11398_v53, 0.0  ;;  %v1138_v54 = vsel %vm868_vm0, %v11402_v15, 0.0 }
 0x249   : > { %1142 = vadd.xlane.f32.xlu1 %v1141_v37  ;;  %1133 = vadd.xlane.f32.xlu0 %v1132_v23  ;;  %v3578_v37 = vmax.f32 %v3577_v19, 0.0  ;;  %v3434_v23 = vld [vmem:[%s16238_s7] sm:$0x3]  ;;  %s12494_s7 = sld [smem:[#allocation5 + $0x16]] }
 0x24a   : > { %v3592_v19 = vmul.f32 %v3591_v0, %v3434_v23 }
 0x24d   : > { %1148 = vadd.xlane.f32.xlu1 %v1147_v17  ;;  %1139 = vadd.xlane.f32.xlu0 %v1138_v54  ;;  %v3579_v17 = vmul.f32 %v3578_v37, %v3434_v23  ;;  %v11446_v54 = vmul.f32 %v11262_v49, %v10914_v59 }
 0x24f   : > { %16242 = vst [vmem:[#allocation56_spill] sm:$0xff] %v11446_v54  ;;  %v3580_v0 = vsel %vm1010_vm1, %v3579_v17, 0.0  ;;  %v1156_v23 = vsel %vm868_vm0, %v11446_v54, 0.0  ;;  %v11464_v17 = vmul.f32 %v11262_v49, %v10954_v12  ;;  %v1414_v12 = vsel %vm868_vm0, %v11282_v39, -inf  ;;  %v16300_v39 = vld [vmem:[#allocation48_spill] sm:$0xff]  ;;  %16322 = sst [smem:[#allocation101_spill]] %s12494_s7 }
 0x250   : > { %v3581_v28 = vrot.slane %v3580_v0, 4 }
 0x251   : > { %1154 = vadd.xlane.f32.xlu1 %v1153_v44  ;;  %1145 = vadd.xlane.f32.xlu0 %v1144_v24  ;;  %v11442_v44 = vmul.f32 %v11262_v49, %v10959_v52  ;;  %v3593_v24 = vsel %vm1010_vm1, %v3592_v19, 0.0  ;;  %v11456_v52 = vmul.f32 %v11262_v49, %v10929_v40  ;;  %16244 = vst [vmem:[#allocation58_spill] sm:$0xff] %v11464_v17  ;;  %v1417_v40 = vsel %vm868_vm0, %v11266_v58, -inf }
 0x252   : > { %v3594_v59 = vrot.slane %v3593_v24, 4  ;;  %v3582_v20 = vadd.f32 %v3581_v28, %v3580_v0  ;;  %v1420_v0 = vsel %vm868_vm0, %v11294_v33, -inf }
 0x253   : > { %16241 = vst [vmem:[#allocation55_spill] sm:$0xff] %v11442_v44  ;;  %v1165_v37 = vsel %vm868_vm0, %v11442_v44, 0.0  ;;  %16243 = vst [vmem:[#allocation57_spill] sm:$0xff] %v11456_v52  ;;  %v1162_v19 = vsel %vm868_vm0, %v11456_v52, 0.0 }
 0x255   : > { %1160 = vadd.xlane.f32.xlu1 %v1159_v60  ;;  %1151 = vadd.xlane.f32.xlu0 %v1150_v22  ;;  %v1411_v60 = vsel %vm868_vm0, %v11270_v30, -inf  ;;  %v3595_v22 = vadd.f32 %v3594_v59, %v3593_v24  ;;  %v3583_v30 = vrot.slane %v3582_v20, 2  ;;  %v1429_v24 = vsel %vm868_vm0, %v11290_v62, -inf }
 0x257   : > { %v3584_v28 = vadd.f32 %v3583_v30, %v3582_v20  ;;  %v1441_v30 = vsel %vm868_vm0, %v11314_v47, -inf }
 0x259   : > { %1166 = vadd.xlane.f32.xlu1 %v1165_v37  ;;  %1157 = vadd.xlane.f32.xlu0 %v1156_v23  ;;  %v1168_v37 = vsel %vm868_vm0, %v11464_v17, 0.0  ;;  %v3596_v23 = vrot.slane %v3595_v22, 2 }
 0x25b   : > { %v3597_v49 = vadd.f32 %v3596_v23, %v3595_v22  ;;  %v1432_v22 = vsel %vm868_vm0, %v11318_v2, -inf }
 0x25d   : > { %1412 = vmax.xlane.f32.xlu1 %v1411_v60  ;;  %1163 = vadd.xlane.f32.xlu0 %v1162_v19  ;;  %v3598_v59 = vrot.slane %v3597_v49, 1  ;;  %v3585_v60 = vrot.slane %v3584_v28, 1  ;;  %v1435_v19 = vsel %vm868_vm0, %v11302_v42, -inf }
 0x25f   : > { %v3586_v20 = vadd.f32 %v3585_v60, %v3584_v28  ;;  %v1450_v60 = vsel %vm868_vm0, %v11354_v36, -inf }
 0x261   : > { %1418 = vmax.xlane.f32.xlu1 %v1417_v40  ;;  %1169 = vadd.xlane.f32.xlu0 %v1168_v37  ;;  %v1426_v40 = vsel %vm868_vm0, %v11306_v43, -inf  ;;  %v16245_v37 = vmov 0.0  }
 0x262   : > { %542 = vst.msk [vmem:[#allocation3 + $0x10] sm:$0x3f] %vm541_vm3, %v16245_v37  ;;  %545 = vst.msk [vmem:[#allocation4 + $0x10] sm:$0x3f] %vm541_vm3, %v16245_v37 }
 0x265   : > { %1424 = vmax.xlane.f32.xlu1 %v1423_v4  ;;  %1415 = vmax.xlane.f32.xlu0 %v1414_v12  ;;  %v3599_v4 = vadd.f32 %v3598_v59, %v3597_v49  ;;  %v1447_v12 = vsel %vm868_vm0, %v11326_v16, -inf  ;;  %v1438_v49 = vsel %vm868_vm0, %v11330_v56, -inf  ;;  %v1459_v59 = vsel %vm868_vm0, %v11350_v35, -inf }
 0x267   : > { %v3600_v23 = vadd.f32 %v3599_v4, %v3586_v20  ;;  %v1471_v20 = vsel %vm868_vm0, %v11374_v9, -inf }
 0x269   : > { %1430 = vmax.xlane.f32.xlu1 %v1429_v24  ;;  %1421 = vmax.xlane.f32.xlu0 %v1420_v0  ;;  %v9109_v28 = vmul.f32 -1.442695, %v3600_v23  ;;  %v1453_v24 = vsel %vm868_vm0, %v11338_v8, -inf  ;;  %v1444_v0 = vsel %vm868_vm0, %v11342_v13, -inf  ;;  %v1477_v23 = vsel %vm868_vm0, %v11386_v3, -inf }
 0x26b   : > { %10343 = vpow2.f32 %v9109_v28  ;;  %v1474_v28 = vsel %vm868_vm0, %v11402_v15, -inf }
 0x26d   : > { %1436 = vmax.xlane.f32.xlu1 %v1435_v19  ;;  %1427 = vmax.xlane.f32.xlu0 %v1426_v40  ;;  %v1465_v19 = vsel %vm868_vm0, %v11362_v38, -inf  ;;  %v1456_v40 = vsel %vm868_vm0, %v11366_v18, -inf  ;;  %v1972_v38 = vstv %s11927_s18  ;;  %s12061_s18 = sld [smem:[#allocation5 + $0x1]] }
 0x271   : > { %1442 = vmax.xlane.f32.xlu1 %v1441_v30  ;;  %1433 = vmax.xlane.f32.xlu0 %v1432_v22  ;;  %v1462_v30 = vsel %vm868_vm0, %v11378_v26, -inf }
 0x275   : > { %1448 = vmax.xlane.f32.xlu1 %v1447_v12  ;;  %1439 = vmax.xlane.f32.xlu0 %v1438_v49  ;;  %v10344_v4 = vpop.eup %10343  ;;  %v1468_v12 = vsel %vm868_vm0, %v11390_v55, -inf  ;;  %v1483_v49 = vsel %vm868_vm0, %v11398_v53, -inf }
 0x276   : > { %v3604_v22 = vadd.f32 1.0, %v10344_v4  ;;  %v1492_v4 = vsel %vm868_vm0, %v11446_v54, -inf }
 0x278   : > { %10345 = vrcp.f32 %v3604_v22  ;;  %v1498_v22 = vsel %vm868_vm0, %v11456_v52, -inf }
 0x279   : > { %1454 = vmax.xlane.f32.xlu1 %v1453_v24  ;;  %1445 = vmax.xlane.f32.xlu0 %v1444_v0  ;;  %v1489_v24 = vsel %vm868_vm0, %v11410_v51, -inf  ;;  %v1480_v0 = vsel %vm868_vm0, %v11414_v21, -inf }
 0x27d   : > { %1460 = vmax.xlane.f32.xlu1 %v1459_v59  ;;  %1451 = vmax.xlane.f32.xlu0 %v1450_v60  ;;  %v1495_v59 = vsel %vm868_vm0, %v11426_v1, -inf  ;;  %v1486_v60 = vsel %vm868_vm0, %v11430_v48, -inf }
 0x281   : > { %1466 = vmax.xlane.f32.xlu1 %v1465_v19  ;;  %1457 = vmax.xlane.f32.xlu0 %v1456_v40  ;;  %v1501_v40 = vsel %vm868_vm0, %v11442_v44, -inf }
 0x282   : > { %v11524_v19 = vpop.eup %10345 }
 0x283   : > { %v11626_v51 = vmul.f32 %v11524_v19, %v11076_v31 }
 0x285   : > { %1472 = vmax.xlane.f32.xlu1 %v1471_v20  ;;  %1463 = vmax.xlane.f32.xlu0 %v1462_v30  ;;  %v11532_v20 = vmul.f32 %v11524_v19, %v10973_v34  ;;  %v1504_v34 = vsel %vm868_vm0, %v11464_v17, -inf  ;;  %16260 = vst [vmem:[#allocation73_spill] sm:$0xff] %v11626_v51 }
 0x287   : > { %16246 = vst [vmem:[#allocation59_spill] sm:$0xff] %v11532_v20  ;;  %v3639_v30 = vsel %vm868_vm0, %v11532_v20, 0.0 }
 0x289   : > { %1478 = vmax.xlane.f32.xlu1 %v1477_v23  ;;  %1469 = vmax.xlane.f32.xlu0 %v1468_v12  ;;  %v11540_v23 = vmul.f32 %v11524_v19, %v10985_v10 }
 0x28b   : > { %16247 = vst [vmem:[#allocation60_spill] sm:$0xff] %v11540_v23  ;;  %v3648_v12 = vsel %vm868_vm0, %v11540_v23, 0.0 }
 0x28d   : > { %1484 = vmax.xlane.f32.xlu1 %v1483_v49  ;;  %1475 = vmax.xlane.f32.xlu0 %v1474_v28  ;;  %v11548_v49 = vmul.f32 %v11524_v19, %v10999_v32  ;;  %v11552_v28 = vmul.f32 %v11524_v19, %v10970_v41  ;;  %v11564_v32 = vmul.f32 %v11524_v19, %v10982_v7 }
 0x28f   : > { %16248 = vst [vmem:[#allocation61_spill] sm:$0xff] %v11548_v49  ;;  %16249 = vst [vmem:[#allocation62_spill] sm:$0xff] %v11552_v28  ;;  %v3654_v10 = vsel %vm868_vm0, %v11548_v49, 0.0 }
 0x290   : > { %16251 = vst [vmem:[#allocation64_spill] sm:$0xff] %v11564_v32 }
 0x291   : > { %1490 = vmax.xlane.f32.xlu1 %v1489_v24  ;;  %1481 = vmax.xlane.f32.xlu0 %v1480_v0  ;;  %v3642_v24 = vsel %vm868_vm0, %v11552_v28, 0.0  ;;  %v11560_v0 = vmul.f32 %v11524_v19, %v11015_v25  ;;  %v11576_v25 = vmul.f32 %v11524_v19, %v10996_v6 }
 0x293   : > { %16250 = vst [vmem:[#allocation63_spill] sm:$0xff] %v11560_v0  ;;  %v3660_v41 = vsel %vm868_vm0, %v11560_v0, 0.0  ;;  %16253 = vst [vmem:[#allocation66_spill] sm:$0xff] %v11576_v25  ;;  %v3982_v31 = vsel %vm868_vm0, %v11560_v0, -inf }
 0x295   : > { %1496 = vmax.xlane.f32.xlu1 %v1495_v59  ;;  %1487 = vmax.xlane.f32.xlu0 %v1486_v60  ;;  %v3645_v59 = vsel %vm868_vm0, %v11564_v32, 0.0  ;;  %v11572_v60 = vmul.f32 %v11524_v19, %v11027_v61  ;;  %v11588_v61 = vmul.f32 %v11524_v19, %v11012_v46  ;;  %v3964_v46 = vsel %vm868_vm0, %v11552_v28, -inf }
 0x297   : > { %16252 = vst [vmem:[#allocation65_spill] sm:$0xff] %v11572_v60  ;;  %v3666_v7 = vsel %vm868_vm0, %v11572_v60, 0.0  ;;  %16255 = vst [vmem:[#allocation68_spill] sm:$0xff] %v11588_v61 }
 0x299   : > { %1502 = vmax.xlane.f32.xlu1 %v1501_v40  ;;  %1493 = vmax.xlane.f32.xlu0 %v1492_v4  ;;  %v3651_v40 = vsel %vm868_vm0, %v11576_v25, 0.0  ;;  %v11584_v4 = vmul.f32 %v11524_v19, %v11046_v11 }
 0x29b   : > { %16254 = vst [vmem:[#allocation67_spill] sm:$0xff] %v11584_v4 }
 0x29d   : > { %3640 = vadd.xlane.f32.xlu1 %v3639_v30  ;;  %1499 = vmax.xlane.f32.xlu0 %v1498_v22  ;;  %v3672_v22 = vsel %vm868_vm0, %v11584_v4, 0.0 }
 0x2a1   : > { %3649 = vadd.xlane.f32.xlu1 %v3648_v12  ;;  %1505 = vmax.xlane.f32.xlu0 %v1504_v34  ;;  %v3657_v12 = vsel %vm868_vm0, %v11588_v61, 0.0  ;;  %v11596_v34 = vmul.f32 %v11524_v19, %v11024_v27  ;;  %v1236_v27 = vlaneseq }
 0x2a3   : > { %16256 = vst [vmem:[#allocation69_spill] sm:$0xff] %v11596_v34  ;;  %v1237_v17 = vand.u32 127, %v1236_v27  ;;  %v11618_v28 = vshrl.u32 %v1236_v27, 7 }
 0x2a5   : > { %3655 = vadd.xlane.f32.xlu1 %v3654_v10  ;;  %3643 = vadd.xlane.f32.xlu0 %v3642_v24  ;;  %v3663_v24 = vsel %vm868_vm0, %v11596_v34, 0.0  ;;  %v1238_v52 = vadd.s32 4294967293, %v1237_v17  ;;  %16259 = vst [vmem:[#allocation72_spill] sm:$0xff] %v11618_v28 }
 0x2a9   : > { %3661 = vadd.xlane.f32.xlu1 %v3660_v41  ;;  %3646 = vadd.xlane.f32.xlu0 %v3645_v59  ;;  %v11604_v41 = vmul.f32 %v11524_v19, %v11036_v14 }
 0x2ab   : > { %16257 = vst [vmem:[#allocation70_spill] sm:$0xff] %v11604_v41 }
 0x2ad   : > { %3667 = vadd.xlane.f32.xlu1 %v3666_v7  ;;  %3652 = vadd.xlane.f32.xlu0 %v3651_v40  ;;  %v3970_v40 = vsel %vm868_vm0, %v11540_v23, -inf }
 0x2ae   : > { %v1083_v6 = vpop.xlane.xlu1 %1082  ;;  %v1077_v30 = vpop.xlane.xlu0 %1076 }
 0x2b1   : > { %3673 = vadd.xlane.f32.xlu1 %v3672_v22  ;;  %3658 = vadd.xlane.f32.xlu0 %v3657_v12  ;;  %v3669_v22 = vsel %vm868_vm0, %v11604_v41, 0.0  ;;  %v11612_v12 = vmul.f32 %v11524_v19, %v11066_v63  ;;  %v1243_v63 = vadd.s32 4294967285, %v1237_v17  ;;  %v11633_v17 = vsub.s32 %v1238_v52, %v11618_v28 }
 0x2b2   : > { %v1089_v11 = vpop.xlane.xlu1 %1088  ;;  %v1080_v10 = vpop.xlane.xlu0 %1079  ;;  %v3973_v52 = vsel %vm868_vm0, %v11576_v25, -inf }
 0x2b3   : > { %16258 = vst [vmem:[#allocation71_spill] sm:$0xff] %v11612_v12 }
 0x2b5   : > { %3965 = vmax.xlane.f32.xlu1 %v3964_v46  ;;  %3664 = vadd.xlane.f32.xlu0 %v3663_v24  ;;  %v3678_v46 = vsel %vm868_vm0, %v11612_v12, 0.0  ;;  %v3961_v24 = vsel %vm868_vm0, %v11532_v20, -inf  ;;  %v1173_v20 = vmul.f32 0.03125, %v1080_v10  ;;  %v1176_v10 = vmul.f32 0.03125, %v1089_v11 }
 0x2b6   : > { %v1095_v59 = vpop.xlane.xlu1 %1094  ;;  %v1086_v7 = vpop.xlane.xlu0 %1085 }
 0x2b7   : > { %v1178_v3 = vmul.f32 0.03125, %v1095_v59 }
 0x2b9   : > { %3971 = vmax.xlane.f32.xlu1 %v3970_v40  ;;  %3670 = vadd.xlane.f32.xlu0 %v3669_v22  ;;  %v3976_v40 = vsel %vm868_vm0, %v11548_v49, -inf  ;;  %v3967_v22 = vsel %vm868_vm0, %v11564_v32, -inf  ;;  %v11636_v49 = vsub.s32 %v1243_v63, %v11618_v28  ;;  %v1175_v32 = vmul.f32 0.03125, %v1086_v7 }
 0x2ba   : > { %v1101_v44 = vpop.xlane.xlu1 %1100  ;;  %v1092_v14 = vpop.xlane.xlu0 %1091  ;;  %v11648_v7 = vmul.f32 %v11524_v19, %v11073_v29  ;;  %v1172_v63 = vmul.f32 0.03125, %v1077_v30  ;;  %v3994_v29 = vsel %vm868_vm0, %v11584_v4, -inf }
 0x2bb   : > { %v1177_v54 = vmul.f32 0.03125, %v1092_v14  ;;  %v1257_v21 = vrot.slane %v1175_v32, %v11636_v49 }
 0x2bc   : > { %16262 = vst [vmem:[#allocation75_spill] sm:$0xff] %v11648_v7  ;;  %v1242_v32 = vrot.slane %v1172_v63, %v11633_v17 }
 0x2bd   : > { %3679 = vadd.xlane.f32.xlu1 %v3678_v46  ;;  %3962 = vmax.xlane.f32.xlu0 %v3961_v24  ;;  %v11630_v46 = vmul.f32 %v11524_v19, %v11055_v50  ;;  %v3684_v50 = vsel %vm868_vm0, %v11626_v51, 0.0  ;;  %v1266_v25 = vrot.slane %v1177_v54, %v11636_v49 }
 0x2be   : > { %v1107_v23 = vpop.xlane.xlu1 %1106  ;;  %v1098_v1 = vpop.xlane.xlu0 %1097 }
 0x2bf   : > { %16261 = vst [vmem:[#allocation74_spill] sm:$0xff] %v11630_v46  ;;  %v1179_v53 = vmul.f32 0.03125, %v1098_v1  ;;  %v3988_v1 = vsel %vm868_vm0, %v11572_v60, -inf  ;;  %v1182_v11 = vmul.f32 0.03125, %v1107_v23 }
 0x2c1   : > { %3977 = vmax.xlane.f32.xlu1 %v3976_v40  ;;  %3968 = vmax.xlane.f32.xlu0 %v3967_v22  ;;  %v3675_v40 = vsel %vm868_vm0, %v11630_v46, 0.0  ;;  %v1174_v22 = vmul.f32 0.03125, %v1083_v6 }
 0x2c2   : > { %v1113_v27 = vpop.xlane.xlu1 %1112  ;;  %v1104_v24 = vpop.xlane.xlu0 %1103 }
 0x2c3   : > { %v1181_v14 = vmul.f32 0.03125, %v1104_v24  ;;  %v1253_v30 = vrot.slane %v1174_v22, %v11633_v17  ;;  %v1275_v24 = vrot.slane %v1179_v53, %v11636_v49  ;;  %v1271_v22 = vrot.slane %v1178_v3, %v11633_v17 }
 0x2c5   : > { %3685 = vadd.xlane.f32.xlu1 %v3684_v50  ;;  %3676 = vadd.xlane.f32.xlu0 %v3675_v40  ;;  %v1247_v50 = vrot.slane %v1173_v20, %v11636_v49  ;;  %v1180_v40 = vmul.f32 0.03125, %v1101_v44  ;;  %v1262_v20 = vrot.slane %v1176_v10, %v11633_v17  ;;  %v1184_v44 = vmul.f32 0.03125, %v1113_v27 }
 0x2c6   : > { %v1119_v0 = vpop.xlane.xlu1 %1118  ;;  %v1110_v48 = vpop.xlane.xlu0 %1109  ;;  %v1284_v54 = vrot.slane %v1181_v14, %v11636_v49  ;;  %v1258_v23 = vsel %vm1248_vm4, %v1257_v21, %v1253_v30  ;;  %v1289_v27 = vrot.slane %v1182_v11, %v11633_v17  ;;  %v1276_v10 = vsel %vm1248_vm4, %v1275_v24, %v1271_v22 }
 0x2c7   : > { %v1183_v6 = vmul.f32 0.03125, %v1110_v48  ;;  %v3681_v48 = vsel %vm868_vm0, %v11648_v7, 0.0  ;;  %v1280_v60 = vrot.slane %v1180_v40, %v11633_v17  ;;  %v1267_v63 = vsel %vm1248_vm4, %v1266_v25, %v1262_v20 }
 0x2c8   : > { %v1186_v14 = vmul.f32 0.03125, %v1119_v0  ;;  %v1298_v21 = vrot.slane %v1184_v44, %v11633_v17  ;;  %v3979_v11 = vsel %vm868_vm0, %v11588_v61, -inf }
 0x2c9   : > { %3983 = vmax.xlane.f32.xlu1 %v3982_v31  ;;  %3974 = vmax.xlane.f32.xlu0 %v3973_v52  ;;  %v1293_v53 = vrot.slane %v1183_v6, %v11636_v49  ;;  %v1249_v52 = vsel %vm1248_vm4, %v1247_v50, %v1242_v32 }
 0x2ca   : > { %v11664_v59 = vpop.xlane.xlu1 %1124  ;;  %v1116_v4 = vpop.xlane.xlu0 %1115  ;;  %v1386_v3 = vsel %vm1385_vm5, %v1258_v23, %v1249_v52  ;;  %v4000_v23 = vsel %vm868_vm0, %v11612_v12, -inf  ;;  %v4006_v52 = vsel %vm868_vm0, %v11626_v51, -inf  ;;  %v1944_v12 = vstv %s11920_s16  ;;  %s12051_s16 = sld [smem:[#allocation5 + $0x3]] }
 0x2cb   : > { %v1185_v31 = vmul.f32 0.03125, %v1116_v4  ;;  %v1285_v4 = vsel %vm1248_vm4, %v1284_v54, %v1280_v60  ;;  %v1388_v25 = vsel %vm1387_vm6, %v1267_v63, %v1386_v3  ;;  %v1294_v40 = vsel %vm1248_vm4, %v1293_v53, %v1289_v27 }
 0x2cc   : > { %v1390_v0 = vsel %vm1389_vm7, %v1276_v10, %v1388_v25  ;;  %v1307_v60 = vrot.slane %v1186_v14, %v11633_v17  ;;  %v3985_v53 = vsel %vm868_vm0, %v11596_v34, -inf  ;;  %v3991_v63 = vsel %vm868_vm0, %v11604_v41, -inf }
 0x2cd   : > { %v1302_v9 = vrot.slane %v1185_v31, %v11636_v49  ;;  %3989 = vmax.xlane.f32.xlu1 %v3988_v1  ;;  %3682 = vadd.xlane.f32.xlu0 %v3681_v48  ;;  %v1392_v24 = vsel %vm1391_vm8, %v1285_v4, %v1390_v0  ;;  %v11702_v27 = vmul.f32 %v11524_v19, %v11092_v57  ;;  %v3997_v4 = vsel %vm868_vm0, %v11630_v46, -inf }
 0x2ce   : > { %v1131_v6 = vpop.xlane.xlu1 %1130  ;;  %v1122_v50 = vpop.xlane.xlu0 %1121  ;;  %v1394_v32 = vsel %vm1393_vm9, %v1294_v40, %v1392_v24  ;;  %v16265_v40 = vld [vmem:[#allocation41_spill] sm:$0xff]  ;;  %v4003_v0 = vsel %vm868_vm0, %v11648_v7, -inf }
 0x2cf   : > { %v1187_v30 = vmul.f32 0.03125, %v1122_v50  ;;  %v1303_v1 = vsel %vm1248_vm4, %v1302_v9, %v1298_v21  ;;  %16263 = vst [vmem:[#allocation76_spill] sm:$0xff] %v11702_v27  ;;  %v3690_v3 = vsel %vm868_vm0, %v11702_v27, 0.0  ;;  %v11708_v21 = vmul.f32 %v11524_v19, %v11116_v5  ;;  %v16267_v5 = vld [vmem:[#allocation38_spill] sm:$0xff] }
 0x2d0   : > { %v1396_v54 = vsel %vm1395_vm10, %v1303_v1, %v1394_v32  ;;  %v11722_v1 = vmul.f32 %v11524_v19, %v16267_v5 }
 0x2d1   : > { %v1311_v48 = vrot.slane %v1187_v30, %v11636_v49  ;;  %3995 = vmax.xlane.f32.xlu1 %v3994_v29  ;;  %3980 = vmax.xlane.f32.xlu0 %v3979_v11  ;;  %16264 = vst [vmem:[#allocation77_spill] sm:$0xff] %v11708_v21  ;;  %v3696_v57 = vsel %vm868_vm0, %v11708_v21, 0.0  ;;  %v11716_v30 = vmul.f32 %v11524_v19, %v16265_v40 }
 0x2d2   : > { %v1137_v20 = vpop.xlane.xlu1 %1136  ;;  %v1128_v44 = vpop.xlane.xlu0 %1127  ;;  %16268 = vst [vmem:[#allocation38_spill] sm:$0xff] %v11722_v1  ;;  %v4009_v62 = vsel %vm868_vm0, %v11722_v1, -inf }
 0x2d3   : > { %v1312_v9 = vsel %vm1248_vm4, %v1311_v48, %v1307_v60  ;;  %16266 = vst [vmem:[#allocation41_spill] sm:$0xff] %v11716_v30  ;;  %v1189_v48 = vmul.f32 0.03125, %v1128_v44 }
 0x2d4   : > { %v1398_v22 = vsel %vm1397_vm11, %v1312_v9, %v1396_v54  ;;  %v3702_v54 = vsel %vm868_vm0, %v11716_v30, 0.0  ;;  %v1190_v9 = vmul.f32 0.03125, %v1131_v6 }
 0x2d5   : > { %1409 = vst.msk [vmem:[#allocation3 + $0x3] sm:$0xff] %vm1408_vm12, %v1398_v22  ;;  %4001 = vmax.xlane.f32.xlu1 %v4000_v23  ;;  %3986 = vmax.xlane.f32.xlu0 %v3985_v53  ;;  %v3687_v23 = vsel %vm868_vm0, %v11722_v1, 0.0  ;;  %v16269_v53 = vld [vmem:[#allocation39_spill] sm:$0xff] }
 0x2d6   : > { %v1143_v29 = vpop.xlane.xlu1 %1142  ;;  %v1134_v31 = vpop.xlane.xlu0 %1133  ;;  %v16297_v1 = vld [vmem:[#allocation43_spill] sm:$0xff] }
 0x2d7   : > { %v1191_v60 = vmul.f32 0.03125, %v1134_v31 }
 0x2d9   : > { %4007 = vmax.xlane.f32.xlu1 %v4006_v52  ;;  %3992 = vmax.xlane.f32.xlu0 %v3991_v63  ;;  %v11730_v52 = vmul.f32 %v11524_v19, %v16269_v53  ;;  %v1188_v63 = vmul.f32 0.03125, %v11664_v59  ;;  %v16273_v53 = vld [vmem:[#allocation42_spill] sm:$0xff] }
 0x2da   : > { %v1149_v10 = vpop.xlane.xlu1 %1148  ;;  %v1140_v14 = vpop.xlane.xlu0 %1139  ;;  %v11742_v59 = vmul.f32 %v11524_v19, %v16273_v53 }
 0x2db   : > { %v1193_v32 = vmul.f32 0.03125, %v1140_v14  ;;  %16270 = vst [vmem:[#allocation39_spill] sm:$0xff] %v11730_v52  ;;  %v1194_v14 = vmul.f32 0.03125, %v1143_v29  ;;  %v1196_v5 = vmul.f32 0.03125, %v1149_v10 }
 0x2dc   : > { %16274 = vst [vmem:[#allocation42_spill] sm:$0xff] %v11742_v59 }
 0x2dd   : > { %3691 = vadd.xlane.f32.xlu1 %v3690_v3  ;;  %3998 = vmax.xlane.f32.xlu0 %v3997_v4  ;;  %v1192_v3 = vmul.f32 0.03125, %v1137_v20  ;;  %v1325_v20 = vrot.slane %v1190_v9, %v11633_v17  ;;  %v1343_v53 = vrot.slane %v1194_v14, %v11633_v17 }
 0x2de   : > { %v1155_v50 = vpop.xlane.xlu1 %1154  ;;  %v1146_v25 = vpop.xlane.xlu0 %1145 }
 0x2df   : > { %v1195_v22 = vmul.f32 0.03125, %v1146_v25  ;;  %v16271_v25 = vld [vmem:[#allocation40_spill] sm:$0xff] }
 0x2e0   : > { %v11736_v40 = vmul.f32 %v11524_v19, %v16271_v25 }
 0x2e1   : > { %3697 = vadd.xlane.f32.xlu1 %v3696_v57  ;;  %4004 = vmax.xlane.f32.xlu0 %v4003_v0  ;;  %v1329_v57 = vrot.slane %v1191_v60, %v11636_v49  ;;  %v1320_v0 = vrot.slane %v1189_v48, %v11636_v49  ;;  %v1347_v29 = vrot.slane %v1195_v22, %v11636_v49  ;;  %v3693_v60 = vsel %vm868_vm0, %v11730_v52, 0.0 }
 0x2e2   : > { %v1161_v11 = vpop.xlane.xlu1 %1160  ;;  %v1152_v24 = vpop.xlane.xlu0 %1151  ;;  %16272 = vst [vmem:[#allocation40_spill] sm:$0xff] %v11736_v40 }
 0x2e3   : > { %v1197_v4 = vmul.f32 0.03125, %v1152_v24  ;;  %v1198_v24 = vmul.f32 0.03125, %v1155_v50  ;;  %v1200_v48 = vmul.f32 0.03125, %v1161_v11  ;;  %v1330_v50 = vsel %vm1248_vm4, %v1329_v57, %v1325_v20 }
 0x2e4   : > { %v3699_v11 = vsel %vm868_vm0, %v11736_v40, 0.0 }
 0x2e5   : > { %3703 = vadd.xlane.f32.xlu1 %v3702_v54  ;;  %3688 = vadd.xlane.f32.xlu0 %v3687_v23  ;;  %v1338_v54 = vrot.slane %v1193_v32, %v11636_v49  ;;  %v1316_v23 = vrot.slane %v1188_v63, %v11633_v17  ;;  %v1356_v10 = vrot.slane %v1197_v4, %v11636_v49 }
 0x2e6   : > { %v1167_v44 = vpop.xlane.xlu1 %1166  ;;  %v1158_v31 = vpop.xlane.xlu0 %1157  ;;  %v1352_v63 = vrot.slane %v1196_v5, %v11633_v17  ;;  %v1361_v4 = vrot.slane %v1198_v24, %v11633_v17 }
 0x2e7   : > { %v1199_v6 = vmul.f32 0.03125, %v1158_v31  ;;  %v1334_v31 = vrot.slane %v1192_v3, %v11633_v17  ;;  %v1321_v7 = vsel %vm1248_vm4, %v1320_v0, %v1316_v23  ;;  %v1202_v51 = vmul.f32 0.03125, %v1167_v44 }
 0x2e8   : > { %v1399_v57 = vsel %vm1385_vm5, %v1330_v50, %v1321_v7  ;;  %v1357_v0 = vsel %vm1248_vm4, %v1356_v10, %v1352_v63  ;;  %v3705_v10 = vsel %vm868_vm0, %v11742_v59, 0.0 }
 0x2e9   : > { %3694 = vadd.xlane.f32.xlu0 %v3693_v60  ;;  %v1365_v9 = vrot.slane %v1199_v6, %v11636_v49  ;;  %v1339_v3 = vsel %vm1248_vm4, %v1338_v54, %v1334_v31  ;;  %v1348_v60 = vsel %vm1248_vm4, %v1347_v29, %v1343_v53  ;;  %v1370_v6 = vrot.slane %v1200_v48, %v11633_v17 }
 0x2ea   : > { %v11751_v32 = vpop.xlane.xlu1 %1412  ;;  %v1164_v25 = vpop.xlane.xlu0 %1163  ;;  %v1400_v54 = vsel %vm1387_vm6, %v1339_v3, %v1399_v57  ;;  %v1379_v7 = vrot.slane %v1202_v51, %v11633_v17 }
 0x2eb   : > { %v1201_v22 = vmul.f32 0.03125, %v1164_v25  ;;  %v1366_v23 = vsel %vm1248_vm4, %v1365_v9, %v1361_v4  ;;  %v1401_v24 = vsel %vm1389_vm7, %v1348_v60, %v1400_v54 }
 0x2ec   : > { %v1402_v29 = vsel %vm1391_vm8, %v1357_v0, %v1401_v24 }
 0x2ed   : > { %v1374_v14 = vrot.slane %v1201_v22, %v11636_v49  ;;  %3700 = vadd.xlane.f32.xlu0 %v3699_v11  ;;  %v1403_v25 = vsel %vm1393_vm9, %v1366_v23, %v1402_v29 }
 0x2ee   : > { %v1419_v5 = vpop.xlane.xlu1 %1418  ;;  %v1170_v20 = vpop.xlane.xlu0 %1169 }
 0x2ef   : > { %v1203_v31 = vmul.f32 0.03125, %v1170_v20  ;;  %v1375_v44 = vsel %vm1248_vm4, %v1374_v14, %v1370_v6 }
 0x2f0   : > { %v1404_v9 = vsel %vm1395_vm10, %v1375_v44, %v1403_v25 }
 0x2f1   : > { %v1383_v48 = vrot.slane %v1203_v31, %v11636_v49  ;;  %3706 = vadd.xlane.f32.xlu0 %v3705_v10  ;;  %v1551_v31 = vrot.slane %v1419_v5, %v11633_v17 }
 0x2f2   : > { %v1425_v53 = vpop.xlane.xlu1 %1424  ;;  %v1416_v50 = vpop.xlane.xlu0 %1415 }
 0x2f3   : > { %v1384_v22 = vsel %vm1248_vm4, %v1383_v48, %v1379_v7  ;;  %v1546_v24 = vrot.slane %v1416_v50, %v11636_v49  ;;  %v1560_v29 = vrot.slane %v1425_v53, %v11633_v17  ;;  %v1542_v48 = vrot.slane %v11751_v32, %v11633_v17 }
 0x2f4   : > { %v1405_v63 = vsel %vm1397_vm11, %v1384_v22, %v1404_v9 }
 0x2f5   : > { %1410 = vst.msk [vmem:[#allocation3 + $0xb] sm:$0xff] %vm1408_vm12, %v1405_v63  ;;  %v1547_v53 = vsel %vm1248_vm4, %v1546_v24, %v1542_v48 }
 0x2f6   : > { %v1431_v3 = vpop.xlane.xlu1 %1430  ;;  %v1422_v51 = vpop.xlane.xlu0 %1421 }
 0x2f7   : > { %v1555_v0 = vrot.slane %v1422_v51, %v11636_v49  ;;  %v1569_v10 = vrot.slane %v1431_v3, %v11633_v17 }
 0x2f9   : > { %v1556_v25 = vsel %vm1248_vm4, %v1555_v0, %v1551_v31 }
 0x2fa   : > { %v1437_v11 = vpop.xlane.xlu1 %1436  ;;  %v1428_v4 = vpop.xlane.xlu0 %1427  ;;  %v1683_v3 = vsel %vm1385_vm5, %v1556_v25, %v1547_v53 }
 0x2fb   : > { %v1564_v20 = vrot.slane %v1428_v4, %v11636_v49  ;;  %v1578_v22 = vrot.slane %v1437_v11, %v11633_v17 }
 0x2fd   : > { %v1565_v5 = vsel %vm1248_vm4, %v1564_v20, %v1560_v29 }
 0x2fe   : > { %v1443_v60 = vpop.xlane.xlu1 %1442  ;;  %v1434_v14 = vpop.xlane.xlu0 %1433  ;;  %v1684_v11 = vsel %vm1387_vm6, %v1565_v5, %v1683_v3  ;;  %v15841_v5 = vstv %s11814_s19 }
 0x2ff   : > { %v1573_v44 = vrot.slane %v1434_v14, %v11636_v49  ;;  %v1587_v51 = vrot.slane %v1443_v60, %v11633_v17 }
 0x301   : > { %v1574_v4 = vsel %vm1248_vm4, %v1573_v44, %v1569_v10 }
 0x302   : > { %v1449_v57 = vpop.xlane.xlu1 %1448  ;;  %v1440_v6 = vpop.xlane.xlu0 %1439  ;;  %v1685_v20 = vsel %vm1389_vm7, %v1574_v4, %v1684_v11  ;;  %v1788_v11 = vstv %s11821_s23  ;;  %s11937_s23 = sld [smem:[#allocation5 + $0x3d]] }
 0x303   : > { %v1582_v7 = vrot.slane %v1440_v6, %v11636_v49  ;;  %v1596_v14 = vrot.slane %v1449_v57, %v11633_v17 }
 0x305   : > { %v1583_v6 = vsel %vm1248_vm4, %v1582_v7, %v1578_v22 }
 0x306   : > { %v1455_v54 = vpop.xlane.xlu1 %1454  ;;  %v1446_v23 = vpop.xlane.xlu0 %1445  ;;  %v1686_v24 = vsel %vm1391_vm8, %v1583_v6, %v1685_v20 }
 0x307   : > { %v1591_v9 = vrot.slane %v1446_v23, %v11636_v49  ;;  %v1605_v44 = vrot.slane %v1455_v54, %v11633_v17 }
 0x309   : > { %v1592_v0 = vsel %vm1248_vm4, %v1591_v9, %v1587_v51 }
 0x30a   : > { %v11795_v50 = vpop.xlane.xlu1 %1460  ;;  %v1452_v63 = vpop.xlane.xlu0 %1451  ;;  %v1687_v57 = vsel %vm1393_vm9, %v1592_v0, %v1686_v24 }
 0x30b   : > { %v1600_v32 = vrot.slane %v1452_v63, %v11636_v49 }
 0x30d   : > { %v1601_v23 = vsel %vm1248_vm4, %v1600_v32, %v1596_v14  ;;  %v15840_v32 = vstv %s11818_s20 }
 0x30e   : > { %v1467_v31 = vpop.xlane.xlu1 %1466  ;;  %v1458_v60 = vpop.xlane.xlu0 %1457  ;;  %v1688_v7 = vsel %vm1395_vm10, %v1601_v23, %v1687_v57 }
 0x30f   : > { %v1609_v29 = vrot.slane %v1458_v60, %v11636_v49  ;;  %v1623_v57 = vrot.slane %v1467_v31, %v11633_v17 }
 0x311   : > { %v1610_v48 = vsel %vm1248_vm4, %v1609_v29, %v1605_v44 }
 0x312   : > { %v1689_v10 = vsel %vm1397_vm11, %v1610_v48, %v1688_v7  ;;  %v1473_v25 = vpop.xlane.xlu1 %1472  ;;  %v1464_v9 = vpop.xlane.xlu0 %1463 }
 0x313   : > { %1699 = vst.msk [vmem:[#allocation4 + $0x3] sm:$0xff] %vm1408_vm12, %v1689_v10  ;;  %v1618_v7 = vrot.slane %v1464_v9, %v11636_v49  ;;  %v1632_v10 = vrot.slane %v1473_v25, %v11633_v17 }
 0x316   : > { %v1479_v54 = vpop.xlane.xlu1 %1478  ;;  %v1470_v22 = vpop.xlane.xlu0 %1469 }
 0x317   : > { %v1627_v60 = vrot.slane %v1470_v22, %v11636_v49  ;;  %v1614_v22 = vrot.slane %v11795_v50, %v11633_v17 }
 0x319   : > { %v1619_v25 = vsel %vm1248_vm4, %v1618_v7, %v1614_v22 }
 0x31a   : > { %v11823_v63 = vld [vmem:[#allocation4] sm:$0xff]  ;;  %v1485_v53 = vpop.xlane.xlu1 %1484  ;;  %v1476_v51 = vpop.xlane.xlu0 %1475 }
 0x31b   : > { %v1733_v4 = vmul.f32 %v15841_v5, %v11823_v63  ;;  %v1761_v6 = vmul.f32 %v15840_v32, %v11823_v63  ;;  %v1789_v23 = vmul.f32 %v1788_v11, %v11823_v63  ;;  %v1636_v24 = vrot.slane %v1476_v51, %v11636_v49 }
 0x31c   : > { %v1641_v51 = vrot.slane %v1479_v54, %v11633_v17  ;;  %v1650_v32 = vrot.slane %v1485_v53, %v11633_v17 }
 0x31d   : > { %1737 = vrot.lane.b32.xlu0 %v1733_v4, %s15899_s24  ;;  %v1637_v31 = vsel %vm1248_vm4, %v1636_v24, %v1632_v10 }
 0x31e   : > { %v1491_v3 = vpop.xlane.xlu1 %1490  ;;  %v1482_v14 = vpop.xlane.xlu0 %1481 }
 0x31f   : > { %v1645_v48 = vrot.slane %v1482_v14, %v11636_v49 }
 0x321   : > { %1765 = vrot.lane.b32.xlu0 %v1761_v6, %s15897_s25  ;;  %v1628_v6 = vsel %vm1248_vm4, %v1627_v60, %v1623_v57  ;;  %v1646_v5 = vsel %vm1248_vm4, %v1645_v48, %v1641_v51 }
 0x322   : > { %v1497_v0 = vpop.xlane.xlu1 %1496  ;;  %v1488_v20 = vpop.xlane.xlu0 %1487  ;;  %v1690_v54 = vsel %vm1385_vm5, %v1628_v6, %v1619_v25  ;;  %v15842_v25 = vstv %s11872_s27  ;;  %s12537_s27 = sld [smem:[#allocation7 + $0x5]] }
 0x323   : > { %v1654_v4 = vrot.slane %v1488_v20, %v11636_v49  ;;  %v1659_v20 = vrot.slane %v1491_v3, %v11633_v17  ;;  %v1668_v60 = vrot.slane %v1497_v0, %v11633_v17  ;;  %v1691_v53 = vsel %vm1387_vm6, %v1637_v31, %v1690_v54 }
 0x324   : > { %v1692_v57 = vsel %vm1389_vm7, %v1646_v5, %v1691_v53 }
 0x325   : > { %1793 = vrot.lane.b32.xlu0 %v1789_v23, %s15903_s26 }
 0x326   : > { %v1503_v44 = vpop.xlane.xlu1 %1502  ;;  %v1494_v29 = vpop.xlane.xlu0 %1493 }
 0x327   : > { %v1663_v23 = vrot.slane %v1494_v29, %v11636_v49  ;;  %v1655_v29 = vsel %vm1248_vm4, %v1654_v4, %v1650_v32  ;;  %v1677_v22 = vrot.slane %v1503_v44, %v11633_v17 }
 0x328   : > { %v1693_v48 = vsel %vm1391_vm8, %v1655_v29, %v1692_v57 }
 0x329   : > { %v1664_v24 = vsel %vm1248_vm4, %v1663_v23, %v1659_v20  ;;  %v15843_v20 = vstv %s11874_s28  ;;  %s12559_s28 = sld [smem:[#allocation7 + $0x36]] }
 0x32a   : > { %v11851_v9 = vpop.xlane.xlu1 %3640  ;;  %v1500_v14 = vpop.xlane.xlu0 %1499  ;;  %v1694_v0 = vsel %vm1393_vm9, %v1664_v24, %v1693_v48  ;;  %v1816_v48 = vstv %s11880_s29  ;;  %s11966_s29 = sld [smem:[#allocation5 + $0x3e]] }
 0x32b   : > { %v1672_v50 = vrot.slane %v1500_v14, %v11636_v49  ;;  %v11884_v14 = vld [vmem:[#allocation3 + $0x8] sm:$0xff] }
 0x32c   : > { %v1706_v29 = vmul.f32 %v15842_v25, %v11884_v14 }
 0x32d   : > { %v1673_v7 = vsel %vm1248_vm4, %v1672_v50, %v1668_v60 }
 0x32e   : > { %v11864_v10 = vpop.xlane.xlu1 %3649  ;;  %v1506_v3 = vpop.xlane.xlu0 %1505  ;;  %v1695_v32 = vsel %vm1395_vm10, %v1673_v7, %v1694_v0  ;;  %v16277_v7 = vstv %s11814_s19  ;;  %v1817_v0 = vmul.f32 %v1816_v48, %v11823_v63  ;;  %s11932_s19 = sld [smem:[#allocation5 + $0x3c]] }
 0x32f   : > { %v1681_v51 = vrot.slane %v1506_v3, %v11636_v49 }
 0x331   : > { %v1682_v4 = vsel %vm1248_vm4, %v1681_v51, %v1677_v22 }
 0x332   : > { %v1696_v5 = vsel %vm1397_vm11, %v1682_v4, %v1695_v32  ;;  %v11877_v6 = vpop.xlane.xlu1 %3655  ;;  %v3644_v44 = vpop.xlane.xlu0 %3643  ;;  %v16278_v32 = vstv %s11818_s20  ;;  %s15890_s20 = smov 122  }
 0x333   : > { %1700 = vst.msk [vmem:[#allocation4 + $0xb] sm:$0xff] %vm1408_vm12, %v1696_v5  ;;  %v3736_v61 = vmul.f32 0.03125, %v3644_v44  ;;  %v3740_v26 = vmul.f32 0.03125, %v11877_v6  ;;  %v2028_v44 = vstv %s11937_s23  ;;  %s12102_s23 = sld [smem:[#allocation5 + $0x6]] }
 0x334   : > { %v2000_v35 = vstv %s11932_s19  ;;  %s12077_s19 = sld [smem:[#allocation5 + $0x5]] }
 0x336   : > { %v11882_v23 = vpop.xlane.xlu1 %3661  ;;  %v3647_v31 = vpop.xlane.xlu0 %3646 }
 0x337   : > { %v3737_v34 = vmul.f32 0.03125, %v3647_v31 }
 0x339   : > { %v3811_v18 = vrot.slane %v3737_v34, %v11633_v17 }
 0x33a   : > { %v1711_v50 = vld [vmem:[#allocation4 + $0x8] sm:$0xff]  ;;  %v11890_v54 = vpop.xlane.xlu1 %3667  ;;  %v3653_v60 = vpop.xlane.xlu0 %3652 }
 0x33b   : > { %v1714_v53 = vmul.f32 %v15843_v20, %v1711_v50  ;;  %v1790_v24 = vmul.f32 %v1788_v11, %v1711_v50  ;;  %v1734_v3 = vmul.f32 %v16277_v7, %v1711_v50  ;;  %v1762_v4 = vmul.f32 %v16278_v32, %v1711_v50 }
 0x33c   : > { %v1844_v11 = vstv %s11886_s30  ;;  %v1872_v7 = vstv %s11902_s13  ;;  %v3739_v15 = vmul.f32 0.03125, %v3653_v60  ;;  %v3742_v60 = vmul.f32 0.03125, %v11882_v23  ;;  %s11992_s30 = sld [smem:[#allocation5 + $0x40]]  ;;  %s12013_s13 = sld [smem:[#allocation5 + $0x41]] }
 0x33d   : > { %v11897_v57 = vadd.f32 %v1714_v53, %v1706_v29  ;;  %1795 = vrot.lane.b32.xlu0 %v1790_v24, %s15903_s26  ;;  %1739 = vrot.lane.b32.xlu1 %v1734_v3, %s15899_s24  ;;  %v1845_v53 = vmul.f32 %v1844_v11, %v11823_v63  ;;  %v1818_v24 = vmul.f32 %v1816_v48, %v1711_v50  ;;  %v1916_v48 = vstv %s11912_s14  ;;  %s12032_s14 = sld [smem:[#allocation5 + $0x2]] }
 0x33e   : > { %v11905_v22 = vpop.xlane.xlu1 %3673  ;;  %v3659_v51 = vpop.xlane.xlu0 %3658  ;;  %v1846_v25 = vmul.f32 %v1844_v11, %v1711_v50  ;;  %v1874_v46 = vmul.f32 %v1872_v7, %v1711_v50  ;;  %v11942_v11 = vld [vmem:[#allocation4 + $0x9] sm:$0xff]  ;;  %v3738_v50 = vmul.f32 0.03125, %v11864_v10  ;;  %v3820_v6 = vrot.slane %v3739_v15, %v11633_v17 }
 0x33f   : > { %v1918_v55 = vmul.f32 %v1916_v48, %v11942_v11  ;;  %v3746_v23 = vmul.f32 0.03125, %v11905_v22 }
 0x341   : > { %1821 = vrot.lane.b32.xlu0 %v1817_v0, %s15901_s15  ;;  %1767 = vrot.lane.b32.xlu1 %v1762_v4, %s15897_s25  ;;  %v1873_v0 = vmul.f32 %v1872_v7, %v11823_v63  ;;  %v11929_v4 = vld [vmem:[#allocation4 + $0x1] sm:$0xff]  ;;  %v3741_v7 = vmul.f32 0.03125, %v3659_v51  ;;  %v3806_v51 = vrot.slane %v3736_v61, %v11636_v49 }
 0x342   : > { %v11915_v5 = vpop.xlane.xlu1 %3965  ;;  %v3665_v29 = vpop.xlane.xlu0 %3664  ;;  %16279 = vst [vmem:[#allocation80_spill] sm:$0xff] %v11929_v4  ;;  %v1973_v10 = vmul.f32 %v1972_v38, %v11929_v4 }
 0x343   : > { %v3743_v8 = vmul.f32 0.03125, %v3665_v29  ;;  %v3829_v34 = vrot.slane %v3741_v7, %v11633_v17 }
 0x345   : > { %1849 = vrot.lane.b32.xlu0 %v1845_v53, %s15892_s17  ;;  %1823 = vrot.lane.b32.xlu1 %v1818_v24, %s15901_s15  ;;  %v1917_v24 = vmul.f32 %v1916_v48, %v11929_v4  ;;  %v3815_v48 = vrot.slane %v3738_v50, %v11636_v49  ;;  %v3838_v61 = vrot.slane %v3743_v8, %v11633_v17 }
 0x346   : > { %v11923_v3 = vpop.xlane.xlu1 %3971  ;;  %v3671_v32 = vpop.xlane.xlu0 %3670  ;;  %v3833_v50 = vrot.slane %v3742_v60, %v11636_v49 }
 0x347   : > { %v3745_v16 = vmul.f32 0.03125, %v3671_v32  ;;  %v1946_v32 = vmul.f32 %v1944_v12, %v11942_v11  ;;  %v3816_v22 = vsel %vm1248_vm4, %v3815_v48, %v3811_v18 }
 0x348   : > { %v3834_v60 = vsel %vm1248_vm4, %v3833_v50, %v3829_v34 }
 0x349   : > { %1877 = vrot.lane.b32.xlu0 %v1873_v0, %s15890_s20  ;;  %1851 = vrot.lane.b32.xlu1 %v1846_v25, %s15892_s17  ;;  %v1945_v25 = vmul.f32 %v1944_v12, %v11929_v4  ;;  %v3847_v7 = vrot.slane %v3745_v16, %v11633_v17  ;;  %v2001_v12 = vmul.f32 %v2000_v35, %v11929_v4 }
 0x34a   : > { %v3680_v53 = vpop.xlane.xlu1 %3679  ;;  %v11935_v20 = vpop.xlane.xlu0 %3962  ;;  %v1974_v16 = vmul.f32 %v1972_v38, %v11942_v11 }
 0x34d   : > { %1921 = vrot.lane.b32.xlu0 %v1917_v24, %s15899_s24  ;;  %1879 = vrot.lane.b32.xlu1 %v1874_v46, %s15890_s20  ;;  %v3735_v24 = vmul.f32 0.03125, %v11851_v9  ;;  %v3744_v9 = vmul.f32 0.03125, %v11890_v54  ;;  %v3748_v54 = vmul.f32 0.03125, %v3680_v53 }
 0x34e   : > { %v11945_v41 = vpop.xlane.xlu1 %3977  ;;  %v11947_v0 = vpop.xlane.xlu0 %3968 }
 0x34f   : > { %v3842_v8 = vrot.slane %v3744_v9, %v11636_v49  ;;  %v3860_v9 = vrot.slane %v3748_v54, %v11636_v49 }
 0x351   : > { %1949 = vrot.lane.b32.xlu0 %v1945_v25, %s15897_s25  ;;  %1923 = vrot.lane.b32.xlu1 %v1918_v55, %s15899_s24  ;;  %v3802_v55 = vrot.slane %v3735_v24, %v11633_v17  ;;  %v3824_v25 = vrot.slane %v3740_v26, %v11636_v49 }
 0x352   : > { %v3686_v31 = vpop.xlane.xlu1 %3685  ;;  %v3677_v46 = vpop.xlane.xlu0 %3676 }
 0x353   : > { %v3747_v29 = vmul.f32 0.03125, %v3677_v46  ;;  %v3807_v26 = vsel %vm1248_vm4, %v3806_v51, %v3802_v55  ;;  %v3825_v53 = vsel %vm1248_vm4, %v3824_v25, %v3820_v6  ;;  %v3750_v18 = vmul.f32 0.03125, %v3686_v31 }
 0x354   : > { %v3943_v48 = vsel %vm1385_vm5, %v3816_v22, %v3807_v26  ;;  %v3843_v51 = vsel %vm1248_vm4, %v3842_v8, %v3838_v61  ;;  %v2029_v55 = vmul.f32 %v2028_v44, %v11929_v4  ;;  %v2056_v25 = vstv %s11966_s29  ;;  %v12019_v26 = vld [vmem:[#allocation3 + $0x2] sm:$0xff]  ;;  %s12115_s29 = sld [smem:[#allocation5 + $0x8]] }
 0x355   : > { %1977 = vrot.lane.b32.xlu0 %v1973_v10, %s15903_s26  ;;  %1951 = vrot.lane.b32.xlu1 %v1946_v32, %s15897_s25  ;;  %v3856_v24 = vrot.slane %v3747_v29, %v11633_v17  ;;  %v3851_v10 = vrot.slane %v3746_v23, %v11636_v49  ;;  %v3944_v29 = vsel %vm1387_vm6, %v3825_v53, %v3943_v48  ;;  %v12036_v48 = vld [vmem:[#allocation3 + $0x5] sm:$0xff] }
 0x356   : > { %v11976_v15 = vpop.xlane.xlu1 %3983  ;;  %v11978_v46 = vpop.xlane.xlu0 %3974  ;;  %v3945_v34 = vsel %vm1389_vm7, %v3834_v60, %v3944_v29  ;;  %v3869_v54 = vrot.slane %v3750_v18, %v11636_v49  ;;  %v2002_v22 = vmul.f32 %v2000_v35, %v11942_v11  ;;  %16281 = vst [vmem:[#allocation82_spill] sm:$0xff] %v12019_v26  ;;  %v12027_v35 = vld [vmem:[#allocation3 + $0xa] sm:$0xff]  ;;  %v12042_v29 = vld [vmem:[#allocation4 + $0x2] sm:$0xff] }
 0x357   : > { %v3852_v23 = vsel %vm1248_vm4, %v3851_v10, %v3847_v7  ;;  %v3861_v32 = vsel %vm1248_vm4, %v3860_v9, %v3856_v24  ;;  %v3946_v61 = vsel %vm1391_vm8, %v3843_v51, %v3945_v34  ;;  %v12015_v7 = vld [vmem:[#allocation3] sm:$0xff]  ;;  %v12025_v10 = vld [vmem:[#allocation3 + $0x9] sm:$0xff]  ;;  %16285 = vst [vmem:[#allocation86_spill] sm:$0xff] %v12042_v29  ;;  %v2100_v34 = vstv %s11992_s30  ;;  %s12117_s30 = sld [smem:[#allocation7]] }
 0x358   : > { %v3947_v8 = vsel %vm1393_vm9, %v3852_v23, %v3946_v61  ;;  %v12023_v24 = vld [vmem:[#allocation3 + $0x3] sm:$0xff]  ;;  %v2058_v61 = vmul.f32 %v2056_v25, %v11942_v11 }
 0x359   : > { %2005 = vrot.lane.b32.xlu0 %v2001_v12, %s15901_s15  ;;  %1979 = vrot.lane.b32.xlu1 %v1974_v16, %s15903_s26  ;;  %v12017_v12 = vld [vmem:[#allocation3 + $0x1] sm:$0xff]  ;;  %16282 = vst [vmem:[#allocation83_spill] sm:$0xff] %v12023_v24  ;;  %v3948_v60 = vsel %vm1395_vm10, %v3861_v32, %v3947_v8  ;;  %v4110_v8 = vrot.slane %v11978_v46, %v11633_v17 }
 0x35a   : > { %v3683_v6 = vpop.xlane.xlu0 %3682  ;;  %v12001_v31 = vpop.xlane.xlu1 %3989  ;;  %16280 = vst [vmem:[#allocation81_spill] sm:$0xff] %v12017_v12  ;;  %v12034_v16 = vld [vmem:[#allocation3 + $0x4] sm:$0xff] }
 0x35b   : > { %v3749_v38 = vmul.f32 0.03125, %v3683_v6  ;;  %16283 = vst [vmem:[#allocation84_spill] sm:$0xff] %v12034_v16  ;;  %v12038_v51 = vld [vmem:[#allocation3 + $0x6] sm:$0xff]  ;;  %v2057_v6 = vmul.f32 %v2056_v25, %v11929_v4  ;;  %v4105_v25 = vrot.slane %v11923_v3, %v11636_v49  ;;  %v4096_v3 = vrot.slane %v11915_v5, %v11636_v49 }
 0x35c   : > { %16284 = vst [vmem:[#allocation85_spill] sm:$0xff] %v12038_v51 }
 0x35d   : > { %v3865_v50 = vrot.slane %v3749_v38, %v11633_v17  ;;  %2033 = vrot.lane.b32.xlu0 %v2029_v55, %s15892_s17  ;;  %2007 = vrot.lane.b32.xlu1 %v2002_v22, %s15901_s15  ;;  %v2030_v38 = vmul.f32 %v2028_v44, %v11942_v11  ;;  %v2101_v55 = vmul.f32 %v2100_v34, %v12042_v29 }
 0x35e   : > { %v3981_v53 = vpop.xlane.xlu0 %3980  ;;  %v3996_v23 = vpop.xlane.xlu1 %3995  ;;  %v4101_v22 = vrot.slane %v11947_v0, %v11633_v17 }
 0x35f   : > { %v3870_v18 = vsel %vm1248_vm4, %v3869_v54, %v3865_v50  ;;  %v2128_v54 = vstv %s12013_s13  ;;  %v12056_v50 = vld [vmem:[#allocation4 + $0xa] sm:$0xff]  ;;  %v4119_v0 = vrot.slane %v3981_v53, %v11633_v17  ;;  %v4123_v53 = vrot.slane %v11976_v15, %v11636_v49  ;;  %s12120_s13 = sld [smem:[#allocation7 + $0x31]] }
 0x360   : > { %v3949_v9 = vsel %vm1397_vm11, %v3870_v18, %v3948_v60  ;;  %v15858_v18 = vstv %s12032_s14  ;;  %v4141_v15 = vrot.slane %v3996_v23, %v11636_v49  ;;  %v2130_v36 = vmul.f32 %v2128_v54, %v12056_v50 }
 0x361   : > { %3959 = vst.msk [vmem:[#allocation3 + $0x3] sm:$0xff] %vm1408_vm12, %v3949_v9  ;;  %2061 = vrot.lane.b32.xlu0 %v2057_v6, %s15890_s20  ;;  %2035 = vrot.lane.b32.xlu1 %v2030_v38, %s15892_s17  ;;  %v4092_v9 = vrot.slane %v11935_v20, %v11633_v17  ;;  %v2129_v6 = vmul.f32 %v2128_v54, %v12042_v29  ;;  %v1718_v23 = vstv %s12061_s18  ;;  %s9017_s18 = sld [smem:[#allocation5 + $0x4]] }
 0x362   : > { %v3987_v32 = vpop.xlane.xlu0 %3986  ;;  %v4002_v60 = vpop.xlane.xlu1 %4001  ;;  %v4114_v38 = vrot.slane %v11945_v41, %v11636_v49  ;;  %v4106_v20 = vsel %vm1248_vm4, %v4105_v25, %v4101_v22  ;;  %v1747_v5 = vmul.f32 %v15858_v18, %v12015_v7  ;;  %v1774_v22 = vstv %s12051_s16  ;;  %s12141_s16 = sld [smem:[#allocation5 + $0x9]] }
 0x363   : > { %v4128_v46 = vrot.slane %v3987_v32, %v11633_v17  ;;  %v4132_v32 = vrot.slane %v12001_v31, %v11636_v49  ;;  %v4097_v25 = vsel %vm1248_vm4, %v4096_v3, %v4092_v9  ;;  %v4150_v31 = vrot.slane %v4002_v60, %v11636_v49 }
 0x364   : > { %v4115_v41 = vsel %vm1248_vm4, %v4114_v38, %v4110_v8  ;;  %v4233_v8 = vsel %vm1385_vm5, %v4106_v20, %v4097_v25  ;;  %v12131_v25 = vld [vmem:[#allocation4 + $0x5] sm:$0xff] }
 0x365   : > { %2105 = vrot.lane.b32.xlu0 %v2101_v55, %s15899_s24  ;;  %2063 = vrot.lane.b32.xlu1 %v2058_v61, %s15890_s20  ;;  %v2102_v55 = vmul.f32 %v2100_v34, %v12056_v50  ;;  %v4133_v38 = vsel %vm1248_vm4, %v4132_v32, %v4128_v46  ;;  %v4234_v18 = vsel %vm1387_vm6, %v4115_v41, %v4233_v8  ;;  %v12124_v41 = vld [vmem:[#allocation4 + $0x3] sm:$0xff] }
 0x366   : > { %v3993_v44 = vpop.xlane.xlu0 %3992  ;;  %16286 = vst [vmem:[#allocation87_spill] sm:$0xff] %v12124_v41  ;;  %v1720_v8 = vmul.f32 %v1718_v23, %v11884_v14 }
 0x367   : > { %v4137_v61 = vrot.slane %v3993_v44, %v11633_v17  ;;  %v4124_v44 = vsel %vm1248_vm4, %v4123_v53, %v4119_v0  ;;  %v1775_v53 = vmul.f32 %v1774_v22, %v12015_v7 }
 0x368   : > { %v4235_v0 = vsel %vm1389_vm7, %v4124_v44, %v4234_v18  ;;  %v1830_v18 = vstv %s12077_s19  ;;  %s12154_s19 = sld [smem:[#allocation5 + $0xa]] }
 0x369   : > { %2133 = vrot.lane.b32.xlu0 %v2129_v6, %s15897_s25  ;;  %2107 = vrot.lane.b32.xlu1 %v2102_v55, %s15899_s24  ;;  %v4008_v55 = vpop.xlane.xlu1 %4007  ;;  %v4142_v9 = vsel %vm1248_vm4, %v4141_v15, %v4137_v61  ;;  %v4236_v46 = vsel %vm1391_vm8, %v4133_v38, %v4235_v0  ;;  %v12133_v15 = vld [vmem:[#allocation4 + $0x6] sm:$0xff]  ;;  %v15860_v0 = vstv %s12120_s13 }
 0x36a   : > { %v3999_v34 = vpop.xlane.xlu0 %3998  ;;  %v4159_v54 = vrot.slane %v4008_v55, %v11636_v49  ;;  %v4237_v61 = vsel %vm1393_vm9, %v4142_v9, %v4236_v46  ;;  %16288 = vst [vmem:[#allocation89_spill] sm:$0xff] %v12133_v15  ;;  %v15861_v55 = vstv %s12117_s30  ;;  %v12147_v9 = vld [vmem:[#allocation3] sm:$0xff] }
 0x36b   : > { %v4146_v6 = vrot.slane %v3999_v34, %v11633_v17 }
 0x36d   : > { %1751 = vrot.lane.b32.xlu0 %v1747_v5, %s15897_s25  ;;  %v4151_v3 = vsel %vm1248_vm4, %v4150_v31, %v4146_v6  ;;  %2135 = vrot.lane.b32.xlu1 %v2130_v36, %s15897_s25  ;;  %v1719_v36 = vmul.f32 %v1718_v23, %v12015_v7  ;;  %v12129_v5 = vld [vmem:[#allocation4 + $0x4] sm:$0xff]  ;;  %v1831_v6 = vmul.f32 %v1830_v18, %v12015_v7  ;;  %v1858_v31 = vstv %s12102_s23  ;;  %s12178_s23 = sld [smem:[#allocation5 + $0xc]] }
 0x36e   : > { %v4005_v60 = vpop.xlane.xlu0 %4004  ;;  %v4238_v32 = vsel %vm1395_vm10, %v4151_v3, %v4237_v61  ;;  %16287 = vst [vmem:[#allocation88_spill] sm:$0xff] %v12129_v5  ;;  %v1859_v38 = vmul.f32 %v1858_v31, %v12015_v7  ;;  %v16289_v3 = vstv %s12032_s14  ;;  %v1776_v61 = vmul.f32 %v1774_v22, %v11884_v14  ;;  %s12169_s14 = sld [smem:[#allocation5 + $0xb]] }
 0x36f   : > { %v4155_v20 = vrot.slane %v4005_v60, %v11633_v17  ;;  %v1748_v23 = vmul.f32 %v16289_v3, %v11884_v14  ;;  %v1902_v60 = vstv %s12115_s29  ;;  %s12185_s29 = sld [smem:[#allocation5 + $0xd]] }
 0x371   : > { %v4160_v34 = vsel %vm1248_vm4, %v4159_v54, %v4155_v20  ;;  %1779 = vrot.lane.b32.xlu0 %v1775_v53, %s15903_s26  ;;  %1723 = vrot.lane.b32.xlu1 %v1719_v36, %s15899_s24  ;;  %v4255_v54 = vmul.f32 %v15861_v55, %v12147_v9  ;;  %v1903_v53 = vmul.f32 %v1902_v60, %v12017_v12  ;;  %v1930_v36 = vstv %s12141_s16  ;;  %s12192_s16 = sld [smem:[#allocation5 + $0xf]]  ;;  %v16292_v55 = vld [vmem:[#allocation46_spill] sm:$0xff] }
 0x372   : > { %v4239_v44 = vsel %vm1397_vm11, %v4160_v34, %v4238_v32  ;;  %v1802_v34 = vstv %s9017_s18  ;;  %s12199_s18 = sld [smem:[#allocation5 + $0x10]] }
 0x373   : > { %4249 = vst.msk [vmem:[#allocation4 + $0x3] sm:$0xff] %vm1408_vm12, %v4239_v44  ;;  %v1931_v44 = vmul.f32 %v1930_v36, %v12017_v12 }
 0x374   : > { %v1986_v3 = vstv %s12169_s14  ;;  %s12383_s14 = sld [smem:[#allocation7 + $0x1]] }
 0x375   : > { %1835 = vrot.lane.b32.xlu0 %v1831_v6, %s15892_s17  ;;  %1725 = vrot.lane.b32.xlu1 %v1720_v8, %s15899_s24  ;;  %v1803_v6 = vmul.f32 %v1802_v34, %v12015_v7  ;;  %v1958_v8 = vstv %s12154_s19  ;;  %s12206_s19 = sld [smem:[#allocation5 + $0x11]] }
 0x376   : > { %v1959_v22 = vmul.f32 %v1958_v8, %v12017_v12 }
 0x379   : > { %1863 = vrot.lane.b32.xlu0 %v1859_v38, %s15890_s20  ;;  %1753 = vrot.lane.b32.xlu1 %v1748_v23, %s15897_s25  ;;  %v1804_v38 = vmul.f32 %v1802_v34, %v11884_v14  ;;  %v1987_v23 = vmul.f32 %v1986_v3, %v12017_v12  ;;  %v2042_v34 = vstv %s12185_s29  ;;  %s12399_s29 = sld [smem:[#allocation5 + $0x42]] }
 0x37a   : > { %v12157_v46 = vld [vmem:[#allocation4] sm:$0xff] }
 0x37b   : > { %v4263_v20 = vmul.f32 %v15860_v0, %v12157_v46  ;;  %v16290_v0 = vld [vmem:[#allocation44_spill] sm:$0xff] }
 0x37d   : > { %v12171_v32 = vadd.f32 %v4263_v20, %v4255_v54  ;;  %1907 = vrot.lane.b32.xlu0 %v1903_v53, %s15899_s24  ;;  %1781 = vrot.lane.b32.xlu1 %v1776_v61, %s15903_s26  ;;  %v1832_v54 = vmul.f32 %v1830_v18, %v11884_v14  ;;  %v2014_v20 = vstv %s12178_s23  ;;  %v1860_v61 = vmul.f32 %v1858_v31, %v11884_v14  ;;  %s12391_s23 = sld [smem:[#allocation7 + $0x33]] }
 0x37e   : > { %v2015_v53 = vmul.f32 %v2014_v20, %v12017_v12  ;;  %v2043_v18 = vmul.f32 %v2042_v34, %v12017_v12  ;;  %v1932_v31 = vmul.f32 %v1930_v36, %v12025_v10  ;;  %v1988_v36 = vmul.f32 %v1986_v3, %v12025_v10 }
 0x381   : > { %1935 = vrot.lane.b32.xlu0 %v1931_v44, %s15897_s25  ;;  %1807 = vrot.lane.b32.xlu1 %v1803_v6, %s15901_s15  ;;  %v1904_v44 = vmul.f32 %v1902_v60, %v12025_v10  ;;  %v2086_v6 = vstv %s12192_s16  ;;  %s12401_s16 = sld [smem:[#allocation5 + $0x7]] }
 0x382   : > { %v2087_v14 = vmul.f32 %v2086_v6, %v12019_v26 }
 0x385   : > { %1963 = vrot.lane.b32.xlu0 %v1959_v22, %s15903_s26  ;;  %1809 = vrot.lane.b32.xlu1 %v1804_v38, %s15901_s15  ;;  %v12208_v22 = vpop.xlane.xlu0 %3688  ;;  %v2114_v38 = vstv %s12199_s18  ;;  %s12404_s18 = sld [smem:[#allocation5 + $0x38]] }
 0x387   : > { %16317 = sst [smem:[#allocation99_spill]] %s12401_s16 }
 0x389   : > { %1991 = vrot.lane.b32.xlu0 %v1987_v23, %s15901_s15  ;;  %1837 = vrot.lane.b32.xlu1 %v1832_v54, %s15892_s17  ;;  %v12217_v60 = vpop.xlane.xlu0 %3694  ;;  %v2115_v23 = vmul.f32 %v2114_v38, %v12019_v26  ;;  %v1960_v54 = vmul.f32 %v1958_v8, %v12025_v10  ;;  %v2016_v8 = vmul.f32 %v2014_v20, %v12025_v10 }
 0x38a   : > { %v2116_v20 = vmul.f32 %v2114_v38, %v12027_v35 }
 0x38b   : > { %16318 = sst [smem:[#allocation100_spill]] %s12404_s18 }
 0x38d   : > { %2019 = vrot.lane.b32.xlu0 %v2015_v53, %s15892_s17  ;;  %1865 = vrot.lane.b32.xlu1 %v1860_v61, %s15890_s20  ;;  %v15859_v53 = vstv %s12206_s19 }
 0x38e   : > { %v2143_v61 = vmul.f32 %v15859_v53, %v12019_v26 }
 0x391   : > { %2047 = vrot.lane.b32.xlu0 %v2043_v18, %s15890_s20  ;;  %1909 = vrot.lane.b32.xlu1 %v1904_v44, %s15899_s24  ;;  %v12228_v18 = vpop.xlane.xlu0 %3700  ;;  %v12232_v44 = vpop.xlane.xlu1 %3691 }
 0x395   : > { %2091 = vrot.lane.b32.xlu0 %v2087_v14, %s15899_s24  ;;  %1937 = vrot.lane.b32.xlu1 %v1932_v31, %s15897_s25  ;;  %v12236_v14 = vpop.xlane.xlu0 %3706  ;;  %v2044_v31 = vmul.f32 %v2042_v34, %v12025_v10 }
 0x399   : > { %2119 = vrot.lane.b32.xlu0 %v2115_v23, %s15897_s25  ;;  %1965 = vrot.lane.b32.xlu1 %v1960_v54, %s15903_s26  ;;  %v12239_v23 = vpop.xlane.xlu1 %3697  ;;  %v12242_v3 = vpop.permute.xlu0 %1737  ;;  %v2088_v54 = vmul.f32 %v2086_v6, %v12027_v35  ;;  %v12262_v6 = vmul.f32 %v11524_v19, %v16290_v0 }
 0x39b   : > { %16291 = vst [vmem:[#allocation44_spill] sm:$0xff] %v12262_v6  ;;  %v3711_v38 = vsel %vm868_vm0, %v12262_v6, 0.0 }
 0x39d   : > { %2147 = vrot.lane.b32.xlu0 %v2143_v61, %s15903_s26  ;;  %1993 = vrot.lane.b32.xlu1 %v1988_v36, %s15901_s15  ;;  %v12246_v61 = vpop.xlane.xlu1 %3703  ;;  %v12249_v36 = vpop.permute.xlu0 %1765  ;;  %s12451_s15 = sld [smem:[#allocation5 + $0x44]] }
 0x3a1   : > { %2021 = vrot.lane.b32.xlu1 %v2016_v8, %s15892_s17  ;;  %v12254_v34 = vpop.permute.xlu0 %1793  ;;  %s12424_s17 = sld [smem:[#allocation5 + $0x43]] }
 0x3a5   : > { %2049 = vrot.lane.b32.xlu1 %v2044_v31, %s15890_s20  ;;  %s12412_s20 = sld [smem:[#allocation5 + $0x12]] }
 0x3a9   : > { %2093 = vrot.lane.b32.xlu1 %v2088_v54, %s15899_s24 }
 0x3ad   : > { %2121 = vrot.lane.b32.xlu1 %v2116_v20, %s15897_s25  ;;  %v12270_v20 = vmul.f32 %v11524_v19, %v16292_v55  ;;  %v4015_v55 = vsel %vm868_vm0, %v11730_v52, -inf }
 0x3af   : > { %v12252_v8 = vpop.permute.xlu1 %1739  ;;  %v12258_v31 = vpop.permute.xlu0 %1795  ;;  %16293 = vst [vmem:[#allocation46_spill] sm:$0xff] %v12270_v20  ;;  %v3717_v42 = vsel %vm868_vm0, %v12270_v20, 0.0 }
 0x3b3   : > { %v12256_v53 = vpop.permute.xlu1 %1767  ;;  %v12274_v13 = vpop.permute.xlu0 %1821 }
 0x3b7   : > { %v12264_v54 = vpop.permute.xlu1 %1823  ;;  %v12280_v0 = vpop.permute.xlu0 %1849 }
 0x3bb   : > { %v12272_v47 = vpop.permute.xlu1 %1851  ;;  %v12294_v33 = vpop.permute.xlu0 %1877 }
 0x3bc   : > { %3712 = vadd.xlane.f32.xlu0 %v3711_v38  ;;  %v16294_v38 = vld [vmem:[#allocation37_spill] sm:$0xff]  ;;  %16296 = vst [vmem:[#allocation90_spill] sm:$0xff] %v12294_v33 }
 0x3bd   : > { %v12290_v45 = vmul.f32 %v11524_v19, %v16294_v38  ;;  %v4021_v38 = vsel %vm868_vm0, %v11736_v40, -inf }
 0x3bf   : > { %v12278_v56 = vpop.permute.xlu1 %1879  ;;  %16295 = vst [vmem:[#allocation37_spill] sm:$0xff] %v12290_v45  ;;  %v12304_v52 = vpop.permute.xlu0 %1921 }
 0x3c0   : > { %3718 = vadd.xlane.f32.xlu0 %v3717_v42  ;;  %v3723_v42 = vsel %vm868_vm0, %v12290_v45, 0.0  ;;  %16299 = vst [vmem:[#allocation91_spill] sm:$0xff] %v12304_v52 }
 0x3c3   : > { %v12284_v2 = vpop.permute.xlu1 %1923  ;;  %v12324_v40 = vpop.permute.xlu0 %1949 }
 0x3c4   : > { %4010 = vmax.xlane.f32.xlu0 %v4009_v62  ;;  %v12302_v62 = vmul.f32 %v11524_v19, %v16297_v1  ;;  %16304 = vst [vmem:[#allocation92_spill] sm:$0xff] %v12324_v40  ;;  %v4033_v40 = vsel %vm868_vm0, %v12262_v6, -inf }
 0x3c6   : > { %16298 = vst [vmem:[#allocation43_spill] sm:$0xff] %v12302_v62  ;;  %v3708_v28 = vsel %vm868_vm0, %v12302_v62, 0.0 }
 0x3c7   : > { %v12292_v43 = vpop.permute.xlu1 %1951 }
 0x3c8   : > { %4016 = vmax.xlane.f32.xlu0 %v4015_v55  ;;  %v12310_v55 = vmul.f32 %v11524_v19, %v16300_v39 }
 0x3ca   : > { %16301 = vst [vmem:[#allocation48_spill] sm:$0xff] %v12310_v55  ;;  %v3729_v1 = vsel %vm868_vm0, %v12310_v55, 0.0 }
 0x3cb   : > { %v12298_v58 = vpop.permute.xlu1 %1979 }
 0x3cc   : > { %3724 = vadd.xlane.f32.xlu0 %v3723_v42  ;;  %v16302_v42 = vld [vmem:[#allocation45_spill] sm:$0xff] }
 0x3cd   : > { %v12318_v15 = vmul.f32 %v11524_v19, %v16302_v42  ;;  %v4027_v42 = vsel %vm868_vm0, %v11742_v59, -inf }
 0x3cf   : > { %v12312_v37 = vpop.permute.xlu1 %2007  ;;  %16303 = vst [vmem:[#allocation45_spill] sm:$0xff] %v12318_v15  ;;  %v3714_v39 = vsel %vm868_vm0, %v12318_v15, 0.0 }
 0x3d0   : > { %4022 = vmax.xlane.f32.xlu0 %v4021_v38  ;;  %v16305_v38 = vld [vmem:[#allocation47_spill] sm:$0xff] }
 0x3d1   : > { %3709 = vadd.xlane.f32.xlu1 %v3708_v28  ;;  %v12330_v52 = vmul.f32 %v11524_v19, %v16305_v38  ;;  %v4039_v38 = vsel %vm868_vm0, %v12270_v20, -inf }
 0x3d3   : > { %v12322_v51 = vpop.permute.xlu1 %2035  ;;  %16306 = vst [vmem:[#allocation47_spill] sm:$0xff] %v12330_v52  ;;  %v3720_v4 = vsel %vm868_vm0, %v12330_v52, 0.0 }
 0x3d4   : > { %3730 = vadd.xlane.f32.xlu0 %v3729_v1  ;;  %v12338_v1 = vpop.permute.xlu0 %1977 }
 0x3d5   : > { %3715 = vadd.xlane.f32.xlu1 %v3714_v39  ;;  %16307 = vst [vmem:[#allocation93_spill] sm:$0xff] %v12338_v1  ;;  %v4012_v39 = vsel %vm868_vm0, %v11702_v27, -inf  ;;  %v16309_v1 = vld [vmem:[#allocation35_spill] sm:$0xff] }
 0x3d6   : > { %v12356_v6 = vmul.f32 %v11524_v19, %v16309_v1 }
 0x3d7   : > { %v12334_v28 = vpop.permute.xlu1 %2063 }
 0x3d8   : > { %4028 = vmax.xlane.f32.xlu0 %v4027_v42  ;;  %v12350_v59 = vpop.permute.xlu0 %2005  ;;  %16310 = vst [vmem:[#allocation35_spill] sm:$0xff] %v12356_v6  ;;  %v3726_v20 = vsel %vm868_vm0, %v12356_v6, 0.0 }
 0x3d9   : > { %3721 = vadd.xlane.f32.xlu1 %v3720_v4  ;;  %16308 = vst [vmem:[#allocation94_spill] sm:$0xff] %v12350_v59  ;;  %v4018_v4 = vsel %vm868_vm0, %v11708_v21, -inf  ;;  %v4051_v21 = vsel %vm868_vm0, %v12310_v55, -inf }
 0x3db   : > { %v12342_v12 = vpop.permute.xlu1 %2107 }
 0x3dc   : > { %4034 = vmax.xlane.f32.xlu0 %v4033_v40  ;;  %v4045_v40 = vsel %vm868_vm0, %v12290_v45, -inf  ;;  %v16312_v45 = vld [vmem:[#allocation49_spill] sm:$0xff] }
 0x3dd   : > { %4013 = vmax.xlane.f32.xlu1 %v4012_v39  ;;  %v12373_v59 = vmul.f32 %v11524_v19, %v16312_v45 }
 0x3df   : > { %v12348_v42 = vpop.permute.xlu1 %2135  ;;  %16313 = vst [vmem:[#allocation49_spill] sm:$0xff] %v12373_v59  ;;  %v3732_v55 = vsel %vm868_vm0, %v12373_v59, 0.0 }
 0x3e0   : > { %4040 = vmax.xlane.f32.xlu0 %v4039_v38  ;;  %v12364_v38 = vpop.permute.xlu0 %2033 }
 0x3e1   : > { %4019 = vmax.xlane.f32.xlu1 %v4018_v4  ;;  %16311 = vst [vmem:[#allocation95_spill] sm:$0xff] %v12364_v38  ;;  %v4024_v4 = vsel %vm868_vm0, %v11716_v30, -inf }
 0x3e3   : > { %v12360_v39 = vpop.permute.xlu1 %1723 }
 0x3e4   : > { %4046 = vmax.xlane.f32.xlu0 %v4045_v40  ;;  %v12376_v33 = vpop.permute.xlu0 %2061 }
 0x3e5   : > { %3727 = vadd.xlane.f32.xlu1 %v3726_v20  ;;  %16314 = vst [vmem:[#allocation96_spill] sm:$0xff] %v12376_v33 }
 0x3e7   : > { %v1726_v27 = vpop.permute.xlu1 %1725 }
 0x3e8   : > { %4052 = vmax.xlane.f32.xlu0 %v4051_v21  ;;  %v1730_v1 = vadd.f32 %v1726_v27, %v11897_v57  ;;  %v4030_v57 = vsel %vm868_vm0, %v12302_v62, -inf  ;;  %v12385_v45 = vpop.permute.xlu0 %2105 }
 0x3e9   : > { %4025 = vmax.xlane.f32.xlu1 %v4024_v4  ;;  %16315 = vst [vmem:[#allocation97_spill] sm:$0xff] %v12385_v45  ;;  %v3751_v45 = vmul.f32 0.03125, %v12208_v22 }
 0x3ea   : > { %v1744_v40 = vadd.f32 %v12252_v8, %v1730_v1  ;;  %v4036_v1 = vsel %vm868_vm0, %v12318_v15, -inf }
 0x3eb   : > { %v1754_v20 = vpop.permute.xlu1 %1753 }
 0x3ec   : > { %v1758_v38 = vadd.f32 %v1754_v20, %v1744_v40  ;;  %v4042_v40 = vsel %vm868_vm0, %v12330_v52, -inf  ;;  %v15895_v20 = vstv %s12383_s14 }
 0x3ed   : > { %3733 = vadd.xlane.f32.xlu1 %v3732_v55 }
 0x3ee   : > { %v1772_v27 = vadd.f32 %v12256_v53, %v1758_v38  ;;  %v12394_v38 = vpop.permute.xlu0 %2133 }
 0x3ef   : > { %v1782_v21 = vpop.permute.xlu1 %1781  ;;  %16316 = vst [vmem:[#allocation98_spill] sm:$0xff] %v12394_v38  ;;  %v3755_v38 = vmul.f32 0.03125, %v12228_v18 }
 0x3f0   : > { %v1786_v19 = vadd.f32 %v1782_v21, %v1772_v27  ;;  %v4269_v21 = vmul.f32 %v15895_v20, %v12147_v9 }
 0x3f1   : > { %4031 = vmax.xlane.f32.xlu1 %v4030_v57 }
 0x3f2   : > { %v1800_v53 = vadd.f32 %v12258_v31, %v1786_v19  ;;  %v4048_v19 = vsel %vm868_vm0, %v12356_v6, -inf }
 0x3f3   : > { %v12387_v8 = vpop.permute.xlu1 %1807 }
 0x3f5   : > { %4037 = vmax.xlane.f32.xlu1 %v4036_v1  ;;  %v15894_v1 = vstv %s12391_s23 }
 0x3f7   : > { %v1810_v55 = vpop.permute.xlu1 %1809 }
 0x3f8   : > { %v1814_v4 = vadd.f32 %v1810_v55, %v1800_v53 }
 0x3f9   : > { %4043 = vmax.xlane.f32.xlu1 %v4042_v40 }
 0x3fa   : > { %v1828_v27 = vadd.f32 %v12264_v54, %v1814_v4  ;;  %v12415_v54 = vpop.permute.xlu0 %1751  ;;  %v4311_v4 = vmul.f32 %v15894_v1, %v12157_v46 }
 0x3fb   : > { %v1838_v31 = vpop.permute.xlu1 %1837 }
 0x3fc   : > { %v1842_v57 = vadd.f32 %v1838_v31, %v1828_v27  ;;  %v4054_v27 = vsel %vm868_vm0, %v12373_v59, -inf  ;;  %v15945_v31 = vstv %s12399_s29  ;;  %v15943_v59 = vstv %s12412_s20 }
 0x3fd   : > { %4049 = vmax.xlane.f32.xlu1 %v4048_v19  ;;  %v15906_v19 = vstv %s12401_s16  ;;  %s12532_s16 = sld [smem:[#allocation5 + $0x17]] }
 0x3fe   : > { %4273 = vrot.lane.b32.xlu0 %v4269_v21, %s15899_s24  ;;  %v1856_v53 = vadd.f32 %v12272_v47, %v1842_v57  ;;  %v1890_v47 = vmul.f32 %v15906_v19, %v12025_v10  ;;  %v15905_v57 = vstv %s12404_s18  ;;  %v12439_v20 = vpop.permute.xlu0 %1779  ;;  %s12445_s24 = sld [smem:[#allocation7 + $0x32]]  ;;  %v15947_v19 = vstv %s12454_s1  ;;  %s16329_s18 = smov 125  }
 0x3ff   : > { %v1866_v55 = vpop.permute.xlu1 %1865 }
 0x400   : > { %v1870_v40 = vadd.f32 %v1866_v55, %v1856_v53  ;;  %v2157_v53 = vmul.f32 %v15945_v31, %v12042_v29  ;;  %v1898_v55 = vmul.f32 %v15905_v57, %v11942_v11  ;;  %v15916_v11 = vstv %s12424_s17 }
 0x401   : > { %4055 = vmax.xlane.f32.xlu1 %v4054_v27 }
 0x402   : > { %4315 = vrot.lane.b32.xlu0 %v4311_v4, %s15897_s25  ;;  %v1884_v21 = vadd.f32 %v12278_v56, %v1870_v40  ;;  %s12442_s25 = sld [smem:[#allocation5 + $0x13]]  ;;  %v2171_v4 = vmul.f32 %v15943_v59, %v12019_v26 }
 0x403   : > { %v1910_v1 = vpop.permute.xlu1 %1909  ;;  %16331 = sst [smem:[#allocation107_spill]] %s12532_s16 }
 0x404   : > { %v1892_v27 = vadd.f32 %v1890_v47, %v1884_v21  ;;  %v12456_v47 = vpop.permute.xlu0 %1835 }
 0x406   : > { %2161 = vrot.lane.b32.xlu0 %v2157_v53, %s15903_s26  ;;  %v1900_v56 = vadd.f32 %v1898_v55, %v1892_v27  ;;  %v2185_v55 = vmul.f32 %v15916_v11, %v12042_v29  ;;  %s12463_s26 = sld [smem:[#allocation5 + $0x14]]  ;;  %v15931_v11 = vstv %s12494_s7  ;;  %s12577_s7 = sld [smem:[#allocation7 + $0x6]] }
 0x407   : > { %v1938_v10 = vpop.permute.xlu1 %1937 }
 0x408   : > { %v1914_v40 = vadd.f32 %v1910_v1, %v1900_v56  ;;  %v15907_v27 = vstv %s12442_s25  ;;  %v15946_v56 = vstv %s12445_s24  ;;  %v12473_v57 = vpop.permute.xlu0 %1863 }
 0x40a   : > { %2175 = vrot.lane.b32.xlu0 %v2171_v4, %s16319_s0  ;;  %v1928_v21 = vadd.f32 %v12284_v2, %v1914_v40  ;;  %v2199_v40 = vmul.f32 %v15907_v27, %v12019_v26 }
 0x40b   : > { %v1966_v53 = vpop.permute.xlu1 %1965 }
 0x40c   : > { %v1942_v1 = vadd.f32 %v1938_v10, %v1928_v21  ;;  %v4283_v21 = vmul.f32 %v15946_v56, %v12157_v46  ;;  %v15915_v27 = vstv %s12463_s26 }
 0x40e   : > { %2189 = vrot.lane.b32.xlu0 %v2185_v55, %s16319_s0  ;;  %v1956_v4 = vadd.f32 %v12292_v43, %v1942_v1  ;;  %v15910_v55 = vstv %s12451_s15 }
 0x40f   : > { %v1994_v2 = vpop.permute.xlu1 %1993 }
 0x410   : > { %v1970_v10 = vadd.f32 %v1966_v53, %v1956_v4  ;;  %v2213_v53 = vmul.f32 %v15910_v55, %v12042_v29  ;;  %v4297_v4 = vmul.f32 %v15947_v19, %v12147_v9  ;;  %v15919_v55 = vstv %s12479_s3 }
 0x412   : > { %2203 = vrot.lane.b32.xlu0 %v2199_v40, %s16320_s4  ;;  %v1984_v43 = vadd.f32 %v12298_v58, %v1970_v10  ;;  %4287 = vrot.lane.b32.xlu1 %v4283_v21, %s16321_s6  ;;  %v15921_v58 = vstv %s12467_s2  ;;  %v12502_v10 = vpop.permute.xlu0 %1907  ;;  %v2227_v21 = vmul.f32 %v15915_v27, %v12019_v26 }
 0x413   : > { %v2022_v40 = vpop.permute.xlu1 %2021  ;;  %16324 = vst [vmem:[#allocation103_spill] sm:$0xff] %v12502_v10 }
 0x414   : > { %v1998_v1 = vadd.f32 %v1994_v2, %v1984_v43 }
 0x416   : > { %2217 = vrot.lane.b32.xlu0 %v2213_v53, %s16320_s4  ;;  %v2012_v2 = vadd.f32 %v12312_v37, %v1998_v1  ;;  %4301 = vrot.lane.b32.xlu1 %v4297_v4, %s16325_s12  ;;  %v4325_v53 = vmul.f32 %v15921_v58, %v12147_v9  ;;  %v15920_v37 = vstv %s12483_s5 }
 0x417   : > { %v2050_v4 = vpop.permute.xlu1 %2049 }
 0x418   : > { %v2026_v43 = vadd.f32 %v2022_v40, %v2012_v2  ;;  %v2241_v40 = vmul.f32 %v15919_v55, %v12042_v29  ;;  %v12526_v2 = vpop.permute.xlu0 %1935  ;;  %v2271_v55 = vmul.f32 %v15931_v11, %v12023_v24  ;;  %v12600_v11 = vld [vmem:[#allocation4 + $0x1] sm:$0xff]  ;;  %v3756_v29 = vmul.f32 0.03125, %v12246_v61 }
 0x419   : > { %16330 = vst [vmem:[#allocation106_spill] sm:$0xff] %v12526_v2 }
 0x41a   : > { %2231 = vrot.lane.b32.xlu0 %v2227_v21, %s16328_s10  ;;  %v2040_v1 = vadd.f32 %v12322_v51, %v2026_v43  ;;  %4329 = vrot.lane.b32.xlu1 %v4325_v53, %s16329_s18  ;;  %v4339_v21 = vmul.f32 %v15920_v37, %v12157_v46  ;;  %v15922_v51 = vstv %s12496_s8  ;;  %v15938_v43 = vstv %s12500_s21  ;;  %s12555_s8 = sld [smem:[#allocation5 + $0x48]] }
 0x41b   : > { %v2074_v53 = vmul.f32 %v15922_v51, %v12027_v35  ;;  %v4353_v58 = vmul.f32 %v15938_v43, %v12147_v9  ;;  %v15928_v51 = vstv %s12515_s11  ;;  %s12591_s11 = sld [smem:[#allocation7 + $0x37]]  ;;  %v12626_v43 = vld [vmem:[#allocation3 + $0x1] sm:$0xff]  ;;  %v12652_v56 = vpop.permute.xlu1 %2093 }
 0x41c   : > { %v2054_v27 = vadd.f32 %v2050_v4, %v2040_v1  ;;  %v15926_v4 = vstv %s12506_s22  ;;  %s12573_s22 = sld [smem:[#allocation7 + $0x3a]] }
 0x41e   : > { %2245 = vrot.lane.b32.xlu0 %v2241_v40, %s16328_s10  ;;  %v2068_v1 = vadd.f32 %v12334_v28, %v2054_v27  ;;  %4343 = vrot.lane.b32.xlu1 %v4339_v21, %s16329_s18  ;;  %v2082_v40 = vmul.f32 %v15926_v4, %v12056_v50  ;;  %v15933_v28 = vstv %s12519_s9  ;;  %v12561_v27 = vpop.permute.xlu0 %1963  ;;  %v15932_v4 = vstv %s12537_s27 }
 0x41f   : > { %16333 = vst [vmem:[#allocation109_spill] sm:$0xff] %v12561_v27  ;;  %v12656_v19 = vpop.permute.xlu1 %2121 }
 0x420   : > { %v2076_v37 = vadd.f32 %v2074_v53, %v2068_v1  ;;  %16332 = sst [smem:[#allocation108_spill]] %s12555_s8  ;;  %v2285_v53 = vmul.f32 %v15928_v51, %v12124_v41  ;;  %v4367_v1 = vmul.f32 %v15933_v28, %v12157_v46  ;;  %v15935_v51 = vstv %s12555_s8  ;;  %s12618_s8 = sld [smem:[#allocation7 + $0x39]] }
 0x421   : > { %v15941_v28 = vstv %s12577_s7 }
 0x422   : > { %2275 = vrot.lane.b32.xlu0 %v2271_v55, %s16321_s6  ;;  %v12563_v21 = vadd.f32 %v2082_v40, %v2076_v37  ;;  %4357 = vrot.lane.b32.xlu1 %v4353_v58, %s16319_s0  ;;  %v15930_v55 = vstv %s12532_s16  ;;  %16334 = sst [smem:[#allocation110_spill]] %s12573_s22  ;;  %v12583_v37 = vpop.permute.xlu0 %1991  ;;  %v4381_v40 = vmul.f32 %v15932_v4, %v12147_v9  ;;  %v15939_v4 = vstv %s12573_s22  ;;  %s12605_s16 = sld [smem:[#allocation7 + $0x8]] }
 0x423   : > { %v2299_v58 = vmul.f32 %v15930_v55, %v12023_v24  ;;  %16335 = vst [vmem:[#allocation111_spill] sm:$0xff] %v12583_v37  ;;  %s12629_s22 = sld [smem:[#allocation7 + $0x9]]  ;;  %v3757_v37 = vmul.f32 0.03125, %v12236_v14 }
 0x426   : > { %2289 = vrot.lane.b32.xlu0 %v2285_v53, %s16321_s6  ;;  %4371 = vrot.lane.b32.xlu1 %v4367_v1, %s16319_s0  ;;  %v15936_v53 = vstv %s12559_s28  ;;  %v2313_v1 = vmul.f32 %v15935_v51, %v12124_v41  ;;  %v4409_v51 = vmul.f32 %v15941_v28, %v12147_v9  ;;  %16338 = sst [smem:[#allocation114_spill]] %s12618_s8 }
 0x427   : > { %v4395_v55 = vmul.f32 %v15936_v53, %v12157_v46  ;;  %v15942_v53 = vstv %s12591_s11 }
 0x428   : > { %16336 = sst [smem:[#allocation112_spill]] %s12605_s16 }
 0x429   : > { %16340 = sst [smem:[#allocation116_spill]] %s12629_s22 }
 0x42a   : > { %2303 = vrot.lane.b32.xlu0 %v2299_v58, %s16325_s12  ;;  %4385 = vrot.lane.b32.xlu1 %v4381_v40, %s16320_s4  ;;  %v12607_v58 = vpop.permute.xlu0 %2019  ;;  %v4495_v40 = vmul.f32 %v15939_v4, %v12600_v11  ;;  %v15944_v4 = vstv %s12605_s16  ;;  %s12792_s16 = sld [smem:[#allocation7 + $0x3b]] }
 0x42b   : > { %16337 = vst [vmem:[#allocation113_spill] sm:$0xff] %v12607_v58  ;;  %v4453_v9 = vmul.f32 %v15944_v4, %v12626_v43 }
 0x42e   : > { %2317 = vrot.lane.b32.xlu0 %v2313_v1, %s16325_s12  ;;  %4399 = vrot.lane.b32.xlu1 %v4395_v55, %s16320_s4  ;;  %v12621_v1 = vpop.permute.xlu0 %2047  ;;  %v4423_v55 = vmul.f32 %v15942_v53, %v12157_v46 }
 0x42f   : > { %16339 = vst [vmem:[#allocation115_spill] sm:$0xff] %v12621_v1  ;;  %v3752_v1 = vmul.f32 0.03125, %v12232_v44  ;;  %v3896_v44 = vrot.slane %v3756_v29, %v11636_v49 }
 0x430   : > { %16353 = sst [smem:[#allocation127_spill]] %s12792_s16 }
 0x432   : > { %4499 = vrot.lane.b32.xlu0 %v4495_v40, %s16325_s12  ;;  %4413 = vrot.lane.b32.xlu1 %v4409_v51, %s16328_s10  ;;  %v15948_v40 = vstv %s12618_s8  ;;  %v12636_v28 = vpop.permute.xlu0 %2091  ;;  %v15953_v51 = vstv %s12629_s22  ;;  %s12715_s22 = sld [smem:[#allocation5 + $0x18]]  ;;  %s12720_s8 = sld [smem:[#allocation7 + $0xa]] }
 0x433   : > { %16341 = vst [vmem:[#allocation117_spill] sm:$0xff] %v12636_v28  ;;  %v4467_v46 = vmul.f32 %v15948_v40, %v12600_v11  ;;  %v4481_v59 = vmul.f32 %v15953_v51, %v12626_v43 }
 0x436   : > { %4427 = vrot.lane.b32.xlu1 %v4423_v55, %s16328_s10  ;;  %v12644_v53 = vpop.permute.xlu0 %2119 }
 0x437   : > { %16342 = vst [vmem:[#allocation118_spill] sm:$0xff] %v12644_v53  ;;  %v3754_v53 = vmul.f32 0.03125, %v12239_v23 }
 0x438   : > { %16345 = sst [smem:[#allocation121_spill]] %s12715_s22 }
 0x439   : > { %v3887_v22 = vrot.slane %v3754_v53, %v11636_v49  ;;  %16346 = sst [smem:[#allocation122_spill]] %s12720_s8 }
 0x43a   : > { %4457 = vrot.lane.b32.xlu1 %v4453_v9, %s16321_s6  ;;  %v12650_v55 = vpop.permute.xlu0 %2147 }
 0x43b   : > { %16343 = vst [vmem:[#allocation119_spill] sm:$0xff] %v12650_v55  ;;  %v3753_v55 = vmul.f32 0.03125, %v12217_v60  ;;  %v3892_v60 = vrot.slane %v3755_v38, %v11633_v17 }
 0x43d   : > { %v3883_v58 = vrot.slane %v3753_v55, %v11633_v17  ;;  %v3897_v53 = vsel %vm1248_vm4, %v3896_v44, %v3892_v60 }
 0x43e   : > { %4471 = vrot.lane.b32.xlu1 %v4467_v46, %s16321_s6 }
 0x43f   : > { %v3888_v38 = vsel %vm1248_vm4, %v3887_v22, %v3883_v58 }
 0x442   : > { %4485 = vrot.lane.b32.xlu1 %v4481_v59, %s16325_s12 }
 0x449   : > { %v3713_v4 = vpop.xlane.xlu0 %3712 }
 0x44a   : > { %v3759_v2 = vmul.f32 0.03125, %v3713_v4  ;;  %v3901_v4 = vrot.slane %v3757_v37, %v11633_v17 }
 0x44d   : > { %v3719_v31 = vpop.xlane.xlu0 %3718 }
 0x44e   : > { %v3761_v61 = vmul.f32 0.03125, %v3719_v31 }
 0x451   : > { %v12654_v9 = vpop.xlane.xlu0 %4010 }
 0x455   : > { %v12658_v40 = vpop.xlane.xlu0 %4016 }
 0x459   : > { %v3725_v6 = vpop.xlane.xlu0 %3724 }
 0x45a   : > { %v3763_v10 = vmul.f32 0.03125, %v3725_v6  ;;  %v3919_v6 = vrot.slane %v3761_v61, %v11633_v17 }
 0x45c   : > { %v3928_v58 = vrot.slane %v3763_v10, %v11633_v17 }
 0x45d   : > { %v12660_v62 = vpop.xlane.xlu0 %4022 }
 0x45e   : > { %v3710_v46 = vpop.xlane.xlu1 %3709 }
 0x45f   : > { %v3758_v28 = vmul.f32 0.03125, %v3710_v46  ;;  %v3874_v46 = vrot.slane %v3751_v45, %v11633_v17  ;;  %v3910_v45 = vrot.slane %v3759_v2, %v11633_v17 }
 0x461   : > { %v3731_v59 = vpop.xlane.xlu0 %3730 }
 0x462   : > { %v3716_v52 = vpop.xlane.xlu1 %3715 }
 0x463   : > { %v3760_v26 = vmul.f32 0.03125, %v3716_v52  ;;  %v3905_v52 = vrot.slane %v3758_v28, %v11636_v49  ;;  %v3765_v28 = vmul.f32 0.03125, %v3731_v59 }
 0x465   : > { %v12675_v18 = vpop.xlane.xlu0 %4028  ;;  %v3914_v55 = vrot.slane %v3760_v26, %v11636_v49  ;;  %v3906_v26 = vsel %vm1248_vm4, %v3905_v52, %v3901_v4  ;;  %v3937_v52 = vrot.slane %v3765_v28, %v11633_v17 }
 0x466   : > { %v3722_v15 = vpop.xlane.xlu1 %3721 }
 0x467   : > { %v3762_v27 = vmul.f32 0.03125, %v3722_v15  ;;  %v3878_v15 = vrot.slane %v3752_v1, %v11636_v49  ;;  %v3915_v37 = vsel %vm1248_vm4, %v3914_v55, %v3910_v45  ;;  %v12711_v45 = vld [vmem:[#allocation3 + $0xe] sm:$0xff] }
 0x468   : > { %16344 = vst [vmem:[#allocation120_spill] sm:$0xff] %v12711_v45 }
 0x469   : > { %v3879_v29 = vsel %vm1248_vm4, %v3878_v15, %v3874_v46  ;;  %v12703_v15 = vld [vmem:[#allocation3 + $0xb] sm:$0xff] }
 0x46a   : > { %v12662_v51 = vpop.xlane.xlu1 %4013  ;;  %v3950_v1 = vsel %vm1385_vm5, %v3888_v38, %v3879_v29 }
 0x46b   : > { %v3951_v60 = vsel %vm1387_vm6, %v3897_v53, %v3950_v1  ;;  %v12709_v53 = vld [vmem:[#allocation3 + $0xd] sm:$0xff] }
 0x46c   : > { %v3952_v46 = vsel %vm1389_vm7, %v3906_v26, %v3951_v60 }
 0x46d   : > { %v3953_v59 = vsel %vm1391_vm8, %v3915_v37, %v3952_v46  ;;  %v4173_v37 = vrot.slane %v12658_v40, %v11633_v17  ;;  %v4191_v46 = vrot.slane %v12675_v18, %v11633_v17 }
 0x46e   : > { %v12664_v30 = vpop.xlane.xlu1 %4019 }
 0x46f   : > { %v4177_v26 = vrot.slane %v12664_v30, %v11636_v49  ;;  %v4182_v30 = vrot.slane %v12660_v62, %v11633_v17 }
 0x471   : > { %v4178_v40 = vsel %vm1248_vm4, %v4177_v26, %v4173_v37 }
 0x472   : > { %v3728_v33 = vpop.xlane.xlu1 %3727 }
 0x473   : > { %v3764_v23 = vmul.f32 0.03125, %v3728_v33  ;;  %v3923_v33 = vrot.slane %v3762_v27, %v11636_v49  ;;  %v4035_v27 = vpop.xlane.xlu0 %4034 }
 0x475   : > { %v3932_v31 = vrot.slane %v3764_v23, %v11636_v49  ;;  %v3924_v2 = vsel %vm1248_vm4, %v3923_v33, %v3919_v6  ;;  %v12707_v33 = vld [vmem:[#allocation3 + $0xc] sm:$0xff] }
 0x476   : > { %v4026_v14 = vpop.xlane.xlu1 %4025  ;;  %v3954_v10 = vsel %vm1393_vm9, %v3924_v2, %v3953_v59  ;;  %v4164_v2 = vrot.slane %v12654_v9, %v11633_v17  ;;  %v4200_v9 = vrot.slane %v4035_v27, %v11633_v17 }
 0x477   : > { %v3933_v61 = vsel %vm1248_vm4, %v3932_v31, %v3928_v58  ;;  %v4041_v31 = vpop.xlane.xlu0 %4040  ;;  %v4186_v1 = vrot.slane %v4026_v14, %v11636_v49 }
 0x478   : > { %v3955_v38 = vsel %vm1395_vm10, %v3933_v61, %v3954_v10 }
 0x479   : > { %v4187_v59 = vsel %vm1248_vm4, %v4186_v1, %v4182_v30 }
 0x47a   : > { %v3734_v22 = vpop.xlane.xlu1 %3733 }
 0x47b   : > { %v3766_v23 = vmul.f32 0.03125, %v3734_v22  ;;  %v4047_v28 = vpop.xlane.xlu0 %4046  ;;  %v4168_v22 = vrot.slane %v12662_v51, %v11636_v49  ;;  %v16347_v51 = vstv %s12383_s14  ;;  %s12760_s14 = sld [smem:[#allocation5 + $0x19]] }
 0x47d   : > { %v3941_v44 = vrot.slane %v3766_v23, %v11636_v49  ;;  %v4169_v10 = vsel %vm1248_vm4, %v4168_v22, %v4164_v2 }
 0x47e   : > { %v4032_v55 = vpop.xlane.xlu1 %4031 }
 0x47f   : > { %v3942_v4 = vsel %vm1248_vm4, %v3941_v44, %v3937_v52  ;;  %v4195_v60 = vrot.slane %v4032_v55, %v11636_v49  ;;  %v2326_v44 = vstv %s12715_s22  ;;  %v4209_v55 = vrot.slane %v4041_v31, %v11633_v17  ;;  %v4053_v27 = vpop.xlane.xlu0 %4052  ;;  %s12783_s22 = sld [smem:[#allocation5 + $0x49]] }
 0x480   : > { %v3956_v29 = vsel %vm1397_vm11, %v3942_v4, %v3955_v38  ;;  %v4240_v4 = vsel %vm1385_vm5, %v4178_v40, %v4169_v10  ;;  %v2327_v31 = vmul.f32 %v2326_v44, %v12023_v24 }
 0x481   : > { %3960 = vst.msk [vmem:[#allocation3 + $0xb] sm:$0xff] %vm1408_vm12, %v3956_v29  ;;  %v4196_v18 = vsel %vm1248_vm4, %v4195_v60, %v4191_v46  ;;  %v4218_v29 = vrot.slane %v4047_v28, %v11633_v17  ;;  %v4241_v26 = vsel %vm1387_vm6, %v4187_v59, %v4240_v4  ;;  %v15974_v60 = vstv %s12720_s8  ;;  %16348 = sst [smem:[#allocation123_spill]] %s12760_s14  ;;  %v12767_v46 = vld [vmem:[#allocation4 + $0xb] sm:$0xff] }
 0x482   : > { %v4038_v6 = vpop.xlane.xlu1 %4037  ;;  %v4227_v28 = vrot.slane %v4053_v27, %v11633_v17  ;;  %v4509_v17 = vmul.f32 %v15974_v60, %v12626_v43  ;;  %s12789_s8 = sld [smem:[#allocation5 + $0x4a]] }
 0x483   : > { %v4204_v14 = vrot.slane %v4038_v6, %v11636_v49  ;;  %v4274_v4 = vpop.permute.xlu0 %4273 }
 0x485   : > { %v4205_v6 = vsel %vm1248_vm4, %v4204_v14, %v4200_v9  ;;  %16350 = sst [smem:[#allocation125_spill]] %s12783_s22 }
 0x486   : > { %v4044_v58 = vpop.xlane.xlu1 %4043 }
 0x487   : > { %v4213_v61 = vrot.slane %v4044_v58, %v11636_v49  ;;  %v4242_v58 = vsel %vm1389_vm7, %v4196_v18, %v4241_v26  ;;  %v15975_v18 = vstv %s12760_s14  ;;  %s12854_s14 = sld [smem:[#allocation7 + $0x54]] }
 0x488   : > { %v12731_v23 = vld [vmem:[#allocation3 + $0x8] sm:$0xff]  ;;  %v4243_v2 = vsel %vm1391_vm8, %v4205_v6, %v4242_v58  ;;  %16352 = sst [smem:[#allocation126_spill]] %s12789_s8  ;;  %v16354_v6 = vstv %s12117_s30  ;;  %v16356_v58 = vstv %s12445_s24  ;;  %s12825_s24 = sld [smem:[#allocation7 + $0xb]] }
 0x489   : > { %v4270_v52 = vmul.f32 %v16347_v51, %v12731_v23  ;;  %v4214_v1 = vsel %vm1248_vm4, %v4213_v61, %v4209_v55  ;;  %v12774_v51 = vld [vmem:[#allocation4 + $0xc] sm:$0xff]  ;;  %v4256_v26 = vmul.f32 %v16354_v6, %v12731_v23  ;;  %s12827_s30 = sld [smem:[#allocation7 + $0x1c]] }
 0x48a   : > { %v4050_v62 = vpop.xlane.xlu1 %4049  ;;  %v4244_v14 = vsel %vm1393_vm9, %v4214_v1, %v4243_v2  ;;  %v16355_v1 = vstv %s12120_s13  ;;  %v16357_v2 = vstv %s12206_s19  ;;  %s12837_s13 = sld [smem:[#allocation7 + $0x4d]]  ;;  %s12843_s19 = sld [smem:[#allocation5 + $0x4b]] }
 0x48b   : > { %v4222_v38 = vrot.slane %v4050_v62, %v11636_v49  ;;  %4275 = vrot.lane.b32.xlu1 %v4270_v52, %s16321_s6  ;;  %v12776_v52 = vld [vmem:[#allocation4 + $0xd] sm:$0xff]  ;;  %v16351_v62 = vstv %s12454_s1  ;;  %s12818_s1 = sld [smem:[#allocation5 + $0x1a]] }
 0x48c   : > { %v4298_v10 = vmul.f32 %v16351_v62, %v12731_v23 }
 0x48d   : > { %v4223_v37 = vsel %vm1248_vm4, %v4222_v38, %v4218_v29  ;;  %v2355_v38 = vmul.f32 %v15975_v18, %v12023_v24  ;;  %16365 = sst [smem:[#allocation133_spill]] %s12854_s14 }
 0x48e   : > { %v4056_v22 = vpop.xlane.xlu1 %4055  ;;  %v4245_v40 = vsel %vm1395_vm10, %v4223_v37, %v4244_v14  ;;  %16358 = sst [smem:[#allocation128_spill]] %s12825_s24 }
 0x48f   : > { %v4231_v30 = vrot.slane %v4056_v22, %v11636_v49  ;;  %2331 = vrot.lane.b32.xlu1 %v2327_v31, %s16329_s18  ;;  %v12778_v49 = vld [vmem:[#allocation4 + $0xe] sm:$0xff]  ;;  %v16009_v22 = vstv %s12783_s22  ;;  %16359 = sst [smem:[#allocation129_spill]] %s12827_s30  ;;  %s12860_s22 = sld [smem:[#allocation7 + $0x5b]] }
 0x490   : > { %16349 = vst [vmem:[#allocation124_spill] sm:$0xff] %v12778_v49  ;;  %16360 = sst [smem:[#allocation130_spill]] %s12837_s13 }
 0x491   : > { %v4232_v61 = vsel %vm1248_vm4, %v4231_v30, %v4227_v28  ;;  %v4279_v28 = vadd.f32 %v4274_v4, %v12171_v32  ;;  %v2144_v30 = vmul.f32 %v16357_v2, %v12027_v35  ;;  %v15971_v32 = vstv %s12792_s16  ;;  %v4316_v4 = vpop.permute.xlu0 %4315  ;;  %s12848_s16 = sld [smem:[#allocation7 + $0x2a]] }
 0x492   : > { %v4246_v9 = vsel %vm1397_vm11, %v4232_v61, %v4245_v40  ;;  %v4288_v59 = vpop.permute.xlu1 %4287  ;;  %v15972_v61 = vstv %s12789_s8  ;;  %s12846_s8 = sld [smem:[#allocation7 + $0x23]]  ;;  %v15968_v2 = vstv %s12827_s30  ;;  %s12882_s30 = sld [smem:[#allocation7 + $0x38]] }
 0x493   : > { %4250 = vst.msk [vmem:[#allocation4 + $0xb] sm:$0xff] %vm1408_vm12, %v4246_v9  ;;  %4513 = vrot.lane.b32.xlu1 %v4509_v17, %s16329_s18  ;;  %v4293_v17 = vadd.f32 %v4288_v59, %v4279_v28  ;;  %v2341_v9 = vmul.f32 %v16009_v22, %v12124_v41  ;;  %v15969_v28 = vstv %s12825_s24  ;;  %s12884_s24 = sld [smem:[#allocation5 + $0x1b]]  ;;  %v2328_v22 = vmul.f32 %v2326_v44, %v12703_v15 }
 0x495   : > { %16366 = sst [smem:[#allocation134_spill]] %s12860_s22 }
 0x496   : > { %v4302_v55 = vpop.permute.xlu1 %4301 }
 0x497   : > { %4303 = vrot.lane.b32.xlu1 %v4298_v10, %s16325_s12  ;;  %v4307_v62 = vadd.f32 %v4302_v55, %v4293_v17  ;;  %v2369_v10 = vmul.f32 %v15972_v61, %v12124_v41  ;;  %v16361_v55 = vstv %s12399_s29  ;;  %16363 = sst [smem:[#allocation132_spill]] %s12848_s16  ;;  %s12857_s29 = sld [smem:[#allocation7 + $0x3c]] }
 0x498   : > { %16362 = sst [smem:[#allocation131_spill]] %s12846_s8 }
 0x499   : > { %v4321_v6 = vadd.f32 %v4316_v4, %v4307_v62 }
 0x49a   : > { %v12797_v29 = vld [vmem:[#allocation4 + $0x8] sm:$0xff]  ;;  %v4330_v27 = vpop.permute.xlu1 %4329 }
 0x49b   : > { %v4264_v31 = vmul.f32 %v16355_v1, %v12797_v29  ;;  %2359 = vrot.lane.b32.xlu1 %v2355_v38, %s16319_s0  ;;  %v4284_v37 = vmul.f32 %v16356_v58, %v12797_v29  ;;  %v4523_v38 = vmul.f32 %v15971_v32, %v12600_v11  ;;  %v16364_v58 = vstv %s12391_s23  ;;  %s12874_s23 = sld [smem:[#allocation7 + $0x7]] }
 0x49c   : > { %v4335_v17 = vadd.f32 %v4330_v27, %v4321_v6  ;;  %v4997_v27 = vld [vmem:[#allocation4 + $0xc] sm:$0xff]  ;;  %v15973_v6 = vstv %s12837_s13  ;;  %s13116_s13 = sld [smem:[#allocation5 + $0x20]] }
 0x49d   : > { %4289 = vrot.lane.b32.xlu0 %v4284_v37, %s16321_s6  ;;  %v12815_v14 = vadd.f32 %v4264_v31, %v4256_v26  ;;  %v2158_v26 = vmul.f32 %v16361_v55, %v12056_v50  ;;  %v15970_v31 = vstv %s12818_s1  ;;  %v4312_v37 = vmul.f32 %v16364_v58, %v12797_v29 }
 0x49e   : > { %v4344_v40 = vpop.permute.xlu1 %4343  ;;  %v16004_v32 = vstv %s12857_s29 }
 0x49f   : > { %2149 = vrot.lane.b32.xlu1 %v2144_v30, %s16329_s18  ;;  %v4989_v30 = vld [vmem:[#allocation3 + $0xc] sm:$0xff] }
 0x4a0   : > { %v12872_v4 = vmul.f32 %v15968_v2, %v4989_v30  ;;  %v5173_v30 = vld [vmem:[#allocation3 + $0xd] sm:$0xff]  ;;  %v15978_v2 = vstv %s12854_s14  ;;  %s16400_s14 = sld [smem:[#allocation112_spill]] }
 0x4a1   : > { %2345 = vrot.lane.b32.xlu0 %v2341_v9, %s16329_s18  ;;  %v2383_v9 = vmul.f32 %v15970_v31, %v12023_v24  ;;  %v12895_v31 = vmul.f32 %v15973_v6, %v4997_v27 }
 0x4a2   : > { %v4358_v59 = vpop.permute.xlu1 %4357  ;;  %16367 = vst [vmem:[#allocation135_spill] sm:$0xff] %v12872_v4 }
 0x4a3   : > { %2373 = vrot.lane.b32.xlu1 %v2369_v10, %s16319_s0  ;;  %v4349_v10 = vadd.f32 %v4344_v40, %v4335_v17  ;;  %v16368_v40 = vstv %s12412_s20  ;;  %v15979_v17 = vstv %s12846_s8  ;;  %16370 = vst [vmem:[#allocation136_spill] sm:$0xff] %v12895_v31  ;;  %s12898_s20 = sld [smem:[#allocation7 + $0xc]]  ;;  %s13095_s8 = sld [smem:[#allocation7 + $0x41]] }
 0x4a4   : > { %v12907_v61 = vmul.f32 %v15979_v17, %v5173_v30 }
 0x4a5   : > { %4527 = vrot.lane.b32.xlu0 %v4523_v38, %s16329_s18  ;;  %v4537_v38 = vmul.f32 %v15969_v28, %v12626_v43  ;;  %v4363_v55 = vadd.f32 %v4358_v59, %v4349_v10  ;;  %v16369_v10 = vstv %s12467_s2  ;;  %v5357_v28 = vld [vmem:[#allocation3 + $0xe] sm:$0xff]  ;;  %s12932_s2 = sld [smem:[#allocation5 + $0x4c]] }
 0x4a6   : > { %v4372_v1 = vpop.permute.xlu1 %4371  ;;  %16371 = vst [vmem:[#allocation137_spill] sm:$0xff] %v12907_v61 }
 0x4a7   : > { %2163 = vrot.lane.b32.xlu1 %v2158_v26, %s16329_s18  ;;  %v2172_v26 = vmul.f32 %v16368_v40, %v12027_v35  ;;  %v4377_v59 = vadd.f32 %v4372_v1, %v4363_v55  ;;  %v5181_v40 = vld [vmem:[#allocation4 + $0xd] sm:$0xff]  ;;  %v15977_v55 = vstv %s12860_s22  ;;  %s13054_s22 = sld [smem:[#allocation5 + $0x1e]] }
 0x4a8   : > { %v5365_v1 = vld [vmem:[#allocation4 + $0xe] sm:$0xff]  ;;  %v12911_v6 = vmul.f32 %v15978_v2, %v5181_v40 }
 0x4a9   : > { %4317 = vrot.lane.b32.xlu0 %v4312_v37, %s16325_s12  ;;  %v16006_v37 = vstv %s12843_s19  ;;  %v12923_v30 = vmul.f32 %v15977_v55, %v5365_v1  ;;  %16401 = sst [smem:[#allocation112_spill]] %s13095_s8 }
 0x4aa   : > { %v4386_v62 = vpop.permute.xlu1 %4385  ;;  %16372 = vst [vmem:[#allocation138_spill] sm:$0xff] %v12911_v6 }
 0x4ab   : > { %2387 = vrot.lane.b32.xlu1 %v2383_v9, %s16320_s4  ;;  %v15976_v9 = vstv %s12848_s16  ;;  %16374 = vst [vmem:[#allocation140_spill] sm:$0xff] %v12923_v30  ;;  %s13061_s16 = sld [smem:[#allocation5 + $0x1f]] }
 0x4ac   : > { %v12915_v60 = vmul.f32 %v15976_v9, %v5357_v28  ;;  %v16375_v28 = vstv %s12424_s17  ;;  %v15980_v9 = vstv %s12882_s30  ;;  %s12942_s17 = sld [smem:[#allocation7 + $0x3d]] }
 0x4ad   : > { %4541 = vrot.lane.b32.xlu0 %v4537_v38, %s16319_s0  ;;  %v4326_v38 = vmul.f32 %v16369_v10, %v12731_v23  ;;  %v2397_v10 = vmul.f32 %v16006_v37, %v12124_v41  ;;  %v2186_v40 = vmul.f32 %v16375_v28, %v12056_v50  ;;  %v4447_v28 = vmul.f32 %v15980_v9, %v12600_v11 }
 0x4ae   : > { %v4400_v58 = vpop.permute.xlu1 %4399  ;;  %16373 = vst [vmem:[#allocation139_spill] sm:$0xff] %v12915_v60 }
 0x4af   : > { %2177 = vrot.lane.b32.xlu1 %v2172_v26, %s16319_s0  ;;  %v4391_v26 = vadd.f32 %v4386_v62, %v4377_v59  ;;  %v4551_v62 = vmul.f32 %v16004_v32, %v12600_v11  ;;  %v15981_v59 = vstv %s12874_s23 }
 0x4b0   : > { %v4439_v1 = vmul.f32 %v15981_v59, %v12626_v43 }
 0x4b1   : > { %4331 = vrot.lane.b32.xlu0 %v4326_v38, %s16329_s18  ;;  %v4405_v18 = vadd.f32 %v4400_v58, %v4391_v26  ;;  %v15994_v26 = vstv %s12884_s24 }
 0x4b2   : > { %v4414_v27 = vpop.permute.xlu1 %4413 }
 0x4b3   : > { %2401 = vrot.lane.b32.xlu1 %v2397_v10, %s16320_s4  ;;  %v4419_v38 = vadd.f32 %v4414_v27, %v4405_v18  ;;  %v16376_v18 = vstv %s12483_s5  ;;  %s12967_s5 = sld [smem:[#allocation7 + $0xd]] }
 0x4b4   : > { %v4340_v27 = vmul.f32 %v16376_v18, %v12797_v29  ;;  %v16377_v18 = vstv %s12442_s25  ;;  %s12988_s25 = sld [smem:[#allocation7 + $0x3e]] }
 0x4b5   : > { %4555 = vrot.lane.b32.xlu0 %v4551_v62, %s16319_s0  ;;  %v15995_v62 = vstv %s12898_s20 }
 0x4b6   : > { %v4428_v58 = vpop.permute.xlu1 %4427 }
 0x4b7   : > { %v4433_v10 = vadd.f32 %v4428_v58, %v4419_v38  ;;  %2191 = vrot.lane.b32.xlu1 %v2186_v40, %s16319_s0  ;;  %v2411_v38 = vmul.f32 %v15994_v26, %v12023_v24  ;;  %v4565_v58 = vmul.f32 %v15995_v62, %v12626_v43 }
 0x4b9   : > { %v4441_v55 = vadd.f32 %v4439_v1, %v4433_v10  ;;  %4345 = vrot.lane.b32.xlu0 %v4340_v27, %s16329_s18  ;;  %v2200_v1 = vmul.f32 %v16377_v18, %v12027_v35  ;;  %v15982_v10 = vstv %s12932_s2  ;;  %v16378_v27 = vstv %s12500_s21  ;;  %s12981_s21 = sld [smem:[#allocation5 + $0x1d]] }
 0x4ba   : > { %v4354_v2 = vmul.f32 %v16378_v27, %v12731_v23  ;;  %v16001_v27 = vstv %s12967_s5  ;;  %v15984_v59 = vstv %s12988_s25 }
 0x4bb   : > { %v12951_v40 = vadd.f32 %v4447_v28, %v4441_v55  ;;  %2415 = vrot.lane.b32.xlu1 %v2411_v38, %s16328_s10  ;;  %v16002_v55 = vstv %s12942_s17  ;;  %v2425_v28 = vmul.f32 %v15982_v10, %v12124_v41 }
 0x4bc   : > { %v4579_v38 = vmul.f32 %v16002_v55, %v12600_v11 }
 0x4bd   : > { %4569 = vrot.lane.b32.xlu0 %v4565_v58, %s16320_s4  ;;  %v16379_v58 = vstv %s12451_s15  ;;  %s12996_s15 = sld [smem:[#allocation7 + $0xf]] }
 0x4be   : > { %v2214_v18 = vmul.f32 %v16379_v58, %v12056_v50 }
 0x4bf   : > { %2205 = vrot.lane.b32.xlu1 %v2200_v1, %s16320_s4  ;;  %v15988_v9 = vstv %s12981_s21 }
 0x4c1   : > { %4359 = vrot.lane.b32.xlu0 %v4354_v2, %s16319_s0  ;;  %v16380_v2 = vstv %s12519_s9  ;;  %s13007_s9 = sld [smem:[#allocation7 + $0x40]] }
 0x4c2   : > { %v4368_v1 = vmul.f32 %v16380_v2, %v12797_v29  ;;  %v16382_v2 = vstv %s12577_s7  ;;  %s16386_s7 = sld [smem:[#allocation101_spill]] }
 0x4c3   : > { %2429 = vrot.lane.b32.xlu1 %v2425_v28, %s16328_s10  ;;  %v12990_v28 = vpop.permute.xlu0 %2161  ;;  %v4410_v17 = vmul.f32 %v16382_v2, %v12731_v23  ;;  %v15983_v2 = vstv %s12996_s15  ;;  %16392 = sst [smem:[#allocation101_spill]] %s13061_s16 }
 0x4c5   : > { %4583 = vrot.lane.b32.xlu0 %v4579_v38, %s16320_s4  ;;  %v16381_v38 = vstv %s12559_s28  ;;  %s13042_s28 = sld [smem:[#allocation5 + $0x4e]] }
 0x4c6   : > { %v4396_v58 = vmul.f32 %v16381_v38, %v12797_v29  ;;  %v16384_v38 = vstv %s12537_s27  ;;  %s13036_s27 = sld [smem:[#allocation5 + $0x4f]] }
 0x4c7   : > { %2219 = vrot.lane.b32.xlu1 %v2214_v18, %s16320_s4  ;;  %v4593_v18 = vmul.f32 %v16001_v27, %v12626_v43  ;;  %v2455_v43 = vmul.f32 %v15988_v9, %v12034_v16  ;;  %v15999_v9 = vstv %s13061_s16  ;;  %s13123_s16 = sld [smem:[#allocation7 + $0x11]] }
 0x4c9   : > { %4373 = vrot.lane.b32.xlu0 %v4368_v1, %s16319_s0  ;;  %v13009_v1 = vpop.permute.xlu0 %2175 }
 0x4ca   : > { %16383 = vst [vmem:[#allocation141_spill] sm:$0xff] %v13009_v1 }
 0x4cb   : > { %4401 = vrot.lane.b32.xlu1 %v4396_v58, %s16320_s4  ;;  %v4382_v58 = vmul.f32 %v16384_v38, %v12731_v23  ;;  %v13033_v38 = vld [vmem:[#allocation4 + $0x2] sm:$0xff] }
 0x4cd   : > { %4597 = vrot.lane.b32.xlu0 %v4593_v18, %s16328_s10  ;;  %v13020_v18 = vld [vmem:[#allocation3 + $0x2] sm:$0xff]  ;;  %v13027_v10 = vpop.permute.xlu0 %2189  ;;  %v16011_v37 = vstv %s13123_s16 }
 0x4ce   : > { %16385 = vst [vmem:[#allocation142_spill] sm:$0xff] %v13027_v10  ;;  %v4637_v23 = vmul.f32 %v15983_v2, %v13020_v18 }
 0x4cf   : > { %4415 = vrot.lane.b32.xlu1 %v4410_v17, %s16328_s10  ;;  %v4607_v17 = vmul.f32 %v15984_v59, %v12600_v11  ;;  %v16389_v59 = vstv %s12479_s3  ;;  %s13068_s3 = sld [smem:[#allocation7 + $0x10]] }
 0x4d1   : > { %4387 = vrot.lane.b32.xlu0 %v4382_v58, %s16320_s4  ;;  %v15987_v58 = vstv %s13007_s9  ;;  %v13048_v2 = vpop.permute.xlu0 %2203 }
 0x4d2   : > { %16388 = vst [vmem:[#allocation143_spill] sm:$0xff] %v13048_v2 }
 0x4d3   : > { %2459 = vrot.lane.b32.xlu1 %v2455_v43, %s16321_s6  ;;  %v16387_v43 = vstv %s12463_s26  ;;  %s16390_s26 = sld [smem:[#allocation105_spill]] }
 0x4d4   : > { %v2228_v11 = vmul.f32 %v16387_v43, %v12027_v35  ;;  %v16391_v35 = vstv %s16386_s7  ;;  %s13086_s7 = sld [smem:[#allocation5 + $0x50]] }
 0x4d5   : > { %4611 = vrot.lane.b32.xlu0 %v4607_v17, %s16328_s10  ;;  %v4651_v17 = vmul.f32 %v15987_v58, %v13033_v38  ;;  %v2272_v43 = vmul.f32 %v16391_v35, %v12703_v15  ;;  %16394 = sst [smem:[#allocation105_spill]] %s13068_s3 }
 0x4d7   : > { %4641 = vrot.lane.b32.xlu1 %v4637_v23, %s16321_s6  ;;  %v2242_v23 = vmul.f32 %v16389_v59, %v12056_v50  ;;  %v15992_v50 = vstv %s13042_s28  ;;  %v13070_v59 = vpop.permute.xlu0 %2217 }
 0x4d8   : > { %16395 = vst [vmem:[#allocation144_spill] sm:$0xff] %v13070_v59  ;;  %v2469_v35 = vmul.f32 %v15992_v50, %v12129_v5 }
 0x4d9   : > { %2233 = vrot.lane.b32.xlu0 %v2228_v11, %s16328_s10  ;;  %v15990_v11 = vstv %s13036_s27 }
 0x4da   : > { %v16003_v62 = vstv %s13086_s7 }
 0x4db   : > { %4655 = vrot.lane.b32.xlu1 %v4651_v17, %s16321_s6  ;;  %v16393_v17 = vstv %s12591_s11  ;;  %s16397_s11 = sld [smem:[#allocation107_spill]] }
 0x4dc   : > { %v4424_v58 = vmul.f32 %v16393_v17, %v12797_v29  ;;  %v16396_v29 = vstv %s16390_s26  ;;  %16398 = sst [smem:[#allocation107_spill]] %s13086_s7  ;;  %s16404_s26 = sld [smem:[#allocation108_spill]] }
 0x4dd   : > { %2247 = vrot.lane.b32.xlu0 %v2242_v23, %s16328_s10  ;;  %v2497_v23 = vmul.f32 %v15990_v11, %v12129_v5  ;;  %v2286_v17 = vmul.f32 %v16396_v29, %v12767_v46  ;;  %v15998_v11 = vstv %s13068_s3  ;;  %16405 = sst [smem:[#allocation108_spill]] %s13116_s13  ;;  %s16407_s3 = sld [smem:[#allocation114_spill]] }
 0x4de   : > { %v4665_v29 = vmul.f32 %v15998_v11, %v13020_v18  ;;  %16408 = sst [smem:[#allocation114_spill]] %s13123_s16  ;;  %s13151_s7 = sld [smem:[#allocation7 + $0x42]] }
 0x4df   : > { %2277 = vrot.lane.b32.xlu1 %v2272_v43, %s16321_s6  ;;  %v15993_v43 = vstv %s13054_s22  ;;  %s16421_s16 = sld [smem:[#allocation110_spill]] }
 0x4e1   : > { %4429 = vrot.lane.b32.xlu0 %v4424_v58, %s16328_s10  ;;  %v13088_v58 = vpop.permute.xlu0 %2231 }
 0x4e2   : > { %16399 = vst [vmem:[#allocation145_spill] sm:$0xff] %v13088_v58 }
 0x4e3   : > { %2501 = vrot.lane.b32.xlu1 %v2497_v23, %s16325_s12  ;;  %v2483_v23 = vmul.f32 %v15993_v43, %v12034_v16  ;;  %v13109_v43 = vpop.permute.xlu1 %4457 }
 0x4e5   : > { %2473 = vrot.lane.b32.xlu0 %v2469_v35, %s16321_s6  ;;  %v2511_v35 = vmul.f32 %v15999_v9, %v12034_v16  ;;  %v13107_v50 = vpop.permute.xlu0 %2245  ;;  %v16008_v9 = vstv %s13095_s8  ;;  %s16414_s8 = sld [smem:[#allocation116_spill]] }
 0x4e6   : > { %16402 = vst [vmem:[#allocation146_spill] sm:$0xff] %v13107_v50  ;;  %16415 = sst [smem:[#allocation116_spill]] %s13151_s7 }
 0x4e7   : > { %2291 = vrot.lane.b32.xlu1 %v2286_v17, %s16321_s6  ;;  %v13105_v17 = vld [vmem:[#allocation3 + $0x9] sm:$0xff]  ;;  %v13131_v27 = vpop.permute.xlu1 %4471 }
 0x4e9   : > { %2487 = vrot.lane.b32.xlu0 %v2483_v23, %s16325_s12  ;;  %v16403_v23 = vstv %s16397_s11  ;;  %s13144_s11 = sld [smem:[#allocation5 + $0x51]] }
 0x4ea   : > { %v2300_v26 = vmul.f32 %v16403_v23, %v12703_v15  ;;  %v13129_v23 = vpop.permute.xlu0 %2275 }
 0x4eb   : > { %2515 = vrot.lane.b32.xlu1 %v2511_v35, %s16329_s18  ;;  %v16406_v35 = vstv %s16400_s14  ;;  %16409 = vst [vmem:[#allocation147_spill] sm:$0xff] %v13129_v23  ;;  %s13202_s14 = sld [smem:[#allocation5 + $0x52]] }
 0x4ec   : > { %v4454_v11 = vmul.f32 %v16406_v35, %v13105_v17  ;;  %v13137_v35 = vld [vmem:[#allocation4 + $0x9] sm:$0xff] }
 0x4ed   : > { %4669 = vrot.lane.b32.xlu0 %v4665_v29, %s16325_s12  ;;  %v2525_v29 = vmul.f32 %v16003_v62, %v12129_v5  ;;  %v16012_v62 = vstv %s13116_s13  ;;  %s13181_s13 = sld [smem:[#allocation7 + $0x12]] }
 0x4ef   : > { %2305 = vrot.lane.b32.xlu1 %v2300_v26, %s16325_s12  ;;  %v4679_v26 = vmul.f32 %v16008_v9, %v13033_v38  ;;  %16412 = sst [smem:[#allocation121_spill]] %s13144_s11  ;;  %v13153_v9 = vpop.permute.xlu0 %2289  ;;  %v16016_v30 = vstv %s13144_s11  ;;  %s13209_s11 = sld [smem:[#allocation7 + $0x43]] }
 0x4f0   : > { %16416 = vst [vmem:[#allocation148_spill] sm:$0xff] %v13153_v9  ;;  %v2553_v44 = vmul.f32 %v16016_v30, %v12129_v5 }
 0x4f1   : > { %4459 = vrot.lane.b32.xlu0 %v4454_v11, %s16321_s6  ;;  %v16410_v11 = vstv %s16404_s26  ;;  %s13172_s26 = sld [smem:[#allocation5 + $0x21]] }
 0x4f2   : > { %v2314_v55 = vmul.f32 %v16410_v11, %v12767_v46  ;;  %v2539_v11 = vmul.f32 %v16012_v62, %v12034_v16  ;;  %v16014_v62 = vstv %s13151_s7  ;;  %s16428_s7 = sld [smem:[#allocation122_spill]] }
 0x4f3   : > { %2529 = vrot.lane.b32.xlu1 %v2525_v29, %s16329_s18  ;;  %v16413_v29 = vstv %s16407_s3  ;;  %s16417_s3 = sld [smem:[#allocation125_spill]]  ;;  %16422 = sst [smem:[#allocation110_spill]] %s13181_s13  ;;  %v16020_v30 = vstv %s13181_s13 }
 0x4f4   : > { %v4468_v32 = vmul.f32 %v16413_v29, %v13137_v35  ;;  %s16434_s13 = sld [smem:[#allocation127_spill]] }
 0x4f5   : > { %4683 = vrot.lane.b32.xlu0 %v4679_v26, %s16325_s12  ;;  %v13155_v26 = vpop.permute.xlu1 %4485  ;;  %v16025_v49 = vstv %s13209_s11 }
 0x4f7   : > { %2319 = vrot.lane.b32.xlu1 %v2314_v55, %s16325_s12  ;;  %v4693_v55 = vmul.f32 %v16011_v37, %v13020_v18  ;;  %16418 = sst [smem:[#allocation125_spill]] %s13172_s26  ;;  %v16019_v61 = vstv %s13172_s26 }
 0x4f8   : > { %s13239_s26 = sld [smem:[#allocation7 + $0x13]] }
 0x4f9   : > { %4473 = vrot.lane.b32.xlu0 %v4468_v32, %s16321_s6  ;;  %v13174_v32 = vpop.permute.xlu0 %2303  ;;  %v16425_v6 = vstv %s16417_s3  ;;  %s13230_s3 = sld [smem:[#allocation5 + $0x22]] }
 0x4fa   : > { %16419 = vst [vmem:[#allocation149_spill] sm:$0xff] %v13174_v32  ;;  %v16441_v32 = vstv %s12818_s1  ;;  %s13317_s1 = sld [smem:[#allocation5 + $0x24]] }
 0x4fb   : > { %2543 = vrot.lane.b32.xlu1 %v2539_v11, %s16319_s0  ;;  %v16420_v11 = vstv %s16414_s8  ;;  %s16426_s8 = sld [smem:[#allocation123_spill]] }
 0x4fc   : > { %v4482_v37 = vmul.f32 %v16420_v11, %v13105_v17  ;;  %16429 = sst [smem:[#allocation123_spill]] %s13209_s11  ;;  %s13269_s11 = sld [smem:[#allocation7 + $0x44]] }
 0x4fd   : > { %v13165_v29 = vpop.permute.xlu1 %4275  ;;  %4697 = vrot.lane.b32.xlu0 %v4693_v55, %s16329_s18  ;;  %v13193_v60 = vpop.permute.xlu0 %2317 }
 0x4fe   : > { %16424 = vst [vmem:[#allocation151_spill] sm:$0xff] %v13193_v60 }
 0x4ff   : > { %2333 = vrot.lane.b32.xlu1 %v2328_v22, %s16329_s18  ;;  %v4707_v22 = vmul.f32 %v16014_v62, %v13033_v38 }
 0x500   : > { %v16036_v50 = vstv %s13317_s1 }
 0x501   : > { %v13183_v55 = vpop.permute.xlu1 %2331  ;;  %4487 = vrot.lane.b32.xlu0 %v4482_v37, %s16325_s12  ;;  %v2342_v37 = vmul.f32 %v16425_v6, %v12767_v46  ;;  %v2567_v6 = vmul.f32 %v16019_v61, %v12034_v16  ;;  %v16431_v4 = vstv %s16426_s8  ;;  %s16439_s8 = sld [smem:[#allocation128_spill]] }
 0x502   : > { %16423 = vst [vmem:[#allocation150_spill] sm:$0xff] %v13183_v55  ;;  %v2356_v45 = vmul.f32 %v16431_v4, %v12703_v15  ;;  %v16032_v23 = vstv %s13269_s11 }
 0x503   : > { %2557 = vrot.lane.b32.xlu1 %v2553_v44, %s16319_s0  ;;  %v16427_v44 = vstv %s16421_s16  ;;  %s16432_s16 = sld [smem:[#allocation126_spill]] }
 0x504   : > { %v4496_v62 = vmul.f32 %v16427_v44, %v13137_v35 }
 0x505   : > { %v13195_v11 = vpop.permute.xlu1 %4513  ;;  %4711 = vrot.lane.b32.xlu0 %v4707_v22, %s16329_s18  ;;  %v13217_v22 = vpop.permute.xlu0 %4499 }
 0x507   : > { %2347 = vrot.lane.b32.xlu1 %v2342_v37, %s16329_s18  ;;  %v4721_v37 = vmul.f32 %v16020_v30, %v13020_v18 }
 0x509   : > { %v13211_v31 = vpop.permute.xlu1 %4303  ;;  %4501 = vrot.lane.b32.xlu0 %v4496_v62, %s16325_s12  ;;  %v16024_v62 = vstv %s13202_s14  ;;  %v16437_v55 = vstv %s16432_s16  ;;  %s13326_s16 = sld [smem:[#allocation7 + $0x45]] }
 0x50a   : > { %v2581_v4 = vmul.f32 %v16024_v62, %v12129_v5  ;;  %v2370_v60 = vmul.f32 %v16437_v55, %v12767_v46  ;;  %v16438_v62 = vstv %s16434_s13  ;;  %s13297_s13 = sld [smem:[#allocation7 + $0x14]] }
 0x50b   : > { %2571 = vrot.lane.b32.xlu1 %v2567_v6, %s16320_s4  ;;  %v16433_v6 = vstv %s16428_s7  ;;  %s13260_s7 = sld [smem:[#allocation5 + $0x53]] }
 0x50c   : > { %v4510_v30 = vmul.f32 %v16433_v6, %v13105_v17  ;;  %v4735_v6 = vmul.f32 %v16025_v49, %v13033_v38  ;;  %v4524_v49 = vmul.f32 %v16438_v62, %v13137_v35 }
 0x50d   : > { %v13223_v44 = vpop.permute.xlu1 %2359  ;;  %4725 = vrot.lane.b32.xlu0 %v4721_v37, %s16319_s0 }
 0x50e   : > { %16430 = vst [vmem:[#allocation152_spill] sm:$0xff] %v13223_v44 }
 0x50f   : > { %2361 = vrot.lane.b32.xlu1 %v2356_v45, %s16319_s0  ;;  %v13233_v61 = vpop.permute.xlu0 %4289 }
 0x511   : > { %v13241_v37 = vpop.permute.xlu1 %2149  ;;  %4515 = vrot.lane.b32.xlu0 %v4510_v30, %s16329_s18  ;;  %v16027_v30 = vstv %s13230_s3  ;;  %v16031_v9 = vstv %s13260_s7 }
 0x512   : > { %v2595_v55 = vmul.f32 %v16027_v30, %v12034_v16 }
 0x513   : > { %2585 = vrot.lane.b32.xlu1 %v2581_v4, %s16320_s4  ;;  %v13248_v45 = vpop.permute.xlu0 %2345 }
 0x514   : > { %16435 = vst [vmem:[#allocation153_spill] sm:$0xff] %v13248_v45  ;;  %v16029_v45 = vstv %s13239_s26 }
 0x515   : > { %v13253_v44 = vpop.permute.xlu1 %2373  ;;  %4739 = vrot.lane.b32.xlu0 %v4735_v6, %s16319_s0  ;;  %v4749_v62 = vmul.f32 %v16029_v45, %v13020_v18 }
 0x516   : > { %16436 = vst [vmem:[#allocation154_spill] sm:$0xff] %v13253_v44 }
 0x517   : > { %2375 = vrot.lane.b32.xlu1 %v2370_v60, %s16319_s0  ;;  %v13263_v4 = vpop.permute.xlu0 %4527 }
 0x519   : > { %v13271_v6 = vpop.permute.xlu1 %2163  ;;  %4529 = vrot.lane.b32.xlu0 %v4524_v49, %s16329_s18  ;;  %v2384_v49 = vmul.f32 %v16441_v32, %v12703_v15  ;;  %v2609_v32 = vmul.f32 %v16031_v9, %v12129_v5 }
 0x51b   : > { %2599 = vrot.lane.b32.xlu1 %v2595_v55, %s16328_s10  ;;  %v13278_v60 = vpop.permute.xlu0 %4317  ;;  %v16442_v55 = vstv %s16439_s8  ;;  %s13404_s8 = sld [smem:[#allocation5 + $0x55]] }
 0x51c   : > { %v4538_v16 = vmul.f32 %v16442_v55, %v13105_v17 }
 0x51d   : > { %v13283_v44 = vpop.permute.xlu1 %2387  ;;  %4753 = vrot.lane.b32.xlu0 %v4749_v62, %s16320_s4 }
 0x51e   : > { %16440 = vst [vmem:[#allocation155_spill] sm:$0xff] %v13283_v44  ;;  %v16444_v44 = vstv %s12843_s19  ;;  %s13334_s19 = sld [smem:[#allocation7 + $0x16]] }
 0x51f   : > { %2389 = vrot.lane.b32.xlu1 %v2384_v49, %s16320_s4  ;;  %v13291_v30 = vpop.permute.xlu0 %4541  ;;  %v4763_v49 = vmul.f32 %v16032_v23, %v13033_v38  ;;  %v2398_v41 = vmul.f32 %v16444_v44, %v12767_v46  ;;  %v16035_v23 = vstv %s13297_s13  ;;  %v16446_v44 = vstv %s12942_s17  ;;  %s16450_s17 = sld [smem:[#allocation79_spill]] }
 0x521   : > { %v13299_v45 = vpop.permute.xlu1 %2177  ;;  %4543 = vrot.lane.b32.xlu0 %v4538_v16, %s16319_s0 }
 0x523   : > { %2613 = vrot.lane.b32.xlu1 %v2609_v32, %s16328_s10  ;;  %v13306_v62 = vpop.permute.xlu0 %4331  ;;  %v16445_v32 = vstv %s12857_s29  ;;  %s13351_s29 = sld [smem:[#allocation7 + $0x47]] }
 0x524   : > { %v4552_v9 = vmul.f32 %v16445_v32, %v13137_v35  ;;  %v4777_v32 = vmul.f32 %v16035_v23, %v13020_v18  ;;  %v16451_v23 = vstv %s12898_s20  ;;  %s13391_s20 = sld [smem:[#allocation5 + $0x56]] }
 0x525   : > { %v13311_v55 = vpop.permute.xlu1 %2401  ;;  %4767 = vrot.lane.b32.xlu0 %v4763_v49, %s16320_s4  ;;  %v4580_v49 = vmul.f32 %v16446_v44, %v13137_v35  ;;  %v4463_v44 = vadd.f32 %v13109_v43, %v12951_v40  ;;  %v2639_v40 = vmul.f32 %v16036_v50, %v12036_v48  ;;  %v16453_v50 = vstv %s16450_s17  ;;  %s13429_s17 = sld [smem:[#allocation7 + $0xe]] }
 0x526   : > { %16443 = vst [vmem:[#allocation156_spill] sm:$0xff] %v13311_v55  ;;  %v1713_v10 = vmul.f32 %v16453_v50, %v11823_v63  ;;  %v16456_v50 = vstv %s12884_s24  ;;  %s13421_s24 = sld [smem:[#allocation5 + $0x25]] }
 0x527   : > { %2403 = vrot.lane.b32.xlu1 %v2398_v41, %s16320_s4  ;;  %v13320_v16 = vpop.permute.xlu0 %4555  ;;  %v4477_v43 = vadd.f32 %v13131_v27, %v4463_v44 }
 0x529   : > { %v13328_v5 = vpop.permute.xlu1 %2191  ;;  %4557 = vrot.lane.b32.xlu0 %v4552_v9, %s16319_s0  ;;  %v16448_v9 = vstv %s12967_s5  ;;  %16449 = sst [smem:[#allocation122_spill]] %s13351_s29  ;;  %s16452_s5 = sld [smem:[#allocation78_spill]]  ;;  %v4491_v2 = vadd.f32 %v13155_v26, %v4477_v43  ;;  %v2412_v26 = vmul.f32 %v16456_v50, %v12703_v15  ;;  %v16460_v50 = vstv %s12988_s25 }
 0x52a   : > { %v4594_v24 = vmul.f32 %v16448_v9, %v13105_v17  ;;  %v13367_v9 = vld [vmem:[#allocation3 + $0x3] sm:$0xff]  ;;  %16454 = sst [smem:[#allocation126_spill]] %s13391_s20  ;;  %s13476_s25 = sld [smem:[#allocation5 + $0x57]] }
 0x52b   : > { %4585 = vrot.lane.b32.xlu1 %v4580_v49, %s16320_s4  ;;  %v13337_v41 = vpop.permute.xlu0 %4345  ;;  %v4505_v43 = vadd.f32 %v13217_v22, %v4491_v2 }
 0x52d   : > { %v13342_v55 = vpop.permute.xlu1 %2415  ;;  %4781 = vrot.lane.b32.xlu0 %v4777_v32, %s16328_s10  ;;  %v16038_v32 = vstv %s13326_s16 }
 0x52e   : > { %16447 = vst [vmem:[#allocation157_spill] sm:$0xff] %v13342_v55  ;;  %v4566_v55 = vmul.f32 %v16451_v23, %v13105_v17  ;;  %v4791_v59 = vmul.f32 %v16038_v32, %v13033_v38 }
 0x52f   : > { %4599 = vrot.lane.b32.xlu1 %v4594_v24, %s16328_s10  ;;  %v13354_v49 = vpop.permute.xlu0 %4569  ;;  %v16037_v24 = vstv %s13334_s19 }
 0x530   : > { %v4821_v44 = vmul.f32 %v16037_v24, %v13367_v9  ;;  %v4280_v24 = vadd.f32 %v13165_v29, %v12815_v14  ;;  %v16458_v29 = vstv %s12932_s2  ;;  %s13434_s2 = sld [smem:[#allocation5 + $0x26]] }
 0x531   : > { %v13360_v58 = vpop.permute.xlu1 %2205  ;;  %4571 = vrot.lane.b32.xlu0 %v4566_v55, %s16320_s4  ;;  %v2098_v55 = vadd.f32 %v12652_v56, %v12563_v21  ;;  %v16455_v56 = vstv %s16452_s5  ;;  %s13443_s5 = sld [smem:[#allocation7 + $0x17]] }
 0x532   : > { %v1705_v21 = vmul.f32 %v16455_v56, %v12015_v7  ;;  %v16457_v7 = vstv %s13351_s29  ;;  %v4519_v56 = vadd.f32 %v13195_v11, %v4505_v43  ;;  %v16075_v43 = vstv %s13404_s8  ;;  %s13479_s29 = sld [smem:[#allocation5 + $0x15]] }
 0x533   : > { %2643 = vrot.lane.b32.xlu1 %v2639_v40, %s16321_s6  ;;  %v13371_v23 = vpop.permute.xlu0 %4359  ;;  %v13388_v40 = vld [vmem:[#allocation4 + $0x3] sm:$0xff] }
 0x534   : > { %v1715_v32 = vadd.f32 %v1713_v10, %v1705_v21  ;;  %v2426_v10 = vmul.f32 %v16458_v29, %v12767_v46 }
 0x535   : > { %v13382_v27 = vpop.permute.xlu1 %2429  ;;  %4795 = vrot.lane.b32.xlu0 %v4791_v59, %s16328_s10  ;;  %v2112_v59 = vadd.f32 %v12342_v12, %v2098_v55  ;;  %v4294_v12 = vadd.f32 %v13233_v61, %v4280_v24  ;;  %v4533_v55 = vadd.f32 %v13263_v4, %v4519_v56  ;;  %v16459_v61 = vstv %s12981_s21  ;;  %s13441_s21 = sld [smem:[#allocation7 + $0x3f]] }
 0x536   : > { %v1729_v2 = vadd.f32 %v12360_v39, %v1715_v32  ;;  %v2456_v39 = vmul.f32 %v16459_v61, %v12707_v33 }
 0x537   : > { %4825 = vrot.lane.b32.xlu1 %v4821_v44, %s16321_s6  ;;  %v4584_v63 = vpop.permute.xlu0 %4583  ;;  %v4835_v44 = vmul.f32 %v16457_v7, %v13388_v40  ;;  %v2126_v22 = vadd.f32 %v12656_v19, %v2112_v59  ;;  %v4308_v11 = vadd.f32 %v13211_v31, %v4294_v12  ;;  %v4547_v32 = vadd.f32 %v13291_v30, %v4533_v55  ;;  %16461 = sst [smem:[#allocation127_spill]] %s13443_s5 }
 0x538   : > { %v16071_v19 = vstv %s13391_s20  ;;  %v1743_v4 = vadd.f32 %v12242_v3, %v1729_v2  ;;  %v2653_v12 = vmul.f32 %v16075_v43, %v12131_v25  ;;  %16463 = sst [smem:[#allocation128_spill]] %s13479_s29 }
 0x539   : > { %v13406_v1 = vpop.permute.xlu1 %2219  ;;  %2417 = vrot.lane.b32.xlu0 %v2412_v26, %s16328_s10  ;;  %v4608_v26 = vmul.f32 %v16460_v50, %v13137_v35  ;;  %v2140_v31 = vadd.f32 %v12348_v42, %v2126_v22  ;;  %v4322_v30 = vadd.f32 %v13278_v60, %v4308_v11  ;;  %v4561_v59 = vadd.f32 %v13320_v16, %v4547_v32  ;;  %s13493_s20 = sld [smem:[#allocation5 + $0x46]] }
 0x53a   : > { %v2681_v7 = vmul.f32 %v16071_v19, %v12131_v25  ;;  %v1757_v60 = vadd.f32 %v12415_v54, %v1743_v4  ;;  %v16462_v54 = vstv %s13042_s28  ;;  %v16072_v22 = vstv %s13429_s17  ;;  %s13491_s28 = sld [smem:[#allocation7 + $0x48]]  ;;  %v13818_v19 = vld [vmem:[#allocation3 + $0x4] sm:$0xff] }
 0x53b   : > { %4839 = vrot.lane.b32.xlu1 %v4835_v44, %s16321_s6  ;;  %v4374_v14 = vpop.permute.xlu0 %4373  ;;  %v2154_v44 = vadd.f32 %v13241_v37, %v2140_v31  ;;  %v4336_v56 = vadd.f32 %v13306_v62, %v4322_v30  ;;  %v4575_v42 = vadd.f32 %v13354_v49, %v4561_v59  ;;  %v16074_v37 = vstv %s13421_s24 }
 0x53c   : > { %v2470_v49 = vmul.f32 %v16462_v54, %v12774_v51  ;;  %v2667_v32 = vmul.f32 %v16074_v37, %v12036_v48 }
 0x53d   : > { %v13423_v21 = vpop.permute.xlu1 %4401  ;;  %2431 = vrot.lane.b32.xlu0 %v2426_v10, %s16328_s10  ;;  %v2168_v2 = vadd.f32 %v13271_v6, %v2154_v44  ;;  %v4350_v29 = vadd.f32 %v13337_v41, %v4336_v56  ;;  %v4589_v10 = vadd.f32 %v4584_v63, %v4575_v42  ;;  %v1771_v41 = vadd.f32 %v12249_v36, %v1757_v60  ;;  %v13513_v56 = vld [vmem:[#allocation3 + $0xa] sm:$0xff] }
 0x53e   : > { %v16070_v63 = vstv %s13441_s21 }
 0x53f   : > { %2461 = vrot.lane.b32.xlu1 %v2456_v39, %s16321_s6  ;;  %v4598_v24 = vpop.permute.xlu0 %4597  ;;  %v2182_v55 = vadd.f32 %v13299_v45, %v2168_v2  ;;  %v4364_v6 = vadd.f32 %v13371_v23, %v4350_v29  ;;  %v16069_v39 = vstv %s13434_s2  ;;  %v16068_v45 = vstv %s13443_s5  ;;  %16464 = sst [smem:[#allocation79_spill]] %s13493_s20  ;;  %s13523_s5 = sld [smem:[#allocation5 + $0x27]] }
 0x540   : > { %v4603_v61 = vadd.f32 %v4598_v24, %v4589_v10  ;;  %v4623_v24 = vmul.f32 %v16072_v22, %v13020_v18  ;;  %v4631_v18 = vmul.f32 %v16070_v63, %v13033_v38  ;;  %v1785_v30 = vadd.f32 %v12439_v20, %v1771_v41  ;;  %v16522_v63 = vld [vmem:[#allocation85_spill] sm:$0xff] }
 0x541   : > { %v13449_v3 = vpop.permute.xlu1 %4415  ;;  %4613 = vrot.lane.b32.xlu0 %v4608_v26, %s16328_s10  ;;  %v2196_v23 = vadd.f32 %v13328_v5, %v2182_v55  ;;  %v4378_v4 = vadd.f32 %v4374_v14, %v4364_v6  ;;  %v2695_v26 = vmul.f32 %v16069_v39, %v12036_v48  ;;  %v16465_v20 = vstv %s13054_s22  ;;  %s13535_s22 = sld [smem:[#allocation7 + $0x18]] }
 0x542   : > { %v2484_v42 = vmul.f32 %v16465_v20, %v12707_v33  ;;  %v16064_v2 = vstv %s13479_s29  ;;  %v16467_v10 = vstv %s12996_s15  ;;  %v16065_v55 = vstv %s13491_s28  ;;  %s16473_s15 = sld [smem:[#allocation101_spill]]  ;;  %s13649_s29 = sld [smem:[#allocation7 + $0x4a]] }
 0x543   : > { %2685 = vrot.lane.b32.xlu1 %v2681_v7, %s16325_s12  ;;  %v4388_v16 = vpop.permute.xlu0 %4387  ;;  %v2210_v5 = vadd.f32 %v13360_v58, %v2196_v23  ;;  %v4849_v7 = vmul.f32 %v16068_v45, %v13367_v9  ;;  %v4638_v54 = vmul.f32 %v16467_v10, %v13513_v56  ;;  %v4863_v23 = vmul.f32 %v16065_v55, %v13388_v40 }
 0x544   : > { %v4392_v14 = vadd.f32 %v4388_v16, %v4378_v4 }
 0x545   : > { %v13466_v62 = vpop.permute.xlu1 %2459  ;;  %2657 = vrot.lane.b32.xlu0 %v2653_v12, %s16321_s6  ;;  %v2224_v44 = vadd.f32 %v13406_v1, %v2210_v5  ;;  %v16066_v12 = vstv %s13476_s25  ;;  %16466 = sst [smem:[#allocation78_spill]] %s13523_s5  ;;  %v1799_v1 = vadd.f32 %v12254_v34, %v1785_v30 }
 0x546   : > { %v4406_v60 = vadd.f32 %v13423_v21, %v4392_v14  ;;  %v2709_v41 = vmul.f32 %v16066_v12, %v12131_v25  ;;  %v16470_v14 = vstv %s13036_s27  ;;  %s13582_s27 = sld [smem:[#allocation7 + $0x49]] }
 0x547   : > { %2475 = vrot.lane.b32.xlu1 %v2470_v49, %s16321_s6  ;;  %v4612_v11 = vpop.permute.xlu0 %4611  ;;  %v2258_v49 = vmul.f32 %v16064_v2, %v12703_v15  ;;  %16468 = sst [smem:[#allocation158_spill]] %s13535_s22  ;;  %v1813_v6 = vadd.f32 %v12387_v8, %v1799_v1 }
 0x548   : > { %v4617_v50 = vadd.f32 %v4612_v11, %v4603_v61  ;;  %v16061_v61 = vstv %s13493_s20  ;;  %v4420_v11 = vadd.f32 %v13449_v3, %v4406_v60  ;;  %v13558_v3 = vld [vmem:[#allocation4 + $0xa] sm:$0xff]  ;;  %s13614_s20 = sld [smem:[#allocation7 + $0x19]] }
 0x549   : > { %v13495_v36 = vpop.permute.xlu1 %4641  ;;  %2671 = vrot.lane.b32.xlu0 %v2667_v32, %s16325_s12  ;;  %v2266_v15 = vmul.f32 %v16061_v61, %v12767_v46  ;;  %v1827_v5 = vadd.f32 %v12274_v13, %v1813_v6 }
 0x54a   : > { %v4625_v31 = vadd.f32 %v4623_v24, %v4617_v50  ;;  %v16469_v24 = vstv %s12874_s23  ;;  %s13571_s23 = sld [smem:[#allocation5 + $0x58]] }
 0x54b   : > { %2699 = vrot.lane.b32.xlu1 %v2695_v26, %s16329_s18  ;;  %v2234_v59 = vpop.permute.xlu0 %2233  ;;  %v4440_v50 = vmul.f32 %v16469_v24, %v13105_v17  ;;  %v16474_v17 = vstv %s13007_s9  ;;  %s13605_s9 = sld [smem:[#allocation5 + $0x28]] }
 0x54c   : > { %v13511_v58 = vadd.f32 %v4631_v18, %v4625_v31  ;;  %v2238_v16 = vadd.f32 %v2234_v59, %v2224_v44  ;;  %v2498_v18 = vmul.f32 %v16470_v14, %v12774_v51  ;;  %v16471_v31 = vstv %s12882_s30  ;;  %16475 = sst [smem:[#allocation101_spill]] %s13582_s27  ;;  %s16476_s30 = sld [smem:[#allocation105_spill]] }
 0x54d   : > { %v13515_v38 = vpop.permute.xlu1 %4655  ;;  %4853 = vrot.lane.b32.xlu0 %v4849_v7, %s16325_s12  ;;  %v4448_v30 = vmul.f32 %v16471_v31, %v13137_v35  ;;  %v16060_v7 = vstv %s13523_s5  ;;  %v4652_v44 = vmul.f32 %v16474_v17, %v13558_v3  ;;  %v1841_v35 = vadd.f32 %v12456_v47, %v1827_v5  ;;  %s16478_s5 = sld [smem:[#allocation107_spill]]  ;;  %v16487_v31 = vld [vmem:[#allocation81_spill] sm:$0xff] }
 0x54e   : > { %v16477_v47 = vstv %s16473_s15  ;;  %16481 = sst [smem:[#allocation105_spill]] %s13614_s20  ;;  %s16482_s15 = sld [smem:[#allocation112_spill]] }
 0x54f   : > { %2489 = vrot.lane.b32.xlu1 %v2484_v42, %s16325_s12  ;;  %v2248_v29 = vpop.permute.xlu0 %2247  ;;  %v16059_v42 = vstv %s13535_s22  ;;  %v1855_v10 = vadd.f32 %v12280_v0, %v1841_v35  ;;  %s16480_s22 = sld [smem:[#allocation99_spill]] }
 0x550   : > { %v2252_v21 = vadd.f32 %v2248_v29, %v2238_v16  ;;  %16472 = sst [smem:[#allocation159_spill]] %s13571_s23  ;;  %v2723_v16 = vmul.f32 %v16060_v7, %v12036_v48  ;;  %v4877_v29 = vmul.f32 %v16059_v42, %v13367_v9  ;;  %v16511_v42 = vld [vmem:[#allocation93_spill] sm:$0xff] }
 0x551   : > { %v13539_v34 = vpop.permute.xlu1 %2277  ;;  %4643 = vrot.lane.b32.xlu0 %v4638_v54, %s16321_s6  ;;  %16491 = sst [smem:[#allocation99_spill]] %s13649_s29 }
 0x552   : > { %v2260_v32 = vadd.f32 %v2258_v49, %v2252_v21  ;;  %v2512_v49 = vmul.f32 %v16477_v47, %v12707_v33  ;;  %v16057_v21 = vstv %s13571_s23  ;;  %s13637_s23 = sld [smem:[#allocation5 + $0x59]] }
 0x553   : > { %2713 = vrot.lane.b32.xlu1 %v2709_v41, %s16329_s18  ;;  %v4430_v8 = vpop.permute.xlu0 %4429  ;;  %v16479_v41 = vstv %s16476_s30  ;;  %s16484_s30 = sld [smem:[#allocation100_spill]]  ;;  %v16485_v5 = vstv %s16478_s5  ;;  %s16492_s5 = sld [smem:[#allocation114_spill]] }
 0x554   : > { %v13553_v4 = vadd.f32 %v2266_v15, %v2260_v32  ;;  %v4434_v26 = vadd.f32 %v4430_v8, %v4420_v11  ;;  %v4666_v0 = vmul.f32 %v16479_v41, %v13513_v56  ;;  %v16055_v11 = vstv %s13582_s27  ;;  %s16489_s27 = sld [smem:[#allocation108_spill]] }
 0x555   : > { %v13561_v46 = vpop.permute.xlu1 %2501  ;;  %4867 = vrot.lane.b32.xlu0 %v4863_v23, %s16325_s12  ;;  %v1869_v15 = vadd.f32 %v12473_v57, %v1855_v10  ;;  %v2737_v8 = vmul.f32 %v16057_v21, %v12131_v25  ;;  %v4891_v24 = vmul.f32 %v16055_v11, %v13388_v40  ;;  %v2526_v14 = vmul.f32 %v16485_v5, %v12774_v51 }
 0x556   : > { %v4442_v59 = vadd.f32 %v4440_v50, %v4434_v26  ;;  %v16483_v50 = vld [vmem:[#allocation90_spill] sm:$0xff] }
 0x557   : > { %2503 = vrot.lane.b32.xlu1 %v2498_v18, %s16325_s12  ;;  %v13574_v13 = vpop.permute.xlu0 %2473  ;;  %v1883_v26 = vadd.f32 %v16483_v50, %v1869_v15  ;;  %v16054_v18 = vstv %s13605_s9 }
 0x558   : > { %v13579_v20 = vadd.f32 %v4448_v30, %v4442_v59  ;;  %16486 = sst [smem:[#allocation107_spill]] %s13637_s23  ;;  %v16488_v30 = vstv %s16480_s22  ;;  %v2751_v47 = vmul.f32 %v16054_v18, %v12036_v48  ;;  %s13673_s22 = sld [smem:[#allocation5 + $0x29]] }
 0x559   : > { %v13585_v60 = vpop.permute.xlu1 %2291  ;;  %4657 = vrot.lane.b32.xlu0 %v4652_v44, %s16321_s6  ;;  %v1889_v59 = vmul.f32 %v16488_v30, %v16487_v31  ;;  %v16490_v44 = vstv %s16482_s15  ;;  %v16494_v41 = vstv %s16484_s30  ;;  %s16496_s15 = sld [smem:[#allocation121_spill]]  ;;  %v16497_v30 = vstv %s16492_s5  ;;  %s13682_s30 = sld [smem:[#allocation7 + $0x1a]] }
 0x55a   : > { %v4680_v35 = vmul.f32 %v16490_v44, %v13558_v3  ;;  %v16051_v44 = vstv %s13649_s29  ;;  %s16502_s5 = sld [smem:[#allocation125_spill]]  ;;  %s16504_s29 = sld [smem:[#allocation110_spill]] }
 0x55b   : > { %2727 = vrot.lane.b32.xlu1 %v2723_v16, %s16319_s0  ;;  %v13592_v1 = vpop.permute.xlu0 %2487  ;;  %v16053_v16 = vstv %s13614_s20  ;;  %s16499_s20 = sld [smem:[#allocation116_spill]] }
 0x55d   : > { %v13598_v54 = vpop.permute.xlu1 %2515  ;;  %4881 = vrot.lane.b32.xlu0 %v4877_v29, %s16329_s18  ;;  %v1891_v29 = vadd.f32 %v1889_v59, %v1883_v26  ;;  %v16495_v26 = vstv %s16489_s27  ;;  %v4694_v59 = vmul.f32 %v16497_v30, %v13513_v56  ;;  %s13705_s27 = sld [smem:[#allocation5 + $0x5a]] }
 0x55e   : > { %v2540_v5 = vmul.f32 %v16495_v26, %v12707_v33 }
 0x55f   : > { %2517 = vrot.lane.b32.xlu1 %v2512_v49, %s16329_s18  ;;  %v13608_v6 = vpop.permute.xlu0 %4669  ;;  %v16493_v49 = vld [vmem:[#allocation80_spill] sm:$0xff] }
 0x561   : > { %v13617_v32 = vpop.permute.xlu1 %2305  ;;  %4671 = vrot.lane.b32.xlu0 %v4666_v0, %s16325_s12  ;;  %v1897_v0 = vmul.f32 %v16494_v41, %v16493_v49 }
 0x563   : > { %2741 = vrot.lane.b32.xlu1 %v2737_v8, %s16319_s0  ;;  %v13624_v23 = vpop.permute.xlu0 %4459  ;;  %v4905_v8 = vmul.f32 %v16053_v16, %v13367_v9  ;;  %v16506_v16 = vld [vmem:[#allocation92_spill] sm:$0xff] }
 0x565   : > { %v13630_v57 = vpop.permute.xlu1 %2529  ;;  %4895 = vrot.lane.b32.xlu0 %v4891_v24, %s16329_s18  ;;  %v1899_v24 = vadd.f32 %v1897_v0, %v1891_v29  ;;  %v4919_v0 = vmul.f32 %v16051_v44, %v13388_v40 }
 0x567   : > { %2531 = vrot.lane.b32.xlu1 %v2526_v14, %s16329_s18  ;;  %v13643_v17 = vpop.permute.xlu0 %4683  ;;  %v16052_v14 = vstv %s13637_s23  ;;  %s13714_s23 = sld [smem:[#allocation7 + $0x4b]] }
 0x568   : > { %v2765_v49 = vmul.f32 %v16052_v14, %v12131_v25 }
 0x569   : > { %v13651_v10 = vpop.permute.xlu1 %2319  ;;  %4685 = vrot.lane.b32.xlu0 %v4680_v35, %s16325_s12  ;;  %v16498_v35 = vld [vmem:[#allocation103_spill] sm:$0xff] }
 0x56a   : > { %v1913_v29 = vadd.f32 %v16498_v35, %v1899_v24  ;;  %v16501_v24 = vstv %s16496_s15  ;;  %s13744_s15 = sld [smem:[#allocation7 + $0x1b]] }
 0x56b   : > { %2755 = vrot.lane.b32.xlu1 %v2751_v47, %s16320_s4  ;;  %v13661_v15 = vpop.permute.xlu0 %4473  ;;  %v2554_v30 = vmul.f32 %v16501_v24, %v12774_v51 }
 0x56d   : > { %v13666_v50 = vpop.permute.xlu1 %2543  ;;  %4909 = vrot.lane.b32.xlu0 %v4905_v8, %s16319_s0  ;;  %v16500_v8 = vld [vmem:[#allocation91_spill] sm:$0xff] }
 0x56e   : > { %v1927_v26 = vadd.f32 %v16500_v8, %v1913_v29  ;;  %v16058_v8 = vstv %s13682_s30 }
 0x56f   : > { %2545 = vrot.lane.b32.xlu1 %v2540_v5, %s16319_s0  ;;  %v13676_v31 = vpop.permute.xlu0 %4697 }
 0x571   : > { %v13685_v47 = vpop.permute.xlu1 %2333  ;;  %4699 = vrot.lane.b32.xlu0 %v4694_v59, %s16329_s18  ;;  %v16056_v59 = vstv %s13673_s22 }
 0x573   : > { %2769 = vrot.lane.b32.xlu1 %v2765_v49, %s16320_s4  ;;  %v13692_v41 = vpop.permute.xlu0 %4487  ;;  %v16503_v49 = vstv %s16499_s20  ;;  %s16509_s20 = sld [smem:[#allocation123_spill]] }
 0x574   : > { %v4708_v29 = vmul.f32 %v16503_v49, %v13558_v3  ;;  %v4933_v49 = vmul.f32 %v16058_v8, %v13367_v9  ;;  %v16063_v8 = vstv %s13714_s23 }
 0x575   : > { %v13698_v5 = vpop.permute.xlu1 %2557  ;;  %4923 = vrot.lane.b32.xlu0 %v4919_v0, %s16319_s0  ;;  %v16505_v0 = vld [vmem:[#allocation106_spill] sm:$0xff] }
 0x576   : > { %v1941_v44 = vadd.f32 %v16505_v0, %v1927_v26  ;;  %v16507_v26 = vstv %s16502_s5  ;;  %v16062_v0 = vstv %s13705_s27  ;;  %s13775_s5 = sld [smem:[#allocation7 + $0x4c]] }
 0x577   : > { %2559 = vrot.lane.b32.xlu1 %v2554_v30, %s16319_s0  ;;  %v13708_v35 = vpop.permute.xlu0 %4711  ;;  %v2779_v30 = vmul.f32 %v16056_v59, %v12036_v48  ;;  %v16508_v59 = vstv %s16504_s29  ;;  %s13766_s29 = sld [smem:[#allocation5 + $0x2b]] }
 0x578   : > { %v1955_v18 = vadd.f32 %v16506_v16, %v1941_v44  ;;  %v4722_v21 = vmul.f32 %v16508_v59, %v13513_v56  ;;  %v16510_v16 = vld [vmem:[#allocation109_spill] sm:$0xff]  ;;  %v4947_v59 = vmul.f32 %v16063_v8, %v13388_v40 }
 0x579   : > { %v13717_v24 = vpop.permute.xlu1 %2347  ;;  %4713 = vrot.lane.b32.xlu0 %v4708_v29, %s16329_s18  ;;  %v2568_v29 = vmul.f32 %v16507_v26, %v12707_v33  ;;  %v2793_v26 = vmul.f32 %v16062_v0, %v12131_v25 }
 0x57a   : > { %v1969_v44 = vadd.f32 %v16510_v16, %v1955_v18 }
 0x57b   : > { %2783 = vrot.lane.b32.xlu1 %v2779_v30, %s16328_s10  ;;  %v13724_v14 = vpop.permute.xlu0 %4501 }
 0x57c   : > { %v1983_v7 = vadd.f32 %v16511_v42, %v1969_v44  ;;  %v16067_v42 = vstv %s13744_s15  ;;  %v16515_v44 = vld [vmem:[#allocation111_spill] sm:$0xff] }
 0x57d   : > { %v13730_v11 = vpop.permute.xlu1 %2571  ;;  %4937 = vrot.lane.b32.xlu0 %v4933_v49, %s16320_s4  ;;  %16513 = sst [smem:[#allocation112_spill]] %s13766_s29  ;;  %v16073_v12 = vstv %s13766_s29  ;;  %s16534_s29 = sld [smem:[#allocation104_spill]] }
 0x57e   : > { %v1997_v8 = vadd.f32 %v16515_v44, %v1983_v7  ;;  %v16518_v7 = vld [vmem:[#allocation94_spill] sm:$0xff] }
 0x57f   : > { %2573 = vrot.lane.b32.xlu1 %v2568_v29, %s16320_s4  ;;  %v13738_v30 = vpop.permute.xlu0 %4725 }
 0x580   : > { %v2011_v44 = vadd.f32 %v16518_v7, %v1997_v8  ;;  %v4647_v8 = vadd.f32 %v13495_v36, %v13511_v58  ;;  %v16077_v7 = vstv %s13775_s5 }
 0x581   : > { %v13747_v49 = vpop.permute.xlu1 %2361  ;;  %4727 = vrot.lane.b32.xlu0 %v4722_v21, %s16319_s0  ;;  %v16512_v21 = vstv %s13202_s14  ;;  %s13784_s14 = sld [smem:[#allocation7 + $0x1d]]  ;;  %v4975_v36 = vmul.f32 %v16077_v7, %v13388_v40 }
 0x582   : > { %v2582_v18 = vmul.f32 %v16512_v21, %v12774_v51  ;;  %v16516_v21 = vstv %s13269_s11  ;;  %s13800_s11 = sld [smem:[#allocation7 + $0x4e]]  ;;  %v4661_v58 = vadd.f32 %v13515_v38, %v4647_v8 }
 0x583   : > { %2797 = vrot.lane.b32.xlu1 %v2793_v26, %s16328_s10  ;;  %v13754_v29 = vpop.permute.xlu0 %4515  ;;  %v16514_v26 = vstv %s16509_s20  ;;  %s13864_s20 = sld [smem:[#allocation5 + $0x2c]] }
 0x584   : > { %v4736_v0 = vmul.f32 %v16514_v26, %v13558_v3  ;;  %v4961_v26 = vmul.f32 %v16067_v42, %v13367_v9  ;;  %v16520_v42 = vstv %s13239_s26  ;;  %v4675_v37 = vadd.f32 %v13608_v6, %v4661_v58  ;;  %s13839_s26 = sld [smem:[#allocation5 + $0x5d]] }
 0x585   : > { %v13760_v61 = vpop.permute.xlu1 %2585  ;;  %4951 = vrot.lane.b32.xlu0 %v4947_v59, %s16320_s4  ;;  %v4750_v45 = vmul.f32 %v16520_v42, %v13513_v56  ;;  %v4464_v58 = vadd.f32 %v13624_v23, %v13579_v20  ;;  %v16529_v20 = vld [vmem:[#allocation96_spill] sm:$0xff] }
 0x587   : > { %2587 = vrot.lane.b32.xlu1 %v2582_v18, %s16320_s4  ;;  %v13769_v16 = vpop.permute.xlu0 %4739  ;;  %v4764_v18 = vmul.f32 %v16516_v21, %v13558_v3  ;;  %16517 = sst [smem:[#allocation100_spill]] %s13784_s14  ;;  %v16076_v22 = vstv %s13784_s14 }
 0x588   : > { %v16104_v43 = vstv %s13800_s11  ;;  %s13869_s14 = sld [smem:[#allocation7 + $0x15]] }
 0x589   : > { %v13778_v59 = vpop.permute.xlu1 %2375  ;;  %4741 = vrot.lane.b32.xlu0 %v4736_v0, %s16319_s0  ;;  %v16519_v0 = vstv %s13297_s13  ;;  %s13846_s13 = sld [smem:[#allocation5 + $0x5c]] }
 0x58a   : > { %v4778_v21 = vmul.f32 %v16519_v0, %v13513_v56  ;;  %16524 = sst [smem:[#allocation108_spill]] %s13839_s26 }
 0x58b   : > { %4769 = vrot.lane.b32.xlu1 %v4764_v18, %s16320_s4  ;;  %v13787_v2 = vpop.permute.xlu0 %4529 }
 0x58d   : > { %v13793_v55 = vpop.permute.xlu1 %2599  ;;  %4965 = vrot.lane.b32.xlu0 %v4961_v26, %s16328_s10  ;;  %v16521_v26 = vld [vmem:[#allocation113_spill] sm:$0xff] }
 0x58e   : > { %v2025_v39 = vadd.f32 %v16521_v26, %v2011_v44  ;;  %v16523_v44 = vld [vmem:[#allocation95_spill] sm:$0xff] }
 0x58f   : > { %4783 = vrot.lane.b32.xlu1 %v4778_v21, %s16328_s10  ;;  %v13803_v18 = vpop.permute.xlu0 %4753  ;;  %v2823_v21 = vmul.f32 %v16073_v12, %v16522_v63  ;;  %v5005_v12 = vmul.f32 %v16076_v22, %v13818_v19 }
 0x590   : > { %v2039_v26 = vadd.f32 %v16523_v44, %v2025_v39  ;;  %v16525_v39 = vstv %s13230_s3  ;;  %v4689_v44 = vadd.f32 %v13643_v17, %v4675_v37  ;;  %s16528_s3 = sld [smem:[#allocation102_spill]] }
 0x591   : > { %v13812_v0 = vpop.permute.xlu1 %2389  ;;  %4755 = vrot.lane.b32.xlu0 %v4750_v45, %s16320_s4  ;;  %v2596_v8 = vmul.f32 %v16525_v39, %v12707_v33 }
 0x592   : > { %v4703_v37 = vadd.f32 %v13676_v31, %v4689_v44  ;;  %v16530_v44 = vstv %s13317_s1  ;;  %s13891_s1 = sld [smem:[#allocation7 + $0x46]] }
 0x593   : > { %2827 = vrot.lane.b32.xlu1 %v2823_v21, %s16321_s6  ;;  %v13822_v42 = vpop.permute.xlu0 %4543  ;;  %v13836_v21 = vld [vmem:[#allocation4 + $0x4] sm:$0xff] }
 0x594   : > { %v5019_v6 = vmul.f32 %v16104_v43, %v13836_v21 }
 0x595   : > { %v13829_v45 = vpop.permute.xlu1 %2613  ;;  %4979 = vrot.lane.b32.xlu0 %v4975_v36, %s16328_s10  ;;  %v16526_v36 = vld [vmem:[#allocation115_spill] sm:$0xff] }
 0x596   : > { %v2053_v22 = vadd.f32 %v16526_v36, %v2039_v26  ;;  %v16527_v26 = vstv %s13260_s7  ;;  %v2640_v36 = vmul.f32 %v16530_v44, %v12709_v53  ;;  %s13882_s7 = sld [smem:[#allocation5 + $0x2d]] }
 0x597   : > { %5009 = vrot.lane.b32.xlu1 %v5005_v12, %s16321_s6  ;;  %v4768_v38 = vpop.permute.xlu0 %4767  ;;  %v2282_v12 = vadd.f32 %v13539_v34, %v13553_v4  ;;  %v2610_v39 = vmul.f32 %v16527_v26, %v12774_v51  ;;  %v4478_v34 = vadd.f32 %v13661_v15, %v4464_v58  ;;  %v4717_v4 = vadd.f32 %v13708_v35, %v4703_v37 }
 0x598   : > { %v2067_v23 = vadd.f32 %v16529_v20, %v2053_v22  ;;  %v16103_v35 = vstv %s13839_s26  ;;  %v16533_v22 = vstv %s16528_s3  ;;  %v16535_v26 = vstv %s13326_s16  ;;  %16536 = sst [smem:[#allocation121_spill]] %s13891_s1  ;;  %s13897_s3 = sld [smem:[#allocation7 + $0x1e]]  ;;  %v16537_v20 = vld [vmem:[#allocation89_spill] sm:$0xff] }
 0x599   : > { %v13849_v7 = vpop.permute.xlu1 %2403  ;;  %2601 = vrot.lane.b32.xlu0 %v2596_v8, %s16328_s10  ;;  %v2296_v8 = vadd.f32 %v13585_v60, %v2282_v12  ;;  %v4492_v60 = vadd.f32 %v13692_v41, %v4478_v34  ;;  %v4731_v15 = vadd.f32 %v13738_v30, %v4717_v4  ;;  %v16532_v12 = vld [vmem:[#allocation82_spill] sm:$0xff]  ;;  %v2865_v44 = vmul.f32 %v16103_v35, %v16537_v20  ;;  %s13919_s16 = sld [smem:[#allocation5 + $0x1c]]  ;;  %s13932_s26 = sld [smem:[#allocation5 + $0x4d]] }
 0x59a   : > { %v2073_v58 = vmul.f32 %v16533_v22, %v16532_v12  ;;  %v16101_v12 = vstv %s13864_s20 }
 0x59b   : > { %5023 = vrot.lane.b32.xlu1 %v5019_v6, %s16321_s6  ;;  %v4558_v17 = vpop.permute.xlu0 %4557  ;;  %v2310_v6 = vadd.f32 %v13617_v32, %v2296_v8  ;;  %v4506_v41 = vadd.f32 %v13724_v14, %v4492_v60  ;;  %v4745_v30 = vadd.f32 %v13769_v16, %v4731_v15  ;;  %v16106_v8 = vstv %s13846_s13  ;;  %v16538_v16 = vld [vmem:[#allocation86_spill] sm:$0xff] }
 0x59c   : > { %16531 = sst [smem:[#allocation114_spill]] %s13882_s7  ;;  %v2075_v34 = vadd.f32 %v2073_v58, %v2067_v23  ;;  %v2837_v15 = vmul.f32 %v16106_v8, %v16537_v20  ;;  %v16097_v58 = vstv %s13869_s14 }
 0x59d   : > { %v13872_v31 = vpop.permute.xlu1 %4585  ;;  %2615 = vrot.lane.b32.xlu0 %v2610_v39, %s16328_s10  ;;  %v4792_v39 = vmul.f32 %v16535_v26, %v13558_v3  ;;  %v2324_v32 = vadd.f32 %v13651_v10, %v2310_v6  ;;  %v4520_v10 = vadd.f32 %v13754_v29, %v4506_v41  ;;  %v4759_v14 = vadd.f32 %v13803_v18, %v4745_v30 }
 0x59e   : > { %v16539_v6 = vstv %s16534_s29  ;;  %v16090_v30 = vstv %s13882_s7  ;;  %s13930_s29 = sld [smem:[#allocation5 + $0x5e]] }
 0x59f   : > { %2645 = vrot.lane.b32.xlu1 %v2640_v36, %s16321_s6  ;;  %v4782_v37 = vpop.permute.xlu0 %4781  ;;  %v2338_v36 = vadd.f32 %v13685_v47, %v2324_v32  ;;  %v2081_v60 = vmul.f32 %v16539_v6, %v16538_v16  ;;  %v4534_v47 = vadd.f32 %v13787_v2, %v4520_v10  ;;  %v4773_v29 = vadd.f32 %v4768_v38, %v4759_v14  ;;  %v16541_v14 = vld [vmem:[#allocation117_spill] sm:$0xff]  ;;  %s13976_s7 = sld [smem:[#allocation5 + $0x2e]] }
 0x5a0   : > { %v4807_v38 = vmul.f32 %v16097_v58, %v13367_v9  ;;  %v16098_v10 = vstv %s13897_s3  ;;  %v2879_v9 = vmul.f32 %v16090_v30, %v16522_v63 }
 0x5a1   : > { %v13899_v4 = vpop.permute.xlu1 %4599  ;;  %4797 = vrot.lane.b32.xlu0 %v4792_v39, %s16328_s10  ;;  %v2352_v22 = vadd.f32 %v13717_v24, %v2338_v36  ;;  %v2083_v18 = vadd.f32 %v2081_v60, %v2075_v34  ;;  %v16540_v39 = vstv %s13404_s8  ;;  %v4548_v41 = vadd.f32 %v13822_v42, %v4534_v47  ;;  %s13944_s8 = sld [smem:[#allocation7 + $0x4f]] }
 0x5a2   : > { %v2654_v32 = vmul.f32 %v16540_v39, %v12776_v52  ;;  %v4787_v2 = vadd.f32 %v4782_v37, %v4773_v29  ;;  %v16092_v34 = vstv %s13891_s1  ;;  %v5033_v47 = vmul.f32 %v16098_v10, %v13818_v19  ;;  %s16548_s1 = sld [smem:[#allocation126_spill]] }
 0x5a3   : > { %2869 = vrot.lane.b32.xlu1 %v2865_v44, %s16325_s12  ;;  %v4572_v23 = vpop.permute.xlu0 %4571  ;;  %v2366_v24 = vadd.f32 %v13747_v49, %v2352_v22  ;;  %v2851_v49 = vmul.f32 %v16101_v12, %v16522_v63  ;;  %v4562_v37 = vadd.f32 %v4558_v17, %v4548_v41  ;;  %v2097_v16 = vadd.f32 %v16541_v14, %v2083_v18 }
 0x5a5   : > { %v13921_v26 = vpop.permute.xlu1 %2643  ;;  %2841 = vrot.lane.b32.xlu0 %v2837_v15, %s16321_s6  ;;  %v2380_v42 = vadd.f32 %v13778_v59, %v2366_v24  ;;  %v4576_v15 = vadd.f32 %v4572_v23, %v4562_v37  ;;  %v4815_v59 = vmul.f32 %v16092_v34, %v13388_v40  ;;  %v16542_v23 = vld [vmem:[#allocation97_spill] sm:$0xff]  ;;  %v16111_v40 = vstv %s13919_s16  ;;  %16544 = sst [smem:[#allocation116_spill]] %s13976_s7 }
 0x5a6   : > { %v2111_v39 = vadd.f32 %v16542_v23, %v2097_v16  ;;  %v16543_v24 = vstv %s13421_s24  ;;  %s13987_s24 = sld [smem:[#allocation7 + $0x1f]]  ;;  %v16550_v23 = vstv %s13429_s17 }
 0x5a7   : > { %2659 = vrot.lane.b32.xlu1 %v2654_v32, %s16321_s6  ;;  %v4796_v44 = vpop.permute.xlu0 %4795  ;;  %v2394_v60 = vadd.f32 %v13812_v0, %v2380_v42  ;;  %v13964_v0 = vld [vmem:[#allocation3 + $0xb] sm:$0xff]  ;;  %v2668_v41 = vmul.f32 %v16543_v24, %v12709_v53  ;;  %v16545_v42 = vstv %s13334_s19  ;;  %v16102_v16 = vstv %s13944_s8  ;;  %s16549_s19 = sld [smem:[#allocation122_spill]]  ;;  %s14022_s17 = sld [smem:[#allocation5 + $0x5f]] }
 0x5a8   : > { %v4801_v36 = vadd.f32 %v4796_v44, %v4787_v2  ;;  %v4590_v2 = vadd.f32 %v13872_v31, %v4576_v15  ;;  %v16108_v44 = vstv %s13932_s26  ;;  %v4822_v37 = vmul.f32 %v16545_v42, %v13964_v0  ;;  %v16547_v31 = vld [vmem:[#allocation118_spill] sm:$0xff] }
 0x5a9   : > { %v13947_v6 = vpop.permute.xlu1 %4825  ;;  %2855 = vrot.lane.b32.xlu0 %v2851_v49, %s16325_s12  ;;  %v2408_v29 = vadd.f32 %v13849_v7, %v2394_v60  ;;  %v16554_v42 = vstv %s13441_s21  ;;  %s16559_s21 = sld [smem:[#allocation127_spill]] }
 0x5aa   : > { %v4809_v17 = vadd.f32 %v4807_v38, %v4801_v36  ;;  %v16096_v38 = vstv %s13930_s29  ;;  %v2442_v36 = vmul.f32 %v16111_v40, %v12707_v33  ;;  %v2450_v33 = vmul.f32 %v16108_v44, %v12774_v51 }
 0x5ab   : > { %2883 = vrot.lane.b32.xlu1 %v2879_v9, %s16329_s18  ;;  %v2418_v22 = vpop.permute.xlu0 %2417  ;;  %v2125_v9 = vadd.f32 %v16547_v31, %v2111_v39  ;;  %v2893_v15 = vmul.f32 %v16096_v38, %v16537_v20  ;;  %v4624_v39 = vmul.f32 %v16550_v23, %v13513_v56 }
 0x5ac   : > { %v13962_v18 = vadd.f32 %v4815_v59, %v4809_v17  ;;  %v2422_v7 = vadd.f32 %v2418_v22, %v2408_v29  ;;  %16546 = sst [smem:[#allocation125_spill]] %s13987_s24  ;;  %v4604_v59 = vadd.f32 %v13899_v4, %v4590_v2  ;;  %v14009_v4 = vld [vmem:[#allocation4 + $0xb] sm:$0xff] }
 0x5ad   : > { %v13968_v32 = vpop.permute.xlu1 %4839  ;;  %5037 = vrot.lane.b32.xlu0 %v5033_v47, %s16325_s12  ;;  %v5047_v47 = vmul.f32 %v16102_v16, %v13836_v21  ;;  %16555 = sst [smem:[#allocation110_spill]] %s14022_s17  ;;  %v16556_v31 = vstv %s16549_s19  ;;  %s14057_s19 = sld [smem:[#allocation5 + $0x2f]] }
 0x5af   : > { %2673 = vrot.lane.b32.xlu1 %v2668_v41, %s16325_s12  ;;  %v2432_v49 = vpop.permute.xlu0 %2431  ;;  %v16551_v41 = vld [vmem:[#allocation98_spill] sm:$0xff] }
 0x5b0   : > { %v2436_v14 = vadd.f32 %v2432_v49, %v2422_v7  ;;  %v2139_v2 = vadd.f32 %v16551_v41, %v2125_v9  ;;  %v16553_v7 = vstv %s16548_s1  ;;  %v4836_v9 = vmul.f32 %v16556_v31, %v14009_v4  ;;  %s14033_s1 = sld [smem:[#allocation7 + $0x50]] }
 0x5b1   : > { %v13990_v60 = vpop.permute.xlu1 %2461  ;;  %4827 = vrot.lane.b32.xlu0 %v4822_v37, %s16321_s6  ;;  %v2682_v49 = vmul.f32 %v16553_v7, %v12776_v52  ;;  %v4632_v37 = vmul.f32 %v16554_v42, %v13558_v3  ;;  %v16558_v3 = vld [vmem:[#allocation119_spill] sm:$0xff]  ;;  %v16562_v7 = vstv %s13434_s2  ;;  %v16088_v42 = vstv %s14022_s17  ;;  %s16568_s2 = sld [smem:[#allocation128_spill]]  ;;  %s14091_s17 = sld [smem:[#allocation5 + $0x60]] }
 0x5b2   : > { %v2444_v17 = vadd.f32 %v2442_v36, %v2436_v14  ;;  %v16086_v14 = vstv %s13976_s7  ;;  %v16565_v31 = vstv %s16559_s21  ;;  %s14067_s7 = sld [smem:[#allocation7 + $0x20]]  ;;  %s16572_s21 = sld [smem:[#allocation79_spill]] }
 0x5b3   : > { %2897 = vrot.lane.b32.xlu1 %v2893_v15, %s16329_s18  ;;  %v4614_v22 = vpop.permute.xlu0 %4613  ;;  %16563 = sst [smem:[#allocation102_spill]] %s14057_s19 }
 0x5b4   : > { %v14004_v29 = vadd.f32 %v2450_v33, %v2444_v17  ;;  %v4618_v24 = vadd.f32 %v4614_v22, %v4604_v59  ;;  %v16089_v59 = vstv %s13987_s24  ;;  %v2153_v33 = vadd.f32 %v16558_v3, %v2139_v2  ;;  %s16574_s24 = sld [smem:[#allocation78_spill]] }
 0x5b5   : > { %v14012_v51 = vpop.permute.xlu1 %2685  ;;  %5051 = vrot.lane.b32.xlu0 %v5047_v47, %s16325_s12  ;;  %v2907_v22 = vmul.f32 %v16086_v14, %v16522_v63 }
 0x5b6   : > { %16552 = vst [vmem:[#allocation90_spill] sm:$0xff] %v14012_v51  ;;  %v4626_v36 = vadd.f32 %v4624_v39, %v4618_v24  ;;  %16557 = sst [smem:[#allocation123_spill]] %s14033_s1  ;;  %v2167_v47 = vadd.f32 %v12990_v28, %v2153_v33  ;;  %v5061_v39 = vmul.f32 %v16089_v59, %v13818_v19  ;;  %v16560_v24 = vld [vmem:[#allocation141_spill] sm:$0xff]  ;;  %v16564_v28 = vld [vmem:[#allocation142_spill] sm:$0xff]  ;;  %v16091_v3 = vstv %s14033_s1  ;;  %v16566_v33 = vld [vmem:[#allocation143_spill] sm:$0xff]  ;;  %s14101_s1 = sld [smem:[#allocation7 + $0x51]] }
 0x5b7   : > { %2687 = vrot.lane.b32.xlu1 %v2682_v49, %s16325_s12  ;;  %v14025_v56 = vpop.permute.xlu0 %2657  ;;  %v2696_v49 = vmul.f32 %v16562_v7, %v12709_v53 }
 0x5b8   : > { %v14030_v15 = vadd.f32 %v4632_v37, %v4626_v36  ;;  %v2181_v41 = vadd.f32 %v16560_v24, %v2167_v47  ;;  %v16567_v24 = vld [vmem:[#allocation144_spill] sm:$0xff] }
 0x5b9   : > { %v14036_v17 = vpop.permute.xlu1 %2475  ;;  %4841 = vrot.lane.b32.xlu0 %v4836_v9, %s16321_s6  ;;  %v4850_v9 = vmul.f32 %v16565_v31, %v13964_v0 }
 0x5ba   : > { %v2195_v37 = vadd.f32 %v16564_v28, %v2181_v41  ;;  %v16569_v28 = vld [vmem:[#allocation145_spill] sm:$0xff] }
 0x5bb   : > { %2911 = vrot.lane.b32.xlu1 %v2907_v22, %s16319_s0  ;;  %v14044_v23 = vpop.permute.xlu0 %2671 }
 0x5bc   : > { %v2209_v22 = vadd.f32 %v16566_v33, %v2195_v37 }
 0x5bd   : > { %v14050_v2 = vpop.permute.xlu1 %2699  ;;  %5065 = vrot.lane.b32.xlu0 %v5061_v39, %s16329_s18  ;;  %v2921_v39 = vmul.f32 %v16088_v42, %v16537_v20  ;;  %v16577_v42 = vstv %s16568_s2  ;;  %s16584_s2 = sld [smem:[#allocation159_spill]] }
 0x5be   : > { %16561 = vst [vmem:[#allocation81_spill] sm:$0xff] %v14050_v2  ;;  %v2223_v41 = vadd.f32 %v16567_v24, %v2209_v22  ;;  %v16093_v22 = vstv %s14057_s19  ;;  %s16587_s19 = sld [smem:[#allocation101_spill]] }
 0x5bf   : > { %2701 = vrot.lane.b32.xlu1 %v2696_v49, %s16329_s18  ;;  %v14061_v36 = vpop.permute.xlu0 %4853  ;;  %v5075_v49 = vmul.f32 %v16091_v3, %v13836_v21  ;;  %v16579_v3 = vld [vmem:[#allocation87_spill] sm:$0xff] }
 0x5c0   : > { %v2237_v37 = vadd.f32 %v16569_v28, %v2223_v41  ;;  %v16575_v41 = vstv %s13491_s28  ;;  %s14128_s28 = sld [smem:[#allocation5 + $0x30]] }
 0x5c1   : > { %v14070_v47 = vpop.permute.xlu1 %2489  ;;  %4855 = vrot.lane.b32.xlu0 %v4850_v9, %s16325_s12  ;;  %v16571_v9 = vstv %s13476_s25  ;;  %v4864_v28 = vmul.f32 %v16575_v41, %v14009_v4  ;;  %s16578_s25 = sld [smem:[#allocation158_spill]] }
 0x5c2   : > { %v2710_v33 = vmul.f32 %v16571_v9, %v12776_v52  ;;  %v16576_v9 = vld [vmem:[#allocation83_spill] sm:$0xff] }
 0x5c3   : > { %2925 = vrot.lane.b32.xlu1 %v2921_v39, %s16319_s0  ;;  %v14078_v7 = vpop.permute.xlu0 %4643  ;;  %v16573_v39 = vld [vmem:[#allocation146_spill] sm:$0xff]  ;;  %v2257_v59 = vmul.f32 %v16577_v42, %v16576_v9  ;;  %v16580_v42 = vstv %s16572_s21  ;;  %s14137_s21 = sld [smem:[#allocation7 + $0x21]]  ;;  %v16590_v58 = vstv %s16584_s2 }
 0x5c4   : > { %v2251_v24 = vadd.f32 %v16573_v39, %v2237_v37  ;;  %v2935_v37 = vmul.f32 %v16093_v22, %v16522_v63  ;;  %v2265_v9 = vmul.f32 %v16580_v42, %v16579_v3  ;;  %s16594_s2 = sld [smem:[#allocation105_spill]] }
 0x5c5   : > { %v14084_v31 = vpop.permute.xlu1 %2713  ;;  %5079 = vrot.lane.b32.xlu0 %v5075_v49, %s16329_s18  ;;  %v16094_v49 = vstv %s14067_s7 }
 0x5c6   : > { %16570 = vst [vmem:[#allocation80_spill] sm:$0xff] %v14084_v31  ;;  %v5089_v41 = vmul.f32 %v16094_v49, %v13818_v19  ;;  %16583 = sst [smem:[#allocation104_spill]] %s14128_s28  ;;  %v16100_v49 = vstv %s14101_s1  ;;  %v16105_v10 = vstv %s14128_s28  ;;  %s16602_s28 = sld [smem:[#allocation99_spill]] }
 0x5c7   : > { %2715 = vrot.lane.b32.xlu1 %v2710_v33, %s16329_s18  ;;  %v14095_v14 = vpop.permute.xlu0 %4867  ;;  %v2259_v33 = vadd.f32 %v2257_v59, %v2251_v24  ;;  %v16099_v59 = vstv %s14091_s17  ;;  %v16585_v3 = vstv %s16578_s25  ;;  %s14169_s25 = sld [smem:[#allocation7 + $0x52]] }
 0x5c8   : > { %v4878_v42 = vmul.f32 %v16585_v3, %v13964_v0  ;;  %v5103_v3 = vmul.f32 %v16100_v49, %v13836_v21 }
 0x5c9   : > { %v14106_v30 = vpop.permute.xlu1 %2503  ;;  %4869 = vrot.lane.b32.xlu0 %v4864_v28, %s16325_s12  ;;  %v16582_v28 = vstv %s16574_s24  ;;  %v2267_v24 = vadd.f32 %v2265_v9, %v2259_v33  ;;  %16586 = sst [smem:[#allocation126_spill]] %s14137_s21  ;;  %v2949_v33 = vmul.f32 %v16099_v59, %v16537_v20  ;;  %v16588_v9 = vld [vmem:[#allocation147_spill] sm:$0xff]  ;;  %s14159_s24 = sld [smem:[#allocation5 + $0x61]]  ;;  %v16592_v59 = vstv %s16587_s19 }
 0x5ca   : > { %v2724_v22 = vmul.f32 %v16582_v28, %v12709_v53  ;;  %v4892_v49 = vmul.f32 %v16592_v59, %v14009_v4  ;;  %v16107_v12 = vstv %s14137_s21  ;;  %s16600_s19 = sld [smem:[#allocation107_spill]] }
 0x5cb   : > { %2939 = vrot.lane.b32.xlu1 %v2935_v37, %s16320_s4  ;;  %v14113_v39 = vpop.permute.xlu0 %4657  ;;  %v2281_v28 = vadd.f32 %v16588_v9, %v2267_v24  ;;  %v16591_v24 = vld [vmem:[#allocation148_spill] sm:$0xff]  ;;  %v5117_v35 = vmul.f32 %v16107_v12, %v13818_v19  ;;  %v16601_v12 = vstv %s16594_s2  ;;  %s14201_s21 = sld [smem:[#allocation7 + $0x22]]  ;;  %s14239_s2 = sld [smem:[#allocation7 + $0x55]] }
 0x5cc   : > { %v4906_v44 = vmul.f32 %v16601_v12, %v13964_v0 }
 0x5cd   : > { %v14121_v34 = vpop.permute.xlu1 %2727  ;;  %5093 = vrot.lane.b32.xlu0 %v5089_v41, %s16319_s0  ;;  %v2295_v9 = vadd.f32 %v16591_v24, %v2281_v28  ;;  %v2963_v28 = vmul.f32 %v16105_v10, %v16522_v63  ;;  %v16606_v63 = vld [vmem:[#allocation154_spill] sm:$0xff] }
 0x5ce   : > { %16581 = vst [vmem:[#allocation103_spill] sm:$0xff] %v14121_v34 }
 0x5cf   : > { %2729 = vrot.lane.b32.xlu1 %v2724_v22, %s16319_s0  ;;  %v14131_v37 = vpop.permute.xlu0 %4881  ;;  %v16113_v8 = vstv %s14159_s24 }
 0x5d0   : > { %v16605_v40 = vstv %s16600_s19  ;;  %s16632_s19 = sld [smem:[#allocation130_spill]] }
 0x5d1   : > { %v14139_v41 = vpop.permute.xlu1 %2517  ;;  %4883 = vrot.lane.b32.xlu0 %v4878_v42, %s16329_s18  ;;  %v2738_v42 = vmul.f32 %v16590_v58, %v12776_v52  ;;  %v5202_v31 = vstv %s14239_s2  ;;  %s14683_s2 = sld [smem:[#allocation7 + $0x5e]] }
 0x5d3   : > { %2953 = vrot.lane.b32.xlu1 %v2949_v33, %s16320_s4  ;;  %v14147_v22 = vpop.permute.xlu0 %4671 }
 0x5d5   : > { %v14152_v38 = vpop.permute.xlu1 %2741  ;;  %5107 = vrot.lane.b32.xlu0 %v5103_v3, %s16319_s0  ;;  %v16593_v3 = vld [vmem:[#allocation149_spill] sm:$0xff] }
 0x5d6   : > { %16589 = vst [vmem:[#allocation91_spill] sm:$0xff] %v14152_v38  ;;  %v2309_v58 = vadd.f32 %v16593_v3, %v2295_v9  ;;  %v16596_v9 = vld [vmem:[#allocation150_spill] sm:$0xff] }
 0x5d7   : > { %2743 = vrot.lane.b32.xlu1 %v2738_v42, %s16319_s0  ;;  %v14163_v33 = vpop.permute.xlu0 %4895  ;;  %v16595_v42 = vld [vmem:[#allocation151_spill] sm:$0xff] }
 0x5d8   : > { %v2323_v24 = vadd.f32 %v16595_v42, %v2309_v58  ;;  %v16599_v58 = vld [vmem:[#allocation153_spill] sm:$0xff] }
 0x5d9   : > { %v14172_v16 = vpop.permute.xlu1 %2531  ;;  %4897 = vrot.lane.b32.xlu0 %v4892_v49, %s16329_s18  ;;  %v16598_v49 = vstv %s13605_s9  ;;  %s14230_s9 = sld [smem:[#allocation7 + $0x53]] }
 0x5da   : > { %v2337_v3 = vadd.f32 %v16596_v9, %v2323_v24  ;;  %v2752_v10 = vmul.f32 %v16598_v49, %v12709_v53  ;;  %v16115_v24 = vstv %s14169_s25  ;;  %v2977_v9 = vmul.f32 %v16113_v8, %v16537_v20 }
 0x5db   : > { %2967 = vrot.lane.b32.xlu1 %v2963_v28, %s16328_s10  ;;  %v14180_v59 = vpop.permute.xlu0 %4685  ;;  %v5131_v12 = vmul.f32 %v16115_v24, %v13836_v21  ;;  %v16116_v20 = vstv %s14201_s21  ;;  %v16608_v24 = vld [vmem:[#allocation155_spill] sm:$0xff] }
 0x5dc   : > { %v2351_v28 = vadd.f32 %v16599_v58, %v2337_v3  ;;  %v16603_v3 = vld [vmem:[#allocation152_spill] sm:$0xff] }
 0x5dd   : > { %v14186_v43 = vpop.permute.xlu1 %2755  ;;  %5121 = vrot.lane.b32.xlu0 %v5117_v35, %s16320_s4 }
 0x5de   : > { %16597 = vst [vmem:[#allocation106_spill] sm:$0xff] %v14186_v43  ;;  %v2365_v49 = vadd.f32 %v16603_v3, %v2351_v28 }
 0x5df   : > { %2757 = vrot.lane.b32.xlu1 %v2752_v10, %s16320_s4  ;;  %v14195_v42 = vpop.permute.xlu0 %4909 }
 0x5e0   : > { %v2379_v8 = vadd.f32 %v16606_v63, %v2365_v49  ;;  %v16609_v63 = vstv %s13714_s23  ;;  %v16610_v49 = vld [vmem:[#allocation156_spill] sm:$0xff]  ;;  %s14255_s23 = sld [smem:[#allocation7 + $0x25]] }
 0x5e1   : > { %v14203_v35 = vpop.permute.xlu1 %2545  ;;  %4911 = vrot.lane.b32.xlu0 %v4906_v44, %s16319_s0  ;;  %v2766_v44 = vmul.f32 %v16605_v40, %v12776_v52  ;;  %v4948_v40 = vmul.f32 %v16609_v63, %v14009_v4  ;;  %v16613_v63 = vstv %s13744_s15  ;;  %s14343_s15 = sld [smem:[#allocation7 + $0x56]] }
 0x5e2   : > { %v4962_v38 = vmul.f32 %v16613_v63, %v13964_v0 }
 0x5e3   : > { %2981 = vrot.lane.b32.xlu1 %v2977_v9, %s16328_s10  ;;  %v14211_v10 = vpop.permute.xlu0 %4699  ;;  %v16607_v9 = vstv %s16602_s28  ;;  %s14381_s28 = sld [smem:[#allocation5 + $0x54]] }
 0x5e4   : > { %v4920_v3 = vmul.f32 %v16607_v9, %v14009_v4 }
 0x5e5   : > { %v14216_v58 = vpop.permute.xlu1 %2769  ;;  %5135 = vrot.lane.b32.xlu0 %v5131_v12, %s16320_s4 }
 0x5e6   : > { %16604 = vst [vmem:[#allocation92_spill] sm:$0xff] %v14216_v58  ;;  %v2393_v58 = vadd.f32 %v16608_v24, %v2379_v8  ;;  %v5145_v8 = vmul.f32 %v16116_v20, %v13818_v19  ;;  %v16611_v24 = vld [vmem:[#allocation157_spill] sm:$0xff] }
 0x5e7   : > { %2771 = vrot.lane.b32.xlu1 %v2766_v44, %s16320_s4  ;;  %v14224_v28 = vpop.permute.xlu0 %4923  ;;  %v16615_v20 = vld [vmem:[#allocation84_spill] sm:$0xff] }
 0x5e8   : > { %v2407_v44 = vadd.f32 %v16610_v49, %v2393_v58  ;;  %v16614_v49 = vstv %s13682_s30  ;;  %s14286_s30 = sld [smem:[#allocation7 + $0x24]] }
 0x5e9   : > { %v14233_v12 = vpop.permute.xlu1 %2559  ;;  %4925 = vrot.lane.b32.xlu0 %v4920_v3, %s16319_s0 }
 0x5ea   : > { %v2421_v43 = vadd.f32 %v16611_v24, %v2407_v44  ;;  %v4934_v44 = vmul.f32 %v16614_v49, %v13964_v0  ;;  %v4831_v24 = vadd.f32 %v13947_v6, %v13962_v18 }
 0x5eb   : > { %4953 = vrot.lane.b32.xlu1 %v4948_v40, %s16320_s4  ;;  %v14243_v9 = vpop.permute.xlu0 %4713 }
 0x5ec   : > { %v2435_v58 = vadd.f32 %v13382_v27, %v2421_v43  ;;  %v16617_v27 = vstv %s13775_s5  ;;  %v4845_v18 = vadd.f32 %v13968_v32, %v4831_v24  ;;  %v16621_v24 = vstv %s13673_s22  ;;  %s14318_s22 = sld [smem:[#allocation7 + $0x26]]  ;;  %s16629_s5 = sld [smem:[#allocation100_spill]] }
 0x5ed   : > { %v14249_v3 = vpop.permute.xlu1 %2783  ;;  %5149 = vrot.lane.b32.xlu0 %v5145_v8, %s16328_s10  ;;  %v16117_v8 = vstv %s14230_s9  ;;  %v4976_v43 = vmul.f32 %v16617_v27, %v14009_v4 }
 0x5ee   : > { %16612 = vst [vmem:[#allocation109_spill] sm:$0xff] %v14249_v3  ;;  %v16616_v3 = vstv %s13919_s16  ;;  %s14378_s16 = sld [smem:[#allocation7 + $0x27]] }
 0x5ef   : > { %4967 = vrot.lane.b32.xlu1 %v4962_v38, %s16328_s10  ;;  %v14259_v40 = vpop.permute.xlu0 %4937  ;;  %v2441_v63 = vmul.f32 %v16616_v3, %v16615_v20  ;;  %v14276_v38 = vld [vmem:[#allocation4 + $0x5] sm:$0xff]  ;;  %v5159_v20 = vmul.f32 %v16117_v8, %v13836_v21  ;;  %v5216_v8 = vstv %s14255_s23  ;;  %s14698_s23 = sld [smem:[#allocation7 + $0x2e]] }
 0x5f0   : > { %v16618_v3 = vld [vmem:[#allocation88_spill] sm:$0xff] }
 0x5f1   : > { %v14270_v34 = vpop.permute.xlu1 %2573  ;;  %4939 = vrot.lane.b32.xlu0 %v4934_v44, %s16320_s4  ;;  %v2443_v49 = vadd.f32 %v2441_v63, %v2435_v58  ;;  %v16619_v44 = vstv %s13932_s26  ;;  %v5203_v58 = vmul.f32 %v5202_v31, %v14276_v38  ;;  %v4859_v63 = vadd.f32 %v14061_v36, %v4845_v18  ;;  %s16630_s26 = sld [smem:[#allocation129_spill]] }
 0x5f2   : > { %v2449_v27 = vmul.f32 %v16619_v44, %v16618_v3  ;;  %v2780_v3 = vmul.f32 %v16621_v24, %v12709_v53  ;;  %v4648_v18 = vadd.f32 %v14078_v7, %v14030_v15  ;;  %v5188_v15 = vstv %s14286_s30  ;;  %s14653_s30 = sld [smem:[#allocation7 + $0x5d]] }
 0x5f3   : > { %4981 = vrot.lane.b32.xlu1 %v4976_v43, %s16328_s10  ;;  %v14280_v6 = vpop.permute.xlu0 %4727  ;;  %v14298_v43 = vld [vmem:[#allocation3 + $0x5] sm:$0xff]  ;;  %v4873_v44 = vadd.f32 %v14095_v14, %v4859_v63  ;;  %v16622_v14 = vstv %s13705_s27  ;;  %v16624_v24 = vstv %s13846_s13  ;;  %s16625_s27 = sld [smem:[#allocation112_spill]]  ;;  %s16631_s13 = sld [smem:[#allocation108_spill]] }
 0x5f4   : > { %v2451_v51 = vadd.f32 %v2449_v27, %v2443_v49  ;;  %v5217_v36 = vmul.f32 %v5216_v8, %v14298_v43  ;;  %v2466_v49 = vadd.f32 %v13990_v60, %v14004_v29  ;;  %v4662_v60 = vadd.f32 %v14113_v39, %v4648_v18 }
 0x5f5   : > { %v14291_v2 = vpop.permute.xlu1 %2797  ;;  %5163 = vrot.lane.b32.xlu0 %v5159_v20, %s16328_s10  ;;  %v4887_v27 = vadd.f32 %v14131_v37, %v4873_v44  ;;  %v16626_v18 = vstv %s13800_s11  ;;  %s14368_s11 = sld [smem:[#allocation5 + $0x23]] }
 0x5f6   : > { %16620 = vst [vmem:[#allocation93_spill] sm:$0xff] %v14291_v2  ;;  %v2465_v20 = vadd.f32 %v13466_v62, %v2451_v51  ;;  %v2480_v63 = vadd.f32 %v14036_v17, %v2466_v49 }
 0x5f7   : > { %5207 = vrot.lane.b32.xlu1 %v5203_v58, %s16321_s6  ;;  %v4952_v32 = vpop.permute.xlu0 %4951  ;;  %v2794_v58 = vmul.f32 %v16622_v14, %v12776_v52  ;;  %v4901_v29 = vadd.f32 %v14163_v33, %v4887_v27  ;;  %v5244_v14 = vstv %s14318_s22  ;;  %s14732_s22 = sld [smem:[#allocation7 + $0x2f]] }
 0x5f8   : > { %v2479_v62 = vadd.f32 %v13574_v13, %v2465_v20  ;;  %v16623_v13 = vld [vmem:[#allocation124_spill] sm:$0xff]  ;;  %v2494_v44 = vadd.f32 %v14070_v47, %v2480_v63  ;;  %v4676_v20 = vadd.f32 %v14147_v22, %v4662_v60 }
 0x5f9   : > { %v14307_v2 = vpop.permute.xlu1 %2587  ;;  %2785 = vrot.lane.b32.xlu0 %v2780_v3, %s16328_s10  ;;  %v2838_v3 = vmul.f32 %v16624_v24, %v16623_v13  ;;  %v4915_v17 = vadd.f32 %v14195_v42, %v4901_v29  ;;  %v14352_v42 = vld [vmem:[#allocation4 + $0xc] sm:$0xff] }
 0x5fa   : > { %v2493_v7 = vadd.f32 %v13592_v1, %v2479_v62  ;;  %v5189_v1 = vmul.f32 %v5188_v15, %v14298_v43  ;;  %v2508_v33 = vadd.f32 %v14106_v30, %v2494_v44  ;;  %v5020_v27 = vmul.f32 %v14352_v42, %v16626_v18 }
 0x5fb   : > { %5221 = vrot.lane.b32.xlu1 %v5217_v36, %s16325_s12  ;;  %v4742_v51 = vpop.permute.xlu0 %4741  ;;  %v4690_v36 = vadd.f32 %v14180_v59, %v4676_v20  ;;  %v4929_v47 = vadd.f32 %v14224_v28, %v4915_v17  ;;  %v16627_v28 = vld [vmem:[#allocation120_spill] sm:$0xff]  ;;  %v16633_v44 = vstv %s16629_s5  ;;  %s16642_s5 = sld [smem:[#allocation123_spill]] }
 0x5fc   : > { %v2507_v22 = vadd.f32 %v13561_v46, %v2493_v7  ;;  %v2522_v62 = vadd.f32 %v14139_v41, %v2508_v33 }
 0x5fd   : > { %v14330_v37 = vpop.permute.xlu1 %4769  ;;  %2799 = vrot.lane.b32.xlu0 %v2794_v58, %s16328_s10  ;;  %v4704_v30 = vadd.f32 %v14211_v10, %v4690_v36  ;;  %v4943_v59 = vadd.f32 %v14259_v40, %v4929_v47  ;;  %v16628_v58 = vstv %s16625_s27  ;;  %v5245_v40 = vmul.f32 %v5244_v14, %v14298_v43  ;;  %s14413_s27 = sld [smem:[#allocation7 + $0x57]] }
 0x5fe   : > { %v2824_v63 = vmul.f32 %v16628_v58, %v16627_v28  ;;  %v2536_v60 = vadd.f32 %v14172_v16, %v2522_v62  ;;  %v2521_v41 = vadd.f32 %v13598_v54, %v2507_v22  ;;  %v16635_v47 = vstv %s16631_s13  ;;  %s16651_s13 = sld [smem:[#allocation116_spill]] }
 0x5ff   : > { %2843 = vrot.lane.b32.xlu1 %v2838_v3, %s16321_s6  ;;  %v4966_v39 = vpop.permute.xlu0 %4965  ;;  %v4718_v29 = vadd.f32 %v14243_v9, %v4704_v30  ;;  %v4957_v7 = vadd.f32 %v4952_v32, %v4943_v59  ;;  %v14384_v3 = vld [vmem:[#allocation3 + $0xc] sm:$0xff]  ;;  %v2866_v22 = vmul.f32 %v16635_v47, %v16623_v13 }
 0x600   : > { %v2550_v24 = vadd.f32 %v14203_v35, %v2536_v60  ;;  %v2535_v54 = vadd.f32 %v13630_v57, %v2521_v41  ;;  %v5006_v20 = vmul.f32 %v14384_v3, %v16633_v44  ;;  %v5230_v35 = vstv %s14343_s15  ;;  %s14716_s15 = sld [smem:[#allocation7 + $0x5f]] }
 0x601   : > { %v14349_v49 = vpop.permute.xlu1 %4783  ;;  %5193 = vrot.lane.b32.xlu0 %v5189_v1, %s16321_s6  ;;  %v4732_v16 = vadd.f32 %v14280_v6, %v4718_v29  ;;  %v4971_v9 = vadd.f32 %v4966_v39, %v4957_v7  ;;  %v16634_v39 = vstv %s16630_s26  ;;  %v5231_v30 = vmul.f32 %v5230_v35, %v14276_v38  ;;  %s14495_s26 = sld [smem:[#allocation7 + $0x29]] }
 0x602   : > { %v2564_v6 = vadd.f32 %v14233_v12, %v2550_v24  ;;  %v4991_v1 = vmul.f32 %v16634_v39, %v13818_v19  ;;  %v2549_v33 = vadd.f32 %v13666_v50, %v2535_v54  ;;  %v5272_v7 = vstv %s14378_s16  ;;  %s14747_s16 = sld [smem:[#allocation7 + $0x60]] }
 0x603   : > { %5025 = vrot.lane.b32.xlu1 %v5020_v27, %s16321_s6  ;;  %v4756_v46 = vpop.permute.xlu0 %4755  ;;  %v4746_v17 = vadd.f32 %v4742_v51, %v4732_v16  ;;  %v16636_v51 = vstv %s16632_s19  ;;  %v2632_v41 = vstv %s14381_s28  ;;  %s14516_s28 = sld [smem:[#allocation7 + $0x59]]  ;;  %s14552_s19 = sld [smem:[#allocation5 + $0x2a]] }
 0x604   : > { %v2578_v18 = vadd.f32 %v14270_v34, %v2564_v6  ;;  %v4999_v19 = vmul.f32 %v16636_v51, %v13836_v21  ;;  %v2563_v62 = vadd.f32 %v13698_v5, %v2549_v33  ;;  %v16637_v5 = vstv %s13944_s8  ;;  %s16639_s8 = sld [smem:[#allocation121_spill]] }
 0x605   : > { %v14370_v10 = vpop.permute.xlu1 %2827  ;;  %2829 = vrot.lane.b32.xlu0 %v2824_v63, %s16321_s6  ;;  %v4760_v27 = vadd.f32 %v4756_v46, %v4746_v17  ;;  %v2624_v46 = vstv %s14368_s11  ;;  %v5048_v63 = vmul.f32 %v14352_v42, %v16637_v5  ;;  %v16640_v6 = vstv %s13897_s3  ;;  %s16645_s3 = sld [smem:[#allocation114_spill]]  ;;  %s16648_s11 = sld [smem:[#allocation110_spill]] }
 0x606   : > { %v2592_v59 = vadd.f32 %v14307_v2, %v2578_v18  ;;  %v2577_v34 = vadd.f32 %v13730_v11, %v2563_v62  ;;  %v2626_v16 = vmul.f32 %v2624_v46, %v12709_v53  ;;  %v5034_v17 = vmul.f32 %v14384_v3, %v16640_v6 }
 0x607   : > { %5249 = vrot.lane.b32.xlu1 %v5245_v40, %s16329_s18  ;;  %v4980_v32 = vpop.permute.xlu0 %4979  ;;  %v4774_v60 = vadd.f32 %v14330_v37, %v4760_v27  ;;  %v16638_v40 = vstv %s13864_s20  ;;  %s14441_s20 = sld [smem:[#allocation7 + $0x28]]  ;;  %v5258_v33 = vstv %s14413_s27  ;;  %v2633_v62 = vmul.f32 %v2632_v41, %v12131_v25 }
 0x608   : > { %v4985_v57 = vadd.f32 %v4980_v32, %v4971_v9  ;;  %v2591_v2 = vadd.f32 %v13760_v61, %v2577_v34  ;;  %v2852_v24 = vmul.f32 %v16638_v40, %v16627_v28  ;;  %v5273_v61 = vmul.f32 %v5272_v7, %v14298_v43  ;;  %s14758_s27 = sld [smem:[#allocation7 + $0x30]] }
 0x609   : > { %v14395_v36 = vpop.permute.xlu1 %5009  ;;  %5011 = vrot.lane.b32.xlu0 %v5006_v20, %s16321_s6  ;;  %v4788_v32 = vadd.f32 %v14349_v49, %v4774_v60  ;;  %v2634_v20 = vmul.f32 %v2632_v41, %v12776_v52  ;;  %v2625_v52 = vmul.f32 %v2624_v46, %v12036_v48  ;;  %v5259_v48 = vmul.f32 %v5258_v33, %v14276_v38 }
 0x60a   : > { %v4993_v12 = vadd.f32 %v4991_v1, %v4985_v57  ;;  %v2605_v54 = vadd.f32 %v13793_v55, %v2591_v2  ;;  %v16641_v1 = vstv %s13869_s14  ;;  %v16644_v18 = vstv %s16639_s8  ;;  %s14472_s14 = sld [smem:[#allocation7 + $0x58]]  ;;  %s14568_s8 = sld [smem:[#allocation5 + $0x5b]] }
 0x60b   : > { %2871 = vrot.lane.b32.xlu1 %v2866_v22, %s16325_s12  ;;  %v2602_v50 = vpop.permute.xlu0 %2601  ;;  %v4808_v49 = vmul.f32 %v16641_v1, %v13964_v0  ;;  %v4816_v27 = vmul.f32 %v16644_v18, %v14009_v4  ;;  %v16647_v4 = vstv %s16642_s5  ;;  %v16649_v5 = vstv %s16645_s3  ;;  %s14570_s5 = sld [smem:[#allocation7 + $0x5c]]  ;;  %s16678_s3 = sld [smem:[#allocation131_spill]] }
 0x60c   : > { %v14411_v58 = vadd.f32 %v4999_v19, %v4993_v12  ;;  %v2606_v29 = vadd.f32 %v2602_v50, %v2592_v59  ;;  %v2619_v53 = vadd.f32 %v13829_v45, %v2605_v54  ;;  %v16643_v45 = vstv %s13930_s29  ;;  %s16646_s29 = sld [smem:[#allocation125_spill]] }
 0x60d   : > { %v14417_v21 = vpop.permute.xlu1 %5023  ;;  %5235 = vrot.lane.b32.xlu0 %v5231_v30, %s16325_s12  ;;  %v2894_v22 = vmul.f32 %v16643_v45, %v16623_v13  ;;  %v5076_v30 = vmul.f32 %v14352_v42, %v16647_v4  ;;  %v5300_v59 = vstv %s14441_s20  ;;  %s16679_s20 = sld [smem:[#allocation133_spill]] }
 0x60e   : > { %v2627_v51 = vadd.f32 %v2625_v52, %v2619_v53 }
 0x60f   : > { %5053 = vrot.lane.b32.xlu1 %v5048_v63, %s16325_s12  ;;  %v2616_v11 = vpop.permute.xlu0 %2615  ;;  %v2880_v63 = vmul.f32 %v16649_v5, %v16627_v28 }
 0x610   : > { %v2620_v9 = vadd.f32 %v2616_v11, %v2606_v29  ;;  %v2635_v34 = vadd.f32 %v2633_v62, %v2627_v51  ;;  %v5301_v29 = vmul.f32 %v5300_v59, %v14298_v43  ;;  %v5286_v40 = vstv %s14472_s14  ;;  %v16659_v62 = vld [vmem:[#allocation103_spill] sm:$0xff]  ;;  %s14771_s14 = sld [smem:[#allocation7 + $0x61]] }
 0x611   : > { %v14433_v37 = vpop.permute.xlu1 %2645  ;;  %2857 = vrot.lane.b32.xlu0 %v2852_v24, %s16325_s12 }
 0x612   : > { %v2628_v44 = vadd.f32 %v2626_v16, %v2620_v9  ;;  %v2649_v25 = vadd.f32 %v13921_v26, %v2635_v34  ;;  %v16650_v11 = vstv %s16646_s29  ;;  %v16652_v9 = vstv %s16648_s11  ;;  %s16762_s11 = sld [smem:[#allocation12_spill]] }
 0x613   : > { %5277 = vrot.lane.b32.xlu1 %v5273_v61, %s16319_s0  ;;  %v4798_v55 = vpop.permute.xlu0 %4797  ;;  %v5062_v26 = vmul.f32 %v14384_v3, %v16650_v11  ;;  %v2922_v54 = vmul.f32 %v16652_v9, %v16623_v13  ;;  %v5287_v61 = vmul.f32 %v5286_v40, %v14276_v38  ;;  %v16660_v34 = vstv %s14091_s17  ;;  %v16663_v11 = vld [vmem:[#allocation106_spill] sm:$0xff]  ;;  %s16665_s17 = sld [smem:[#allocation126_spill]] }
 0x614   : > { %v14448_v39 = vadd.f32 %v2634_v20, %v2628_v44  ;;  %v4802_v57 = vadd.f32 %v4798_v55, %v4788_v32  ;;  %v2663_v2 = vadd.f32 %v14025_v56, %v2649_v25  ;;  %v16653_v32 = vld [vmem:[#allocation90_spill] sm:$0xff]  ;;  %v16654_v20 = vstv %s14101_s1  ;;  %s16661_s1 = sld [smem:[#allocation102_spill]] }
 0x615   : > { %v14455_v47 = vpop.permute.xlu1 %2869  ;;  %5039 = vrot.lane.b32.xlu0 %v5034_v17, %s16325_s12  ;;  %v5104_v53 = vmul.f32 %v14352_v42, %v16654_v20  ;;  %v5328_v55 = vstv %s14495_s26  ;;  %v16655_v17 = vstv %s16651_s13  ;;  %v2950_v5 = vmul.f32 %v16660_v34, %v16623_v13 }
 0x616   : > { %v4810_v12 = vadd.f32 %v4808_v49, %v4802_v57  ;;  %v2677_v24 = vadd.f32 %v14044_v23, %v2663_v2  ;;  %v2908_v1 = vmul.f32 %v16655_v17, %v16627_v28  ;;  %v16656_v49 = vld [vmem:[#allocation81_spill] sm:$0xff]  ;;  %v5329_v45 = vmul.f32 %v5328_v55, %v14298_v43 }
 0x617   : > { %2899 = vrot.lane.b32.xlu1 %v2894_v22, %s16329_s18  ;;  %v14465_v0 = vpop.permute.xlu0 %2841  ;;  %v16657_v22 = vld [vmem:[#allocation80_spill] sm:$0xff]  ;;  %v16664_v9 = vstv %s14169_s25  ;;  %v16668_v17 = vld [vmem:[#allocation109_spill] sm:$0xff]  ;;  %s14615_s25 = sld [smem:[#allocation7 + $0x2b]] }
 0x618   : > { %v14470_v19 = vadd.f32 %v4816_v27, %v4810_v12  ;;  %v2691_v44 = vadd.f32 %v16653_v32, %v2677_v24  ;;  %v16658_v12 = vstv %s14067_s7  ;;  %s14561_s7 = sld [smem:[#allocation7 + $0x5a]]  ;;  %s9458_s26 = sshll.u32 %s16762_s11, 5 }
 0x619   : > { %v14475_v50 = vpop.permute.xlu1 %2659  ;;  %5263 = vrot.lane.b32.xlu0 %v5259_v48, %s16329_s18  ;;  %v5090_v51 = vmul.f32 %v14384_v3, %v16658_v12  ;;  %v5314_v48 = vstv %s14516_s28  ;;  %v16670_v12 = vld [vmem:[#allocation93_spill] sm:$0xff] }
 0x61a   : > { %v2705_v57 = vadd.f32 %v16656_v49, %v2691_v44  ;;  %v5315_v2 = vmul.f32 %v5314_v48, %v14276_v38  ;;  %v16667_v20 = vstv %s16661_s1  ;;  %s16763_s1 = sld [smem:[#allocation172_spill]] }
 0x61b   : > { %5081 = vrot.lane.b32.xlu1 %v5076_v30, %s16329_s18  ;;  %v14483_v46 = vpop.permute.xlu0 %2855 }
 0x61c   : > { %v2719_v18 = vadd.f32 %v16657_v22, %v2705_v57  ;;  %v16669_v57 = vstv %s14201_s21  ;;  %v2808_v22 = vstv %s14552_s19  ;;  %s16674_s21 = sld [smem:[#allocation104_spill]]  ;;  %s16743_s19 = sld [smem:[#allocation170_spill]] }
 0x61d   : > { %v14489_v60 = vpop.permute.xlu1 %2883  ;;  %2885 = vrot.lane.b32.xlu0 %v2880_v63, %s16329_s18  ;;  %v16662_v63 = vld [vmem:[#allocation91_spill] sm:$0xff] }
 0x61e   : > { %v2733_v4 = vadd.f32 %v16659_v62, %v2719_v18  ;;  %v2650_v18 = vadd.f32 %v14433_v37, %v14448_v39  ;;  %v16673_v37 = vstv %s14230_s9  ;;  %s14632_s9 = sld [smem:[#allocation7 + $0x2c]] }
 0x61f   : > { %5305 = vrot.lane.b32.xlu1 %v5301_v29, %s16320_s4  ;;  %v14499_v41 = vpop.permute.xlu0 %5037  ;;  %v5160_v39 = vmul.f32 %v14352_v42, %v16673_v37  ;;  %v14650_v37 = vld [vmem:[#allocation3 + $0x6] sm:$0xff] }
 0x620   : > { %v2747_v25 = vadd.f32 %v16662_v63, %v2733_v4  ;;  %v16671_v4 = vstv %s16665_s17  ;;  %v5342_v63 = vstv %s14561_s7  ;;  %s480_s7 = scalar_lea.vmem %s16763_s1, %s9458_s26 }
 0x621   : > { %v2674_v16 = vpop.permute.xlu1 %2673  ;;  %5067 = vrot.lane.b32.xlu0 %v5062_v26, %s16329_s18  ;;  %v5118_v34 = vmul.f32 %v14384_v3, %v16671_v4 }
 0x622   : > { %v2761_v26 = vadd.f32 %v16663_v11, %v2747_v25  ;;  %v16672_v25 = vld [vmem:[#allocation85_spill] sm:$0xff] }
 0x623   : > { %2927 = vrot.lane.b32.xlu1 %v2922_v54, %s16319_s0  ;;  %v14511_v56 = vpop.permute.xlu0 %4827  ;;  %v5132_v54 = vmul.f32 %v14352_v42, %v16664_v9 }
 0x625   : > { %v14519_v23 = vpop.permute.xlu1 %2897  ;;  %5291 = vrot.lane.b32.xlu0 %v5287_v61, %s16319_s0  ;;  %v16666_v61 = vld [vmem:[#allocation92_spill] sm:$0xff] }
 0x626   : > { %v2775_v32 = vadd.f32 %v16666_v61, %v2761_v26  ;;  %v2816_v26 = vstv %s14568_s8 }
 0x627   : > { %5109 = vrot.lane.b32.xlu1 %v5104_v53, %s16319_s0  ;;  %v14527_v6 = vpop.permute.xlu0 %5051  ;;  %v2936_v53 = vmul.f32 %v16667_v20, %v16627_v28 }
 0x629   : > { %v2688_v52 = vpop.permute.xlu1 %2687  ;;  %2913 = vrot.lane.b32.xlu0 %v2908_v1, %s16319_s0  ;;  %v2789_v1 = vadd.f32 %v16668_v17, %v2775_v32  ;;  %v5343_v32 = vmul.f32 %v5342_v63, %v14276_v38 }
 0x62b   : > { %5333 = vrot.lane.b32.xlu1 %v5329_v45, %s16328_s10  ;;  %v14539_v27 = vpop.permute.xlu0 %4841  ;;  %v5146_v45 = vmul.f32 %v14384_v3, %v16669_v57  ;;  %v5386_v3 = vstv %s14570_s5 }
 0x62d   : > { %v14546_v30 = vpop.permute.xlu1 %2911  ;;  %5095 = vrot.lane.b32.xlu0 %v5090_v51, %s16319_s0  ;;  %v2803_v51 = vadd.f32 %v16670_v12, %v2789_v1 }
 0x62f   : > { %2955 = vrot.lane.b32.xlu1 %v2950_v5, %s16320_s4  ;;  %v14556_v29 = vpop.permute.xlu0 %5065  ;;  %v2664_v5 = vadd.f32 %v14475_v50, %v2650_v18 }
 0x631   : > { %v2702_v24 = vpop.permute.xlu1 %2701  ;;  %5319 = vrot.lane.b32.xlu0 %v5315_v2, %s16320_s4  ;;  %v2809_v2 = vmul.f32 %v2808_v22, %v16672_v25  ;;  %v2678_v9 = vadd.f32 %v2674_v16, %v2664_v5 }
 0x633   : > { %5137 = vrot.lane.b32.xlu1 %v5132_v54, %s16320_s4  ;;  %v14574_v44 = vpop.permute.xlu0 %4855  ;;  %v14606_v54 = vld [vmem:[#allocation4 + $0x6] sm:$0xff]  ;;  %v2811_v61 = vadd.f32 %v2809_v2, %v2803_v51  ;;  %v2692_v20 = vadd.f32 %v2688_v52, %v2678_v9 }
 0x634   : > { %v5387_v17 = vmul.f32 %v5386_v3, %v14606_v54 }
 0x635   : > { %v14580_v49 = vpop.permute.xlu1 %2925  ;;  %2941 = vrot.lane.b32.xlu0 %v2936_v53, %s16320_s4  ;;  %v16675_v53 = vld [vmem:[#allocation89_spill] sm:$0xff]  ;;  %v2706_v1 = vadd.f32 %v2702_v24, %v2692_v20  ;;  %v14636_v24 = vld [vmem:[#allocation3 + $0xd] sm:$0xff] }
 0x636   : > { %v2817_v42 = vmul.f32 %v2816_v26, %v16675_v53  ;;  %v5400_v53 = vstv %s14632_s9  ;;  %s10429_s9 = smov 32  }
 0x637   : > { %5151 = vrot.lane.b32.xlu1 %v5146_v45, %s16328_s10  ;;  %v14591_v62 = vpop.permute.xlu0 %5079  ;;  %v16676_v45 = vstv %s16674_s21  ;;  %s16746_s21 = sld [smem:[#allocation171_spill]] }
 0x638   : > { %v2819_v57 = vadd.f32 %v2817_v42, %v2811_v61  ;;  %v2964_v18 = vmul.f32 %v16676_v45, %v16627_v28 }
 0x639   : > { %v2716_v11 = vpop.permute.xlu1 %2715  ;;  %5123 = vrot.lane.b32.xlu0 %v5118_v34, %s16320_s4  ;;  %v5190_v34 = vmul.f32 %v14636_v24, %v5188_v15 }
 0x63a   : > { %v2720_v12 = vadd.f32 %v2716_v11, %v2706_v1  ;;  %v2833_v51 = vadd.f32 %v14370_v10, %v2819_v57  ;;  %v16677_v10 = vstv %s14159_s24  ;;  %s14669_s24 = sld [smem:[#allocation7 + $0x2d]]  ;;  %v5401_v1 = vmul.f32 %v5400_v53, %v14650_v37 }
 0x63b   : > { %5165 = vrot.lane.b32.xlu1 %v5160_v39, %s16328_s10  ;;  %v14610_v50 = vpop.permute.xlu0 %4869  ;;  %v2978_v11 = vmul.f32 %v16677_v10, %v16623_v13  ;;  %v5372_v39 = vstv %s14615_s25  ;;  %v5414_v57 = vstv %s14653_s30 }
 0x63c   : > { %v2847_v25 = vadd.f32 %v14465_v0, %v2833_v51  ;;  %v14657_v0 = vld [vmem:[#allocation4 + $0xd] sm:$0xff]  ;;  %v5373_v20 = vmul.f32 %v5372_v39, %v14650_v37  ;;  %v5415_v51 = vmul.f32 %v5414_v57, %v14606_v54 }
 0x63d   : > { %v14620_v16 = vpop.permute.xlu1 %2939  ;;  %5347 = vrot.lane.b32.xlu0 %v5343_v32, %s16328_s10  ;;  %v5204_v61 = vmul.f32 %v14657_v0, %v5202_v31  ;;  %v5218_v31 = vmul.f32 %v14636_v24, %v5216_v8  ;;  %s16747_s25 = smov %s16746_s21 }
 0x63e   : > { %v2861_v15 = vadd.f32 %v14483_v46, %v2847_v25 }
 0x63f   : > { %5391 = vrot.lane.b32.xlu1 %v5387_v17, %s16321_s6  ;;  %v14627_v52 = vpop.permute.xlu0 %5093 }
 0x640   : > { %v2875_v46 = vadd.f32 %v14455_v47, %v2861_v15 }
 0x641   : > { %v2730_v4 = vpop.permute.xlu1 %2729  ;;  %2969 = vrot.lane.b32.xlu0 %v2964_v18, %s16328_s10  ;;  %v5232_v18 = vmul.f32 %v14657_v0, %v5230_v35  ;;  %v5246_v35 = vmul.f32 %v14636_v24, %v5244_v14 }
 0x642   : > { %v14641_v5 = vadd.f32 %v2730_v4, %v2720_v12  ;;  %v2889_v47 = vadd.f32 %v14489_v60, %v2875_v46  ;;  %v5015_v4 = vadd.f32 %v14395_v36, %v14411_v58  ;;  %v5428_v60 = vstv %s14669_s24 }
 0x643   : > { %5195 = vrot.lane.b32.xlu1 %v5190_v34, %s16321_s6  ;;  %v14645_v2 = vpop.permute.xlu0 %4883  ;;  %v5429_v36 = vmul.f32 %v5428_v60, %v14650_v37 }
 0x644   : > { %v2903_v8 = vadd.f32 %v14519_v23, %v2889_v47  ;;  %v5029_v58 = vadd.f32 %v14417_v21, %v5015_v4 }
 0x645   : > { %v2954_v9 = vpop.permute.xlu1 %2953  ;;  %2983 = vrot.lane.b32.xlu0 %v2978_v11, %s16328_s10  ;;  %v5442_v11 = vstv %s14683_s2 }
 0x646   : > { %v2917_v34 = vadd.f32 %v14546_v30, %v2903_v8  ;;  %v4832_v30 = vadd.f32 %v14511_v56, %v14470_v19  ;;  %v5443_v56 = vmul.f32 %v5442_v11, %v14606_v54  ;;  %v5470_v8 = vstv %s14716_s15 }
 0x647   : > { %5209 = vrot.lane.b32.xlu1 %v5204_v61, %s16321_s6  ;;  %v14663_v32 = vpop.permute.xlu0 %5107  ;;  %v5043_v61 = vadd.f32 %v14499_v41, %v5029_v58 }
 0x648   : > { %v2931_v23 = vadd.f32 %v14580_v49, %v2917_v34  ;;  %v5260_v49 = vmul.f32 %v14657_v0, %v5258_v33  ;;  %v4846_v21 = vadd.f32 %v14539_v27, %v4832_v30  ;;  %v5274_v27 = vmul.f32 %v14636_v24, %v5272_v7 }
 0x649   : > { %v14672_v42 = vpop.permute.xlu1 %2743  ;;  %5377 = vrot.lane.b32.xlu0 %v5373_v20, %s16321_s6 }
 0x64a   : > { %v2945_v14 = vadd.f32 %v14620_v16, %v2931_v23  ;;  %v5057_v16 = vadd.f32 %v14527_v6, %v5043_v61  ;;  %v4860_v46 = vadd.f32 %v14574_v44, %v4846_v21  ;;  %v5484_v23 = vstv %s14732_s22 }
 0x64b   : > { %5223 = vrot.lane.b32.xlu1 %v5218_v31, %s16325_s12  ;;  %v4898_v17 = vpop.permute.xlu0 %4897  ;;  %v5456_v31 = vstv %s14698_s23 }
 0x64c   : > { %v2959_v20 = vadd.f32 %v2954_v9, %v2945_v14  ;;  %v5071_v9 = vadd.f32 %v14556_v29, %v5057_v16  ;;  %v5457_v44 = vmul.f32 %v5456_v31, %v14650_v37  ;;  %v5288_v29 = vmul.f32 %v14657_v0, %v5286_v40 }
 0x64d   : > { %v2968_v45 = vpop.permute.xlu1 %2967  ;;  %5405 = vrot.lane.b32.xlu0 %v5401_v1, %s16325_s12  ;;  %v4874_v1 = vadd.f32 %v14610_v50, %v4860_v46  ;;  %v5498_v14 = vstv %s14747_s16  ;;  %v16680_v16 = vstv %s16678_s3 }
 0x64e   : > { %v2973_v33 = vadd.f32 %v2968_v45, %v2959_v20  ;;  %v5085_v45 = vadd.f32 %v14591_v62, %v5071_v9  ;;  %v5499_v21 = vmul.f32 %v5498_v14, %v14606_v54  ;;  %v5512_v20 = vstv %s14758_s27 }
 0x64f   : > { %5237 = vrot.lane.b32.xlu1 %v5232_v18, %s16325_s12  ;;  %v5122_v12 = vpop.permute.xlu0 %5121  ;;  %v4888_v18 = vadd.f32 %v14645_v2, %v4874_v1  ;;  %v5471_v2 = vmul.f32 %v5470_v8, %v14606_v54  ;;  %v5175_v46 = vmul.f32 %v16680_v16, %v14298_v43  ;;  %v5513_v43 = vmul.f32 %v5512_v20, %v14650_v37 }
 0x650   : > { %v5099_v50 = vadd.f32 %v14627_v52, %v5085_v45  ;;  %v5302_v52 = vmul.f32 %v14636_v24, %v5300_v59  ;;  %v5316_v59 = vmul.f32 %v14657_v0, %v5314_v48  ;;  %v16682_v45 = vld [vmem:[#allocation135_spill] sm:$0xff] }
 0x651   : > { %v14701_v25 = vpop.permute.xlu1 %2757  ;;  %5419 = vrot.lane.b32.xlu0 %v5415_v51, %s16325_s12  ;;  %v4902_v51 = vadd.f32 %v4898_v17, %v4888_v18 }
 0x652   : > { %v5113_v34 = vadd.f32 %v14663_v32, %v5099_v50  ;;  %v5485_v32 = vmul.f32 %v5484_v23, %v14650_v37 }
 0x653   : > { %5251 = vrot.lane.b32.xlu1 %v5246_v35, %s16329_s18  ;;  %v4912_v10 = vpop.permute.xlu0 %4911 }
 0x654   : > { %v4916_v35 = vadd.f32 %v4912_v10, %v4902_v51  ;;  %v5127_v17 = vadd.f32 %v5122_v12, %v5113_v34  ;;  %v16683_v51 = vld [vmem:[#allocation136_spill] sm:$0xff]  ;;  %v2810_v34 = vmul.f32 %v2808_v22, %v16627_v28  ;;  %v5330_v28 = vmul.f32 %v14636_v24, %v5328_v55 }
 0x655   : > { %v2982_v15 = vpop.permute.xlu1 %2981  ;;  %5433 = vrot.lane.b32.xlu0 %v5429_v36, %s16329_s18 }
 0x656   : > { %v2987_v47 = vadd.f32 %v2982_v15, %v2973_v33 }
 0x657   : > { %5265 = vrot.lane.b32.xlu1 %v5260_v49, %s16329_s18  ;;  %v5136_v19 = vpop.permute.xlu0 %5135 }
 0x658   : > { %v9107_v4 = vmul.f32 -1.442695, %v2987_v47  ;;  %v5141_v10 = vadd.f32 %v5136_v19, %v5127_v17  ;;  %v2748_v19 = vadd.f32 %v14672_v42, %v14641_v5  ;;  %v16681_v5 = vstv %s16679_s20 }
 0x659   : > { %v2772_v41 = vpop.permute.xlu1 %2771  ;;  %5447 = vrot.lane.b32.xlu0 %v5443_v56, %s16329_s18  ;;  %v5183_v42 = vmul.f32 %v16681_v5, %v14276_v38  ;;  %v10367_v38 = vld [vmem:[#allocation4 + $0xe] sm:$0xff]  ;;  %v2818_v17 = vmul.f32 %v2816_v26, %v16623_v13  ;;  %v10368_v26 = vld [vmem:[#allocation3 + $0xe] sm:$0xff] }
 0x65a   : > { %10347 = vpow2.f32 %v9107_v4  ;;  %v2762_v9 = vadd.f32 %v14701_v25, %v2748_v19  ;;  %v5472_v55 = vmul.f32 %v10367_v38, %v5470_v8  ;;  %v5458_v19 = vmul.f32 %v10368_v26, %v5456_v31 }
 0x65b   : > { %5279 = vrot.lane.b32.xlu1 %v5274_v27, %s16319_s0  ;;  %v4926_v6 = vpop.permute.xlu0 %4925  ;;  %v5344_v27 = vmul.f32 %v14657_v0, %v5342_v63 }
 0x65c   : > { %v4930_v36 = vadd.f32 %v4926_v6, %v4916_v35 }
 0x65d   : > { %v4954_v7 = vpop.permute.xlu1 %4953  ;;  %5461 = vrot.lane.b32.xlu0 %v5457_v44, %s16319_s0  ;;  %v2776_v44 = vadd.f32 %v2772_v41, %v2762_v9 }
 0x65f   : > { %5293 = vrot.lane.b32.xlu1 %v5288_v29, %s16319_s0  ;;  %v5150_v62 = vpop.permute.xlu0 %5149  ;;  %v5388_v29 = vmul.f32 %v10367_v38, %v5386_v3  ;;  %v5416_v3 = vmul.f32 %v10367_v38, %v5414_v57  ;;  %v5444_v57 = vmul.f32 %v10367_v38, %v5442_v11 }
 0x660   : > { %v5155_v12 = vadd.f32 %v5150_v62, %v5141_v10 }
 0x661   : > { %v4968_v40 = vpop.permute.xlu1 %4967  ;;  %5475 = vrot.lane.b32.xlu0 %v5471_v2, %s16319_s0 }
 0x663   : > { %5307 = vrot.lane.b32.xlu1 %v5302_v52, %s16320_s4  ;;  %v4940_v58 = vpop.permute.xlu0 %4939 }
 0x664   : > { %v4944_v30 = vadd.f32 %v4940_v58, %v4930_v36  ;;  %v10348_v0 = vpop.eup %10347 }
 0x665   : > { %v4982_v15 = vpop.permute.xlu1 %4981  ;;  %5489 = vrot.lane.b32.xlu0 %v5485_v32, %s16320_s4  ;;  %v2995_v2 = vadd.f32 1.0, %v10348_v0  ;;  %v5374_v32 = vmul.f32 %v10368_v26, %v5372_v39 }
 0x666   : > { %v4958_v49 = vadd.f32 %v4954_v7, %v4944_v30  ;;  %v5526_v7 = vstv %s14771_s14  ;;  %v5402_v30 = vmul.f32 %v10368_v26, %v5400_v53 }
 0x667   : > { %5321 = vrot.lane.b32.xlu1 %v5316_v59, %s16320_s4  ;;  %v5164_v61 = vpop.permute.xlu0 %5163  ;;  %v5527_v62 = vmul.f32 %v5526_v7, %v14606_v54  ;;  %10349 = vrcp.f32 %v2995_v2  ;;  %v16684_v59 = vld [vmem:[#allocation72_spill] sm:$0xff] }
 0x668   : > { %v4972_v56 = vadd.f32 %v4968_v40, %v4958_v49  ;;  %v5169_v48 = vadd.f32 %v5164_v61, %v5155_v12  ;;  %v14854_v39 = vsub.s32 0, %v16684_v59  ;;  %v5430_v49 = vmul.f32 %v10368_v26, %v5428_v60 }
 0x669   : > { %v14787_v33 = vpop.permute.xlu1 %5207  ;;  %5503 = vrot.lane.b32.xlu0 %v5499_v21, %s16320_s4  ;;  %v14865_v21 = vsub.s32 1, %v16684_v59  ;;  %v14878_v9 = vsub.s32 2, %v16684_v59  ;;  %v14884_v5 = vsub.s32 3, %v16684_v59  ;;  %v14908_v2 = vsub.s32 6, %v16684_v59 }
 0x66a   : > { %v4986_v1 = vadd.f32 %v4982_v15, %v4972_v56  ;;  %v5177_v47 = vadd.f32 %v5175_v46, %v5169_v48  ;;  %v5500_v15 = vmul.f32 %v10367_v38, %v5498_v14  ;;  %v5486_v46 = vmul.f32 %v10368_v26, %v5484_v23 }
 0x66b   : > { %5349 = vrot.lane.b32.xlu1 %v5344_v27, %s16328_s10  ;;  %v2786_v6 = vpop.permute.xlu0 %2785  ;;  %v5528_v27 = vmul.f32 %v10367_v38, %v5526_v7  ;;  %v14900_v38 = vsub.s32 5, %v16684_v59 }
 0x66c   : > { %v4994_v18 = vadd.f32 %v16682_v45, %v4986_v1  ;;  %v14803_v63 = vadd.f32 %v5183_v42, %v5177_v47  ;;  %v2790_v50 = vadd.f32 %v2786_v6, %v2776_v44  ;;  %v5514_v6 = vmul.f32 %v10368_v26, %v5512_v20 }
 0x66d   : > { %v14805_v25 = vpop.permute.xlu1 %5221  ;;  %5517 = vrot.lane.b32.xlu0 %v5513_v43, %s16328_s10  ;;  %v14893_v45 = vsub.s32 4, %v16684_v59 }
 0x66e   : > { %v14811_v4 = vadd.f32 %v16683_v51, %v4994_v18 }
 0x66f   : > { %5393 = vrot.lane.b32.xlu1 %v5388_v29, %s16321_s6  ;;  %v2800_v41 = vpop.permute.xlu0 %2799 }
 0x670   : > { %v2804_v35 = vadd.f32 %v2800_v41, %v2790_v50 }
 0x671   : > { %v14818_v40 = vpop.permute.xlu1 %2843  ;;  %5531 = vrot.lane.b32.xlu0 %v5527_v62, %s16328_s10  ;;  %v14856_v12 = vpop.eup %10349 }
 0x672   : > { %v2812_v52 = vadd.f32 %v2810_v34, %v2804_v35  ;;  %v3004_v53 = vrot.slane %v14856_v12, %v14854_v39  ;;  %v3015_v16 = vrot.slane %v14856_v12, %v14865_v21  ;;  %v3026_v47 = vrot.slane %v14856_v12, %v14878_v9 }
 0x673   : > { %5421 = vrot.lane.b32.xlu1 %v5416_v3, %s16325_s12  ;;  %v5194_v36 = vpop.permute.xlu0 %5193  ;;  %v3037_v44 = vrot.slane %v14856_v12, %v14884_v5  ;;  %v3048_v20 = vrot.slane %v14856_v12, %v14893_v45 }
 0x674   : > { %v14830_v22 = vadd.f32 %v2818_v17, %v2812_v52  ;;  %v5199_v23 = vadd.f32 %v5194_v36, %v14803_v63  ;;  %v3070_v17 = vrot.slane %v14856_v12, %v14908_v2  ;;  %v14915_v36 = vsub.s32 7, %v16684_v59 }
 0x675   : > { %v14832_v58 = vpop.permute.xlu1 %5025  ;;  %5335 = vrot.lane.b32.xlu0 %v5330_v28, %s16328_s10 }
 0x676   : > { %v5213_v18 = vadd.f32 %v14787_v33, %v5199_v23 }
 0x677   : > { %5449 = vrot.lane.b32.xlu1 %v5444_v57, %s16329_s18  ;;  %v2830_v13 = vpop.permute.xlu0 %2829 }
 0x678   : > { %v5227_v29 = vadd.f32 %v14805_v25, %v5213_v18  ;;  %v2834_v51 = vadd.f32 %v2830_v13, %v14830_v22 }
 0x679   : > { %v14840_v10 = vpop.permute.xlu1 %5249  ;;  %5379 = vrot.lane.b32.xlu0 %v5374_v32, %s16321_s6 }
 0x67a   : > { %v2848_v25 = vadd.f32 %v14818_v40, %v2834_v51  ;;  %v3081_v40 = vrot.slane %v14856_v12, %v14915_v36 }
 0x67b   : > { %5477 = vrot.lane.b32.xlu1 %v5472_v55, %s16319_s0  ;;  %v5012_v24 = vpop.permute.xlu0 %5011 }
 0x67c   : > { %v5016_v0 = vadd.f32 %v5012_v24, %v14811_v4  ;;  %v3059_v4 = vrot.slane %v14856_v12, %v14900_v38 }
 0x67d   : > { %v14848_v11 = vpop.permute.xlu1 %2871  ;;  %5407 = vrot.lane.b32.xlu0 %v5402_v30, %s16325_s12  ;;  %s16693_s12 = sld [smem:[#allocation169_spill]] }
 0x67e   : > { %v5030_v33 = vadd.f32 %v14832_v58, %v5016_v0 }
 0x67f   : > { %5505 = vrot.lane.b32.xlu1 %v5500_v15, %s16320_s4  ;;  %v5236_v8 = vpop.permute.xlu0 %5235 }
 0x680   : > { %v5241_v41 = vadd.f32 %v5236_v8, %v5227_v29  ;;  %v16689_v29 = vld [vmem:[#allocation137_spill] sm:$0xff] }
 0x681   : > { %v5054_v61 = vpop.permute.xlu1 %5053  ;;  %5435 = vrot.lane.b32.xlu0 %v5430_v49, %s16329_s18 }
 0x682   : > { %v5255_v3 = vadd.f32 %v14840_v10, %v5241_v41 }
 0x683   : > { %3010 = vbcast.lane.b32.xlu1 %v3004_v53, 264  ;;  %v2858_v14 = vpop.permute.xlu0 %2857 }
 0x684   : > { %v2862_v28 = vadd.f32 %v2858_v14, %v2848_v25 }
 0x685   : > { %v5278_v56 = vpop.permute.xlu1 %5277  ;;  %5463 = vrot.lane.b32.xlu0 %v5458_v19, %s16319_s0  ;;  %s16685_s0 = sld [smem:[#allocation132_spill]] }
 0x686   : > { %v2876_v32 = vadd.f32 %v14848_v11, %v2862_v28 }
 0x687   : > { %3017 = vbcast.lane.b32.xlu1 %v3015_v16, 256  ;;  %v5040_v60 = vpop.permute.xlu0 %5039 }
 0x688   : > { %v5044_v34 = vadd.f32 %v5040_v60, %v5030_v33 }
 0x689   : > { %v14874_v48 = vpop.permute.xlu1 %2899  ;;  %5491 = vrot.lane.b32.xlu0 %v5486_v46, %s16320_s4  ;;  %s16686_s4 = sld [smem:[#allocation134_spill]] }
 0x68a   : > { %v5058_v58 = vadd.f32 %v5054_v61, %v5044_v34 }
 0x68b   : > { %5533 = vrot.lane.b32.xlu1 %v5528_v27, %s16328_s10  ;;  %v5264_v31 = vpop.permute.xlu0 %5263 }
 0x68c   : > { %v5269_v22 = vadd.f32 %v5264_v31, %v5255_v3 }
 0x68d   : > { %v5082_v1 = vpop.permute.xlu1 %5081  ;;  %3006 = vbcast.lane.b32.xlu0 %v3004_v53, 256 }
 0x68e   : > { %v5283_v10 = vadd.f32 %v5278_v56, %v5269_v22 }
 0x68f   : > { %3032 = vbcast.lane.b32.xlu1 %v3026_v47, 264  ;;  %v2886_v42 = vpop.permute.xlu0 %2885 }
 0x690   : > { %v2890_v24 = vadd.f32 %v2886_v42, %v2876_v32 }
 0x691   : > { %v5306_v43 = vpop.permute.xlu1 %5305  ;;  %5519 = vrot.lane.b32.xlu0 %v5514_v6, %s16328_s10 }
 0x692   : > { %v2904_v61 = vadd.f32 %v14874_v48, %v2890_v24  ;;  %v16687_v48 = vstv %s16685_s0 }
 0x693   : > { %3043 = vbcast.lane.b32.xlu1 %v3037_v44, 264  ;;  %v5068_v7 = vpop.permute.xlu0 %5067  ;;  %v5359_v42 = vmul.f32 %v16687_v48, %v14650_v37 }
 0x694   : > { %v5072_v13 = vadd.f32 %v5068_v7, %v5058_v58  ;;  %v16688_v7 = vstv %s16686_s4 }
 0x695   : > { %v2928_v63 = vpop.permute.xlu1 %2927  ;;  %3021 = vbcast.lane.b32.xlu0 %v3015_v16, 264  ;;  %v5367_v0 = vmul.f32 %v16688_v7, %v14606_v54 }
 0x696   : > { %v5086_v15 = vadd.f32 %v5082_v1, %v5072_v13 }
 0x697   : > { %3054 = vbcast.lane.b32.xlu1 %v3048_v20, 264  ;;  %v5292_v50 = vpop.permute.xlu0 %5291 }
 0x698   : > { %v5297_v30 = vadd.f32 %v5292_v50, %v5283_v10 }
 0x699   : > { %v5110_v62 = vpop.permute.xlu1 %5109  ;;  %3028 = vbcast.lane.b32.xlu0 %v3026_v47, 256 }
 0x69a   : > { %v5311_v53 = vadd.f32 %v5306_v43, %v5297_v30 }
 0x69b   : > { %3065 = vbcast.lane.b32.xlu1 %v3059_v4, 264  ;;  %v2914_v35 = vpop.permute.xlu0 %2913 }
 0x69c   : > { %v2918_v19 = vadd.f32 %v2914_v35, %v2904_v61 }
 0x69d   : > { %v5334_v52 = vpop.permute.xlu1 %5333  ;;  %3039 = vbcast.lane.b32.xlu0 %v3037_v44, 256 }
 0x69e   : > { %v2932_v46 = vadd.f32 %v2928_v63, %v2918_v19 }
 0x69f   : > { %3076 = vbcast.lane.b32.xlu1 %v3070_v17, 264  ;;  %v5096_v57 = vpop.permute.xlu0 %5095 }
 0x6a0   : > { %v5100_v8 = vadd.f32 %v5096_v57, %v5086_v15 }
 0x6a1   : > { %v2956_v26 = vpop.permute.xlu1 %2955  ;;  %3050 = vbcast.lane.b32.xlu0 %v3048_v20, 256 }
 0x6a2   : > { %v5114_v16 = vadd.f32 %v5110_v62, %v5100_v8  ;;  %v16690_v62 = vld [vmem:[#allocation138_spill] sm:$0xff] }
 0x6a3   : > { %3087 = vbcast.lane.b32.xlu1 %v3081_v40, 264  ;;  %v5320_v55 = vpop.permute.xlu0 %5319 }
 0x6a4   : > { %v5325_v12 = vadd.f32 %v5320_v55, %v5311_v53 }
 0x6a5   : > { %v5138_v59 = vpop.permute.xlu1 %5137  ;;  %3061 = vbcast.lane.b32.xlu0 %v3059_v4, 256 }
 0x6a6   : > { %v5339_v31 = vadd.f32 %v5334_v52, %v5325_v12 }
 0x6a7   : > { %v2942_v49 = vpop.permute.xlu0 %2941 }
 0x6a8   : > { %v2946_v47 = vadd.f32 %v2942_v49, %v2932_v46 }
 0x6a9   : > { %v5152_v14 = vpop.permute.xlu1 %5151  ;;  %3072 = vbcast.lane.b32.xlu0 %v3070_v17, 256 }
 0x6aa   : > { %v2960_v51 = vadd.f32 %v2956_v26, %v2946_v47 }
 0x6ab   : > { %v5124_v11 = vpop.permute.xlu0 %5123 }
 0x6ac   : > { %v5128_v56 = vadd.f32 %v5124_v11, %v5114_v16 }
 0x6ad   : > { %v5166_v60 = vpop.permute.xlu1 %5165  ;;  %3083 = vbcast.lane.b32.xlu0 %v3081_v40, 256 }
 0x6ae   : > { %v5142_v27 = vadd.f32 %v5138_v59, %v5128_v56 }
 0x6af   : > { %v5348_v1 = vpop.permute.xlu0 %5347 }
 0x6b0   : > { %v5156_v23 = vadd.f32 %v5152_v14, %v5142_v27  ;;  %v5353_v6 = vadd.f32 %v5348_v1, %v5339_v31 }
 0x6b1   : > { %v5392_v43 = vpop.permute.xlu1 %5391 }
 0x6b2   : > { %v5170_v44 = vadd.f32 %v5166_v60, %v5156_v23  ;;  %v5361_v18 = vadd.f32 %v5359_v42, %v5353_v6 }
 0x6b3   : > { %v2970_v20 = vpop.permute.xlu0 %2969 }
 0x6b4   : > { %v5178_v50 = vadd.f32 %v16689_v29, %v5170_v44  ;;  %v5369_v63 = vadd.f32 %v5367_v0, %v5361_v18  ;;  %v2974_v33 = vadd.f32 %v2970_v20, %v2960_v51 }
 0x6b5   : > { %v5196_v41 = vpop.permute.xlu1 %5195 }
 0x6b6   : > { %v5186_v4 = vadd.f32 %v16690_v62, %v5178_v50 }
 0x6b7   : > { %v2984_v34 = vpop.permute.xlu0 %2983 }
 0x6b8   : > { %v2988_v35 = vadd.f32 %v2984_v34, %v2974_v33  ;;  %v5200_v15 = vadd.f32 %v5196_v41, %v5186_v4 }
 0x6b9   : > { %v5210_v25 = vpop.permute.xlu1 %5209 }
 0x6ba   : > { %v9108_v37 = vmul.f32 -1.442695, %v2988_v35  ;;  %v5214_v19 = vadd.f32 %v5210_v25, %v5200_v15 }
 0x6bb   : > { %v5378_v3 = vpop.permute.xlu0 %5377 }
 0x6bc   : > { %10351 = vpow2.f32 %v9108_v37  ;;  %v5383_v40 = vadd.f32 %v5378_v3, %v5369_v63 }
 0x6bd   : > { %v5224_v52 = vpop.permute.xlu1 %5223 }
 0x6be   : > { %v5397_v55 = vadd.f32 %v5392_v43, %v5383_v40  ;;  %v5228_v11 = vadd.f32 %v5224_v52, %v5214_v19  ;;  %v16694_v19 = vmov 0.0  }
 0x6bf   : > { %v5406_v17 = vpop.permute.xlu0 %5405  ;;  %488 = vst.msk [vmem:[#allocation2 + $0x20] sm:$0xff] %vm482_vm13, %v16694_v19  ;;  %483 = vst.msk [vmem:[#allocation2] sm:$0xff] %vm482_vm13, %v16694_v19 }
 0x6c0   : > { %v5411_v59 = vadd.f32 %v5406_v17, %v5397_v55  ;;  %v16691_v17 = vld [vmem:[#allocation139_spill] sm:$0xff]  ;;  %489 = vst.msk [vmem:[#allocation2 + $0x28] sm:$0x3] %vm485_vm14, %v16694_v19  ;;  %486 = vst.msk [vmem:[#allocation2 + $0x10] sm:$0x3] %vm485_vm14, %v16694_v19 }
 0x6c1   : > { %v5238_v28 = vpop.permute.xlu1 %5237  ;;  %484 = vst.msk [vmem:[#allocation2 + $0x8] sm:$0xff] %vm482_vm13, %v16694_v19  ;;  %487 = vst.msk [vmem:[#allocation2 + $0x18] sm:$0xff] %vm482_vm13, %v16694_v19 }
 0x6c2   : > { %v5242_v27 = vadd.f32 %v5238_v28, %v5228_v11  ;;  %490 = vst.msk [vmem:[#allocation2 + $0x30] sm:$0xff] %vm482_vm13, %v16694_v19  ;;  %491 = vst.msk [vmem:[#allocation2 + $0x38] sm:$0xff] %vm482_vm13, %v16694_v19 }
 0x6c3   : > { %v5420_v22 = vpop.permute.xlu0 %5419  ;;  %492 = vst.msk [vmem:[#allocation2 + $0x40] sm:$0x3] %vm485_vm14, %v16694_v19  ;;  %495 = vst.msk [vmem:[#allocation2 + $0x58] sm:$0x3] %vm485_vm14, %v16694_v19 }
 0x6c4   : > { %v5425_v61 = vadd.f32 %v5420_v22, %v5411_v59  ;;  %v10304_v59 = vld [vmem:[%s16693_s12 + $0x28] sm:$0xff]   ;;  %493 = vst.msk [vmem:[#allocation2 + $0x48] sm:$0xff] %vm482_vm13, %v16694_v19  ;;  %494 = vst.msk [vmem:[#allocation2 + $0x50] sm:$0xff] %vm482_vm13, %v16694_v19 }
 0x6c5   : > { %v5252_v54 = vpop.permute.xlu1 %5251  ;;  %496 = vst.msk [vmem:[#allocation2 + $0x60] sm:$0xff] %vm482_vm13, %v16694_v19  ;;  %497 = vst.msk [vmem:[#allocation2 + $0x68] sm:$0xff] %vm482_vm13, %v16694_v19 }
 0x6c6   : > { %v10352_v58 = vpop.eup %10351  ;;  %v5256_v47 = vadd.f32 %v5252_v54, %v5242_v27  ;;  %v16692_v54 = vld [vmem:[#allocation140_spill] sm:$0xff]  ;;  %498 = vst.msk [vmem:[#allocation2 + $0x70] sm:$0x3] %vm485_vm14, %v16694_v19  ;;  %501 = vst.msk [vmem:[#allocation2 + $0x88] sm:$0x3] %vm485_vm14, %v16694_v19 }
 0x6c7   : > { %v2996_v57 = vadd.f32 1.0, %v10352_v58  ;;  %v5434_v13 = vpop.permute.xlu0 %5433  ;;  %499 = vst.msk [vmem:[#allocation2 + $0x78] sm:$0xff] %vm482_vm13, %v16694_v19  ;;  %500 = vst.msk [vmem:[#allocation2 + $0x80] sm:$0xff] %vm482_vm13, %v16694_v19 }
 0x6c8   : > { %v5439_v12 = vadd.f32 %v5434_v13, %v5425_v61  ;;  %502 = vst.msk [vmem:[#allocation2 + $0x90] sm:$0xff] %vm482_vm13, %v16694_v19  ;;  %503 = vst.msk [vmem:[#allocation2 + $0x98] sm:$0xff] %vm482_vm13, %v16694_v19 }
 0x6c9   : > { %10353 = vrcp.f32 %v2996_v57  ;;  %v5266_v26 = vpop.permute.xlu1 %5265  ;;  %504 = vst.msk [vmem:[#allocation2 + $0xa0] sm:$0x3] %vm485_vm14, %v16694_v19  ;;  %507 = vst.msk [vmem:[#allocation2 + $0xb8] sm:$0x3] %vm485_vm14, %v16694_v19 }
 0x6ca   : > { %v5270_v6 = vadd.f32 %v5266_v26, %v5256_v47  ;;  %505 = vst.msk [vmem:[#allocation2 + $0xa8] sm:$0xff] %vm482_vm13, %v16694_v19  ;;  %506 = vst.msk [vmem:[#allocation2 + $0xb0] sm:$0xff] %vm482_vm13, %v16694_v19 }
 0x6cb   : > { %v5448_v32 = vpop.permute.xlu0 %5447  ;;  %508 = vst.msk [vmem:[#allocation2 + $0xc0] sm:$0xff] %vm482_vm13, %v16694_v19  ;;  %509 = vst.msk [vmem:[#allocation2 + $0xc8] sm:$0xff] %vm482_vm13, %v16694_v19 }
 0x6cc   : > { %v5453_v56 = vadd.f32 %v5448_v32, %v5439_v12  ;;  %510 = vst.msk [vmem:[#allocation2 + $0xd0] sm:$0x3] %vm485_vm14, %v16694_v19  ;;  %513 = vst.msk [vmem:[#allocation2 + $0xe8] sm:$0x3] %vm485_vm14, %v16694_v19  ;;  %v10306_v12 = vld [vmem:[%s16693_s12 + $0x30] sm:$0xff]  }
 0x6cd   : > { %v5280_v10 = vpop.permute.xlu1 %5279  ;;  %511 = vst.msk [vmem:[#allocation2 + $0xd8] sm:$0xff] %vm482_vm13, %v16694_v19  ;;  %512 = vst.msk [vmem:[#allocation2 + $0xe0] sm:$0xff] %vm482_vm13, %v16694_v19 }
 0x6ce   : > { %v5284_v18 = vadd.f32 %v5280_v10, %v5270_v6  ;;  %514 = vst.msk [vmem:[#allocation2 + $0xf0] sm:$0xff] %vm482_vm13, %v16694_v19  ;;  %515 = vst.msk [vmem:[#allocation2 + $0xf8] sm:$0xff] %vm482_vm13, %v16694_v19 }
 0x6cf   : > { %v5462_v24 = vpop.permute.xlu0 %5461  ;;  %516 = vst.msk [vmem:[#allocation2 + $0x100] sm:$0x3] %vm485_vm14, %v16694_v19  ;;  %519 = vst.msk [vmem:[#allocation2 + $0x118] sm:$0x3] %vm485_vm14, %v16694_v19 }
 0x6d0   : > { %v5467_v31 = vadd.f32 %v5462_v24, %v5453_v56  ;;  %v10303_v24 = vld [vmem:[%s16693_s12 + $0x20] sm:$0xff]   ;;  %517 = vst.msk [vmem:[#allocation2 + $0x108] sm:$0xff] %vm482_vm13, %v16694_v19  ;;  %518 = vst.msk [vmem:[#allocation2 + $0x110] sm:$0xff] %vm482_vm13, %v16694_v19 }
 0x6d1   : > { %v5294_v30 = vpop.permute.xlu1 %5293  ;;  %9639 = vmatprep.subr.bf16.mxu1 %v10303_v24  ;;  %520 = vst.msk [vmem:[#allocation2 + $0x120] sm:$0xff] %vm482_vm13, %v16694_v19  ;;  %521 = vst.msk [vmem:[#allocation2 + $0x128] sm:$0xff] %vm482_vm13, %v16694_v19 }
 0x6d2   : > { %v5298_v20 = vadd.f32 %v5294_v30, %v5284_v18  ;;  %9640 = vmatpush3.bf16.msra.mxu1 %v10303_v24  ;;  %522 = vst.msk [vmem:[#allocation2 + $0x130] sm:$0x3] %vm485_vm14, %v16694_v19  ;;  %525 = vst.msk [vmem:[#allocation2 + $0x148] sm:$0x3] %vm485_vm14, %v16694_v19  ;;  %v10310_v18 = vld [vmem:[%s16693_s12 + $0x98] sm:$0xff]  }
 0x6d3   : > { %v14929_v8 = vpop.eup %10353  ;;  %v5476_v49 = vpop.permute.xlu0 %5475  ;;  %9641 = vmatprep.subr.bf16.mxu1 %v10304_v59  ;;  %523 = vst.msk [vmem:[#allocation2 + $0x138] sm:$0xff] %vm482_vm13, %v16694_v19  ;;  %524 = vst.msk [vmem:[#allocation2 + $0x140] sm:$0xff] %vm482_vm13, %v16694_v19 }
 0x6d4   : > { %v3092_v53 = vrot.slane %v14929_v8, %v14854_v39  ;;  %v3103_v60 = vrot.slane %v14929_v8, %v14865_v21  ;;  %v5481_v23 = vadd.f32 %v5476_v49, %v5467_v31  ;;  %v3114_v48 = vrot.slane %v14929_v8, %v14878_v9  ;;  %v10305_v49 = vld [vmem:[%s16693_s12 + $0x80] sm:$0xff]   ;;  %526 = vst.msk [vmem:[#allocation2 + $0x150] sm:$0xff] %vm482_vm13, %v16694_v19  ;;  %v10308_v31 = vld [vmem:[%s16693_s12 + $0x38] sm:$0xff]  }
 0x6d5   : > { %v5308_v14 = vpop.permute.xlu1 %5307  ;;  %v3125_v0 = vrot.slane %v14929_v8, %v14884_v5  ;;  %v3136_v33 = vrot.slane %v14929_v8, %v14893_v45  ;;  %v3147_v25 = vrot.slane %v14929_v8, %v14900_v38  ;;  %v3158_v22 = vrot.slane %v14929_v8, %v14908_v2  ;;  %9799 = vmatprep.subr.bf16.mxu0 %v10305_v49 }
 0x6d6   : > { %3098 = vbcast.lane.b32.xlu1 %v3092_v53, 264  ;;  %3094 = vbcast.lane.b32.xlu0 %v3092_v53, 256  ;;  %v5312_v63 = vadd.f32 %v5308_v14, %v5298_v20  ;;  %527 = vst.msk [vmem:[#allocation2 + $0x158] sm:$0xff] %vm482_vm13, %v16694_v19  ;;  %529 = vst.msk [vmem:[#allocation2 + $0x168] sm:$0xff] %vm482_vm13, %v16694_v19  ;;  %v16696_v20 = vld [vmem:[#allocation13_spill] sm:$0xff] }
 0x6d7   : > { %v5490_v16 = vpop.permute.xlu0 %5489  ;;  %9642 = vmatpush3.bf16.msra.mxu1 %v10304_v59  ;;  %9800 = vmatpush3.bf16.msra.mxu0 %v10305_v49  ;;  %528 = vst.msk [vmem:[#allocation2 + $0x160] sm:$0x3] %vm485_vm14, %v16694_v19  ;;  %531 = vst.msk [vmem:[#allocation2 + $0x178] sm:$0x3] %vm485_vm14, %v16694_v19 }
 0x6d8   : > { %v5495_v43 = vadd.f32 %v5490_v16, %v5481_v23  ;;  %530 = vst.msk [vmem:[#allocation2 + $0x170] sm:$0xff] %vm482_vm13, %v16694_v19  ;;  %532 = vst.msk [vmem:[#allocation2 + $0x180] sm:$0xff] %vm482_vm13, %v16694_v19  ;;  %v10307_v16 = vld [vmem:[%s16693_s12 + $0x88] sm:$0xff]   ;;  %9643 = vmatprep.subr.bf16.mxu1 %v10306_v12 }
 0x6d9   : > { %v5322_v46 = vpop.permute.xlu1 %5321  ;;  %533 = vst.msk [vmem:[#allocation2 + $0x188] sm:$0xff] %vm482_vm13, %v16694_v19  ;;  %535 = vst.msk [vmem:[#allocation2 + $0x198] sm:$0xff] %vm482_vm13, %v16694_v19  ;;  %9801 = vmatprep.subr.bf16.mxu0 %v10307_v16 }
 0x6da   : > { %3109 = vbcast.lane.b32.xlu1 %v3103_v60, 264  ;;  %3105 = vbcast.lane.b32.xlu0 %v3103_v60, 256  ;;  %v5326_v62 = vadd.f32 %v5322_v46, %v5312_v63  ;;  %534 = vst.msk [vmem:[#allocation2 + $0x190] sm:$0x3] %vm485_vm14, %v16694_v19  ;;  %537 = vst.msk [vmem:[#allocation2 + $0x1a8] sm:$0x3] %vm485_vm14, %v16694_v19 }
 0x6db   : > { %v5504_v1 = vpop.permute.xlu0 %5503  ;;  %536 = vst.msk [vmem:[#allocation2 + $0x1a0] sm:$0xff] %vm482_vm13, %v16694_v19  ;;  %9644 = vmatpush3.bf16.msra.mxu1 %v10306_v12  ;;  %9802 = vmatpush3.bf16.msra.mxu0 %v10307_v16  ;;  %v16704_v12 = vld [vmem:[#allocation21_spill] sm:$0xff] }
 0x6dc   : > { %v5509_v7 = vadd.f32 %v5504_v1, %v5495_v43  ;;  %v10309_v1 = vld [vmem:[%s16693_s12 + $0x90] sm:$0xff]   ;;  %9645 = vmatprep.subr.bf16.mxu1 %v10308_v31  ;;  %v6009_v43 = vld [vmem:[#allocation2 + $0x1] sm:$0xff] }
 0x6dd   : > { %v5350_v42 = vpop.permute.xlu1 %5349  ;;  %9803 = vmatprep.subr.bf16.mxu0 %v10309_v1 }
 0x6de   : > { %3120 = vbcast.lane.b32.xlu1 %v3114_v48, 264  ;;  %3116 = vbcast.lane.b32.xlu0 %v3114_v48, 256 }
 0x6df   : > { %v5518_v44 = vpop.permute.xlu0 %5517  ;;  %9646 = vmatpush3.bf16.msra.mxu1 %v10308_v31  ;;  %9804 = vmatpush3.bf16.msra.mxu0 %v10309_v1  ;;  %v16706_v31 = vld [vmem:[#allocation23_spill] sm:$0xff] }
 0x6e0   : > { %v5523_v29 = vadd.f32 %v5518_v44, %v5509_v7  ;;  %v6010_v44 = vld [vmem:[#allocation2 + $0x9] sm:$0xff]  ;;  %9805 = vmatprep.subr.bf16.mxu0 %v10310_v18 }
 0x6e1   : > { %v5394_v50 = vpop.permute.xlu1 %5393  ;;  %v16695_v7 = vld [vmem:[#allocation15_spill] sm:$0xff] }
 0x6e2   : > { %3131 = vbcast.lane.b32.xlu1 %v3125_v0, 264  ;;  %3127 = vbcast.lane.b32.xlu0 %v3125_v0, 256 }
 0x6e3   : > { %v5532_v51 = vpop.permute.xlu0 %5531  ;;  %9806 = vmatpush3.bf16.msra.mxu0 %v10310_v18  ;;  %v16707_v18 = vld [vmem:[#allocation26_spill] sm:$0xff] }
 0x6e4   : > { %v5537_v41 = vadd.f32 %v5532_v51, %v5523_v29 }
 0x6e5   : > { %v14943_v37 = vpop.permute.xlu1 %5421 }
 0x6e6   : > { %v9207_v4 = vmul.f32 -1.442695, %v5537_v41  ;;  %3142 = vbcast.lane.b32.xlu1 %v3136_v33, 264  ;;  %3138 = vbcast.lane.b32.xlu0 %v3136_v33, 256  ;;  %v16697_v41 = vld [vmem:[#allocation14_spill] sm:$0xff] }
 0x6e7   : > { %v5336_v34 = vpop.permute.xlu0 %5335 }
 0x6e8   : > { %10355 = vpow2.f32 %v9207_v4  ;;  %v5340_v35 = vadd.f32 %v5336_v34, %v5326_v62  ;;  %v16698_v62 = vld [vmem:[#allocation16_spill] sm:$0xff] }
 0x6e9   : > { %v14949_v57 = vpop.permute.xlu1 %5449 }
 0x6ea   : > { %v5354_v3 = vadd.f32 %v5350_v42, %v5340_v35  ;;  %3153 = vbcast.lane.b32.xlu1 %v3147_v25, 264  ;;  %3149 = vbcast.lane.b32.xlu0 %v3147_v25, 256 }
 0x6eb   : > { %v5380_v52 = vpop.permute.xlu0 %5379 }
 0x6ec   : > { %v5362_v28 = vadd.f32 %v16691_v17, %v5354_v3 }
 0x6ed   : > { %v14953_v55 = vpop.permute.xlu1 %5477 }
 0x6ee   : > { %v5370_v58 = vadd.f32 %v16692_v54, %v5362_v28  ;;  %3164 = vbcast.lane.b32.xlu1 %v3158_v22, 264  ;;  %3160 = vbcast.lane.b32.xlu0 %v3158_v22, 256  ;;  %v16699_v22 = vld [vmem:[#allocation18_spill] sm:$0xff] }
 0x6ef   : > { %v5408_v13 = vpop.permute.xlu0 %5407 }
 0x6f0   : > { %v5384_v40 = vadd.f32 %v5380_v52, %v5370_v58  ;;  %v16700_v58 = vld [vmem:[#allocation17_spill] sm:$0xff] }
 0x6f1   : > { %v14968_v53 = vpop.permute.xlu1 %5505 }
 0x6f2   : > { %v10356_v26 = vpop.eup %10355  ;;  %v5398_v30 = vadd.f32 %v5394_v50, %v5384_v40  ;;  %v6041_v50 = vpack.c.bf16 %v6010_v44, %v6009_v43 }
 0x6f3   : > { %v5545_v32 = vadd.f32 1.0, %v10356_v26  ;;  %v14951_v10 = vpop.permute.xlu0 %5435 }
 0x6f4   : > { %v14966_v61 = vadd.f32 %v5408_v13, %v5398_v30  ;;  %9647 = vmatprep.mubr.msk.bf16.mxu1 %vm482_vm13, %v6041_v50 }
 0x6f5   : > { %10357 = vrcp.f32 %v5545_v32  ;;  %v3011_v27 = vpop.permute.xlu1 %3010  ;;  %v16701_v32 = vld [vmem:[#allocation20_spill] sm:$0xff] }
 0x6f6   : > { %v5426_v11 = vadd.f32 %v14943_v37, %v14966_v61  ;;  %v3178_v0 = vmul.f32 %v3011_v27, %v16695_v7 }
 0x6f7   : > { %v14958_v15 = vpop.permute.xlu0 %5463 }
 0x6f8   : > { %v5440_v47 = vadd.f32 %v14951_v10, %v5426_v11 }
 0x6f9   : > { %v3018_v6 = vpop.permute.xlu1 %3017 }
 0x6fa   : > { %v5454_v42 = vadd.f32 %v14949_v57, %v5440_v47  ;;  %v3179_v33 = vmul.f32 %v3018_v6, %v16697_v41  ;;  %v16710_v41 = vld [vmem:[#allocation27_spill] sm:$0xff] }
 0x6fb   : > { %v14970_v14 = vpop.permute.xlu0 %5491 }
 0x6fc   : > { %v5468_v63 = vadd.f32 %v14958_v15, %v5454_v42 }
 0x6fd   : > { %v5534_v34 = vpop.permute.xlu1 %5533 }
 0x6fe   : > { %v5482_v35 = vadd.f32 %v14953_v55, %v5468_v63  ;;  %v16702_v55 = vld [vmem:[#allocation19_spill] sm:$0xff] }
 0x6ff   : > { %v15088_v56 = vpop.eup %10357  ;;  %v3007_v60 = vpop.permute.xlu0 %3006 }
 0x700   : > { %v5554_v46 = vrot.slane %v15088_v56, %v14854_v39  ;;  %v5565_v48 = vrot.slane %v15088_v56, %v14865_v21  ;;  %v3177_v29 = vmul.f32 %v3007_v60, %v16696_v20  ;;  %v5576_v25 = vrot.slane %v15088_v56, %v14878_v9 }
 0x701   : > { %v5496_v37 = vadd.f32 %v14970_v14, %v5482_v35  ;;  %v3033_v3 = vpop.permute.xlu1 %3032  ;;  %v5587_v17 = vrot.slane %v15088_v56, %v14884_v5  ;;  %v5598_v15 = vrot.slane %v15088_v56, %v14893_v45  ;;  %v16703_v14 = vld [vmem:[#allocation22_spill] sm:$0xff]  ;;  %v5631_v44 = vrot.slane %v15088_v56, %v14915_v36 }
 0x702   : > { %5560 = vbcast.lane.b32.xlu1 %v5554_v46, 264  ;;  %5556 = vbcast.lane.b32.xlu0 %v5554_v46, 256  ;;  %v3182_v54 = vmul.f32 %v3033_v3, %v16699_v22  ;;  %v16705_v46 = vld [vmem:[#allocation24_spill] sm:$0xff]  ;;  %v16712_v3 = vld [vmem:[#allocation29_spill] sm:$0xff] }
 0x703   : > { %v5520_v23 = vpop.permute.xlu0 %5519  ;;  %v5510_v28 = vadd.f32 %v14968_v53, %v5496_v37  ;;  %v5609_v53 = vrot.slane %v15088_v56, %v14900_v38  ;;  %v16713_v22 = vld [vmem:[#allocation32_spill] sm:$0xff] }
 0x705   : > { %v3044_v13 = vpop.permute.xlu1 %3043  ;;  %v5524_v40 = vadd.f32 %v5520_v23, %v5510_v28  ;;  %v5620_v23 = vrot.slane %v15088_v56, %v14908_v2  ;;  %v3169_v56 = vrot.slane %v14929_v8, %v14915_v36 }
 0x706   : > { %5571 = vbcast.lane.b32.xlu1 %v5565_v48, 264  ;;  %5567 = vbcast.lane.b32.xlu0 %v5565_v48, 256  ;;  %v3184_v10 = vmul.f32 %v3044_v13, %v16701_v32  ;;  %v15147_v48 = vld [vmem:[%s16693_s12 + $0xa0] sm:$0xff]  }
 0x707   : > { %v3022_v51 = vpop.permute.xlu0 %3021  ;;  %v5538_v30 = vadd.f32 %v5534_v34, %v5524_v40  ;;  %9839 = vmatprep.subr.bf16.mxu0 %v15147_v48  ;;  %v16716_v32 = vld [vmem:[#allocation33_spill] sm:$0xff] }
 0x708   : > { %v3180_v4 = vmul.f32 %v3022_v51, %v16698_v62  ;;  %v16709_v51 = vld [vmem:[#allocation28_spill] sm:$0xff] }
 0x709   : > { %v9208_v59 = vmul.f32 -1.442695, %v5538_v30  ;;  %v3055_v49 = vpop.permute.xlu1 %3054 }
 0x70a   : > { %5826 = vrot.lane.b32.xlu1 %v3178_v0, %s10429_s9  ;;  %5824 = vrot.lane.b32.xlu0 %v3177_v29, %s10429_s9  ;;  %v3186_v19 = vmul.f32 %v3055_v49, %v16703_v14  ;;  %v16708_v0 = vld [vmem:[#allocation25_spill] sm:$0xff]  ;;  %v16718_v14 = vld [vmem:[#allocation36_spill] sm:$0xff] }
 0x70b   : > { %v3029_v52 = vpop.permute.xlu0 %3028  ;;  %10359 = vpow2.f32 %v9208_v59 }
 0x70c   : > { %v3181_v57 = vmul.f32 %v3029_v52, %v16700_v58  ;;  %v16714_v58 = vld [vmem:[#allocation31_spill] sm:$0xff] }
 0x70d   : > { %v3066_v11 = vpop.permute.xlu1 %3065 }
 0x70e   : > { %5828 = vrot.lane.b32.xlu0 %v3179_v33, %s10429_s9  ;;  %5830 = vrot.lane.b32.xlu1 %v3180_v4, %s10429_s9  ;;  %v3188_v27 = vmul.f32 %v3066_v11, %v16705_v46 }
 0x70f   : > { %v3040_v26 = vpop.permute.xlu0 %3039 }
 0x710   : > { %v3183_v24 = vmul.f32 %v3040_v26, %v16702_v55 }
 0x711   : > { %v3077_v6 = vpop.permute.xlu1 %3076 }
 0x712   : > { %5578 = vbcast.lane.b32.xlu0 %v5576_v25, 256  ;;  %5582 = vbcast.lane.b32.xlu1 %v5576_v25, 264  ;;  %v3190_v7 = vmul.f32 %v3077_v6, %v16707_v18  ;;  %v16711_v25 = vld [vmem:[#allocation30_spill] sm:$0xff] }
 0x713   : > { %v3051_v61 = vpop.permute.xlu0 %3050  ;;  %v16723_v18 = vld [vmem:[#allocation62_spill] sm:$0xff] }
 0x714   : > { %v3185_v16 = vmul.f32 %v3051_v61, %v16704_v12  ;;  %v16717_v61 = vld [vmem:[#allocation52_spill] sm:$0xff] }
 0x715   : > { %v10360_v47 = vpop.eup %10359  ;;  %v3088_v29 = vpop.permute.xlu1 %3087 }
 0x716   : > { %5589 = vbcast.lane.b32.xlu0 %v5587_v17, 256  ;;  %5593 = vbcast.lane.b32.xlu1 %v5587_v17, 264  ;;  %v5546_v42 = vadd.f32 1.0, %v10360_v47  ;;  %v3192_v63 = vmul.f32 %v3088_v29, %v16709_v51  ;;  %v16725_v29 = vld [vmem:[#allocation57_spill] sm:$0xff] }
 0x717   : > { %v3062_v60 = vpop.permute.xlu0 %3061  ;;  %v16726_v51 = vld [vmem:[#allocation53_spill] sm:$0xff] }
 0x718   : > { %v3187_v1 = vmul.f32 %v3062_v60, %v16706_v31  ;;  %10361 = vrcp.f32 %v5546_v42  ;;  %v16721_v42 = vld [vmem:[#allocation56_spill] sm:$0xff] }
 0x71a   : > { %5834 = vrot.lane.b32.xlu1 %v3182_v54, %s10429_s9  ;;  %5832 = vrot.lane.b32.xlu0 %v3181_v57, %s10429_s9 }
 0x71b   : > { %v3073_v43 = vpop.permute.xlu0 %3072 }
 0x71c   : > { %v3189_v20 = vmul.f32 %v3073_v43, %v16708_v0  ;;  %v16722_v43 = vld [vmem:[#allocation51_spill] sm:$0xff] }
 0x71d   : > { %v16724_v0 = vld [vmem:[#allocation59_spill] sm:$0xff] }
 0x71e   : > { %5838 = vrot.lane.b32.xlu1 %v3184_v10, %s10429_s9  ;;  %5836 = vrot.lane.b32.xlu0 %v3183_v24, %s10429_s9 }
 0x71f   : > { %v3084_v50 = vpop.permute.xlu0 %3083 }
 0x720   : > { %v3191_v33 = vmul.f32 %v3084_v50, %v16710_v41  ;;  %v16727_v41 = vld [vmem:[#allocation60_spill] sm:$0xff] }
 0x722   : > { %5604 = vbcast.lane.b32.xlu1 %v5598_v15, 264  ;;  %5600 = vbcast.lane.b32.xlu0 %v5598_v15, 256  ;;  %v15162_v62 = vpop.eup %10361 }
 0x723   : > { %v5642_v4 = vrot.slane %v15162_v62, %v14854_v39  ;;  %v5653_v8 = vrot.slane %v15162_v62, %v14865_v21  ;;  %v5664_v39 = vrot.slane %v15162_v62, %v14878_v9  ;;  %v16715_v21 = vld [vmem:[#allocation34_spill] sm:$0xff]  ;;  %v15183_v9 = vld [vmem:[%s16693_s12] sm:$0xff]   ;;  %v5675_v55 = vrot.slane %v15162_v62, %v14884_v5 }
 0x724   : > { %9679 = vmatprep.subr.bf16.mxu1 %v15183_v9  ;;  %v5686_v15 = vrot.slane %v15162_v62, %v14893_v45  ;;  %v16719_v5 = vld [vmem:[#allocation54_spill] sm:$0xff]  ;;  %v5697_v45 = vrot.slane %v15162_v62, %v14900_v38 }
 0x726   : > { %5615 = vbcast.lane.b32.xlu1 %v5609_v53, 264  ;;  %5611 = vbcast.lane.b32.xlu0 %v5609_v53, 256 }
 0x72a   : > { %5842 = vrot.lane.b32.xlu1 %v3186_v19, %s10429_s9  ;;  %5840 = vrot.lane.b32.xlu0 %v3185_v16, %s10429_s9  ;;  %v16720_v16 = vld [vmem:[#allocation50_spill] sm:$0xff] }
 0x72e   : > { %5846 = vrot.lane.b32.xlu1 %v3188_v27, %s10429_s9  ;;  %5844 = vrot.lane.b32.xlu0 %v3187_v1, %s10429_s9  ;;  %v5708_v1 = vrot.slane %v15162_v62, %v14908_v2 }
 0x732   : > { %5626 = vbcast.lane.b32.xlu1 %v5620_v23, 264  ;;  %5622 = vbcast.lane.b32.xlu0 %v5620_v23, 256 }
 0x736   : > { %5637 = vbcast.lane.b32.xlu1 %v5631_v44, 264  ;;  %5633 = vbcast.lane.b32.xlu0 %v5631_v44, 256 }
 0x73a   : > { %5850 = vrot.lane.b32.xlu1 %v3190_v7, %s10429_s9  ;;  %5848 = vrot.lane.b32.xlu0 %v3189_v20, %s10429_s9 }
 0x73e   : > { %5854 = vrot.lane.b32.xlu1 %v3192_v63, %s10429_s9  ;;  %5852 = vrot.lane.b32.xlu0 %v3191_v33, %s10429_s9 }
 0x742   : > { %3175 = vbcast.lane.b32.xlu1 %v3169_v56, 264  ;;  %3171 = vbcast.lane.b32.xlu0 %v3169_v56, 256  ;;  %v16728_v56 = vld [vmem:[#allocation64_spill] sm:$0xff] }
 0x746   : > { %5648 = vbcast.lane.b32.xlu1 %v5642_v4, 264  ;;  %5644 = vbcast.lane.b32.xlu0 %v5642_v4, 256 }
 0x748   : > { %v3099_v34 = vpop.permute.xlu1 %3098  ;;  %v3095_v35 = vpop.permute.xlu0 %3094 }
 0x749   : > { %v3194_v37 = vmul.f32 %v3099_v34, %v16711_v25  ;;  %v3193_v52 = vmul.f32 %v3095_v35, %v16712_v3  ;;  %v5719_v25 = vrot.slane %v15162_v62, %v14915_v36  ;;  %v10316_v36 = vld [vmem:[%s16693_s12 + $0x8] sm:$0xff]  }
 0x74b   : > { %5858 = vrot.lane.b32.xlu1 %v3194_v37, %s10429_s9  ;;  %5856 = vrot.lane.b32.xlu0 %v3193_v52, %s10429_s9 }
 0x74c   : > { %v3110_v17 = vpop.permute.xlu1 %3109  ;;  %v3106_v28 = vpop.permute.xlu0 %3105 }
 0x74d   : > { %v3196_v54 = vmul.f32 %v3110_v17, %v16713_v22  ;;  %v3195_v57 = vmul.f32 %v3106_v28, %v16714_v58 }
 0x74f   : > { %5659 = vbcast.lane.b32.xlu1 %v5653_v8, 264  ;;  %5655 = vbcast.lane.b32.xlu0 %v5653_v8, 256 }
 0x750   : > { %v3121_v13 = vpop.permute.xlu1 %3120  ;;  %v3117_v26 = vpop.permute.xlu0 %3116 }
 0x751   : > { %v3198_v40 = vmul.f32 %v3121_v13, %v16715_v21  ;;  %v3197_v10 = vmul.f32 %v3117_v26, %v16716_v32 }
 0x753   : > { %5670 = vbcast.lane.b32.xlu1 %v5664_v39, 264  ;;  %5666 = vbcast.lane.b32.xlu0 %v5664_v39, 256  ;;  %v16729_v39 = vld [vmem:[#allocation61_spill] sm:$0xff] }
 0x754   : > { %v3132_v24 = vpop.permute.xlu1 %3131  ;;  %v3128_v30 = vpop.permute.xlu0 %3127 }
 0x755   : > { %v3200_v53 = vmul.f32 %v3132_v24, %v16717_v61  ;;  %v3199_v19 = vmul.f32 %v3128_v30, %v16718_v14  ;;  %v10312_v30 = vld [vmem:[%s16693_s12 + $0xa8] sm:$0xff]   ;;  %v10319_v61 = vld [vmem:[%s16693_s12 + $0x18] sm:$0xff]  }
 0x757   : > { %5862 = vrot.lane.b32.xlu1 %v3196_v54, %s10429_s9  ;;  %5860 = vrot.lane.b32.xlu0 %v3195_v57, %s10429_s9  ;;  %v16730_v54 = vld [vmem:[#allocation66_spill] sm:$0xff] }
 0x758   : > { %v3143_v59 = vpop.permute.xlu1 %3142  ;;  %v3139_v49 = vpop.permute.xlu0 %3138 }
 0x759   : > { %v3202_v12 = vmul.f32 %v3143_v59, %v16719_v5  ;;  %v3201_v11 = vmul.f32 %v3139_v49, %v16720_v16  ;;  %v10313_v49 = vld [vmem:[%s16693_s12 + $0xb0] sm:$0xff]  }
 0x75b   : > { %5866 = vrot.lane.b32.xlu1 %v3198_v40, %s10429_s9  ;;  %5864 = vrot.lane.b32.xlu0 %v3197_v10, %s10429_s9  ;;  %v16731_v40 = vld [vmem:[#allocation63_spill] sm:$0xff]  ;;  %v16732_v10 = vld [vmem:[#allocation68_spill] sm:$0xff] }
 0x75c   : > { %v3154_v60 = vpop.permute.xlu1 %3153  ;;  %v3150_v46 = vpop.permute.xlu0 %3149 }
 0x75d   : > { %v3204_v6 = vmul.f32 %v3154_v60, %v16721_v42  ;;  %v3203_v44 = vmul.f32 %v3150_v46, %v16722_v43  ;;  %v16734_v46 = vld [vmem:[#allocation69_spill] sm:$0xff] }
 0x75f   : > { %5681 = vbcast.lane.b32.xlu1 %v5675_v55, 264  ;;  %5677 = vbcast.lane.b32.xlu0 %v5675_v55, 256 }
 0x760   : > { %v3165_v27 = vpop.permute.xlu1 %3164  ;;  %v3161_v31 = vpop.permute.xlu0 %3160 }
 0x761   : > { %v3206_v50 = vmul.f32 %v3165_v27, %v16725_v29  ;;  %v3205_v63 = vmul.f32 %v3161_v31, %v16726_v51  ;;  %v15267_v31 = vld [vmem:[%s16693_s12 + $0xc0] sm:$0xff]  }
 0x763   : > { %5692 = vbcast.lane.b32.xlu1 %v5686_v15, 264  ;;  %5688 = vbcast.lane.b32.xlu0 %v5686_v15, 256  ;;  %v10317_v15 = vld [vmem:[%s16693_s12 + $0x10] sm:$0xff]  }
 0x767   : > { %5870 = vrot.lane.b32.xlu1 %v3200_v53, %s10429_s9  ;;  %5868 = vrot.lane.b32.xlu0 %v3199_v19, %s10429_s9 }
 0x76b   : > { %5874 = vrot.lane.b32.xlu1 %v3202_v12, %s10429_s9  ;;  %5872 = vrot.lane.b32.xlu0 %v3201_v11, %s10429_s9  ;;  %v16733_v11 = vld [vmem:[#allocation65_spill] sm:$0xff] }
 0x76f   : > { %5703 = vbcast.lane.b32.xlu1 %v5697_v45, 264  ;;  %5699 = vbcast.lane.b32.xlu0 %v5697_v45, 256 }
 0x773   : > { %5714 = vbcast.lane.b32.xlu1 %v5708_v1, 264  ;;  %5710 = vbcast.lane.b32.xlu0 %v5708_v1, 256 }
 0x774   : > { %v5561_v47 = vpop.permute.xlu1 %5560  ;;  %v5557_v23 = vpop.permute.xlu0 %5556 }
 0x775   : > { %v5728_v7 = vmul.f32 %v5561_v47, %v16723_v18  ;;  %v5727_v20 = vmul.f32 %v5557_v23, %v16724_v0  ;;  %v15279_v0 = vld [vmem:[%s16693_s12 + $0x40] sm:$0xff]  }
 0x777   : > { %5878 = vrot.lane.b32.xlu1 %v3204_v6, %s10429_s9  ;;  %5876 = vrot.lane.b32.xlu0 %v3203_v44, %s10429_s9  ;;  %5761 = vst.msk [vmem:[#allocation2 + $0x21] sm:$0xff] %vm868_vm0, %v5728_v7  ;;  %5760 = vst.msk [vmem:[#allocation2 + $0x19] sm:$0xff] %vm868_vm0, %v5727_v20  ;;  %v16735_v6 = vld [vmem:[#allocation67_spill] sm:$0xff]  ;;  %v16736_v44 = vld [vmem:[#allocation70_spill] sm:$0xff] }
 0x778   : > { %v5572_v38 = vpop.permute.xlu1 %5571  ;;  %v5568_v2 = vpop.permute.xlu0 %5567 }
 0x779   : > { %v5730_v33 = vmul.f32 %v5572_v38, %v16727_v41  ;;  %v5729_v4 = vmul.f32 %v5568_v2, %v16728_v56 }
 0x77b   : > { %5882 = vrot.lane.b32.xlu1 %v3206_v50, %s10429_s9  ;;  %5880 = vrot.lane.b32.xlu0 %v3205_v63, %s10429_s9  ;;  %5762 = vst.msk [vmem:[#allocation2 + $0x31] sm:$0xff] %vm868_vm0, %v5729_v4  ;;  %5763 = vst.msk [vmem:[#allocation2 + $0x39] sm:$0xff] %vm868_vm0, %v5730_v33  ;;  %v16737_v33 = vld [vmem:[#allocation71_spill] sm:$0xff]  ;;  %v16738_v4 = vld [vmem:[#allocation74_spill] sm:$0xff] }
 0x77c   : > { %v5827_v34 = vpop.permute.xlu1 %5826  ;;  %v5825_v35 = vpop.permute.xlu0 %5824 }
 0x77d   : > { %5922 = vst.msk [vmem:[#allocation2 + $0x21] sm:$0xff] %vm5920_vm15, %v5827_v34  ;;  %5921 = vst.msk [vmem:[#allocation2 + $0x19] sm:$0xff] %vm5920_vm15, %v5825_v35 }
 0x77f   : > { %5725 = vbcast.lane.b32.xlu1 %v5719_v25, 264  ;;  %5721 = vbcast.lane.b32.xlu0 %v5719_v25, 256 }
 0x780   : > { %v5831_v37 = vpop.permute.xlu1 %5830  ;;  %v5829_v3 = vpop.permute.xlu0 %5828 }
 0x781   : > { %5924 = vst.msk [vmem:[#allocation2 + $0x39] sm:$0xff] %vm5920_vm15, %v5831_v37  ;;  %5923 = vst.msk [vmem:[#allocation2 + $0x31] sm:$0xff] %vm5920_vm15, %v5829_v3 }
 0x784   : > { %v5583_v52 = vpop.permute.xlu1 %5582  ;;  %v5579_v8 = vpop.permute.xlu0 %5578  ;;  %v6011_v17 = vld [vmem:[#allocation2 + $0x19] sm:$0xff]  ;;  %v6012_v28 = vld [vmem:[#allocation2 + $0x21] sm:$0xff] }
 0x785   : > { %v5732_v22 = vmul.f32 %v5583_v52, %v16729_v39  ;;  %v5731_v58 = vmul.f32 %v5579_v8, %v16730_v54  ;;  %v6042_v57 = vpack.c.bf16 %v6012_v28, %v6011_v17  ;;  %v16739_v8 = vld [vmem:[#allocation73_spill] sm:$0xff]  ;;  %v16740_v28 = vld [vmem:[#allocation75_spill] sm:$0xff] }
 0x787   : > { %5765 = vst.msk [vmem:[#allocation2 + $0x51] sm:$0xff] %vm868_vm0, %v5732_v22  ;;  %5764 = vst.msk [vmem:[#allocation2 + $0x49] sm:$0xff] %vm868_vm0, %v5731_v58  ;;  %9648 = vmatmul.mubr.msk.bf16.vlgmr.msra.gmra.mrb[0].mxu1 %vm482_vm13, %v6042_v57  ;;  %9807 = vmatprep.mubr.msk.bf16.mxu0 %vm482_vm13, %v6042_v57 }
 0x788   : > { %v5594_v62 = vpop.permute.xlu1 %5593  ;;  %v5590_v13 = vpop.permute.xlu0 %5589  ;;  %v6013_v26 = vld [vmem:[#allocation2 + $0x31] sm:$0xff]  ;;  %v6014_v21 = vld [vmem:[#allocation2 + $0x39] sm:$0xff]  ;;  %9680 = vmatpush3.bf16.msra.mxu1 %v15183_v9 }
 0x789   : > { %v5734_v32 = vmul.f32 %v5594_v62, %v16731_v40  ;;  %v5733_v55 = vmul.f32 %v5590_v13, %v16732_v10  ;;  %v6043_v24 = vpack.c.bf16 %v6014_v21, %v6013_v26  ;;  %9681 = vmatprep.subr.bf16.mxu1 %v10316_v36  ;;  %v16741_v40 = vld [vmem:[#allocation58_spill] sm:$0xff]  ;;  %v16742_v10 = vld [vmem:[#allocation55_spill] sm:$0xff] }
 0x78b   : > { %5767 = vst.msk [vmem:[#allocation2 + $0x69] sm:$0xff] %vm868_vm0, %v5734_v32  ;;  %5766 = vst.msk [vmem:[#allocation2 + $0x61] sm:$0xff] %vm868_vm0, %v5733_v55  ;;  %9651 = vmatprep.mubr.msk.bf16.mxu1 %vm482_vm13, %v6043_v24  ;;  %9808 = vmatmul.mubr.msk.bf16.vlgmr.msra.gmra.mrb[0].mxu0 %vm482_vm13, %v6043_v24 }
 0x78c   : > { %v5835_v9 = vpop.permute.xlu1 %5834  ;;  %v5833_v59 = vpop.permute.xlu0 %5832  ;;  %9840 = vmatpush3.bf16.msra.mxu0 %v15147_v48  ;;  %9682 = vmatpush3.bf16.msra.mxu1 %v10316_v36  ;;  %v10314_v48 = vld [vmem:[%s16693_s12 + $0xb8] sm:$0xff]  }
 0x78d   : > { %5926 = vst.msk [vmem:[#allocation2 + $0x51] sm:$0xff] %vm5920_vm15, %v5835_v9  ;;  %5925 = vst.msk [vmem:[#allocation2 + $0x49] sm:$0xff] %vm5920_vm15, %v5833_v59  ;;  %9841 = vmatprep.subr.bf16.mxu0 %v10312_v30  ;;  %9683 = vmatprep.subr.bf16.mxu1 %v10317_v15 }
 0x790   : > { %v5839_v53 = vpop.permute.xlu1 %5838  ;;  %v5837_v14 = vpop.permute.xlu0 %5836  ;;  %9842 = vmatpush3.bf16.msra.mxu0 %v10312_v30  ;;  %9684 = vmatpush3.bf16.msra.mxu1 %v10317_v15  ;;  %v8851_v30 = vld [vmem:[%s16743_s19] sm:$0xff] }
 0x791   : > { %5928 = vst.msk [vmem:[#allocation2 + $0x69] sm:$0xff] %vm5920_vm15, %v5839_v53  ;;  %5927 = vst.msk [vmem:[#allocation2 + $0x61] sm:$0xff] %vm5920_vm15, %v5837_v14  ;;  %9843 = vmatprep.subr.bf16.mxu0 %v10313_v49  ;;  %9685 = vmatprep.subr.bf16.mxu1 %v10319_v61  ;;  %v7498_v15 = vld [vmem:[#allocation2 + $0x1a] sm:$0xff]  ;;  %v7499_v53 = vld [vmem:[#allocation2 + $0x22] sm:$0xff] }
 0x792   : > { %v16744_v14 = vld [vmem:[#allocation76_spill] sm:$0xff] }
 0x794   : > { %v5605_v19 = vpop.permute.xlu1 %5604  ;;  %v5601_v5 = vpop.permute.xlu0 %5600  ;;  %v6015_v12 = vld [vmem:[#allocation2 + $0x49] sm:$0xff]  ;;  %v6016_v16 = vld [vmem:[#allocation2 + $0x51] sm:$0xff]  ;;  %9844 = vmatpush3.bf16.msra.mxu0 %v10313_v49  ;;  %9686 = vmatpush3.bf16.msra.mxu1 %v10319_v61 }
 0x795   : > { %v5736_v60 = vmul.f32 %v5605_v19, %v16733_v11  ;;  %v5735_v45 = vmul.f32 %v5601_v5, %v16734_v46  ;;  %v6044_v27 = vpack.c.bf16 %v6016_v16, %v6015_v12  ;;  %9845 = vmatprep.subr.bf16.mxu0 %v10314_v48  ;;  %9719 = vmatprep.subr.bf16.mxu1 %v15279_v0  ;;  %v16745_v19 = vld [vmem:[#allocation38_spill] sm:$0xff] }
 0x796   : > { %v15320_v16 = vpack.c.bf16 %v7499_v53, %v7498_v15  ;;  %v8852_v11 = vld [vmem:[%s16743_s19 + $0x8] sm:$0xff] }
 0x797   : > { %5769 = vst.msk [vmem:[#allocation2 + $0x81] sm:$0xff] %vm868_vm0, %v5736_v60  ;;  %5768 = vst.msk [vmem:[#allocation2 + $0x79] sm:$0xff] %vm868_vm0, %v5735_v45  ;;  %9652 = vmatmul.mubr.msk.bf16.gmra.mrb[4].mxu1 %vm482_vm13, %v6044_v27  ;;  %9811 = vmatprep.mubr.msk.bf16.mxu0 %vm482_vm13, %v6044_v27  ;;  %v7500_v45 = vld [vmem:[#allocation2 + $0x32] sm:$0xff]  ;;  %v7501_v27 = vld [vmem:[#allocation2 + $0x3a] sm:$0xff] }
 0x798   : > { %v5616_v1 = vpop.permute.xlu1 %5615  ;;  %v5612_v47 = vpop.permute.xlu0 %5611  ;;  %v6017_v23 = vld [vmem:[#allocation2 + $0x61] sm:$0xff]  ;;  %v6018_v42 = vld [vmem:[#allocation2 + $0x69] sm:$0xff]  ;;  %9846 = vmatpush3.bf16.msra.mxu0 %v10314_v48 }
 0x799   : > { %v5738_v43 = vmul.f32 %v5616_v1, %v16735_v6  ;;  %v5737_v18 = vmul.f32 %v5612_v47, %v16736_v44  ;;  %v6045_v7 = vpack.c.bf16 %v6018_v42, %v6017_v23  ;;  %9879 = vmatprep.subr.bf16.mxu0 %v15267_v31  ;;  %v8867_v1 = vld [vmem:[%s16746_s21] sm:$0xff]  ;;  %v7502_v47 = vld [vmem:[#allocation2 + $0x4a] sm:$0xff]  ;;  %v7503_v23 = vld [vmem:[#allocation2 + $0x52] sm:$0xff] }
 0x79b   : > { %5771 = vst.msk [vmem:[#allocation2 + $0x99] sm:$0xff] %vm868_vm0, %v5738_v43  ;;  %5770 = vst.msk [vmem:[#allocation2 + $0x91] sm:$0xff] %vm868_vm0, %v5737_v18  ;;  %9655 = vmatprep.mubr.msk.bf16.mxu1 %vm482_vm13, %v6045_v7  ;;  %9812 = vmatmul.mubr.msk.bf16.gmra.mrb[4].mxu0 %vm482_vm13, %v6045_v7  ;;  %v16748_v43 = vld [vmem:[#allocation77_spill] sm:$0xff]  ;;  %v16749_v18 = vld [vmem:[#allocation39_spill] sm:$0xff] }
 0x79c   : > { %v5843_v20 = vpop.permute.xlu1 %5842  ;;  %v5841_v38 = vpop.permute.xlu0 %5840 }
 0x79d   : > { %5930 = vst.msk [vmem:[#allocation2 + $0x81] sm:$0xff] %vm5920_vm15, %v5843_v20  ;;  %5929 = vst.msk [vmem:[#allocation2 + $0x79] sm:$0xff] %vm5920_vm15, %v5841_v38  ;;  %v15335_v20 = vpack.c.bf16 %v7501_v27, %v7500_v45  ;;  %v10320_v38 = vld [vmem:[%s16693_s12 + $0xc8] sm:$0xff]  }
 0x7a0   : > { %v5847_v2 = vpop.permute.xlu1 %5846  ;;  %v5845_v29 = vpop.permute.xlu0 %5844 }
 0x7a1   : > { %5932 = vst.msk [vmem:[#allocation2 + $0x99] sm:$0xff] %vm5920_vm15, %v5847_v2  ;;  %5931 = vst.msk [vmem:[#allocation2 + $0x91] sm:$0xff] %vm5920_vm15, %v5845_v29  ;;  %v15340_v2 = vpack.c.bf16 %v7503_v23, %v7502_v47  ;;  %v8868_v29 = vld [vmem:[%s16747_s25 + $0x8] sm:$0xff] }
 0x7a4   : > { %v5627_v50 = vpop.permute.xlu1 %5626  ;;  %v5623_v51 = vpop.permute.xlu0 %5622  ;;  %v6019_v63 = vld [vmem:[#allocation2 + $0x79] sm:$0xff]  ;;  %v6020_v41 = vld [vmem:[#allocation2 + $0x81] sm:$0xff] }
 0x7a5   : > { %v5740_v56 = vmul.f32 %v5627_v50, %v16737_v33  ;;  %v5739_v34 = vmul.f32 %v5623_v51, %v16738_v4  ;;  %v6046_v35 = vpack.c.bf16 %v6020_v41, %v6019_v63  ;;  %v16750_v33 = vld [vmem:[#allocation41_spill] sm:$0xff]  ;;  %v16751_v4 = vld [vmem:[#allocation40_spill] sm:$0xff] }
 0x7a7   : > { %5773 = vst.msk [vmem:[#allocation2 + $0xb1] sm:$0xff] %vm868_vm0, %v5740_v56  ;;  %5772 = vst.msk [vmem:[#allocation2 + $0xa9] sm:$0xff] %vm868_vm0, %v5739_v34  ;;  %9656 = vmatmul.mubr.msk.bf16.gmra.mrb[8].mxu1 %vm482_vm13, %v6046_v35  ;;  %9815 = vmatprep.mubr.msk.bf16.mxu0 %vm482_vm13, %v6046_v35 }
 0x7a8   : > { %v5638_v25 = vpop.permute.xlu1 %5637  ;;  %v5634_v37 = vpop.permute.xlu0 %5633  ;;  %v6021_v3 = vld [vmem:[#allocation2 + $0x91] sm:$0xff]  ;;  %v6022_v52 = vld [vmem:[#allocation2 + $0x99] sm:$0xff] }
 0x7a9   : > { %v5742_v17 = vmul.f32 %v5638_v25, %v16739_v8  ;;  %v5741_v39 = vmul.f32 %v5634_v37, %v16740_v28  ;;  %v6047_v22 = vpack.c.bf16 %v6022_v52, %v6021_v3  ;;  %v10322_v25 = vld [vmem:[%s16693_s12 + $0xd0] sm:$0xff]   ;;  %v7504_v37 = vld [vmem:[#allocation2 + $0x62] sm:$0xff] }
 0x7aa   : > { %v7505_v3 = vld [vmem:[#allocation2 + $0x6a] sm:$0xff]  ;;  %v7507_v52 = vld [vmem:[#allocation2 + $0x82] sm:$0xff] }
 0x7ab   : > { %5775 = vst.msk [vmem:[#allocation2 + $0xc9] sm:$0xff] %vm868_vm0, %v5742_v17  ;;  %5774 = vst.msk [vmem:[#allocation2 + $0xc1] sm:$0xff] %vm868_vm0, %v5741_v39  ;;  %9659 = vmatprep.mubr.msk.bf16.mxu1 %vm482_vm13, %v6047_v22  ;;  %9816 = vmatmul.mubr.msk.bf16.gmra.mrb[8].mxu0 %vm482_vm13, %v6047_v22  ;;  %v15365_v28 = vpack.c.bf16 %v7505_v3, %v7504_v37  ;;  %v10324_v39 = vld [vmem:[%s16693_s12 + $0xd8] sm:$0xff]  }
 0x7ac   : > { %v5851_v54 = vpop.permute.xlu1 %5850  ;;  %v5849_v58 = vpop.permute.xlu0 %5848 }
 0x7ad   : > { %5934 = vst.msk [vmem:[#allocation2 + $0xb1] sm:$0xff] %vm5920_vm15, %v5851_v54  ;;  %5933 = vst.msk [vmem:[#allocation2 + $0xa9] sm:$0xff] %vm5920_vm15, %v5849_v58 }
 0x7b0   : > { %v5855_v57 = vpop.permute.xlu1 %5854  ;;  %v5853_v36 = vpop.permute.xlu0 %5852 }
 0x7b1   : > { %5936 = vst.msk [vmem:[#allocation2 + $0xc9] sm:$0xff] %vm5920_vm15, %v5855_v57  ;;  %5935 = vst.msk [vmem:[#allocation2 + $0xc1] sm:$0xff] %vm5920_vm15, %v5853_v36  ;;  %v15381_v57 = vld [vmem:[%s16693_s12 + $0xe0] sm:$0xff]   ;;  %v7508_v36 = vld [vmem:[#allocation2 + $0x92] sm:$0xff] }
 0x7b4   : > { %v3176_v62 = vpop.permute.xlu1 %3175  ;;  %v3172_v13 = vpop.permute.xlu0 %3171  ;;  %v6023_v26 = vld [vmem:[#allocation2 + $0xa9] sm:$0xff]  ;;  %v6024_v21 = vld [vmem:[#allocation2 + $0xb1] sm:$0xff] }
 0x7b5   : > { %v3208_v32 = vmul.f32 %v3176_v62, %v16741_v40  ;;  %v3207_v55 = vmul.f32 %v3172_v13, %v16742_v10  ;;  %v6048_v24 = vpack.c.bf16 %v6024_v21, %v6023_v26  ;;  %v7509_v62 = vld [vmem:[#allocation2 + $0x9a] sm:$0xff]  ;;  %v7510_v13 = vld [vmem:[#allocation2 + $0xaa] sm:$0xff]  ;;  %v7511_v26 = vld [vmem:[#allocation2 + $0xb2] sm:$0xff] }
 0x7b7   : > { %5886 = vrot.lane.b32.xlu1 %v3208_v32, %s10429_s9  ;;  %9660 = vmatmul.mubr.msk.bf16.gmra.mrb[12].mxu1 %vm482_vm13, %v6048_v24 }
 0x7b8   : > { %9819 = vmatprep.mubr.msk.bf16.mxu0 %vm482_vm13, %v6048_v24  ;;  %5884 = vrot.lane.b32.xlu0 %v3207_v55, %s10429_s9  ;;  %v5649_v9 = vpop.permute.xlu1 %5648  ;;  %v5645_v59 = vpop.permute.xlu0 %5644  ;;  %v6025_v49 = vld [vmem:[#allocation2 + $0xc1] sm:$0xff]  ;;  %v6026_v61 = vld [vmem:[#allocation2 + $0xc9] sm:$0xff] }
 0x7b9   : > { %v5744_v48 = vmul.f32 %v5649_v9, %v16744_v14  ;;  %v5743_v5 = vmul.f32 %v5645_v59, %v16745_v19  ;;  %v6049_v12 = vpack.c.bf16 %v6026_v61, %v6025_v49  ;;  %v16752_v55 = vld [vmem:[#allocation43_spill] sm:$0xff]  ;;  %v15385_v9 = vpack.c.bf16 %v7509_v62, %v7508_v36  ;;  %v16754_v19 = vld [vmem:[#allocation45_spill] sm:$0xff] }
 0x7ba   : > { %v15390_v49 = vpack.c.bf16 %v7511_v26, %v7510_v13  ;;  %v7513_v45 = vld [vmem:[#allocation2 + $0xca] sm:$0xff] }
 0x7bb   : > { %5777 = vst.msk [vmem:[#allocation2 + $0xe1] sm:$0xff] %vm868_vm0, %v5744_v48  ;;  %5776 = vst.msk [vmem:[#allocation2 + $0xd9] sm:$0xff] %vm868_vm0, %v5743_v5  ;;  %8855 = vperm.xlu1 %10302, %v8851_v30   ;;  %9663 = vmatprep.mubr.msk.bf16.mxu1 %vm482_vm13, %v6049_v12  ;;  %v16753_v30 = vld [vmem:[#allocation42_spill] sm:$0xff] }
 0x7bc   : > { %9820 = vmatmul.mubr.msk.bf16.gmra.mrb[12].mxu0 %vm482_vm13, %v6049_v12  ;;  %v16755_v12 = vld [vmem:[#allocation44_spill] sm:$0xff] }
 0x7bd   : > { %9847 = vmatprep.mubr.msk.bf16.mxu0 %vm482_vm13, %v15320_v16  ;;  %v5859_v60 = vpop.permute.xlu1 %5858  ;;  %v5857_v46 = vpop.permute.xlu0 %5856 }
 0x7be   : > { %5938 = vst.msk [vmem:[#allocation2 + $0xe1] sm:$0xff] %vm5920_vm15, %v5859_v60  ;;  %5937 = vst.msk [vmem:[#allocation2 + $0xd9] sm:$0xff] %vm5920_vm15, %v5857_v46  ;;  %v7512_v46 = vld [vmem:[#allocation2 + $0xc2] sm:$0xff] }
 0x7bf   : > { %8860 = vperm.xlu1 %10302, %v8852_v11  }
 0x7c1   : > { %v5660_v42 = vpop.permute.xlu1 %5659  ;;  %v5656_v6 = vpop.permute.xlu0 %5655 }
 0x7c2   : > { %v5746_v44 = vmul.f32 %v5660_v42, %v16748_v43  ;;  %v5745_v7 = vmul.f32 %v5656_v6, %v16749_v18  ;;  %v15410_v42 = vpack.c.bf16 %v7513_v45, %v7512_v46 }
 0x7c3   : > { %8871 = vperm.xlu1 %10302, %v8867_v1  }
 0x7c4   : > { %5779 = vst.msk [vmem:[#allocation2 + $0xf9] sm:$0xff] %vm868_vm0, %v5746_v44  ;;  %5778 = vst.msk [vmem:[#allocation2 + $0xf1] sm:$0xff] %vm868_vm0, %v5745_v7  ;;  %9848 = vmatmul.mubr.msk.bf16.vlgmr.msra.gmra.mrb[0].mxu0 %vm482_vm13, %v15335_v20 }
 0x7c5   : > { %9851 = vmatprep.mubr.msk.bf16.mxu0 %vm482_vm13, %v15340_v2  ;;  %v5671_v50 = vpop.permute.xlu1 %5670  ;;  %v5667_v51 = vpop.permute.xlu0 %5666  ;;  %v6027_v63 = vld [vmem:[#allocation2 + $0xd9] sm:$0xff]  ;;  %v6028_v41 = vld [vmem:[#allocation2 + $0xe1] sm:$0xff]  ;;  %9880 = vmatpush3.bf16.msra.mxu0 %v15267_v31 }
 0x7c6   : > { %v5748_v56 = vmul.f32 %v5671_v50, %v16750_v33  ;;  %v5747_v34 = vmul.f32 %v5667_v51, %v16751_v4  ;;  %v15354_v35 = vpack.c.bf16 %v6028_v41, %v6027_v63  ;;  %9881 = vmatprep.subr.bf16.mxu0 %v10320_v38  ;;  %v7506_v31 = vld [vmem:[#allocation2 + $0x7a] sm:$0xff]  ;;  %v7515_v1 = vld [vmem:[#allocation2 + $0xe2] sm:$0xff]  ;;  %v16756_v33 = vld [vmem:[#allocation47_spill] sm:$0xff] }
 0x7c7   : > { %8876 = vperm.xlu1 %10302, %v8868_v29   ;;  %v15370_v22 = vpack.c.bf16 %v7507_v52, %v7506_v31  ;;  %v7514_v27 = vld [vmem:[#allocation2 + $0xda] sm:$0xff]  ;;  %v16757_v4 = vld [vmem:[#allocation46_spill] sm:$0xff] }
 0x7c8   : > { %5781 = vst.msk [vmem:[#allocation2 + $0x111] sm:$0xff] %vm868_vm0, %v5748_v56  ;;  %5780 = vst.msk [vmem:[#allocation2 + $0x109] sm:$0xff] %vm868_vm0, %v5747_v34  ;;  %9664 = vmatmul.mubr.msk.bf16.gmra.mrb[16].mxu1 %vm482_vm13, %v15354_v35  ;;  %v15412_v6 = vpack.c.bf16 %v7515_v1, %v7514_v27  ;;  %v5953_v1 = vld [vmem:[#allocation2] sm:$0xff] }
 0x7c9   : > { %v5863_v8 = vpop.permute.xlu1 %5862  ;;  %v5861_v17 = vpop.permute.xlu0 %5860  ;;  %9882 = vmatpush3.bf16.msra.mxu0 %v10320_v38 }
 0x7ca   : > { %5940 = vst.msk [vmem:[#allocation2 + $0xf9] sm:$0xff] %vm5920_vm15, %v5863_v8  ;;  %5939 = vst.msk [vmem:[#allocation2 + $0xf1] sm:$0xff] %vm5920_vm15, %v5861_v17  ;;  %9883 = vmatprep.subr.bf16.mxu0 %v10322_v25 }
 0x7cc   : > { %9852 = vmatmul.mubr.msk.bf16.gmra.mrb[4].mxu0 %vm482_vm13, %v15365_v28 }
 0x7cd   : > { %9855 = vmatprep.mubr.msk.bf16.mxu0 %vm482_vm13, %v15370_v22  ;;  %v5867_v54 = vpop.permute.xlu1 %5866  ;;  %v5865_v58 = vpop.permute.xlu0 %5864  ;;  %9884 = vmatpush3.bf16.msra.mxu0 %v10322_v25 }
 0x7ce   : > { %5942 = vst.msk [vmem:[#allocation2 + $0x111] sm:$0xff] %vm5920_vm15, %v5867_v54  ;;  %5941 = vst.msk [vmem:[#allocation2 + $0x109] sm:$0xff] %vm5920_vm15, %v5865_v58  ;;  %9885 = vmatprep.subr.bf16.mxu0 %v10324_v39  ;;  %v16759_v58 = vld [vmem:[#allocation37_spill] sm:$0xff] }
 0x7d1   : > { %v5682_v21 = vpop.permute.xlu1 %5681  ;;  %v5678_v40 = vpop.permute.xlu0 %5677  ;;  %v6029_v32 = vld [vmem:[#allocation2 + $0xf1] sm:$0xff]  ;;  %v6030_v10 = vld [vmem:[#allocation2 + $0xf9] sm:$0xff]  ;;  %9886 = vmatpush3.bf16.msra.mxu0 %v10324_v39 }
 0x7d2   : > { %v5750_v24 = vmul.f32 %v5682_v21, %v16752_v55  ;;  %v5749_v15 = vmul.f32 %v5678_v40, %v16753_v30  ;;  %v15387_v59 = vpack.c.bf16 %v6030_v10, %v6029_v32  ;;  %9919 = vmatprep.subr.bf16.mxu0 %v15381_v57  ;;  %v7516_v18 = vld [vmem:[#allocation2 + $0xf2] sm:$0xff]  ;;  %v7517_v7 = vld [vmem:[#allocation2 + $0xfa] sm:$0xff] }
 0x7d3   : > { %v15422_v25 = vpack.c.bf16 %v7517_v7, %v7516_v18  ;;  %v16758_v39 = vld [vmem:[#allocation35_spill] sm:$0xff] }
 0x7d4   : > { %5783 = vst.msk [vmem:[#allocation2 + $0x129] sm:$0xff] %vm868_vm0, %v5750_v24  ;;  %5782 = vst.msk [vmem:[#allocation2 + $0x121] sm:$0xff] %vm868_vm0, %v5749_v15  ;;  %9856 = vmatmul.mubr.msk.bf16.gmra.mrb[8].mxu0 %vm482_vm13, %v15385_v9  ;;  %9667 = vmatprep.mubr.msk.bf16.mxu1 %vm482_vm13, %v15387_v59 }
 0x7d5   : > { %9859 = vmatprep.mubr.msk.bf16.mxu0 %vm482_vm13, %v15390_v49  ;;  %v5693_v61 = vpop.permute.xlu1 %5692  ;;  %v5689_v53 = vpop.permute.xlu0 %5688  ;;  %v6031_v14 = vld [vmem:[#allocation2 + $0x109] sm:$0xff]  ;;  %v6032_v48 = vld [vmem:[#allocation2 + $0x111] sm:$0xff] }
 0x7d6   : > { %v5752_v5 = vmul.f32 %v5693_v61, %v16754_v19  ;;  %v5751_v11 = vmul.f32 %v5689_v53, %v16755_v12  ;;  %v15402_v60 = vpack.c.bf16 %v6032_v48, %v6031_v14  ;;  %v7518_v38 = vld [vmem:[#allocation2 + $0x10a] sm:$0xff]  ;;  %v7519_v29 = vld [vmem:[#allocation2 + $0x112] sm:$0xff] }
 0x7d7   : > { %v15426_v3 = vpack.c.bf16 %v7519_v29, %v7518_v38 }
 0x7d8   : > { %5785 = vst.msk [vmem:[#allocation2 + $0x141] sm:$0xff] %vm868_vm0, %v5752_v5  ;;  %5784 = vst.msk [vmem:[#allocation2 + $0x139] sm:$0xff] %vm868_vm0, %v5751_v11  ;;  %9668 = vmatmul.mubr.msk.bf16.gmra.mrb[20].mxu1 %vm482_vm13, %v15402_v60  ;;  %v16760_v5 = vld [vmem:[#allocation49_spill] sm:$0xff]  ;;  %v16761_v11 = vld [vmem:[#allocation48_spill] sm:$0xff] }
 0x7d9   : > { %v5871_v47 = vpop.permute.xlu1 %5870  ;;  %v5869_v23 = vpop.permute.xlu0 %5868 }
 0x7da   : > { %5944 = vst.msk [vmem:[#allocation2 + $0x129] sm:$0xff] %vm5920_vm15, %v5871_v47  ;;  %5943 = vst.msk [vmem:[#allocation2 + $0x121] sm:$0xff] %vm5920_vm15, %v5869_v23  ;;  %v5954_v47 = vld [vmem:[#allocation2 + $0x8] sm:$0xff] }
 0x7db   : > { %v5985_v7 = vpack.c.bf16 %v5954_v47, %v5953_v1  ;;  %v5975_v1 = vld [vmem:[#allocation2 + $0x108] sm:$0xff]  ;;  %v5976_v47 = vld [vmem:[#allocation2 + $0x110] sm:$0xff] }
 0x7dc   : > { %9860 = vmatmul.mubr.msk.bf16.gmra.mrb[12].mxu0 %vm482_vm13, %v15410_v42 }
 0x7dd   : > { %9863 = vmatprep.mubr.msk.bf16.mxu0 %vm482_vm13, %v15412_v6  ;;  %v5875_v43 = vpop.permute.xlu1 %5874  ;;  %v5873_v44 = vpop.permute.xlu0 %5872 }
 0x7de   : > { %5946 = vst.msk [vmem:[#allocation2 + $0x141] sm:$0xff] %vm5920_vm15, %v5875_v43  ;;  %5945 = vst.msk [vmem:[#allocation2 + $0x139] sm:$0xff] %vm5920_vm15, %v5873_v44 }
 0x7e1   : > { %v5704_v50 = vpop.permute.xlu1 %5703  ;;  %v5700_v51 = vpop.permute.xlu0 %5699  ;;  %v6033_v63 = vld [vmem:[#allocation2 + $0x121] sm:$0xff]  ;;  %v6034_v41 = vld [vmem:[#allocation2 + $0x129] sm:$0xff] }
 0x7e2   : > { %v5754_v56 = vmul.f32 %v5704_v50, %v16756_v33  ;;  %v5753_v34 = vmul.f32 %v5700_v51, %v16757_v4  ;;  %v15424_v37 = vpack.c.bf16 %v6034_v41, %v6033_v63  ;;  %v7520_v13 = vld [vmem:[#allocation2 + $0x122] sm:$0xff]  ;;  %v7521_v26 = vld [vmem:[#allocation2 + $0x12a] sm:$0xff]  ;;  %v5955_v51 = vld [vmem:[#allocation2 + $0x18] sm:$0xff] }
 0x7e3   : > { %v15446_v55 = vpack.c.bf16 %v7521_v26, %v7520_v13  ;;  %v5956_v63 = vld [vmem:[#allocation2 + $0x20] sm:$0xff]  ;;  %v5957_v41 = vld [vmem:[#allocation2 + $0x30] sm:$0xff]  ;;  %v5958_v33 = vld [vmem:[#allocation2 + $0x38] sm:$0xff] }
 0x7e4   : > { %5787 = vst.msk [vmem:[#allocation2 + $0x159] sm:$0xff] %vm868_vm0, %v5754_v56  ;;  %5786 = vst.msk [vmem:[#allocation2 + $0x151] sm:$0xff] %vm868_vm0, %v5753_v34  ;;  %9864 = vmatmul.mubr.msk.bf16.gmra.mrb[16].mxu0 %vm482_vm13, %v15422_v25  ;;  %9671 = vmatprep.mubr.msk.bf16.mxu1 %vm482_vm13, %v15424_v37  ;;  %v15477_v56 = vpack.c.bf16 %v5956_v63, %v5955_v51  ;;  %v10323_v4 = vld [vmem:[%s16693_s12 + $0x48] sm:$0xff]   ;;  %v15482_v34 = vpack.c.bf16 %v5958_v33, %v5957_v41  ;;  %v5963_v13 = vld [vmem:[#allocation2 + $0x78] sm:$0xff] }
 0x7e5   : > { %9867 = vmatprep.mubr.msk.bf16.mxu0 %vm482_vm13, %v15426_v3  ;;  %v5715_v31 = vpop.permute.xlu1 %5714  ;;  %v5711_v52 = vpop.permute.xlu0 %5710  ;;  %v6035_v8 = vld [vmem:[#allocation2 + $0x139] sm:$0xff]  ;;  %v6036_v17 = vld [vmem:[#allocation2 + $0x141] sm:$0xff] }
 0x7e6   : > { %v5756_v54 = vmul.f32 %v5715_v31, %v16758_v39  ;;  %v5755_v36 = vmul.f32 %v5711_v52, %v16759_v58  ;;  %v15438_v62 = vpack.c.bf16 %v6036_v17, %v6035_v8  ;;  %v7522_v21 = vld [vmem:[#allocation2 + $0x13a] sm:$0xff]  ;;  %v7523_v40 = vld [vmem:[#allocation2 + $0x142] sm:$0xff]  ;;  %v10325_v31 = vld [vmem:[%s16693_s12 + $0x50] sm:$0xff]  }
 0x7e7   : > { %v15448_v24 = vpack.c.bf16 %v7523_v40, %v7522_v21  ;;  %v5959_v52 = vld [vmem:[#allocation2 + $0x48] sm:$0xff]  ;;  %v5960_v8 = vld [vmem:[#allocation2 + $0x50] sm:$0xff]  ;;  %v5961_v17 = vld [vmem:[#allocation2 + $0x60] sm:$0xff] }
 0x7e8   : > { %5789 = vst.msk [vmem:[#allocation2 + $0x171] sm:$0xff] %vm868_vm0, %v5756_v54  ;;  %5788 = vst.msk [vmem:[#allocation2 + $0x169] sm:$0xff] %vm868_vm0, %v5755_v36  ;;  %9672 = vmatmul.mubr.msk.bf16.gmra.mrb[24].mxu1 %vm482_vm13, %v15438_v62  ;;  %v5962_v39 = vld [vmem:[#allocation2 + $0x68] sm:$0xff]  ;;  %v15492_v54 = vpack.c.bf16 %v5960_v8, %v5959_v52  ;;  %v10327_v58 = vld [vmem:[%s16693_s12 + $0x58] sm:$0xff]  }
 0x7e9   : > { %v5879_v32 = vpop.permute.xlu1 %5878  ;;  %v5877_v10 = vpop.permute.xlu0 %5876  ;;  %v15497_v36 = vpack.c.bf16 %v5962_v39, %v5961_v17  ;;  %v5964_v26 = vld [vmem:[#allocation2 + $0x80] sm:$0xff]  ;;  %v5965_v21 = vld [vmem:[#allocation2 + $0x90] sm:$0xff]  ;;  %v5966_v40 = vld [vmem:[#allocation2 + $0x98] sm:$0xff] }
 0x7ea   : > { %5948 = vst.msk [vmem:[#allocation2 + $0x159] sm:$0xff] %vm5920_vm15, %v5879_v32  ;;  %5947 = vst.msk [vmem:[#allocation2 + $0x151] sm:$0xff] %vm5920_vm15, %v5877_v10  ;;  %v15508_v32 = vpack.c.bf16 %v5964_v26, %v5963_v13  ;;  %v15511_v10 = vpack.c.bf16 %v5966_v40, %v5965_v21  ;;  %v5979_v63 = vld [vmem:[#allocation2 + $0x138] sm:$0xff]  ;;  %v5980_v41 = vld [vmem:[#allocation2 + $0x140] sm:$0xff] }
 0x7eb   : > { %v6532_v39 = vld [vmem:[#allocation2 + $0x2] sm:$0xff] }
 0x7ec   : > { %9868 = vmatmul.mubr.msk.bf16.gmra.mrb[20].mxu0 %vm482_vm13, %v15446_v55 }
 0x7ed   : > { %9871 = vmatprep.mubr.msk.bf16.mxu0 %vm482_vm13, %v15448_v24  ;;  %v5883_v30 = vpop.permute.xlu1 %5882  ;;  %v5881_v15 = vpop.permute.xlu0 %5880 }
 0x7ee   : > { %5950 = vst.msk [vmem:[#allocation2 + $0x171] sm:$0xff] %vm5920_vm15, %v5883_v30  ;;  %5949 = vst.msk [vmem:[#allocation2 + $0x169] sm:$0xff] %vm5920_vm15, %v5881_v15  ;;  %v5967_v30 = vld [vmem:[#allocation2 + $0xa8] sm:$0xff]  ;;  %v5968_v15 = vld [vmem:[#allocation2 + $0xb0] sm:$0xff] }
 0x7f1   : > { %v5726_v61 = vpop.permute.xlu1 %5725  ;;  %v5722_v53 = vpop.permute.xlu0 %5721  ;;  %v6037_v14 = vld [vmem:[#allocation2 + $0x151] sm:$0xff]  ;;  %v6038_v48 = vld [vmem:[#allocation2 + $0x159] sm:$0xff] }
 0x7f2   : > { %v7524_v19 = vld [vmem:[#allocation2 + $0x152] sm:$0xff]  ;;  %v5758_v12 = vmul.f32 %v5726_v61, %v16760_v5  ;;  %v5757_v46 = vmul.f32 %v5722_v53, %v16761_v11  ;;  %v15458_v45 = vpack.c.bf16 %v6038_v48, %v6037_v14  ;;  %v7525_v27 = vld [vmem:[#allocation2 + $0x15a] sm:$0xff]  ;;  %v5970_v53 = vld [vmem:[#allocation2 + $0xc8] sm:$0xff]  ;;  %v15517_v14 = vpack.c.bf16 %v5968_v15, %v5967_v30 }
 0x7f3   : > { %v15460_v23 = vpack.c.bf16 %v7525_v27, %v7524_v19  ;;  %v5969_v61 = vld [vmem:[#allocation2 + $0xc0] sm:$0xff]  ;;  %v5971_v19 = vld [vmem:[#allocation2 + $0xd8] sm:$0xff]  ;;  %v5981_v33 = vld [vmem:[#allocation2 + $0x150] sm:$0xff] }
 0x7f4   : > { %5791 = vst.msk [vmem:[#allocation2 + $0x189] sm:$0xff] %vm868_vm0, %v5758_v12  ;;  %5790 = vst.msk [vmem:[#allocation2 + $0x181] sm:$0xff] %vm868_vm0, %v5757_v46  ;;  %9675 = vmatprep.mubr.msk.bf16.mxu1 %vm482_vm13, %v15458_v45  ;;  %v15519_v48 = vpack.c.bf16 %v5970_v53, %v5969_v61  ;;  %v5972_v5 = vld [vmem:[#allocation2 + $0xe0] sm:$0xff]  ;;  %v5973_v12 = vld [vmem:[#allocation2 + $0xf0] sm:$0xff] }
 0x7f5   : > { %9872 = vmatmul.mubr.msk.bf16.gmra.mrb[24].mxu0 %vm482_vm13, %v15460_v23  ;;  %v6039_v43 = vld [vmem:[#allocation2 + $0x169] sm:$0xff]  ;;  %v6040_v44 = vld [vmem:[#allocation2 + $0x171] sm:$0xff]  ;;  %v15525_v46 = vpack.c.bf16 %v5972_v5, %v5971_v19 }
 0x7f6   : > { %v7526_v18 = vld [vmem:[#allocation2 + $0x16a] sm:$0xff]  ;;  %v15468_v38 = vpack.c.bf16 %v6040_v44, %v6039_v43  ;;  %v7527_v29 = vld [vmem:[#allocation2 + $0x172] sm:$0xff]  ;;  %v5977_v43 = vld [vmem:[#allocation2 + $0x120] sm:$0xff] }
 0x7f7   : > { %v15470_v50 = vpack.c.bf16 %v7527_v29, %v7526_v18  ;;  %v5974_v11 = vld [vmem:[#allocation2 + $0xf8] sm:$0xff]  ;;  %v5978_v44 = vld [vmem:[#allocation2 + $0x128] sm:$0xff]  ;;  %v15533_v18 = vpack.c.bf16 %v5976_v47, %v5975_v1  ;;  %v5984_v21 = vld [vmem:[#allocation2 + $0x170] sm:$0xff] }
 0x7f8   : > { %9676 = vmatmul.mubr.msk.bf16.gmra.mrb[28].mxu1 %vm482_vm13, %v15468_v38  ;;  %v15527_v27 = vpack.c.bf16 %v5974_v11, %v5973_v12  ;;  %v5983_v26 = vld [vmem:[#allocation2 + $0x168] sm:$0xff]  ;;  %v10330_v53 = vld [vmem:[%s16693_s12 + $0xf0] sm:$0xff]  }
 0x7f9   : > { %9875 = vmatprep.mubr.msk.bf16.mxu0 %vm482_vm13, %v15470_v50  ;;  %9687 = vmatprep.mubr.msk.bf16.mxu1 %vm482_vm13, %v5985_v7  ;;  %v15535_v7 = vpack.c.bf16 %v5978_v44, %v5977_v43  ;;  %v15557_v30 = vpack.c.bf16 %v5984_v21, %v5983_v26  ;;  %v10328_v15 = vld [vmem:[%s16693_s12 + $0xe8] sm:$0xff]   ;;  %v10333_v19 = vld [vmem:[%s16693_s12 + $0x70] sm:$0xff]   ;;  %v8152_v44 = vld [vmem:[#allocation2 + $0x99] sm:$0xff] }
 0x7fa   : > { %v10331_v61 = vld [vmem:[%s16693_s12 + $0x68] sm:$0xff]   ;;  %v8146_v5 = vld [vmem:[#allocation2 + $0x51] sm:$0xff]  ;;  %v7195_v21 = vld [vmem:[#allocation2 + $0xf9] sm:$0xff] }
 0x7fb   : > { %v8148_v12 = vld [vmem:[#allocation2 + $0x69] sm:$0xff]  ;;  %v8150_v47 = vld [vmem:[#allocation2 + $0x81] sm:$0xff]  ;;  %v8151_v43 = vld [vmem:[#allocation2 + $0x91] sm:$0xff] }
 0x7fc   : > { %v7194_v26 = vld [vmem:[#allocation2 + $0xf1] sm:$0xff] }
 0x800   : > { %9688 = vmatmul.mubr.msk.bf16.vlgmr.msra.gmra.mrb[0].mxu1 %vm482_vm13, %v15477_v56 }
 0x801   : > { %9691 = vmatprep.mubr.msk.bf16.mxu1 %vm482_vm13, %v15482_v34  ;;  %9720 = vmatpush3.bf16.msra.mxu1 %v15279_v0  ;;  %v15506_v0 = vld [vmem:[%s16693_s12 + $0x60] sm:$0xff]  }
 0x802   : > { %9721 = vmatprep.subr.bf16.mxu1 %v10323_v4 }
 0x805   : > { %9722 = vmatpush3.bf16.msra.mxu1 %v10323_v4  ;;  %v5982_v4 = vld [vmem:[#allocation2 + $0x158] sm:$0xff] }
 0x806   : > { %9723 = vmatprep.subr.bf16.mxu1 %v10325_v31  ;;  %v15545_v52 = vpack.c.bf16 %v5982_v4, %v5981_v33  ;;  %v8154_v33 = vld [vmem:[#allocation2 + $0xb1] sm:$0xff]  ;;  %v8155_v4 = vld [vmem:[#allocation2 + $0xc1] sm:$0xff] }
 0x808   : > { %9692 = vmatmul.mubr.msk.bf16.gmra.mrb[4].mxu1 %vm482_vm13, %v15492_v54 }
 0x809   : > { %9695 = vmatprep.mubr.msk.bf16.mxu1 %vm482_vm13, %v15497_v36  ;;  %9724 = vmatpush3.bf16.msra.mxu1 %v10325_v31  ;;  %v15543_v31 = vpack.c.bf16 %v5980_v41, %v5979_v63  ;;  %v8179_v63 = vpack.c.bf16 %v8152_v44, %v8151_v43  ;;  %v8153_v41 = vld [vmem:[#allocation2 + $0xa9] sm:$0xff]  ;;  %v8482_v43 = vld [vmem:[#allocation2 + $0xfa] sm:$0xff] }
 0x80a   : > { %9725 = vmatprep.subr.bf16.mxu1 %v10327_v58 }
 0x80d   : > { %9726 = vmatpush3.bf16.msra.mxu1 %v10327_v58  ;;  %v6533_v58 = vld [vmem:[#allocation2 + $0xa] sm:$0xff] }
 0x80e   : > { %9759 = vmatprep.subr.bf16.mxu1 %v15506_v0  ;;  %v6564_v40 = vpack.c.bf16 %v6533_v58, %v6532_v39  ;;  %v8180_v39 = vpack.c.bf16 %v8154_v33, %v8153_v41 }
 0x810   : > { %9696 = vmatmul.mubr.msk.bf16.gmra.mrb[8].mxu1 %vm482_vm13, %v15508_v32 }
 0x811   : > { %9699 = vmatprep.mubr.msk.bf16.mxu1 %vm482_vm13, %v15511_v10 }
 0x818   : > { %9700 = vmatmul.mubr.msk.bf16.gmra.mrb[12].mxu1 %vm482_vm13, %v15517_v14 }
 0x819   : > { %9703 = vmatprep.mubr.msk.bf16.mxu1 %vm482_vm13, %v15519_v48 }
 0x820   : > { %9704 = vmatmul.mubr.msk.bf16.gmra.mrb[16].mxu1 %vm482_vm13, %v15525_v46 }
 0x821   : > { %9707 = vmatprep.mubr.msk.bf16.mxu1 %vm482_vm13, %v15527_v27 }
 0x828   : > { %9708 = vmatmul.mubr.msk.bf16.gmra.mrb[20].mxu1 %vm482_vm13, %v15533_v18 }
 0x829   : > { %v5887_v29 = vpop.permute.xlu1 %5886  ;;  %9711 = vmatprep.mubr.msk.bf16.mxu1 %vm482_vm13, %v15535_v7 }
 0x82a   : > { %5952 = vst.msk [vmem:[#allocation2 + $0x189] sm:$0xff] %vm5920_vm15, %v5887_v29  ;;  %v5885_v51 = vpop.permute.xlu0 %5884  ;;  %v10370_v29 = vld [vmem:[%s16693_s12 + $0x88] sm:$0xff]  }
 0x82b   : > { %5951 = vst.msk [vmem:[#allocation2 + $0x181] sm:$0xff] %vm5920_vm15, %v5885_v51 }
 0x830   : > { %9712 = vmatmul.mubr.msk.bf16.gmra.mrb[24].mxu1 %vm482_vm13, %v15543_v31 }
 0x831   : > { %9715 = vmatprep.mubr.msk.bf16.mxu1 %vm482_vm13, %v15545_v52  ;;  %v7529_v8 = vld [vmem:[#allocation2 + $0x18a] sm:$0xff] }
 0x832   : > { %v7528_v17 = vld [vmem:[#allocation2 + $0x182] sm:$0xff] }
 0x833   : > { %v15551_v13 = vpack.c.bf16 %v7529_v8, %v7528_v17  ;;  %v8156_v8 = vld [vmem:[#allocation2 + $0xc9] sm:$0xff]  ;;  %v10372_v17 = vld [vmem:[%s16693_s12 + $0x98] sm:$0xff]  }
 0x834   : > { %v8181_v58 = vpack.c.bf16 %v8156_v8, %v8155_v4  ;;  %v8488_v4 = vld [vmem:[#allocation2 + $0x142] sm:$0xff]  ;;  %v8489_v8 = vld [vmem:[#allocation2 + $0x152] sm:$0xff] }
 0x835   : > { %9876 = vmatmul.mubr.msk.bf16.gmra.mrb[28].mxu0 %vm482_vm13, %v15551_v13 }
 0x836   : > { %9887 = vmatprep.mubr.msk.bf16.mxu0 %vm482_vm13, %v15482_v34 }
 0x838   : > { %9716 = vmatmul.mubr.msk.bf16.gmra.mrb[28].mxu1 %vm482_vm13, %v15557_v30 }
 0x839   : > { %9727 = vmatprep.mubr.msk.bf16.mxu1 %vm482_vm13, %v6564_v40 }
 0x83d   : > { %9888 = vmatmul.mubr.msk.bf16.vlgmr.msra.gmra.mrb[0].mxu0 %vm482_vm13, %v15492_v54 }
 0x83e   : > { %9920 = vmatpush3.bf16.msra.mxu0 %v15381_v57  ;;  %9891 = vmatprep.mubr.msk.bf16.mxu0 %vm482_vm13, %v15497_v36  ;;  %v10332_v57 = vld [vmem:[%s16693_s12 + $0xf8] sm:$0xff]  }
 0x83f   : > { %9921 = vmatprep.subr.bf16.mxu0 %v10328_v15 }
 0x840   : > { %9728 = vmatmul.mubr.msk.bf16.vlgmr.msra.gmra.mrb[0].mxu1 %vm482_vm13, %v15320_v16  ;;  %v10335_v16 = vld [vmem:[%s16693_s12 + $0x78] sm:$0xff]  }
 0x841   : > { %9731 = vmatprep.mubr.msk.bf16.mxu1 %vm482_vm13, %v15335_v20  ;;  %9760 = vmatpush3.bf16.msra.mxu1 %v15506_v0  ;;  %v10334_v20 = vld [vmem:[%s16693_s12 + $0x100] sm:$0xff]  }
 0x842   : > { %9922 = vmatpush3.bf16.msra.mxu0 %v10328_v15  ;;  %9761 = vmatprep.subr.bf16.mxu1 %v10331_v61  ;;  %v10369_v0 = vld [vmem:[%s16693_s12 + $0x80] sm:$0xff]   ;;  %v7197_v15 = vld [vmem:[#allocation2 + $0x111] sm:$0xff] }
 0x843   : > { %9923 = vmatprep.subr.bf16.mxu0 %v10330_v53 }
 0x845   : > { %9892 = vmatmul.mubr.msk.bf16.gmra.mrb[4].mxu0 %vm482_vm13, %v15508_v32  ;;  %9762 = vmatpush3.bf16.msra.mxu1 %v10331_v61  ;;  %v7217_v61 = vpack.c.bf16 %v7195_v21, %v7194_v26 }
 0x846   : > { %9895 = vmatprep.mubr.msk.bf16.mxu0 %vm482_vm13, %v15511_v10  ;;  %9924 = vmatpush3.bf16.msra.mxu0 %v10330_v53 }
 0x847   : > { %9925 = vmatprep.subr.bf16.mxu0 %v10332_v57  ;;  %9763 = vmatprep.subr.bf16.mxu1 %v10333_v19 }
 0x848   : > { %9732 = vmatmul.mubr.msk.bf16.gmra.mrb[4].mxu1 %vm482_vm13, %v15340_v2  ;;  %v7849_v2 = vld [vmem:[#allocation2 + $0x180] sm:$0xff] }
 0x849   : > { %9735 = vmatprep.mubr.msk.bf16.mxu1 %vm482_vm13, %v15365_v28  ;;  %9764 = vmatpush3.bf16.msra.mxu1 %v10333_v19  ;;  %v7850_v28 = vld [vmem:[#allocation2 + $0x188] sm:$0xff] }
 0x84a   : > { %9926 = vmatpush3.bf16.msra.mxu0 %v10332_v57  ;;  %9765 = vmatprep.subr.bf16.mxu1 %v10335_v16  ;;  %v8471_v57 = vld [vmem:[#allocation2 + $0x7a] sm:$0xff]  ;;  %v8472_v19 = vld [vmem:[#allocation2 + $0x82] sm:$0xff] }
 0x84b   : > { %9959 = vmatprep.subr.bf16.mxu0 %v10334_v20 }
 0x84d   : > { %9896 = vmatmul.mubr.msk.bf16.gmra.mrb[8].mxu0 %vm482_vm13, %v15517_v14  ;;  %9766 = vmatpush3.bf16.msra.mxu1 %v10335_v16  ;;  %v8473_v16 = vld [vmem:[#allocation2 + $0x92] sm:$0xff] }
 0x84e   : > { %9899 = vmatprep.mubr.msk.bf16.mxu0 %vm482_vm13, %v15519_v48  ;;  %9999 = vmatprep.subr.bf16.mxu1 %v10369_v0 }
 0x850   : > { %9736 = vmatmul.mubr.msk.bf16.gmra.mrb[8].mxu1 %vm482_vm13, %v15370_v22  ;;  %v15636_v22 = vpack.c.bf16 %v7850_v28, %v7849_v2  ;;  %v7198_v2 = vld [vmem:[#allocation2 + $0x121] sm:$0xff]  ;;  %v7199_v28 = vld [vmem:[#allocation2 + $0x129] sm:$0xff] }
 0x851   : > { %9739 = vmatprep.mubr.msk.bf16.mxu1 %vm482_vm13, %v15385_v9  ;;  %v7851_v9 = vld [vmem:[#allocation2 + $0x198] sm:$0xff] }
 0x855   : > { %9900 = vmatmul.mubr.msk.bf16.gmra.mrb[12].mxu0 %vm482_vm13, %v15525_v46 }
 0x856   : > { %9903 = vmatprep.mubr.msk.bf16.mxu0 %vm482_vm13, %v15527_v27 }
 0x858   : > { %9740 = vmatmul.mubr.msk.bf16.gmra.mrb[12].mxu1 %vm482_vm13, %v15390_v49  ;;  %v7852_v49 = vld [vmem:[#allocation2 + $0x1a0] sm:$0xff] }
 0x859   : > { %9743 = vmatprep.mubr.msk.bf16.mxu1 %vm482_vm13, %v15410_v42  ;;  %v7868_v42 = vpack.c.bf16 %v7852_v49, %v7851_v9  ;;  %v7200_v9 = vld [vmem:[#allocation2 + $0x139] sm:$0xff]  ;;  %v7201_v49 = vld [vmem:[#allocation2 + $0x141] sm:$0xff] }
 0x85d   : > { %9904 = vmatmul.mubr.msk.bf16.gmra.mrb[16].mxu0 %vm482_vm13, %v15533_v18 }
 0x85e   : > { %9907 = vmatprep.mubr.msk.bf16.mxu0 %vm482_vm13, %v15535_v7 }
 0x860   : > { %9744 = vmatmul.mubr.msk.bf16.gmra.mrb[16].mxu1 %vm482_vm13, %v15412_v6  ;;  %v8143_v6 = vld [vmem:[#allocation2 + $0x31] sm:$0xff] }
 0x861   : > { %9747 = vmatprep.mubr.msk.bf16.mxu1 %vm482_vm13, %v15422_v25  ;;  %v8144_v25 = vld [vmem:[#allocation2 + $0x39] sm:$0xff] }
 0x865   : > { %9908 = vmatmul.mubr.msk.bf16.gmra.mrb[20].mxu0 %vm482_vm13, %v15543_v31 }
 0x866   : > { %9911 = vmatprep.mubr.msk.bf16.mxu0 %vm482_vm13, %v15545_v52 }
 0x868   : > { %9748 = vmatmul.mubr.msk.bf16.gmra.mrb[20].mxu1 %vm482_vm13, %v15426_v3  ;;  %v8175_v3 = vpack.c.bf16 %v8144_v25, %v8143_v6  ;;  %v7220_v6 = vpack.c.bf16 %v7201_v49, %v7200_v9  ;;  %v8475_v25 = vld [vmem:[#allocation2 + $0xaa] sm:$0xff] }
 0x869   : > { %9751 = vmatprep.mubr.msk.bf16.mxu1 %vm482_vm13, %v15446_v55  ;;  %v8145_v55 = vld [vmem:[#allocation2 + $0x49] sm:$0xff] }
 0x86a   : > { %v8176_v11 = vpack.c.bf16 %v8146_v5, %v8145_v55  ;;  %v8477_v55 = vld [vmem:[#allocation2 + $0xc2] sm:$0xff]  ;;  %v8478_v5 = vld [vmem:[#allocation2 + $0xca] sm:$0xff] }
 0x86d   : > { %9912 = vmatmul.mubr.msk.bf16.gmra.mrb[24].mxu0 %vm482_vm13, %v15557_v30 }
 0x86e   : > { %9915 = vmatprep.mubr.msk.bf16.mxu0 %vm482_vm13, %v15636_v22 }
 0x870   : > { %9752 = vmatmul.mubr.msk.bf16.gmra.mrb[24].mxu1 %vm482_vm13, %v15448_v24  ;;  %v8147_v24 = vld [vmem:[#allocation2 + $0x61] sm:$0xff] }
 0x871   : > { %9755 = vmatprep.mubr.msk.bf16.mxu1 %vm482_vm13, %v15460_v23  ;;  %v10336_v23 = vld [vmem:[%s16693_s12 + $0x108] sm:$0xff]   ;;  %v8177_v1 = vpack.c.bf16 %v8148_v12, %v8147_v24  ;;  %v7202_v12 = vld [vmem:[#allocation2 + $0x151] sm:$0xff] }
 0x875   : > { %9916 = vmatmul.mubr.msk.bf16.gmra.mrb[28].mxu0 %vm482_vm13, %v7868_v42  ;;  %v7219_v42 = vpack.c.bf16 %v7199_v28, %v7198_v2 }
 0x876   : > { %9927 = vmatprep.mubr.msk.bf16.mxu0 %vm482_vm13, %v8175_v3  ;;  %v8476_v3 = vld [vmem:[#allocation2 + $0xb2] sm:$0xff] }
 0x877   : > { %v8502_v24 = vpack.c.bf16 %v8476_v3, %v8475_v25 }
 0x878   : > { %9756 = vmatmul.mubr.msk.bf16.gmra.mrb[28].mxu1 %vm482_vm13, %v15470_v50  ;;  %v10337_v50 = vld [vmem:[%s16693_s12 + $0x110] sm:$0xff]  }
 0x879   : > { %9767 = vmatprep.mubr.msk.bf16.mxu1 %vm482_vm13, %v15477_v56  ;;  %v8149_v56 = vld [vmem:[#allocation2 + $0x79] sm:$0xff] }
 0x87a   : > { %v8178_v51 = vpack.c.bf16 %v8150_v47, %v8149_v56  ;;  %v8480_v56 = vld [vmem:[#allocation2 + $0xe2] sm:$0xff]  ;;  %v8481_v47 = vld [vmem:[#allocation2 + $0xf2] sm:$0xff] }
 0x87d   : > { %9928 = vmatmul.mubr.msk.bf16.vlgmr.msra.gmra.mrb[0].mxu0 %vm482_vm13, %v8176_v11  ;;  %v7203_v11 = vld [vmem:[#allocation2 + $0x159] sm:$0xff] }
 0x87e   : > { %9960 = vmatpush3.bf16.msra.mxu0 %v10334_v20  ;;  %9931 = vmatprep.mubr.msk.bf16.mxu0 %vm482_vm13, %v8177_v1  ;;  %v8474_v20 = vld [vmem:[#allocation2 + $0x9a] sm:$0xff]  ;;  %v7221_v1 = vpack.c.bf16 %v7203_v11, %v7202_v12 }
 0x87f   : > { %9961 = vmatprep.subr.bf16.mxu0 %v10336_v23 }
 0x880   : > { %9768 = vmatmul.mubr.msk.bf16.vlgmr.msra.gmra.mrb[0].mxu1 %vm482_vm13, %v15482_v34  ;;  %v10338_v34 = vld [vmem:[%s16693_s12 + $0x118] sm:$0xff]  }
 0x881   : > { %9771 = vmatprep.mubr.msk.bf16.mxu1 %vm482_vm13, %v15492_v54  ;;  %10003 = vmatpush3.bf16.msra.mxu1 %v10369_v0  ;;  %v10371_v54 = vld [vmem:[%s16693_s12 + $0x90] sm:$0xff]   ;;  %v8500_v0 = vpack.c.bf16 %v8472_v19, %v8471_v57 }
 0x882   : > { %9962 = vmatpush3.bf16.msra.mxu0 %v10336_v23  ;;  %10000 = vmatprep.subr.bf16.mxu1 %v10370_v29  ;;  %v8503_v23 = vpack.c.bf16 %v8478_v5, %v8477_v55 }
 0x883   : > { %9963 = vmatprep.subr.bf16.mxu0 %v10337_v50 }
 0x885   : > { %9932 = vmatmul.mubr.msk.bf16.gmra.mrb[4].mxu0 %vm482_vm13, %v8178_v51  ;;  %10004 = vmatpush3.bf16.msra.mxu1 %v10370_v29  ;;  %v8505_v29 = vpack.c.bf16 %v8482_v43, %v8481_v47  ;;  %v8483_v51 = vld [vmem:[#allocation2 + $0x10a] sm:$0xff] }
 0x886   : > { %9935 = vmatprep.mubr.msk.bf16.mxu0 %vm482_vm13, %v8179_v63  ;;  %9964 = vmatpush3.bf16.msra.mxu0 %v10337_v50  ;;  %v8479_v50 = vld [vmem:[#allocation2 + $0xda] sm:$0xff]  ;;  %v8485_v63 = vld [vmem:[#allocation2 + $0x122] sm:$0xff] }
 0x887   : > { %9965 = vmatprep.subr.bf16.mxu0 %v10338_v34  ;;  %10001 = vmatprep.subr.bf16.mxu1 %v10371_v54  ;;  %v8504_v44 = vpack.c.bf16 %v8480_v56, %v8479_v50 }
 0x888   : > { %9772 = vmatmul.mubr.msk.bf16.gmra.mrb[4].mxu1 %vm482_vm13, %v15497_v36  ;;  %v8465_v36 = vld [vmem:[#allocation2 + $0x32] sm:$0xff] }
 0x889   : > { %9775 = vmatprep.mubr.msk.bf16.mxu1 %vm482_vm13, %v15508_v32  ;;  %10005 = vmatpush3.bf16.msra.mxu1 %v10371_v54  ;;  %v8466_v32 = vld [vmem:[#allocation2 + $0x3a] sm:$0xff]  ;;  %v8486_v54 = vld [vmem:[#allocation2 + $0x12a] sm:$0xff] }
 0x88a   : > { %9966 = vmatpush3.bf16.msra.mxu0 %v10338_v34  ;;  %10002 = vmatprep.subr.bf16.mxu1 %v10372_v17  ;;  %v8484_v34 = vld [vmem:[#allocation2 + $0x112] sm:$0xff]  ;;  %v8507_v33 = vpack.c.bf16 %v8486_v54, %v8485_v63 }
 0x88b   : > { %v8506_v41 = vpack.c.bf16 %v8484_v34, %v8483_v51 }
 0x88d   : > { %9936 = vmatmul.mubr.msk.bf16.gmra.mrb[8].mxu0 %vm482_vm13, %v8180_v39  ;;  %10006 = vmatpush3.bf16.msra.mxu1 %v10372_v17  ;;  %v8490_v17 = vld [vmem:[#allocation2 + $0x15a] sm:$0xff] }
 0x88e   : > { %9939 = vmatprep.mubr.msk.bf16.mxu0 %vm482_vm13, %v8181_v58  ;;  %v8509_v58 = vpack.c.bf16 %v8490_v17, %v8489_v8 }
 0x890   : > { %9776 = vmatmul.mubr.msk.bf16.gmra.mrb[8].mxu1 %vm482_vm13, %v15511_v10  ;;  %v8497_v10 = vpack.c.bf16 %v8466_v32, %v8465_v36 }
 0x891   : > { %9779 = vmatprep.mubr.msk.bf16.mxu1 %vm482_vm13, %v15517_v14  ;;  %v7192_v14 = vld [vmem:[#allocation2 + $0xd9] sm:$0xff] }
 0x895   : > { %9940 = vmatmul.mubr.msk.bf16.gmra.mrb[12].mxu0 %vm482_vm13, %v15354_v35  ;;  %v8171_v35 = vld [vmem:[#allocation2 + $0x181] sm:$0xff] }
 0x896   : > { %9943 = vmatprep.mubr.msk.bf16.mxu0 %vm482_vm13, %v15387_v59  ;;  %v8172_v59 = vld [vmem:[#allocation2 + $0x189] sm:$0xff] }
 0x898   : > { %9780 = vmatmul.mubr.msk.bf16.gmra.mrb[12].mxu1 %vm482_vm13, %v15519_v48  ;;  %v7193_v48 = vld [vmem:[#allocation2 + $0xe1] sm:$0xff] }
 0x899   : > { %9783 = vmatprep.mubr.msk.bf16.mxu1 %vm482_vm13, %v15525_v46  ;;  %v7216_v46 = vpack.c.bf16 %v7193_v48, %v7192_v14 }
 0x89d   : > { %9944 = vmatmul.mubr.msk.bf16.gmra.mrb[16].mxu0 %vm482_vm13, %v15402_v60  ;;  %v15712_v60 = vpack.c.bf16 %v8172_v59, %v8171_v35  ;;  %v8491_v35 = vld [vmem:[#allocation2 + $0x16a] sm:$0xff]  ;;  %v8492_v59 = vld [vmem:[#allocation2 + $0x172] sm:$0xff] }
 0x89e   : > { %9947 = vmatprep.mubr.msk.bf16.mxu0 %vm482_vm13, %v15424_v37  ;;  %v8173_v37 = vld [vmem:[#allocation2 + $0x199] sm:$0xff] }
 0x8a0   : > { %9784 = vmatmul.mubr.msk.bf16.gmra.mrb[16].mxu1 %vm482_vm13, %v15527_v27  ;;  %v8467_v27 = vld [vmem:[#allocation2 + $0x4a] sm:$0xff] }
 0x8a1   : > { %9787 = vmatprep.mubr.msk.bf16.mxu1 %vm482_vm13, %v15533_v18  ;;  %v8468_v18 = vld [vmem:[#allocation2 + $0x52] sm:$0xff] }
 0x8a5   : > { %9948 = vmatmul.mubr.msk.bf16.gmra.mrb[20].mxu0 %vm482_vm13, %v15438_v62  ;;  %v8174_v62 = vld [vmem:[#allocation2 + $0x1a1] sm:$0xff] }
 0x8a6   : > { %9951 = vmatprep.mubr.msk.bf16.mxu0 %vm482_vm13, %v15458_v45  ;;  %v8190_v45 = vpack.c.bf16 %v8174_v62, %v8173_v37  ;;  %v8495_v37 = vld [vmem:[#allocation2 + $0x19a] sm:$0xff]  ;;  %v8496_v62 = vld [vmem:[#allocation2 + $0x1a2] sm:$0xff] }
 0x8a8   : > { %9788 = vmatmul.mubr.msk.bf16.gmra.mrb[20].mxu1 %vm482_vm13, %v15535_v7  ;;  %v8469_v7 = vld [vmem:[#allocation2 + $0x62] sm:$0xff] }
 0x8a9   : > { %9791 = vmatprep.mubr.msk.bf16.mxu1 %vm482_vm13, %v15543_v31  ;;  %v8470_v31 = vld [vmem:[#allocation2 + $0x6a] sm:$0xff] }
 0x8aa   : > { %v8499_v40 = vpack.c.bf16 %v8470_v31, %v8469_v7 }
 0x8ad   : > { %9952 = vmatmul.mubr.msk.bf16.gmra.mrb[24].mxu0 %vm482_vm13, %v15468_v38 }
 0x8ae   : > { %9955 = vmatprep.mubr.msk.bf16.mxu0 %vm482_vm13, %v15712_v60 }
 0x8b0   : > { %9792 = vmatmul.mubr.msk.bf16.gmra.mrb[24].mxu1 %vm482_vm13, %v15545_v52  ;;  %v8498_v52 = vpack.c.bf16 %v8468_v18, %v8467_v27 }
 0x8b1   : > { %9795 = vmatprep.mubr.msk.bf16.mxu1 %vm482_vm13, %v15557_v30  ;;  %v7196_v30 = vld [vmem:[#allocation2 + $0x109] sm:$0xff] }
 0x8b2   : > { %v7218_v53 = vpack.c.bf16 %v7197_v15, %v7196_v30 }
 0x8b5   : > { %9956 = vmatmul.mubr.msk.bf16.gmra.mrb[28].mxu0 %vm482_vm13, %v8190_v45  ;;  %v8512_v45 = vpack.c.bf16 %v8496_v62, %v8495_v37 }
 0x8b6   : > { %9967 = vmatprep.mubr.msk.bf16.mxu0 %vm482_vm13, %v8497_v10 }
 0x8b8   : > { %9796 = vmatmul.mubr.msk.bf16.gmra.mrb[28].mxu1 %vm482_vm13, %v15636_v22  ;;  %v8501_v22 = vpack.c.bf16 %v8474_v20, %v8473_v16 }
 0x8b9   : > { %9823 = vmatprep.mubr.msk.bf16.mxu1 %vm482_vm13, %v7216_v46 }
 0x8bd   : > { %9968 = vmatmul.mubr.msk.bf16.vlgmr.msra.gmra.mrb[0].mxu0 %vm482_vm13, %v8498_v52 }
 0x8be   : > { %9971 = vmatprep.mubr.msk.bf16.mxu0 %vm482_vm13, %v8499_v40 }
 0x8c0   : > { %9824 = vmatmul.mubr.msk.bf16.vlgmr.msra.gmra.mrb[16].mxu1 %vm482_vm13, %v7217_v61 }
 0x8c1   : > { %9827 = vmatprep.mubr.msk.bf16.mxu1 %vm482_vm13, %v7218_v53 }
 0x8c5   : > { %9972 = vmatmul.mubr.msk.bf16.gmra.mrb[4].mxu0 %vm482_vm13, %v8500_v0 }
 0x8c6   : > { %9975 = vmatprep.mubr.msk.bf16.mxu0 %vm482_vm13, %v8501_v22 }
 0x8c8   : > { %9828 = vmatmul.mubr.msk.bf16.gmra.mrb[20].mxu1 %vm482_vm13, %v7219_v42 }
 0x8c9   : > { %9831 = vmatprep.mubr.msk.bf16.mxu1 %vm482_vm13, %v7220_v6 }
 0x8cd   : > { %9976 = vmatmul.mubr.msk.bf16.gmra.mrb[8].mxu0 %vm482_vm13, %v8502_v24 }
 0x8ce   : > { %9979 = vmatprep.mubr.msk.bf16.mxu0 %vm482_vm13, %v8503_v23 }
 0x8d0   : > { %9832 = vmatmul.mubr.msk.bf16.gmra.mrb[24].mxu1 %vm482_vm13, %v7221_v1 }
 0x8d1   : > { %9835 = vmatprep.mubr.msk.bf16.mxu1 %vm482_vm13, %v15468_v38  ;;  %v8487_v38 = vld [vmem:[#allocation2 + $0x13a] sm:$0xff] }
 0x8d2   : > { %v8508_v39 = vpack.c.bf16 %v8488_v4, %v8487_v38 }
 0x8d5   : > { %9980 = vmatmul.mubr.msk.bf16.gmra.mrb[12].mxu0 %vm482_vm13, %v8504_v44 }
 0x8d6   : > { %9983 = vmatprep.mubr.msk.bf16.mxu0 %vm482_vm13, %v8505_v29 }
 0x8d8   : > { %9836 = vmatmul.mubr.msk.bf16.gmra.mrb[28].mxu1 %vm482_vm13, %v15712_v60  ;;  %v8510_v60 = vpack.c.bf16 %v8492_v59, %v8491_v35 }
 0x8dd   : > { %9984 = vmatmul.mubr.msk.bf16.gmra.mrb[16].mxu0 %vm482_vm13, %v8506_v41 }
 0x8de   : > { %9987 = vmatprep.mubr.msk.bf16.mxu0 %vm482_vm13, %v8507_v33 }
 0x8e5   : > { %9988 = vmatmul.mubr.msk.bf16.gmra.mrb[20].mxu0 %vm482_vm13, %v8508_v39 }
 0x8e6   : > { %9991 = vmatprep.mubr.msk.bf16.mxu0 %vm482_vm13, %v8509_v58 }
 0x8ed   : > { %9992 = vmatmul.mubr.msk.bf16.gmra.mrb[24].mxu0 %vm482_vm13, %v8510_v60 }
 0x8ee   : > { %9995 = vmatprep.mubr.msk.bf16.mxu0 %vm482_vm13, %v15551_v13 }
 0x8f5   : > { %9996 = vmatmul.mubr.msk.bf16.gmra.mrb[28].mxu0 %vm482_vm13, %v8512_v45 }
 0x953   : > { %v9769_v36 = vpop.f32.mrb[0].mxu1 }
 0x954   : > { %v7017_v32 = vpop.f32.mrb[1].mxu1 }
 0x955   : > { %v9770_v10 = vpop.f32.mrb[2].mxu1 }
 0x956   : > { %v7020_v14 = vpop.f32.mrb[3].mxu1 }
 0x95b   : > { %v9773_v48 = vpop.f32.mrb[4].mxu1 }
 0x95c   : > { %v7033_v46 = vpop.f32.mrb[5].mxu1 }
 0x95d   : > { %v9774_v27 = vpop.f32.mrb[6].mxu1 }
 0x95e   : > { %v7036_v18 = vpop.f32.mrb[7].mxu1 }
 0x963   : > { %v9777_v7 = vpop.f32.mrb[8].mxu1 }
 0x964   : > { %v7049_v31 = vpop.f32.mrb[9].mxu1 }
 0x965   : > { %v9778_v52 = vpop.f32.mrb[10].mxu1 }
 0x966   : > { %v7052_v26 = vpop.f32.mrb[11].mxu1 }
 0x96b   : > { %v9781_v21 = vpop.f32.mrb[12].mxu1 }
 0x96c   : > { %v7065_v40 = vpop.f32.mrb[13].mxu1 }
 0x96d   : > { %v9782_v13 = vpop.f32.mrb[14].mxu1 }
 0x96e   : > { %v7068_v30 = vpop.f32.mrb[15].mxu1 }
 0x990   : > { %v9969_v15 = vpop.f32.mrb[0].mxu0 }
 0x991   : > { %v10007_v61 = vadd.f32 %v9969_v15, %v9769_v36  ;;  %v8628_v53 = vpop.f32.mrb[1].mxu0 }
 0x992   : > { %v10008_v57 = vadd.f32 %v8628_v53, %v7017_v32  ;;  %v9970_v19 = vpop.f32.mrb[2].mxu0 }
 0x993   : > { %v10009_v16 = vadd.f32 %v9970_v19, %v9770_v10  ;;  %v8631_v20 = vpop.f32.mrb[3].mxu0  ;;  %v9825_v0 = vpop.f32.mrb[16].mxu1 }
 0x994   : > { %v10010_v2 = vadd.f32 %v8631_v20, %v7020_v14  ;;  %8787 = vxpose.xlu0.b32.start [1/16] (narrow) %v10008_v57, 16  ;;  %v7403_v28 = vpop.f32.mrb[17].mxu1 }
 0x995   : > { %v9826_v22 = vpop.f32.mrb[18].mxu1 }
 0x996   : > { %v7406_v9 = vpop.f32.mrb[19].mxu1 }
 0x998   : > { %8788 = vxpose.xlu0.b32.cont [2/16] (narrow) %v10010_v2, 16  ;;  %v9973_v49 = vpop.f32.mrb[4].mxu0 }
 0x999   : > { %v10011_v42 = vadd.f32 %v9973_v49, %v9773_v48  ;;  %v8644_v6 = vpop.f32.mrb[5].mxu0 }
 0x99a   : > { %v10012_v25 = vadd.f32 %v8644_v6, %v7033_v46  ;;  %v9974_v3 = vpop.f32.mrb[6].mxu0 }
 0x99b   : > { %v10013_v55 = vadd.f32 %v9974_v3, %v9774_v27  ;;  %v8647_v5 = vpop.f32.mrb[7].mxu0  ;;  %v9829_v24 = vpop.f32.mrb[20].mxu1 }
 0x99c   : > { %v10014_v12 = vadd.f32 %v8647_v5, %v7036_v18  ;;  %8789 = vxpose.xlu0.b32.cont [3/16] (narrow) %v10007_v61, 16  ;;  %v7419_v11 = vpop.f32.mrb[21].mxu1  ;;  %v8856_v3 = vpop.permute.xlu1 %8855 }
 0x99d   : > { %v9830_v23 = vpop.f32.mrb[22].mxu1 }
 0x99e   : > { %v7422_v1 = vpop.f32.mrb[23].mxu1 }
 0x9a0   : > { %8790 = vxpose.xlu0.b32.cont [4/16] (narrow) %v10009_v16, 16  ;;  %v9977_v50 = vpop.f32.mrb[8].mxu0 }
 0x9a1   : > { %v10015_v56 = vadd.f32 %v9977_v50, %v9777_v7  ;;  %v8660_v47 = vpop.f32.mrb[9].mxu0 }
 0x9a2   : > { %v10016_v43 = vadd.f32 %v8660_v47, %v7049_v31  ;;  %v9978_v44 = vpop.f32.mrb[10].mxu0 }
 0x9a3   : > { %v10017_v29 = vadd.f32 %v9978_v44, %v9778_v52  ;;  %v8663_v51 = vpop.f32.mrb[11].mxu0  ;;  %v9833_v34 = vpop.f32.mrb[24].mxu1 }
 0x9a4   : > { %v10018_v63 = vadd.f32 %v8663_v51, %v7052_v26  ;;  %8791 = vxpose.xlu0.b32.cont [5/16] (narrow) %v10012_v25, 16  ;;  %v7435_v54 = vpop.f32.mrb[25].mxu1 }
 0x9a5   : > { %v9834_v41 = vpop.f32.mrb[26].mxu1 }
 0x9a6   : > { %v7438_v33 = vpop.f32.mrb[27].mxu1 }
 0x9a8   : > { %8792 = vxpose.xlu0.b32.cont [6/16] (narrow) %v10014_v12, 16  ;;  %v9981_v38 = vpop.f32.mrb[12].mxu0 }
 0x9a9   : > { %v10019_v4 = vadd.f32 %v9981_v38, %v9781_v21  ;;  %v8676_v8 = vpop.f32.mrb[13].mxu0 }
 0x9aa   : > { %v10020_v17 = vadd.f32 %v8676_v8, %v7065_v40  ;;  %v9982_v39 = vpop.f32.mrb[14].mxu0 }
 0x9ab   : > { %v10021_v58 = vadd.f32 %v9982_v39, %v9782_v13  ;;  %v8679_v35 = vpop.f32.mrb[15].mxu0  ;;  %v9837_v59 = vpop.f32.mrb[28].mxu1 }
 0x9ac   : > { %v10022_v60 = vadd.f32 %v8679_v35, %v7068_v30  ;;  %8793 = vxpose.xlu0.b32.cont [7/16] (narrow) %v10011_v42, 16  ;;  %v7451_v37 = vpop.f32.mrb[29].mxu1 }
 0x9ad   : > { %v9838_v62 = vpop.f32.mrb[30].mxu1 }
 0x9ae   : > { %v7454_v45 = vpop.f32.mrb[31].mxu1 }
 0x9b0   : > { %8794 = vxpose.xlu0.b32.cont [8/16] (narrow) %v10013_v55, 16  ;;  %v9985_v36 = vpop.f32.mrb[16].mxu0  ;;  %v8861_v55 = vpop.permute.xlu1 %8860 }
 0x9b1   : > { %v10023_v32 = vadd.f32 %v9985_v36, %v9825_v0  ;;  %v8692_v10 = vpop.f32.mrb[17].mxu0 }
 0x9b2   : > { %v10024_v14 = vadd.f32 %v8692_v10, %v7403_v28  ;;  %v9986_v48 = vpop.f32.mrb[18].mxu0 }
 0x9b3   : > { %v10025_v46 = vadd.f32 %v9986_v48, %v9826_v22  ;;  %v8695_v27 = vpop.f32.mrb[19].mxu0 }
 0x9b4   : > { %v10026_v18 = vadd.f32 %v8695_v27, %v7406_v9  ;;  %8795 = vxpose.xlu0.b32.cont [9/16] (narrow) %v10016_v43, 16  ;;  %8819 = vxpose.xlu1.b32.start [1/16] (narrow) %v10024_v14, 16  ;;  %v8872_v5 = vpop.permute.xlu1 %8871 }
 0x9b8   : > { %8796 = vxpose.xlu0.b32.cont [10/16] (narrow) %v10018_v63, 16  ;;  %v9989_v7 = vpop.f32.mrb[20].mxu0  ;;  %8820 = vxpose.xlu1.b32.cont [2/16] (narrow) %v10026_v18, 16 }
 0x9b9   : > { %v10027_v31 = vadd.f32 %v9989_v7, %v9829_v24  ;;  %v8708_v52 = vpop.f32.mrb[21].mxu0 }
 0x9ba   : > { %v10028_v26 = vadd.f32 %v8708_v52, %v7419_v11  ;;  %v9990_v21 = vpop.f32.mrb[22].mxu0 }
 0x9bb   : > { %v10029_v40 = vadd.f32 %v9990_v21, %v9830_v23  ;;  %v8711_v13 = vpop.f32.mrb[23].mxu0 }
 0x9bc   : > { %v10030_v30 = vadd.f32 %v8711_v13, %v7422_v1  ;;  %8797 = vxpose.xlu0.b32.cont [11/16] (narrow) %v10015_v56, 16  ;;  %8821 = vxpose.xlu1.b32.cont [3/16] (narrow) %v10023_v32, 16  ;;  %v8877_v56 = vpop.permute.xlu1 %8876 }
 0x9c0   : > { %8798 = vxpose.xlu0.b32.cont [12/16] (narrow) %v10017_v29, 16  ;;  %v9993_v15 = vpop.f32.mrb[24].mxu0  ;;  %8822 = vxpose.xlu1.b32.cont [4/16] (narrow) %v10025_v46, 16 }
 0x9c1   : > { %v10031_v61 = vadd.f32 %v9993_v15, %v9833_v34  ;;  %v8724_v53 = vpop.f32.mrb[25].mxu0 }
 0x9c2   : > { %v10032_v57 = vadd.f32 %v8724_v53, %v7435_v54  ;;  %v9994_v19 = vpop.f32.mrb[26].mxu0 }
 0x9c3   : > { %v10033_v16 = vadd.f32 %v9994_v19, %v9834_v41  ;;  %v8727_v20 = vpop.f32.mrb[27].mxu0 }
 0x9c4   : > { %v10034_v0 = vadd.f32 %v8727_v20, %v7438_v33  ;;  %8799 = vxpose.xlu0.b32.cont [13/16] (narrow) %v10020_v17, 16  ;;  %8823 = vxpose.xlu1.b32.cont [5/16] (narrow) %v10028_v26, 16 }
 0x9c8   : > { %8800 = vxpose.xlu0.b32.cont [14/16] (narrow) %v10022_v60, 16  ;;  %v9997_v2 = vpop.f32.mrb[28].mxu0  ;;  %8824 = vxpose.xlu1.b32.cont [6/16] (narrow) %v10030_v30, 16 }
 0x9c9   : > { %v10035_v28 = vadd.f32 %v9997_v2, %v9837_v59  ;;  %v8740_v22 = vpop.f32.mrb[29].mxu0 }
 0x9ca   : > { %v10036_v9 = vadd.f32 %v8740_v22, %v7451_v37  ;;  %v9998_v49 = vpop.f32.mrb[30].mxu0 }
 0x9cb   : > { %v10037_v42 = vadd.f32 %v9998_v49, %v9838_v62  ;;  %v8743_v6 = vpop.f32.mrb[31].mxu0 }
 0x9cc   : > { %v10038_v25 = vadd.f32 %v8743_v6, %v7454_v45  ;;  %8801 = vxpose.xlu0.b32.cont [15/16] (narrow) %v10019_v4, 16  ;;  %8825 = vxpose.xlu1.b32.cont [7/16] (narrow) %v10027_v31, 16 }
 0x9d0   : > { %8802 = vxpose.xlu0.b32.end [16/16] (narrow) %v10021_v58, 16  ;;  %8826 = vxpose.xlu1.b32.cont [8/16] (narrow) %v10029_v40, 16 }
 0x9d4   : > { %8827 = vxpose.xlu1.b32.cont [9/16] (narrow) %v10032_v57, 16 }
 0x9d8   : > { %8828 = vxpose.xlu1.b32.cont [10/16] (narrow) %v10034_v0, 16 }
 0x9dc   : > { %8829 = vxpose.xlu1.b32.cont [11/16] (narrow) %v10031_v61, 16 }
 0x9e0   : > { %8830 = vxpose.xlu1.b32.cont [12/16] (narrow) %v10033_v16, 16 }
 0x9e4   : > { %8831 = vxpose.xlu1.b32.cont [13/16] (narrow) %v10036_v9, 16 }
 0x9e8   : > { %8832 = vxpose.xlu1.b32.cont [14/16] (narrow) %v10038_v25, 16 }
 0x9ec   : > { %8833 = vxpose.xlu1.b32.cont [15/16] (narrow) %v10035_v28, 16 }
 0x9f0   : > { %8834 = vxpose.xlu1.b32.end [16/16] (narrow) %v10037_v42, 16 }
 0xa14   : > { %v8803_v24 = vpop.trf.xlu0 }
 0xa15   : > { %v8863_v12 = vmul.f32 %v8856_v3, %v8803_v24 }
 0xa17   : > { %v8879_v11 = vadd.f32 %v8872_v5, %v8863_v12 }
 0xa18   : > { %v8804_v23 = vpop.trf.xlu0 }
 0xa19   : > { %v8883_v1 = vmax.f32 %v8879_v11, 0.0  ;;  %v8865_v50 = vmul.f32 %v8861_v55, %v8804_v23 }
 0xa1b   : > { %8887 = vst [vmem:[%s480_s7] sm:$0xff] %v8883_v1  ;;  %v8881_v47 = vadd.f32 %v8877_v56, %v8865_v50 }
 0xa1d   : > { %v8885_v43 = vmax.f32 %v8881_v47, 0.0 }
 0xa1f   : > { %8889 = vst [vmem:[%s480_s7 + $0x10] sm:$0xff] %v8885_v43 }
 0xa34   : > { %v8835_v44 = vpop.trf.xlu1 }
 0xa35   : > { %v8864_v29 = vmul.f32 %v8856_v3, %v8835_v44 }
 0xa37   : > { %v8880_v51 = vadd.f32 %v8872_v5, %v8864_v29 }
 0xa38   : > { %v8836_v34 = vpop.trf.xlu1 }
 0xa39   : > { %v8884_v63 = vmax.f32 %v8880_v51, 0.0  ;;  %v8866_v54 = vmul.f32 %v8861_v55, %v8836_v34 }
 0xa3b   : > { %8888 = vst [vmem:[%s480_s7 + $0x8] sm:$0xff] %v8884_v63  ;;  %v8882_v41 = vadd.f32 %v8877_v56, %v8866_v54 }
 0xa3d   : > { %v8886_v33 = vmax.f32 %v8882_v41, 0.0 }
 0xa3f   : > { %8890 = vst [vmem:[%s480_s7 + $0x18] sm:$0xff] %v8886_v33 }
 0xa40 PF: > { %s16764_s17 = sld [smem:[#allocation11_spill]] }
 0xa46   : > { %s24_s21 = sadd.s32 1, %s16764_s17  }
 0xa47   : > { %p21_p5 = scmp.ge.s32.totalorder %s24_s21, 4  }
 0xa49   :  { %23 = sbr.rel (!%p21_p5) target bundleno = 16 (0x10), region = 123 }
 0xa50   :  { %8912 = vsyncpa [#allocation6], 1 }
 0xa51   :  { %8914 = vsyncpa [#allocation6 + $0x1], 1 }
 0xa52   :  { %8915 = vsyncpa [#allocation8], 1 }

</bundles_post_ra>
